<compile_context>
chip_gen: v7x
topology: tpu7x:2x2x1
jax: 0.10.0
libtpu: 0.0.40
codegen_flags: <defaults>
</compile_context>

<pallas_src>
import jax
import jax.numpy as jnp
import numpy as np
from jax import lax
from jax.experimental import pallas as pl
from jax.experimental.pallas import tpu as pltpu

M = 256  # columns per phase chunk == final activation length (16384 / 64)

LAYER_CFG = [
    # (C_in, C_out, dilated)
    (15, 24, True),
    (24, 32, True),
    (32, 48, True),
    (48, 64, False),
    (64, 96, False),
    (96, 128, False),
]

# Padded (C_in, C_out) per layer so every tap offset t*c_pad in the stacked
# bf16 scratch is a multiple of 16 (packed-sublane tile): 15->16, 24->32.
_PAD_CFG = [(16, 32), (32, 32), (32, 48), (48, 64), (64, 96), (96, 128)]


# ----------------------------------------------------------------------------
# Static scatter plans (built at import/trace time, pure Python)
# ----------------------------------------------------------------------------
def _make_plan(p_in, out_phases, dilated, in_stride):
    """For each computed output phase (chunk column jc) and tap t of a stride-2
    conv, which SOURCE chunk (and +-1-column edge shift) fills stacked-operand
    slot (t, jc).  Source chunk j holds input phase in_stride*j.

    Returns dict: src_chunk -> list of (tap, jc, shift) with shift in
    {0, +1 (shift right, zero col 0), -1 (shift left, zero last col)}.
    """
    d = 2 if dilated else 1
    plan = {}
    for jc, r in enumerate(out_phases):
        for t in range(3):
            q = 2 * r + d * (t - 1)          # needed input phase (may wrap)
            if q < 0:
                phase, shift = q + p_in, 1   # previous m -> shift right
            elif q >= p_in:
                phase, shift = q - p_in, -1  # next m -> shift left
            else:
                phase, shift = q, 0
            assert phase % in_stride == 0
            plan.setdefault(phase // in_stride, []).append((t, jc, shift))
    return plan


def _check_plan(plan, n_chunks, n_src):
    slots = [(t, jc) for dests in plan.values() for (t, jc, _s) in dests]
    assert sorted(slots) == sorted((t, jc) for t in range(3) for jc in range(n_chunks))
    assert set(plan) <= set(range(n_src))


# Layers 2/3 are dilated -> layers 1/2 only compute even output phases; the
# wrapper only ships even input samples (layer 1 never reads odd ones).
_PLAN1 = _make_plan(64, tuple(range(0, 32, 2)), True, 2)   # s1 from input chunks
_PLAN2 = _make_plan(32, tuple(range(0, 16, 2)), True, 2)   # s2 from layer-1 output
_PLAN3 = _make_plan(16, tuple(range(0, 8)), True, 2)       # s3 from layer-2 output
_PLAN4 = _make_plan(8, tuple(range(0, 4)), False, 1)
_PLAN5 = _make_plan(4, tuple(range(0, 2)), False, 1)
_PLAN6 = _make_plan(2, tuple(range(0, 1)), False, 1)

_check_plan(_PLAN1, 16, 32)
_check_plan(_PLAN2, 8, 16)
_check_plan(_PLAN3, 8, 8)
_check_plan(_PLAN4, 4, 8)
_check_plan(_PLAN5, 2, 4)
_check_plan(_PLAN6, 1, 2)

# Stacked-operand scratch (bf16): (3 * C_in_pad, n_computed_output_phases * M)
_SCRATCH_SHAPES = [
    (48, 16 * M),    # s1
    (96, 8 * M),     # s2
    (96, 8 * M),     # s3
    (144, 4 * M),    # s4
    (192, 2 * M),    # s5
    (288, 1 * M),    # s6
]


# ----------------------------------------------------------------------------
# Pallas kernel
# ----------------------------------------------------------------------------
def _shift_right1(c):
    """out[:, 0] = 0, out[:, m] = c[:, m-1]  (== the conv's left zero padding)."""
    z = jnp.zeros((c.shape[0], 1), c.dtype)
    return jnp.concatenate([z, c[:, :-1]], axis=1)


def _shift_left1(c):
    """out[:, M-1] = 0, out[:, m] = c[:, m+1]  (== the conv's right zero padding)."""
    z = jnp.zeros((c.shape[0], 1), c.dtype)
    return jnp.concatenate([c[:, 1:], z], axis=1)


def _scatter_chunks(get_chunk, plan, s_ref, c_pad):
    """Scatter 256-column source chunks into a stacked operand scratch.

    Every destination slot (tap t, chunk column jc) of s_ref is written exactly
    once; each source chunk is produced once and reused for its 1-3 stores.
    """
    for src in sorted(plan):
        c = get_chunk(src)                       # (c_pad, M) bf16
        pieces = {0: c}
        for (t, jc, shift) in plan[src]:
            if shift not in pieces:
                pieces[shift] = _shift_right1(c) if shift > 0 else _shift_left1(c)
            s_ref[t * c_pad:(t + 1) * c_pad, jc * M:(jc + 1) * M] = pieces[shift]


def _conv_into_next(s_in, w_ref, b_ref, s_next, plan, c_pad_next):
    """Conv1d(k=3, stride=2) + folded BN as ONE deep-K bf16 MXU dot.

    bias + ReLU + bf16 cast are fused per output chunk and the chunk is
    scattered straight into the NEXT layer's stacked operand (no full
    activation staging copy).
    """
    res = jnp.dot(w_ref[...], s_in[...], preferred_element_type=jnp.float32)
    bias = jnp.broadcast_to(b_ref[...], (res.shape[0], M))   # hoisted once

    def chunk(j):
        return jnp.maximum(res[:, j * M:(j + 1) * M] + bias, 0.0).astype(jnp.bfloat16)

    _scatter_chunks(chunk, plan, s_next, c_pad_next)


def _wide6_kernel(x_ref, w1, b1, w2, b2, w3, b3, w4, b4, w5, b5, w6, b6,
                  wfc_ref, bfc_ref, o_ref, s1, s2, s3, s4, s5, s6):
    # Layer-1 stacked operand straight from the pipelined input block.
    _scatter_chunks(lambda j: x_ref[0, :, j * M:(j + 1) * M], _PLAN1, s1, 16)

    # Layers 1-5: dot + fused per-chunk epilogue into the next stacked operand.
    _conv_into_next(s1, w1, b1, s2, _PLAN2, 32)
    _conv_into_next(s2, w2, b2, s3, _PLAN3, 32)
    _conv_into_next(s3, w3, b3, s4, _PLAN4, 48)
    _conv_into_next(s4, w4, b4, s5, _PLAN5, 64)
    _conv_into_next(s5, w5, b5, s6, _PLAN6, 96)

    # Layer 6 + fused FC epilogue (natural (128, 256) order == torch flatten).
    a6 = jnp.maximum(
        jnp.dot(w6[...], s6[...], preferred_element_type=jnp.float32) + b6[...],
        0.0)                                                   # (128, 256) f32
    p0 = jnp.sum(a6 * wfc_ref[0], axis=1, keepdims=True)       # (128, 1)
    p1 = jnp.sum(a6 * wfc_ref[1], axis=1, keepdims=True)       # (128, 1)
    red = jnp.sum(jnp.concatenate([p0, p1], axis=1), axis=0, keepdims=True)  # (1, 2)
    o_ref[0] = red + bfc_ref[...]


# ----------------------------------------------------------------------------
# Wrapper (glue)
# ----------------------------------------------------------------------------
def _phase_major_input(x):
    """(N, 15, 16384) f32 -> (N, 16, 8192) bf16 holding only the EVEN samples
    (layer 1 has stride 2 + dilation 2 and never reads odd positions), in
    phase-major order: out[:, c, j*256 + m] = x[:, c, 64*m + 2*j]."""
    n = x.shape[0]
    xb = x.astype(jnp.bfloat16)                      # cast before relayout
    xb = jnp.pad(xb, ((0, 0), (0, 1), (0, 0)))       # channels 15 -> 16
    xb = xb.reshape(n, 16, M, 64)[:, :, :, ::2]      # keep even phases only
    return xb.transpose(0, 1, 3, 2).reshape(n, 16, 32 * M)


def wide6l1d_forward(x, w_list, b_list, wfc, bfc):
    n = x.shape[0]
    xp = _phase_major_input(x)                       # (n, 16, 8192) bf16

    in_specs = [pl.BlockSpec((1, 16, 32 * M), lambda i: (i, 0, 0))]
    args = [xp]
    for w, b in zip(w_list, b_list):
        in_specs.append(pl.BlockSpec(w.shape, lambda i: (0, 0)))
        in_specs.append(pl.BlockSpec(b.shape, lambda i: (0, 0)))
        args.extend([w, b])
    in_specs.append(pl.BlockSpec(wfc.shape, lambda i: (0, 0, 0)))
    in_specs.append(pl.BlockSpec(bfc.shape, lambda i: (0, 0)))
    args.extend([wfc, bfc])

    macs = (32 * 48 * 16 * M + 32 * 96 * 8 * M + 48 * 96 * 8 * M
            + 64 * 144 * 4 * M + 96 * 192 * 2 * M + 128 * 288 * M + 2 * 128 * M)
    w_bytes = (sum(w.size * w.dtype.itemsize for w in w_list)
               + sum(b.size * b.dtype.itemsize for b in b_list)
               + wfc.size * wfc.dtype.itemsize + bfc.size * bfc.dtype.itemsize)
    cost = pl.CostEstimate(
        flops=2 * macs * n,
        transcendentals=0,
        bytes_accessed=n * (16 * 32 * M * 2 + 2 * 4) + w_bytes,
    )

    out = pl.pallas_call(
        _wide6_kernel,
        out_shape=jax.ShapeDtypeStruct((n, 1, 2), jnp.float32),
        grid=(n,),
        in_specs=in_specs,
        out_specs=pl.BlockSpec((1, 1, 2), lambda i: (i, 0, 0)),
        scratch_shapes=[pltpu.VMEM(s, jnp.bfloat16) for s in _SCRATCH_SHAPES],
        compiler_params=pltpu.CompilerParams(dimension_semantics=("parallel",)),
        cost_estimate=cost,
    )(*args)
    return out[:, 0, :]


# ----------------------------------------------------------------------------
# Parameters (deterministic, synthetic), BN folding & packing (hoisted)
# ----------------------------------------------------------------------------
def init_params(key):
    params = []
    for (cin, cout, _dil) in LAYER_CFG:
        key, k1, k2, k3, k4, k5, k6 = jax.random.split(key, 7)
        params.append(dict(
            w=0.1 * jax.random.normal(k1, (cout, cin, 3), jnp.float32),   # torch (O, I, K)
            b=0.1 * jax.random.normal(k2, (cout,), jnp.float32),
            gamma=1.0 + 0.1 * jax.random.normal(k3, (cout,), jnp.float32),
            beta=0.1 * jax.random.normal(k4, (cout,), jnp.float32),
            mean=0.1 * jax.random.normal(k5, (cout,), jnp.float32),
            var=1.0 + 0.1 * jnp.abs(jax.random.normal(k6, (cout,), jnp.float32)),
        ))
    key, kw, kb = jax.random.split(key, 3)
    w_fc = 0.01 * jax.random.normal(kw, (2, 128 * 256), jnp.float32)      # torch (out, in)
    b_fc = 0.01 * jax.random.normal(kb, (2,), jnp.float32)
    return params, w_fc, b_fc


def fold_bn(p, eps=1e-5):
    scale = p["gamma"] / jnp.sqrt(p["var"] + eps)
    w_fold = p["w"] * scale[:, None, None]               # (O, I, K) f32
    b_fold = (p["b"] - p["mean"]) * scale + p["beta"]    # (O,)      f32
    return w_fold, b_fold


def pack_params(params, w_fc, b_fc):
    """Fold BN (eval mode) and pre-pack into kernel layouts (once, outside jit).

    Conv layer k -> (C_out_pad, 3*C_in_pad) bf16, tap-major along the
    contraction (padded rows/cols AND padded folded bias are exactly zero),
    plus (C_out_pad, 1) f32 bias.  FC -> (2, 128, 256) f32 + (1, 2) f32.
    """
    w_list, b_list = [], []
    for p, (cin, cout, _dil), (cin_pad, cout_pad) in zip(params, LAYER_CFG, _PAD_CFG):
        w_fold, b_fold = fold_bn(p)
        wp = jnp.zeros((cout_pad, 3, cin_pad), jnp.float32)
        wp = wp.at[:cout, :, :cin].set(jnp.transpose(w_fold, (0, 2, 1)))   # (O, K, I)
        w_list.append(wp.reshape(cout_pad, 3 * cin_pad).astype(jnp.bfloat16))
        bp = jnp.zeros((cout_pad, 1), jnp.float32).at[:cout, 0].set(b_fold)
        b_list.append(bp)
    wfc = w_fc.reshape(2, 128, M).astype(jnp.float32)    # kept f32-resident in VMEM
    bfc = b_fc[None, :].astype(jnp.float32)              # (1, 2)
    return w_list, b_list, wfc, bfc


# ----------------------------------------------------------------------------
# Pure-JAX reference (same bf16-operand / f32-accumulate numerics)
# ----------------------------------------------------------------------------
def reference_forward(x, params, w_fc, b_fc):
    out = x.astype(jnp.bfloat16)
    out_f32 = None
    for p, (_cin, _cout, dil) in zip(params, LAYER_CFG):
        w_fold, b_fold = fold_bn(p)
        d = 2 if dil else 1
        pad = 2 if dil else 1
        conv = lax.conv_general_dilated(
            out, w_fold.astype(jnp.bfloat16),
            window_strides=(2,), padding=[(pad, pad)], rhs_dilation=(d,),
            dimension_numbers=("NCH", "OIH", "NCH"),
            preferred_element_type=jnp.float32)
        out_f32 = jnp.maximum(conv + b_fold[None, :, None], 0.0)
        out = out_f32.astype(jnp.bfloat16)
    flat = out_f32.reshape(out_f32.shape[0], -1)                        # (N, 32768) f32
    return jnp.einsum("nk,ok->no", flat, w_fc,
                      precision=lax.Precision.HIGHEST) + b_fc[None, :]


if __name__ == "__main__":
    key = jax.random.PRNGKey(0)
    key, kx, kp = jax.random.split(key, 3)

    # Module expects (swt_levels+1, sample_count) = (15, 16384); batch N=2.
    N, C, L = 2, 15, 16384
    x = jax.random.normal(kx, (N, C, L), jnp.float32)

    params, w_fc, b_fc = init_params(kp)
    # BN folding + weight packing hoisted out of the jitted forward path.
    w_list, b_list, wfc, bfc = pack_params(params, w_fc, b_fc)

    fwd = jax.jit(wide6l1d_forward)
    out = jax.block_until_ready(fwd(x, w_list, b_list, wfc, bfc))

    ref = jax.block_until_ready(reference_forward(x, params, w_fc, b_fc))
    # Tolerance reflects bf16 MXU operands (f32 accumulate) in both kernel and
    # reference; any structural/indexing bug would be orders of magnitude larger.
    np.testing.assert_allclose(np.asarray(out), np.asarray(ref), rtol=1e-2, atol=1e-2)
    assert out.shape == (N, 2) and out.dtype == jnp.float32

    print("KERNEL_OK")
</pallas_src>

<mosaic_0001>
module attributes {stable_mosaic.version = 11 : i64} {
  func.func @_wide6_kernel(%arg0: i32, %arg1: memref<1x16x8192xbf16, #tpu.memory_space<vmem>>, %arg2: memref<32x48xbf16, #tpu.memory_space<vmem>>, %arg3: memref<32x1xf32, #tpu.memory_space<vmem>>, %arg4: memref<32x96xbf16, #tpu.memory_space<vmem>>, %arg5: memref<32x1xf32, #tpu.memory_space<vmem>>, %arg6: memref<48x96xbf16, #tpu.memory_space<vmem>>, %arg7: memref<48x1xf32, #tpu.memory_space<vmem>>, %arg8: memref<64x144xbf16, #tpu.memory_space<vmem>>, %arg9: memref<64x1xf32, #tpu.memory_space<vmem>>, %arg10: memref<96x192xbf16, #tpu.memory_space<vmem>>, %arg11: memref<96x1xf32, #tpu.memory_space<vmem>>, %arg12: memref<128x288xbf16, #tpu.memory_space<vmem>>, %arg13: memref<128x1xf32, #tpu.memory_space<vmem>>, %arg14: memref<2x128x256xf32, #tpu.memory_space<vmem>>, %arg15: memref<1x2xf32, #tpu.memory_space<vmem>>, %arg16: memref<1x1x2xf32, #tpu.memory_space<vmem>>, %arg17: memref<48x4096xbf16, #tpu.memory_space<vmem>>, %arg18: memref<96x2048xbf16, #tpu.memory_space<vmem>>, %arg19: memref<96x2048xbf16, #tpu.memory_space<vmem>>, %arg20: memref<144x1024xbf16, #tpu.memory_space<vmem>>, %arg21: memref<192x512xbf16, #tpu.memory_space<vmem>>, %arg22: memref<288x256xbf16, #tpu.memory_space<vmem>>) attributes {dimension_semantics = [#tpu.dimension_semantics<parallel>], iteration_bounds = array<i64: 2>, scalar_prefetch = 0 : i64, scratch_operands = 6 : i64, tpu.core_type = #tpu.core_type<tc>, window_params = [{transform_indices = @transform_0, window_bounds = array<i64: 1, 16, 8192>}, {pipeline_mode = #tpu.pipeline_mode<synchronous>, transform_indices = @transform_1, window_bounds = array<i64: 32, 48>}, {pipeline_mode = #tpu.pipeline_mode<synchronous>, transform_indices = @transform_2, window_bounds = array<i64: 32, 1>}, {pipeline_mode = #tpu.pipeline_mode<synchronous>, transform_indices = @transform_3, window_bounds = array<i64: 32, 96>}, {pipeline_mode = #tpu.pipeline_mode<synchronous>, transform_indices = @transform_4, window_bounds = array<i64: 32, 1>}, {pipeline_mode = #tpu.pipeline_mode<synchronous>, transform_indices = @transform_5, window_bounds = array<i64: 48, 96>}, {pipeline_mode = #tpu.pipeline_mode<synchronous>, transform_indices = @transform_6, window_bounds = array<i64: 48, 1>}, {pipeline_mode = #tpu.pipeline_mode<synchronous>, transform_indices = @transform_7, window_bounds = array<i64: 64, 144>}, {pipeline_mode = #tpu.pipeline_mode<synchronous>, transform_indices = @transform_8, window_bounds = array<i64: 64, 1>}, {pipeline_mode = #tpu.pipeline_mode<synchronous>, transform_indices = @transform_9, window_bounds = array<i64: 96, 192>}, {pipeline_mode = #tpu.pipeline_mode<synchronous>, transform_indices = @transform_10, window_bounds = array<i64: 96, 1>}, {pipeline_mode = #tpu.pipeline_mode<synchronous>, transform_indices = @transform_11, window_bounds = array<i64: 128, 288>}, {pipeline_mode = #tpu.pipeline_mode<synchronous>, transform_indices = @transform_12, window_bounds = array<i64: 128, 1>}, {pipeline_mode = #tpu.pipeline_mode<synchronous>, transform_indices = @transform_13, window_bounds = array<i64: 2, 128, 256>}, {pipeline_mode = #tpu.pipeline_mode<synchronous>, transform_indices = @transform_14, window_bounds = array<i64: 1, 2>}, {transform_indices = @transform_15, window_bounds = array<i64: 1, 1, 2>}]} {
    %c0 = arith.constant 0 : index
    %c0_0 = arith.constant 0 : index
    %c0_1 = arith.constant 0 : index
    %0 = vector.load %arg1[%c0, %c0_0, %c0_1] : memref<1x16x8192xbf16, #tpu.memory_space<vmem>>, vector<1x16x256xbf16>
    %1 = vector.shape_cast %0 : vector<1x16x256xbf16> to vector<16x256xbf16>
    %c16 = arith.constant 16 : index
    %c0_2 = arith.constant 0 : index
    %2 = vector.load %arg17[%c16, %c0_2] : memref<48x4096xbf16, #tpu.memory_space<vmem>>, vector<16x256xbf16>
    tpu.vector_store %arg17[%c16, %c0_2], %1 {strides = array<i32>} : memref<48x4096xbf16, #tpu.memory_space<vmem>>, vector<16x256xbf16>,
    %c0_3 = arith.constant 0 : index
    %c0_4 = arith.constant 0 : index
    %c256 = arith.constant 256 : index
    %3 = vector.load %arg1[%c0_3, %c0_4, %c256] : memref<1x16x8192xbf16, #tpu.memory_space<vmem>>, vector<1x16x256xbf16>
    %4 = vector.shape_cast %3 : vector<1x16x256xbf16> to vector<16x256xbf16>
    %c32 = arith.constant 32 : index
    %c0_5 = arith.constant 0 : index
    %5 = vector.load %arg17[%c32, %c0_5] : memref<48x4096xbf16, #tpu.memory_space<vmem>>, vector<16x256xbf16>
    tpu.vector_store %arg17[%c32, %c0_5], %4 {strides = array<i32>} : memref<48x4096xbf16, #tpu.memory_space<vmem>>, vector<16x256xbf16>,
    %c0_6 = arith.constant 0 : index
    %c256_7 = arith.constant 256 : index
    %6 = vector.load %arg17[%c0_6, %c256_7] : memref<48x4096xbf16, #tpu.memory_space<vmem>>, vector<16x256xbf16>
    tpu.vector_store %arg17[%c0_6, %c256_7], %4 {strides = array<i32>} : memref<48x4096xbf16, #tpu.memory_space<vmem>>, vector<16x256xbf16>,
    %c0_8 = arith.constant 0 : index
    %c0_9 = arith.constant 0 : index
    %c512 = arith.constant 512 : index
    %7 = vector.load %arg1[%c0_8, %c0_9, %c512] : memref<1x16x8192xbf16, #tpu.memory_space<vmem>>, vector<1x16x256xbf16>
    %8 = vector.shape_cast %7 : vector<1x16x256xbf16> to vector<16x256xbf16>
    %c16_10 = arith.constant 16 : index
    %c256_11 = arith.constant 256 : index
    %9 = vector.load %arg17[%c16_10, %c256_11] : memref<48x4096xbf16, #tpu.memory_space<vmem>>, vector<16x256xbf16>
    tpu.vector_store %arg17[%c16_10, %c256_11], %8 {strides = array<i32>} : memref<48x4096xbf16, #tpu.memory_space<vmem>>, vector<16x256xbf16>,
    %c0_12 = arith.constant 0 : index
    %c0_13 = arith.constant 0 : index
    %c768 = arith.constant 768 : index
    %10 = vector.load %arg1[%c0_12, %c0_13, %c768] : memref<1x16x8192xbf16, #tpu.memory_space<vmem>>, vector<1x16x256xbf16>
    %11 = vector.shape_cast %10 : vector<1x16x256xbf16> to vector<16x256xbf16>
    %c32_14 = arith.constant 32 : index
    %c256_15 = arith.constant 256 : index
    %12 = vector.load %arg17[%c32_14, %c256_15] : memref<48x4096xbf16, #tpu.memory_space<vmem>>, vector<16x256xbf16>
    tpu.vector_store %arg17[%c32_14, %c256_15], %11 {strides = array<i32>} : memref<48x4096xbf16, #tpu.memory_space<vmem>>, vector<16x256xbf16>,
    %c0_16 = arith.constant 0 : index
    %c512_17 = arith.constant 512 : index
    %13 = vector.load %arg17[%c0_16, %c512_17] : memref<48x4096xbf16, #tpu.memory_space<vmem>>, vector<16x256xbf16>
    tpu.vector_store %arg17[%c0_16, %c512_17], %11 {strides = array<i32>} : memref<48x4096xbf16, #tpu.memory_space<vmem>>, vector<16x256xbf16>,
    %c0_18 = arith.constant 0 : index
    %c0_19 = arith.constant 0 : index
    %c1024 = arith.constant 1024 : index
    %14 = vector.load %arg1[%c0_18, %c0_19, %c1024] : memref<1x16x8192xbf16, #tpu.memory_space<vmem>>, vector<1x16x256xbf16>
    %15 = vector.shape_cast %14 : vector<1x16x256xbf16> to vector<16x256xbf16>
    %c16_20 = arith.constant 16 : index
    %c512_21 = arith.constant 512 : index
    %16 = vector.load %arg17[%c16_20, %c512_21] : memref<48x4096xbf16, #tpu.memory_space<vmem>>, vector<16x256xbf16>
    tpu.vector_store %arg17[%c16_20, %c512_21], %15 {strides = array<i32>} : memref<48x4096xbf16, #tpu.memory_space<vmem>>, vector<16x256xbf16>,
    %c0_22 = arith.constant 0 : index
    %c0_23 = arith.constant 0 : index
    %c1280 = arith.constant 1280 : index
    %17 = vector.load %arg1[%c0_22, %c0_23, %c1280] : memref<1x16x8192xbf16, #tpu.memory_space<vmem>>, vector<1x16x256xbf16>
    %18 = vector.shape_cast %17 : vector<1x16x256xbf16> to vector<16x256xbf16>
    %c32_24 = arith.constant 32 : index
    %c512_25 = arith.constant 512 : index
    %19 = vector.load %arg17[%c32_24, %c512_25] : memref<48x4096xbf16, #tpu.memory_space<vmem>>, vector<16x256xbf16>
    tpu.vector_store %arg17[%c32_24, %c512_25], %18 {strides = array<i32>} : memref<48x4096xbf16, #tpu.memory_space<vmem>>, vector<16x256xbf16>,
    %c0_26 = arith.constant 0 : index
    %c768_27 = arith.constant 768 : index
    %20 = vector.load %arg17[%c0_26, %c768_27] : memref<48x4096xbf16, #tpu.memory_space<vmem>>, vector<16x256xbf16>
    tpu.vector_store %arg17[%c0_26, %c768_27], %18 {strides = array<i32>} : memref<48x4096xbf16, #tpu.memory_space<vmem>>, vector<16x256xbf16>,
    %c0_28 = arith.constant 0 : index
    %c0_29 = arith.constant 0 : index
    %c1536 = arith.constant 1536 : index
    %21 = vector.load %arg1[%c0_28, %c0_29, %c1536] : memref<1x16x8192xbf16, #tpu.memory_space<vmem>>, vector<1x16x256xbf16>
    %22 = vector.shape_cast %21 : vector<1x16x256xbf16> to vector<16x256xbf16>
    %c16_30 = arith.constant 16 : index
    %c768_31 = arith.constant 768 : index
    %23 = vector.load %arg17[%c16_30, %c768_31] : memref<48x4096xbf16, #tpu.memory_space<vmem>>, vector<16x256xbf16>
    tpu.vector_store %arg17[%c16_30, %c768_31], %22 {strides = array<i32>} : memref<48x4096xbf16, #tpu.memory_space<vmem>>, vector<16x256xbf16>,
    %c0_32 = arith.constant 0 : index
    %c0_33 = arith.constant 0 : index
    %c1792 = arith.constant 1792 : index
    %24 = vector.load %arg1[%c0_32, %c0_33, %c1792] : memref<1x16x8192xbf16, #tpu.memory_space<vmem>>, vector<1x16x256xbf16>
    %25 = vector.shape_cast %24 : vector<1x16x256xbf16> to vector<16x256xbf16>
    %c32_34 = arith.constant 32 : index
    %c768_35 = arith.constant 768 : index
    %26 = vector.load %arg17[%c32_34, %c768_35] : memref<48x4096xbf16, #tpu.memory_space<vmem>>, vector<16x256xbf16>
    tpu.vector_store %arg17[%c32_34, %c768_35], %25 {strides = array<i32>} : memref<48x4096xbf16, #tpu.memory_space<vmem>>, vector<16x256xbf16>,
    %c0_36 = arith.constant 0 : index
    %c1024_37 = arith.constant 1024 : index
    %27 = vector.load %arg17[%c0_36, %c1024_37] : memref<48x4096xbf16, #tpu.memory_space<vmem>>, vector<16x256xbf16>
    tpu.vector_store %arg17[%c0_36, %c1024_37], %25 {strides = array<i32>} : memref<48x4096xbf16, #tpu.memory_space<vmem>>, vector<16x256xbf16>,
    %c0_38 = arith.constant 0 : index
    %c0_39 = arith.constant 0 : index
    %c2048 = arith.constant 2048 : index
    %28 = vector.load %arg1[%c0_38, %c0_39, %c2048] : memref<1x16x8192xbf16, #tpu.memory_space<vmem>>, vector<1x16x256xbf16>
    %29 = vector.shape_cast %28 : vector<1x16x256xbf16> to vector<16x256xbf16>
    %c16_40 = arith.constant 16 : index
    %c1024_41 = arith.constant 1024 : index
    %30 = vector.load %arg17[%c16_40, %c1024_41] : memref<48x4096xbf16, #tpu.memory_space<vmem>>, vector<16x256xbf16>
    tpu.vector_store %arg17[%c16_40, %c1024_41], %29 {strides = array<i32>} : memref<48x4096xbf16, #tpu.memory_space<vmem>>, vector<16x256xbf16>,
    %c0_42 = arith.constant 0 : index
    %c0_43 = arith.constant 0 : index
    %c2304 = arith.constant 2304 : index
    %31 = vector.load %arg1[%c0_42, %c0_43, %c2304] : memref<1x16x8192xbf16, #tpu.memory_space<vmem>>, vector<1x16x256xbf16>
    %32 = vector.shape_cast %31 : vector<1x16x256xbf16> to vector<16x256xbf16>
    %c32_44 = arith.constant 32 : index
    %c1024_45 = arith.constant 1024 : index
    %33 = vector.load %arg17[%c32_44, %c1024_45] : memref<48x4096xbf16, #tpu.memory_space<vmem>>, vector<16x256xbf16>
    tpu.vector_store %arg17[%c32_44, %c1024_45], %32 {strides = array<i32>} : memref<48x4096xbf16, #tpu.memory_space<vmem>>, vector<16x256xbf16>,
    %c0_46 = arith.constant 0 : index
    %c1280_47 = arith.constant 1280 : index
    %34 = vector.load %arg17[%c0_46, %c1280_47] : memref<48x4096xbf16, #tpu.memory_space<vmem>>, vector<16x256xbf16>
    tpu.vector_store %arg17[%c0_46, %c1280_47], %32 {strides = array<i32>} : memref<48x4096xbf16, #tpu.memory_space<vmem>>, vector<16x256xbf16>,
    %c0_48 = arith.constant 0 : index
    %c0_49 = arith.constant 0 : index
    %c2560 = arith.constant 2560 : index
    %35 = vector.load %arg1[%c0_48, %c0_49, %c2560] : memref<1x16x8192xbf16, #tpu.memory_space<vmem>>, vector<1x16x256xbf16>
    %36 = vector.shape_cast %35 : vector<1x16x256xbf16> to vector<16x256xbf16>
    %c16_50 = arith.constant 16 : index
    %c1280_51 = arith.constant 1280 : index
    %37 = vector.load %arg17[%c16_50, %c1280_51] : memref<48x4096xbf16, #tpu.memory_space<vmem>>, vector<16x256xbf16>
    tpu.vector_store %arg17[%c16_50, %c1280_51], %36 {strides = array<i32>} : memref<48x4096xbf16, #tpu.memory_space<vmem>>, vector<16x256xbf16>,
    %c0_52 = arith.constant 0 : index
    %c0_53 = arith.constant 0 : index
    %c2816 = arith.constant 2816 : index
    %38 = vector.load %arg1[%c0_52, %c0_53, %c2816] : memref<1x16x8192xbf16, #tpu.memory_space<vmem>>, vector<1x16x256xbf16>
    %39 = vector.shape_cast %38 : vector<1x16x256xbf16> to vector<16x256xbf16>
    %c32_54 = arith.constant 32 : index
    %c1280_55 = arith.constant 1280 : index
    %40 = vector.load %arg17[%c32_54, %c1280_55] : memref<48x4096xbf16, #tpu.memory_space<vmem>>, vector<16x256xbf16>
    tpu.vector_store %arg17[%c32_54, %c1280_55], %39 {strides = array<i32>} : memref<48x4096xbf16, #tpu.memory_space<vmem>>, vector<16x256xbf16>,
    %c0_56 = arith.constant 0 : index
    %c1536_57 = arith.constant 1536 : index
    %41 = vector.load %arg17[%c0_56, %c1536_57] : memref<48x4096xbf16, #tpu.memory_space<vmem>>, vector<16x256xbf16>
    tpu.vector_store %arg17[%c0_56, %c1536_57], %39 {strides = array<i32>} : memref<48x4096xbf16, #tpu.memory_space<vmem>>, vector<16x256xbf16>,
    %c0_58 = arith.constant 0 : index
    %c0_59 = arith.constant 0 : index
    %c3072 = arith.constant 3072 : index
    %42 = vector.load %arg1[%c0_58, %c0_59, %c3072] : memref<1x16x8192xbf16, #tpu.memory_space<vmem>>, vector<1x16x256xbf16>
    %43 = vector.shape_cast %42 : vector<1x16x256xbf16> to vector<16x256xbf16>
    %c16_60 = arith.constant 16 : index
    %c1536_61 = arith.constant 1536 : index
    %44 = vector.load %arg17[%c16_60, %c1536_61] : memref<48x4096xbf16, #tpu.memory_space<vmem>>, vector<16x256xbf16>
    tpu.vector_store %arg17[%c16_60, %c1536_61], %43 {strides = array<i32>} : memref<48x4096xbf16, #tpu.memory_space<vmem>>, vector<16x256xbf16>,
    %c0_62 = arith.constant 0 : index
    %c0_63 = arith.constant 0 : index
    %c3328 = arith.constant 3328 : index
    %45 = vector.load %arg1[%c0_62, %c0_63, %c3328] : memref<1x16x8192xbf16, #tpu.memory_space<vmem>>, vector<1x16x256xbf16>
    %46 = vector.shape_cast %45 : vector<1x16x256xbf16> to vector<16x256xbf16>
    %c32_64 = arith.constant 32 : index
    %c1536_65 = arith.constant 1536 : index
    %47 = vector.load %arg17[%c32_64, %c1536_65] : memref<48x4096xbf16, #tpu.memory_space<vmem>>, vector<16x256xbf16>
    tpu.vector_store %arg17[%c32_64, %c1536_65], %46 {strides = array<i32>} : memref<48x4096xbf16, #tpu.memory_space<vmem>>, vector<16x256xbf16>,
    %c0_66 = arith.constant 0 : index
    %c1792_67 = arith.constant 1792 : index
    %48 = vector.load %arg17[%c0_66, %c1792_67] : memref<48x4096xbf16, #tpu.memory_space<vmem>>, vector<16x256xbf16>
    tpu.vector_store %arg17[%c0_66, %c1792_67], %46 {strides = array<i32>} : memref<48x4096xbf16, #tpu.memory_space<vmem>>, vector<16x256xbf16>,
    %c0_68 = arith.constant 0 : index
    %c0_69 = arith.constant 0 : index
    %c3584 = arith.constant 3584 : index
    %49 = vector.load %arg1[%c0_68, %c0_69, %c3584] : memref<1x16x8192xbf16, #tpu.memory_space<vmem>>, vector<1x16x256xbf16>
    %50 = vector.shape_cast %49 : vector<1x16x256xbf16> to vector<16x256xbf16>
    %c16_70 = arith.constant 16 : index
    %c1792_71 = arith.constant 1792 : index
    %51 = vector.load %arg17[%c16_70, %c1792_71] : memref<48x4096xbf16, #tpu.memory_space<vmem>>, vector<16x256xbf16>
    tpu.vector_store %arg17[%c16_70, %c1792_71], %50 {strides = array<i32>} : memref<48x4096xbf16, #tpu.memory_space<vmem>>, vector<16x256xbf16>,
    %c0_72 = arith.constant 0 : index
    %c0_73 = arith.constant 0 : index
    %c3840 = arith.constant 3840 : index
    %52 = vector.load %arg1[%c0_72, %c0_73, %c3840] : memref<1x16x8192xbf16, #tpu.memory_space<vmem>>, vector<1x16x256xbf16>
    %53 = vector.shape_cast %52 : vector<1x16x256xbf16> to vector<16x256xbf16>
    %c32_74 = arith.constant 32 : index
    %c1792_75 = arith.constant 1792 : index
    %54 = vector.load %arg17[%c32_74, %c1792_75] : memref<48x4096xbf16, #tpu.memory_space<vmem>>, vector<16x256xbf16>
    tpu.vector_store %arg17[%c32_74, %c1792_75], %53 {strides = array<i32>} : memref<48x4096xbf16, #tpu.memory_space<vmem>>, vector<16x256xbf16>,
    %c0_76 = arith.constant 0 : index
    %c2048_77 = arith.constant 2048 : index
    %55 = vector.load %arg17[%c0_76, %c2048_77] : memref<48x4096xbf16, #tpu.memory_space<vmem>>, vector<16x256xbf16>
    tpu.vector_store %arg17[%c0_76, %c2048_77], %53 {strides = array<i32>} : memref<48x4096xbf16, #tpu.memory_space<vmem>>, vector<16x256xbf16>,
    %c0_78 = arith.constant 0 : index
    %c0_79 = arith.constant 0 : index
    %c4096 = arith.constant 4096 : index
    %56 = vector.load %arg1[%c0_78, %c0_79, %c4096] : memref<1x16x8192xbf16, #tpu.memory_space<vmem>>, vector<1x16x256xbf16>
    %57 = vector.shape_cast %56 : vector<1x16x256xbf16> to vector<16x256xbf16>
    %c16_80 = arith.constant 16 : index
    %c2048_81 = arith.constant 2048 : index
    %58 = vector.load %arg17[%c16_80, %c2048_81] : memref<48x4096xbf16, #tpu.memory_space<vmem>>, vector<16x256xbf16>
    tpu.vector_store %arg17[%c16_80, %c2048_81], %57 {strides = array<i32>} : memref<48x4096xbf16, #tpu.memory_space<vmem>>, vector<16x256xbf16>,
    %c0_82 = arith.constant 0 : index
    %c0_83 = arith.constant 0 : index
    %c4352 = arith.constant 4352 : index
    %59 = vector.load %arg1[%c0_82, %c0_83, %c4352] : memref<1x16x8192xbf16, #tpu.memory_space<vmem>>, vector<1x16x256xbf16>
    %60 = vector.shape_cast %59 : vector<1x16x256xbf16> to vector<16x256xbf16>
    %c32_84 = arith.constant 32 : index
    %c2048_85 = arith.constant 2048 : index
    %61 = vector.load %arg17[%c32_84, %c2048_85] : memref<48x4096xbf16, #tpu.memory_space<vmem>>, vector<16x256xbf16>
    tpu.vector_store %arg17[%c32_84, %c2048_85], %60 {strides = array<i32>} : memref<48x4096xbf16, #tpu.memory_space<vmem>>, vector<16x256xbf16>,
    %c0_86 = arith.constant 0 : index
    %c2304_87 = arith.constant 2304 : index
    %62 = vector.load %arg17[%c0_86, %c2304_87] : memref<48x4096xbf16, #tpu.memory_space<vmem>>, vector<16x256xbf16>
    tpu.vector_store %arg17[%c0_86, %c2304_87], %60 {strides = array<i32>} : memref<48x4096xbf16, #tpu.memory_space<vmem>>, vector<16x256xbf16>,
    %c0_88 = arith.constant 0 : index
    %c0_89 = arith.constant 0 : index
    %c4608 = arith.constant 4608 : index
    %63 = vector.load %arg1[%c0_88, %c0_89, %c4608] : memref<1x16x8192xbf16, #tpu.memory_space<vmem>>, vector<1x16x256xbf16>
    %64 = vector.shape_cast %63 : vector<1x16x256xbf16> to vector<16x256xbf16>
    %c16_90 = arith.constant 16 : index
    %c2304_91 = arith.constant 2304 : index
    %65 = vector.load %arg17[%c16_90, %c2304_91] : memref<48x4096xbf16, #tpu.memory_space<vmem>>, vector<16x256xbf16>
    tpu.vector_store %arg17[%c16_90, %c2304_91], %64 {strides = array<i32>} : memref<48x4096xbf16, #tpu.memory_space<vmem>>, vector<16x256xbf16>,
    %c0_92 = arith.constant 0 : index
    %c0_93 = arith.constant 0 : index
    %c4864 = arith.constant 4864 : index
    %66 = vector.load %arg1[%c0_92, %c0_93, %c4864] : memref<1x16x8192xbf16, #tpu.memory_space<vmem>>, vector<1x16x256xbf16>
    %67 = vector.shape_cast %66 : vector<1x16x256xbf16> to vector<16x256xbf16>
    %c32_94 = arith.constant 32 : index
    %c2304_95 = arith.constant 2304 : index
    %68 = vector.load %arg17[%c32_94, %c2304_95] : memref<48x4096xbf16, #tpu.memory_space<vmem>>, vector<16x256xbf16>
    tpu.vector_store %arg17[%c32_94, %c2304_95], %67 {strides = array<i32>} : memref<48x4096xbf16, #tpu.memory_space<vmem>>, vector<16x256xbf16>,
    %c0_96 = arith.constant 0 : index
    %c2560_97 = arith.constant 2560 : index
    %69 = vector.load %arg17[%c0_96, %c2560_97] : memref<48x4096xbf16, #tpu.memory_space<vmem>>, vector<16x256xbf16>
    tpu.vector_store %arg17[%c0_96, %c2560_97], %67 {strides = array<i32>} : memref<48x4096xbf16, #tpu.memory_space<vmem>>, vector<16x256xbf16>,
    %c0_98 = arith.constant 0 : index
    %c0_99 = arith.constant 0 : index
    %c5120 = arith.constant 5120 : index
    %70 = vector.load %arg1[%c0_98, %c0_99, %c5120] : memref<1x16x8192xbf16, #tpu.memory_space<vmem>>, vector<1x16x256xbf16>
    %71 = vector.shape_cast %70 : vector<1x16x256xbf16> to vector<16x256xbf16>
    %c16_100 = arith.constant 16 : index
    %c2560_101 = arith.constant 2560 : index
    %72 = vector.load %arg17[%c16_100, %c2560_101] : memref<48x4096xbf16, #tpu.memory_space<vmem>>, vector<16x256xbf16>
    tpu.vector_store %arg17[%c16_100, %c2560_101], %71 {strides = array<i32>} : memref<48x4096xbf16, #tpu.memory_space<vmem>>, vector<16x256xbf16>,
    %c0_102 = arith.constant 0 : index
    %c0_103 = arith.constant 0 : index
    %c5376 = arith.constant 5376 : index
    %73 = vector.load %arg1[%c0_102, %c0_103, %c5376] : memref<1x16x8192xbf16, #tpu.memory_space<vmem>>, vector<1x16x256xbf16>
    %74 = vector.shape_cast %73 : vector<1x16x256xbf16> to vector<16x256xbf16>
    %c32_104 = arith.constant 32 : index
    %c2560_105 = arith.constant 2560 : index
    %75 = vector.load %arg17[%c32_104, %c2560_105] : memref<48x4096xbf16, #tpu.memory_space<vmem>>, vector<16x256xbf16>
    tpu.vector_store %arg17[%c32_104, %c2560_105], %74 {strides = array<i32>} : memref<48x4096xbf16, #tpu.memory_space<vmem>>, vector<16x256xbf16>,
    %c0_106 = arith.constant 0 : index
    %c2816_107 = arith.constant 2816 : index
    %76 = vector.load %arg17[%c0_106, %c2816_107] : memref<48x4096xbf16, #tpu.memory_space<vmem>>, vector<16x256xbf16>
    tpu.vector_store %arg17[%c0_106, %c2816_107], %74 {strides = array<i32>} : memref<48x4096xbf16, #tpu.memory_space<vmem>>, vector<16x256xbf16>,
    %c0_108 = arith.constant 0 : index
    %c0_109 = arith.constant 0 : index
    %c5632 = arith.constant 5632 : index
    %77 = vector.load %arg1[%c0_108, %c0_109, %c5632] : memref<1x16x8192xbf16, #tpu.memory_space<vmem>>, vector<1x16x256xbf16>
    %78 = vector.shape_cast %77 : vector<1x16x256xbf16> to vector<16x256xbf16>
    %c16_110 = arith.constant 16 : index
    %c2816_111 = arith.constant 2816 : index
    %79 = vector.load %arg17[%c16_110, %c2816_111] : memref<48x4096xbf16, #tpu.memory_space<vmem>>, vector<16x256xbf16>
    tpu.vector_store %arg17[%c16_110, %c2816_111], %78 {strides = array<i32>} : memref<48x4096xbf16, #tpu.memory_space<vmem>>, vector<16x256xbf16>,
    %c0_112 = arith.constant 0 : index
    %c0_113 = arith.constant 0 : index
    %c5888 = arith.constant 5888 : index
    %80 = vector.load %arg1[%c0_112, %c0_113, %c5888] : memref<1x16x8192xbf16, #tpu.memory_space<vmem>>, vector<1x16x256xbf16>
    %81 = vector.shape_cast %80 : vector<1x16x256xbf16> to vector<16x256xbf16>
    %c32_114 = arith.constant 32 : index
    %c2816_115 = arith.constant 2816 : index
    %82 = vector.load %arg17[%c32_114, %c2816_115] : memref<48x4096xbf16, #tpu.memory_space<vmem>>, vector<16x256xbf16>
    tpu.vector_store %arg17[%c32_114, %c2816_115], %81 {strides = array<i32>} : memref<48x4096xbf16, #tpu.memory_space<vmem>>, vector<16x256xbf16>,
    %c0_116 = arith.constant 0 : index
    %c3072_117 = arith.constant 3072 : index
    %83 = vector.load %arg17[%c0_116, %c3072_117] : memref<48x4096xbf16, #tpu.memory_space<vmem>>, vector<16x256xbf16>
    tpu.vector_store %arg17[%c0_116, %c3072_117], %81 {strides = array<i32>} : memref<48x4096xbf16, #tpu.memory_space<vmem>>, vector<16x256xbf16>,
    %c0_118 = arith.constant 0 : index
    %c0_119 = arith.constant 0 : index
    %c6144 = arith.constant 6144 : index
    %84 = vector.load %arg1[%c0_118, %c0_119, %c6144] : memref<1x16x8192xbf16, #tpu.memory_space<vmem>>, vector<1x16x256xbf16>
    %85 = vector.shape_cast %84 : vector<1x16x256xbf16> to vector<16x256xbf16>
    %c16_120 = arith.constant 16 : index
    %c3072_121 = arith.constant 3072 : index
    %86 = vector.load %arg17[%c16_120, %c3072_121] : memref<48x4096xbf16, #tpu.memory_space<vmem>>, vector<16x256xbf16>
    tpu.vector_store %arg17[%c16_120, %c3072_121], %85 {strides = array<i32>} : memref<48x4096xbf16, #tpu.memory_space<vmem>>, vector<16x256xbf16>,
    %c0_122 = arith.constant 0 : index
    %c0_123 = arith.constant 0 : index
    %c6400 = arith.constant 6400 : index
    %87 = vector.load %arg1[%c0_122, %c0_123, %c6400] : memref<1x16x8192xbf16, #tpu.memory_space<vmem>>, vector<1x16x256xbf16>
    %88 = vector.shape_cast %87 : vector<1x16x256xbf16> to vector<16x256xbf16>
    %c32_124 = arith.constant 32 : index
    %c3072_125 = arith.constant 3072 : index
    %89 = vector.load %arg17[%c32_124, %c3072_125] : memref<48x4096xbf16, #tpu.memory_space<vmem>>, vector<16x256xbf16>
    tpu.vector_store %arg17[%c32_124, %c3072_125], %88 {strides = array<i32>} : memref<48x4096xbf16, #tpu.memory_space<vmem>>, vector<16x256xbf16>,
    %c0_126 = arith.constant 0 : index
    %c3328_127 = arith.constant 3328 : index
    %90 = vector.load %arg17[%c0_126, %c3328_127] : memref<48x4096xbf16, #tpu.memory_space<vmem>>, vector<16x256xbf16>
    tpu.vector_store %arg17[%c0_126, %c3328_127], %88 {strides = array<i32>} : memref<48x4096xbf16, #tpu.memory_space<vmem>>, vector<16x256xbf16>,
    %c0_128 = arith.constant 0 : index
    %c0_129 = arith.constant 0 : index
    %c6656 = arith.constant 6656 : index
    %91 = vector.load %arg1[%c0_128, %c0_129, %c6656] : memref<1x16x8192xbf16, #tpu.memory_space<vmem>>, vector<1x16x256xbf16>
    %92 = vector.shape_cast %91 : vector<1x16x256xbf16> to vector<16x256xbf16>
    %c16_130 = arith.constant 16 : index
    %c3328_131 = arith.constant 3328 : index
    %93 = vector.load %arg17[%c16_130, %c3328_131] : memref<48x4096xbf16, #tpu.memory_space<vmem>>, vector<16x256xbf16>
    tpu.vector_store %arg17[%c16_130, %c3328_131], %92 {strides = array<i32>} : memref<48x4096xbf16, #tpu.memory_space<vmem>>, vector<16x256xbf16>,
    %c0_132 = arith.constant 0 : index
    %c0_133 = arith.constant 0 : index
    %c6912 = arith.constant 6912 : index
    %94 = vector.load %arg1[%c0_132, %c0_133, %c6912] : memref<1x16x8192xbf16, #tpu.memory_space<vmem>>, vector<1x16x256xbf16>
    %95 = vector.shape_cast %94 : vector<1x16x256xbf16> to vector<16x256xbf16>
    %c32_134 = arith.constant 32 : index
    %c3328_135 = arith.constant 3328 : index
    %96 = vector.load %arg17[%c32_134, %c3328_135] : memref<48x4096xbf16, #tpu.memory_space<vmem>>, vector<16x256xbf16>
    tpu.vector_store %arg17[%c32_134, %c3328_135], %95 {strides = array<i32>} : memref<48x4096xbf16, #tpu.memory_space<vmem>>, vector<16x256xbf16>,
    %c0_136 = arith.constant 0 : index
    %c3584_137 = arith.constant 3584 : index
    %97 = vector.load %arg17[%c0_136, %c3584_137] : memref<48x4096xbf16, #tpu.memory_space<vmem>>, vector<16x256xbf16>
    tpu.vector_store %arg17[%c0_136, %c3584_137], %95 {strides = array<i32>} : memref<48x4096xbf16, #tpu.memory_space<vmem>>, vector<16x256xbf16>,
    %c0_138 = arith.constant 0 : index
    %c0_139 = arith.constant 0 : index
    %c7168 = arith.constant 7168 : index
    %98 = vector.load %arg1[%c0_138, %c0_139, %c7168] : memref<1x16x8192xbf16, #tpu.memory_space<vmem>>, vector<1x16x256xbf16>
    %99 = vector.shape_cast %98 : vector<1x16x256xbf16> to vector<16x256xbf16>
    %c16_140 = arith.constant 16 : index
    %c3584_141 = arith.constant 3584 : index
    %100 = vector.load %arg17[%c16_140, %c3584_141] : memref<48x4096xbf16, #tpu.memory_space<vmem>>, vector<16x256xbf16>
    tpu.vector_store %arg17[%c16_140, %c3584_141], %99 {strides = array<i32>} : memref<48x4096xbf16, #tpu.memory_space<vmem>>, vector<16x256xbf16>,
    %c0_142 = arith.constant 0 : index
    %c0_143 = arith.constant 0 : index
    %c7424 = arith.constant 7424 : index
    %101 = vector.load %arg1[%c0_142, %c0_143, %c7424] : memref<1x16x8192xbf16, #tpu.memory_space<vmem>>, vector<1x16x256xbf16>
    %102 = vector.shape_cast %101 : vector<1x16x256xbf16> to vector<16x256xbf16>
    %c32_144 = arith.constant 32 : index
    %c3584_145 = arith.constant 3584 : index
    %103 = vector.load %arg17[%c32_144, %c3584_145] : memref<48x4096xbf16, #tpu.memory_space<vmem>>, vector<16x256xbf16>
    tpu.vector_store %arg17[%c32_144, %c3584_145], %102 {strides = array<i32>} : memref<48x4096xbf16, #tpu.memory_space<vmem>>, vector<16x256xbf16>,
    %c0_146 = arith.constant 0 : index
    %c3840_147 = arith.constant 3840 : index
    %104 = vector.load %arg17[%c0_146, %c3840_147] : memref<48x4096xbf16, #tpu.memory_space<vmem>>, vector<16x256xbf16>
    tpu.vector_store %arg17[%c0_146, %c3840_147], %102 {strides = array<i32>} : memref<48x4096xbf16, #tpu.memory_space<vmem>>, vector<16x256xbf16>,
    %c0_148 = arith.constant 0 : index
    %c0_149 = arith.constant 0 : index
    %c7680 = arith.constant 7680 : index
    %105 = vector.load %arg1[%c0_148, %c0_149, %c7680] : memref<1x16x8192xbf16, #tpu.memory_space<vmem>>, vector<1x16x256xbf16>
    %106 = vector.shape_cast %105 : vector<1x16x256xbf16> to vector<16x256xbf16>
    %c16_150 = arith.constant 16 : index
    %c3840_151 = arith.constant 3840 : index
    %107 = vector.load %arg17[%c16_150, %c3840_151] : memref<48x4096xbf16, #tpu.memory_space<vmem>>, vector<16x256xbf16>
    tpu.vector_store %arg17[%c16_150, %c3840_151], %106 {strides = array<i32>} : memref<48x4096xbf16, #tpu.memory_space<vmem>>, vector<16x256xbf16>,
    %c0_152 = arith.constant 0 : index
    %c0_153 = arith.constant 0 : index
    %c7936 = arith.constant 7936 : index
    %108 = vector.load %arg1[%c0_152, %c0_153, %c7936] : memref<1x16x8192xbf16, #tpu.memory_space<vmem>>, vector<1x16x256xbf16>
    %109 = vector.shape_cast %108 : vector<1x16x256xbf16> to vector<16x256xbf16>
    %cst = arith.constant 0.000000e+00 : bf16
    %110 = vector.broadcast %cst : bf16 to vector<16x1xbf16>
    %111 = vector.extract_strided_slice %109 {offsets = [0, 0], sizes = [16, 255], strides = [1, 1]} : vector<16x256xbf16> to vector<16x255xbf16>
    %112 = tpu.concatenate %110, %111 in 1 : vector<16x1xbf16>, vector<16x255xbf16> -> vector<16x256xbf16>
    %c0_154 = arith.constant 0 : index
    %c0_155 = arith.constant 0 : index
    %113 = vector.load %arg17[%c0_154, %c0_155] : memref<48x4096xbf16, #tpu.memory_space<vmem>>, vector<16x256xbf16>
    tpu.vector_store %arg17[%c0_154, %c0_155], %112 {strides = array<i32>} : memref<48x4096xbf16, #tpu.memory_space<vmem>>, vector<16x256xbf16>,
    %c32_156 = arith.constant 32 : index
    %c3840_157 = arith.constant 3840 : index
    %114 = vector.load %arg17[%c32_156, %c3840_157] : memref<48x4096xbf16, #tpu.memory_space<vmem>>, vector<16x256xbf16>
    tpu.vector_store %arg17[%c32_156, %c3840_157], %109 {strides = array<i32>} : memref<48x4096xbf16, #tpu.memory_space<vmem>>, vector<16x256xbf16>,
    %c0_158 = arith.constant 0 : index
    %c0_159 = arith.constant 0 : index
    %115 = vector.load %arg2[%c0_158, %c0_159] : memref<32x48xbf16, #tpu.memory_space<vmem>>, vector<32x48xbf16>
    %c0_160 = arith.constant 0 : index
    %c0_161 = arith.constant 0 : index
    %116 = vector.load %arg17[%c0_160, %c0_161] : memref<48x4096xbf16, #tpu.memory_space<vmem>>, vector<48x4096xbf16>
    %cst_162 = arith.constant dense<0.000000e+00> : vector<32x4096xf32>
    %117 = tpu.matmul %115, %116, %cst_162 {dimension_numbers = #tpu.dot_dimension_numbers<[1], [0], [0], [1], [0, 0, 1, 1], [], []>} : vector<32x48xbf16>, vector<48x4096xbf16>, vector<32x4096xf32> -> vector<32x4096xf32>
    %c0_163 = arith.constant 0 : index
    %c0_164 = arith.constant 0 : index
    %118 = vector.load %arg3[%c0_163, %c0_164] : memref<32x1xf32, #tpu.memory_space<vmem>>, vector<32x1xf32>
    %119 = vector.shape_cast %118 : vector<32x1xf32> to vector<32x1xf32>
    %120 = vector.broadcast %119 : vector<32x1xf32> to vector<32x256xf32>
    %121 = vector.extract_strided_slice %117 {offsets = [0, 0], sizes = [32, 256], strides = [1, 1]} : vector<32x4096xf32> to vector<32x256xf32>
    %122 = arith.addf %121, %120 : vector<32x256xf32>
    %cst_165 = arith.constant 0.000000e+00 : f32
    %123 = vector.broadcast %cst_165 : f32 to vector<32x256xf32>
    %124 = arith.maximumf %122, %123 : vector<32x256xf32>
    %125 = arith.truncf %124 : vector<32x256xf32> to vector<32x256xbf16>
    %c32_166 = arith.constant 32 : index
    %c0_167 = arith.constant 0 : index
    %126 = vector.load %arg18[%c32_166, %c0_167] : memref<96x2048xbf16, #tpu.memory_space<vmem>>, vector<32x256xbf16>
    tpu.vector_store %arg18[%c32_166, %c0_167], %125 {strides = array<i32>} : memref<96x2048xbf16, #tpu.memory_space<vmem>>, vector<32x256xbf16>,
    %127 = vector.extract_strided_slice %117 {offsets = [0, 256], sizes = [32, 256], strides = [1, 1]} : vector<32x4096xf32> to vector<32x256xf32>
    %128 = arith.addf %127, %120 : vector<32x256xf32>
    %cst_168 = arith.constant 0.000000e+00 : f32
    %129 = vector.broadcast %cst_168 : f32 to vector<32x256xf32>
    %130 = arith.maximumf %128, %129 : vector<32x256xf32>
    %131 = arith.truncf %130 : vector<32x256xf32> to vector<32x256xbf16>
    %c64 = arith.constant 64 : index
    %c0_169 = arith.constant 0 : index
    %132 = vector.load %arg18[%c64, %c0_169] : memref<96x2048xbf16, #tpu.memory_space<vmem>>, vector<32x256xbf16>
    tpu.vector_store %arg18[%c64, %c0_169], %131 {strides = array<i32>} : memref<96x2048xbf16, #tpu.memory_space<vmem>>, vector<32x256xbf16>,
    %c0_170 = arith.constant 0 : index
    %c256_171 = arith.constant 256 : index
    %133 = vector.load %arg18[%c0_170, %c256_171] : memref<96x2048xbf16, #tpu.memory_space<vmem>>, vector<32x256xbf16>
    tpu.vector_store %arg18[%c0_170, %c256_171], %131 {strides = array<i32>} : memref<96x2048xbf16, #tpu.memory_space<vmem>>, vector<32x256xbf16>,
    %134 = vector.extract_strided_slice %117 {offsets = [0, 512], sizes = [32, 256], strides = [1, 1]} : vector<32x4096xf32> to vector<32x256xf32>
    %135 = arith.addf %134, %120 : vector<32x256xf32>
    %cst_172 = arith.constant 0.000000e+00 : f32
    %136 = vector.broadcast %cst_172 : f32 to vector<32x256xf32>
    %137 = arith.maximumf %135, %136 : vector<32x256xf32>
    %138 = arith.truncf %137 : vector<32x256xf32> to vector<32x256xbf16>
    %c32_173 = arith.constant 32 : index
    %c256_174 = arith.constant 256 : index
    %139 = vector.load %arg18[%c32_173, %c256_174] : memref<96x2048xbf16, #tpu.memory_space<vmem>>, vector<32x256xbf16>
    tpu.vector_store %arg18[%c32_173, %c256_174], %138 {strides = array<i32>} : memref<96x2048xbf16, #tpu.memory_space<vmem>>, vector<32x256xbf16>,
    %140 = vector.extract_strided_slice %117 {offsets = [0, 768], sizes = [32, 256], strides = [1, 1]} : vector<32x4096xf32> to vector<32x256xf32>
    %141 = arith.addf %140, %120 : vector<32x256xf32>
    %cst_175 = arith.constant 0.000000e+00 : f32
    %142 = vector.broadcast %cst_175 : f32 to vector<32x256xf32>
    %143 = arith.maximumf %141, %142 : vector<32x256xf32>
    %144 = arith.truncf %143 : vector<32x256xf32> to vector<32x256xbf16>
    %c64_176 = arith.constant 64 : index
    %c256_177 = arith.constant 256 : index
    %145 = vector.load %arg18[%c64_176, %c256_177] : memref<96x2048xbf16, #tpu.memory_space<vmem>>, vector<32x256xbf16>
    tpu.vector_store %arg18[%c64_176, %c256_177], %144 {strides = array<i32>} : memref<96x2048xbf16, #tpu.memory_space<vmem>>, vector<32x256xbf16>,
    %c0_178 = arith.constant 0 : index
    %c512_179 = arith.constant 512 : index
    %146 = vector.load %arg18[%c0_178, %c512_179] : memref<96x2048xbf16, #tpu.memory_space<vmem>>, vector<32x256xbf16>
    tpu.vector_store %arg18[%c0_178, %c512_179], %144 {strides = array<i32>} : memref<96x2048xbf16, #tpu.memory_space<vmem>>, vector<32x256xbf16>,
    %147 = vector.extract_strided_slice %117 {offsets = [0, 1024], sizes = [32, 256], strides = [1, 1]} : vector<32x4096xf32> to vector<32x256xf32>
    %148 = arith.addf %147, %120 : vector<32x256xf32>
    %cst_180 = arith.constant 0.000000e+00 : f32
    %149 = vector.broadcast %cst_180 : f32 to vector<32x256xf32>
    %150 = arith.maximumf %148, %149 : vector<32x256xf32>
    %151 = arith.truncf %150 : vector<32x256xf32> to vector<32x256xbf16>
    %c32_181 = arith.constant 32 : index
    %c512_182 = arith.constant 512 : index
    %152 = vector.load %arg18[%c32_181, %c512_182] : memref<96x2048xbf16, #tpu.memory_space<vmem>>, vector<32x256xbf16>
    tpu.vector_store %arg18[%c32_181, %c512_182], %151 {strides = array<i32>} : memref<96x2048xbf16, #tpu.memory_space<vmem>>, vector<32x256xbf16>,
    %153 = vector.extract_strided_slice %117 {offsets = [0, 1280], sizes = [32, 256], strides = [1, 1]} : vector<32x4096xf32> to vector<32x256xf32>
    %154 = arith.addf %153, %120 : vector<32x256xf32>
    %cst_183 = arith.constant 0.000000e+00 : f32
    %155 = vector.broadcast %cst_183 : f32 to vector<32x256xf32>
    %156 = arith.maximumf %154, %155 : vector<32x256xf32>
    %157 = arith.truncf %156 : vector<32x256xf32> to vector<32x256xbf16>
    %c64_184 = arith.constant 64 : index
    %c512_185 = arith.constant 512 : index
    %158 = vector.load %arg18[%c64_184, %c512_185] : memref<96x2048xbf16, #tpu.memory_space<vmem>>, vector<32x256xbf16>
    tpu.vector_store %arg18[%c64_184, %c512_185], %157 {strides = array<i32>} : memref<96x2048xbf16, #tpu.memory_space<vmem>>, vector<32x256xbf16>,
    %c0_186 = arith.constant 0 : index
    %c768_187 = arith.constant 768 : index
    %159 = vector.load %arg18[%c0_186, %c768_187] : memref<96x2048xbf16, #tpu.memory_space<vmem>>, vector<32x256xbf16>
    tpu.vector_store %arg18[%c0_186, %c768_187], %157 {strides = array<i32>} : memref<96x2048xbf16, #tpu.memory_space<vmem>>, vector<32x256xbf16>,
    %160 = vector.extract_strided_slice %117 {offsets = [0, 1536], sizes = [32, 256], strides = [1, 1]} : vector<32x4096xf32> to vector<32x256xf32>
    %161 = arith.addf %160, %120 : vector<32x256xf32>
    %cst_188 = arith.constant 0.000000e+00 : f32
    %162 = vector.broadcast %cst_188 : f32 to vector<32x256xf32>
    %163 = arith.maximumf %161, %162 : vector<32x256xf32>
    %164 = arith.truncf %163 : vector<32x256xf32> to vector<32x256xbf16>
    %c32_189 = arith.constant 32 : index
    %c768_190 = arith.constant 768 : index
    %165 = vector.load %arg18[%c32_189, %c768_190] : memref<96x2048xbf16, #tpu.memory_space<vmem>>, vector<32x256xbf16>
    tpu.vector_store %arg18[%c32_189, %c768_190], %164 {strides = array<i32>} : memref<96x2048xbf16, #tpu.memory_space<vmem>>, vector<32x256xbf16>,
    %166 = vector.extract_strided_slice %117 {offsets = [0, 1792], sizes = [32, 256], strides = [1, 1]} : vector<32x4096xf32> to vector<32x256xf32>
    %167 = arith.addf %166, %120 : vector<32x256xf32>
    %cst_191 = arith.constant 0.000000e+00 : f32
    %168 = vector.broadcast %cst_191 : f32 to vector<32x256xf32>
    %169 = arith.maximumf %167, %168 : vector<32x256xf32>
    %170 = arith.truncf %169 : vector<32x256xf32> to vector<32x256xbf16>
    %c64_192 = arith.constant 64 : index
    %c768_193 = arith.constant 768 : index
    %171 = vector.load %arg18[%c64_192, %c768_193] : memref<96x2048xbf16, #tpu.memory_space<vmem>>, vector<32x256xbf16>
    tpu.vector_store %arg18[%c64_192, %c768_193], %170 {strides = array<i32>} : memref<96x2048xbf16, #tpu.memory_space<vmem>>, vector<32x256xbf16>,
    %c0_194 = arith.constant 0 : index
    %c1024_195 = arith.constant 1024 : index
    %172 = vector.load %arg18[%c0_194, %c1024_195] : memref<96x2048xbf16, #tpu.memory_space<vmem>>, vector<32x256xbf16>
    tpu.vector_store %arg18[%c0_194, %c1024_195], %170 {strides = array<i32>} : memref<96x2048xbf16, #tpu.memory_space<vmem>>, vector<32x256xbf16>,
    %173 = vector.extract_strided_slice %117 {offsets = [0, 2048], sizes = [32, 256], strides = [1, 1]} : vector<32x4096xf32> to vector<32x256xf32>
    %174 = arith.addf %173, %120 : vector<32x256xf32>
    %cst_196 = arith.constant 0.000000e+00 : f32
    %175 = vector.broadcast %cst_196 : f32 to vector<32x256xf32>
    %176 = arith.maximumf %174, %175 : vector<32x256xf32>
    %177 = arith.truncf %176 : vector<32x256xf32> to vector<32x256xbf16>
    %c32_197 = arith.constant 32 : index
    %c1024_198 = arith.constant 1024 : index
    %178 = vector.load %arg18[%c32_197, %c1024_198] : memref<96x2048xbf16, #tpu.memory_space<vmem>>, vector<32x256xbf16>
    tpu.vector_store %arg18[%c32_197, %c1024_198], %177 {strides = array<i32>} : memref<96x2048xbf16, #tpu.memory_space<vmem>>, vector<32x256xbf16>,
    %179 = vector.extract_strided_slice %117 {offsets = [0, 2304], sizes = [32, 256], strides = [1, 1]} : vector<32x4096xf32> to vector<32x256xf32>
    %180 = arith.addf %179, %120 : vector<32x256xf32>
    %cst_199 = arith.constant 0.000000e+00 : f32
    %181 = vector.broadcast %cst_199 : f32 to vector<32x256xf32>
    %182 = arith.maximumf %180, %181 : vector<32x256xf32>
    %183 = arith.truncf %182 : vector<32x256xf32> to vector<32x256xbf16>
    %c64_200 = arith.constant 64 : index
    %c1024_201 = arith.constant 1024 : index
    %184 = vector.load %arg18[%c64_200, %c1024_201] : memref<96x2048xbf16, #tpu.memory_space<vmem>>, vector<32x256xbf16>
    tpu.vector_store %arg18[%c64_200, %c1024_201], %183 {strides = array<i32>} : memref<96x2048xbf16, #tpu.memory_space<vmem>>, vector<32x256xbf16>,
    %c0_202 = arith.constant 0 : index
    %c1280_203 = arith.constant 1280 : index
    %185 = vector.load %arg18[%c0_202, %c1280_203] : memref<96x2048xbf16, #tpu.memory_space<vmem>>, vector<32x256xbf16>
    tpu.vector_store %arg18[%c0_202, %c1280_203], %183 {strides = array<i32>} : memref<96x2048xbf16, #tpu.memory_space<vmem>>, vector<32x256xbf16>,
    %186 = vector.extract_strided_slice %117 {offsets = [0, 2560], sizes = [32, 256], strides = [1, 1]} : vector<32x4096xf32> to vector<32x256xf32>
    %187 = arith.addf %186, %120 : vector<32x256xf32>
    %cst_204 = arith.constant 0.000000e+00 : f32
    %188 = vector.broadcast %cst_204 : f32 to vector<32x256xf32>
    %189 = arith.maximumf %187, %188 : vector<32x256xf32>
    %190 = arith.truncf %189 : vector<32x256xf32> to vector<32x256xbf16>
    %c32_205 = arith.constant 32 : index
    %c1280_206 = arith.constant 1280 : index
    %191 = vector.load %arg18[%c32_205, %c1280_206] : memref<96x2048xbf16, #tpu.memory_space<vmem>>, vector<32x256xbf16>
    tpu.vector_store %arg18[%c32_205, %c1280_206], %190 {strides = array<i32>} : memref<96x2048xbf16, #tpu.memory_space<vmem>>, vector<32x256xbf16>,
    %192 = vector.extract_strided_slice %117 {offsets = [0, 2816], sizes = [32, 256], strides = [1, 1]} : vector<32x4096xf32> to vector<32x256xf32>
    %193 = arith.addf %192, %120 : vector<32x256xf32>
    %cst_207 = arith.constant 0.000000e+00 : f32
    %194 = vector.broadcast %cst_207 : f32 to vector<32x256xf32>
    %195 = arith.maximumf %193, %194 : vector<32x256xf32>
    %196 = arith.truncf %195 : vector<32x256xf32> to vector<32x256xbf16>
    %c64_208 = arith.constant 64 : index
    %c1280_209 = arith.constant 1280 : index
    %197 = vector.load %arg18[%c64_208, %c1280_209] : memref<96x2048xbf16, #tpu.memory_space<vmem>>, vector<32x256xbf16>
    tpu.vector_store %arg18[%c64_208, %c1280_209], %196 {strides = array<i32>} : memref<96x2048xbf16, #tpu.memory_space<vmem>>, vector<32x256xbf16>,
    %c0_210 = arith.constant 0 : index
    %c1536_211 = arith.constant 1536 : index
    %198 = vector.load %arg18[%c0_210, %c1536_211] : memref<96x2048xbf16, #tpu.memory_space<vmem>>, vector<32x256xbf16>
    tpu.vector_store %arg18[%c0_210, %c1536_211], %196 {strides = array<i32>} : memref<96x2048xbf16, #tpu.memory_space<vmem>>, vector<32x256xbf16>,
    %199 = vector.extract_strided_slice %117 {offsets = [0, 3072], sizes = [32, 256], strides = [1, 1]} : vector<32x4096xf32> to vector<32x256xf32>
    %200 = arith.addf %199, %120 : vector<32x256xf32>
    %cst_212 = arith.constant 0.000000e+00 : f32
    %201 = vector.broadcast %cst_212 : f32 to vector<32x256xf32>
    %202 = arith.maximumf %200, %201 : vector<32x256xf32>
    %203 = arith.truncf %202 : vector<32x256xf32> to vector<32x256xbf16>
    %c32_213 = arith.constant 32 : index
    %c1536_214 = arith.constant 1536 : index
    %204 = vector.load %arg18[%c32_213, %c1536_214] : memref<96x2048xbf16, #tpu.memory_space<vmem>>, vector<32x256xbf16>
    tpu.vector_store %arg18[%c32_213, %c1536_214], %203 {strides = array<i32>} : memref<96x2048xbf16, #tpu.memory_space<vmem>>, vector<32x256xbf16>,
    %205 = vector.extract_strided_slice %117 {offsets = [0, 3328], sizes = [32, 256], strides = [1, 1]} : vector<32x4096xf32> to vector<32x256xf32>
    %206 = arith.addf %205, %120 : vector<32x256xf32>
    %cst_215 = arith.constant 0.000000e+00 : f32
    %207 = vector.broadcast %cst_215 : f32 to vector<32x256xf32>
    %208 = arith.maximumf %206, %207 : vector<32x256xf32>
    %209 = arith.truncf %208 : vector<32x256xf32> to vector<32x256xbf16>
    %c64_216 = arith.constant 64 : index
    %c1536_217 = arith.constant 1536 : index
    %210 = vector.load %arg18[%c64_216, %c1536_217] : memref<96x2048xbf16, #tpu.memory_space<vmem>>, vector<32x256xbf16>
    tpu.vector_store %arg18[%c64_216, %c1536_217], %209 {strides = array<i32>} : memref<96x2048xbf16, #tpu.memory_space<vmem>>, vector<32x256xbf16>,
    %c0_218 = arith.constant 0 : index
    %c1792_219 = arith.constant 1792 : index
    %211 = vector.load %arg18[%c0_218, %c1792_219] : memref<96x2048xbf16, #tpu.memory_space<vmem>>, vector<32x256xbf16>
    tpu.vector_store %arg18[%c0_218, %c1792_219], %209 {strides = array<i32>} : memref<96x2048xbf16, #tpu.memory_space<vmem>>, vector<32x256xbf16>,
    %212 = vector.extract_strided_slice %117 {offsets = [0, 3584], sizes = [32, 256], strides = [1, 1]} : vector<32x4096xf32> to vector<32x256xf32>
    %213 = arith.addf %212, %120 : vector<32x256xf32>
    %cst_220 = arith.constant 0.000000e+00 : f32
    %214 = vector.broadcast %cst_220 : f32 to vector<32x256xf32>
    %215 = arith.maximumf %213, %214 : vector<32x256xf32>
    %216 = arith.truncf %215 : vector<32x256xf32> to vector<32x256xbf16>
    %c32_221 = arith.constant 32 : index
    %c1792_222 = arith.constant 1792 : index
    %217 = vector.load %arg18[%c32_221, %c1792_222] : memref<96x2048xbf16, #tpu.memory_space<vmem>>, vector<32x256xbf16>
    tpu.vector_store %arg18[%c32_221, %c1792_222], %216 {strides = array<i32>} : memref<96x2048xbf16, #tpu.memory_space<vmem>>, vector<32x256xbf16>,
    %218 = vector.extract_strided_slice %117 {offsets = [0, 3840], sizes = [32, 256], strides = [1, 1]} : vector<32x4096xf32> to vector<32x256xf32>
    %219 = arith.addf %218, %120 : vector<32x256xf32>
    %cst_223 = arith.constant 0.000000e+00 : f32
    %220 = vector.broadcast %cst_223 : f32 to vector<32x256xf32>
    %221 = arith.maximumf %219, %220 : vector<32x256xf32>
    %222 = arith.truncf %221 : vector<32x256xf32> to vector<32x256xbf16>
    %cst_224 = arith.constant 0.000000e+00 : bf16
    %223 = vector.broadcast %cst_224 : bf16 to vector<32x1xbf16>
    %224 = vector.extract_strided_slice %222 {offsets = [0, 0], sizes = [32, 255], strides = [1, 1]} : vector<32x256xbf16> to vector<32x255xbf16>
    %225 = tpu.concatenate %223, %224 in 1 : vector<32x1xbf16>, vector<32x255xbf16> -> vector<32x256xbf16>
    %c0_225 = arith.constant 0 : index
    %c0_226 = arith.constant 0 : index
    %226 = vector.load %arg18[%c0_225, %c0_226] : memref<96x2048xbf16, #tpu.memory_space<vmem>>, vector<32x256xbf16>
    tpu.vector_store %arg18[%c0_225, %c0_226], %225 {strides = array<i32>} : memref<96x2048xbf16, #tpu.memory_space<vmem>>, vector<32x256xbf16>,
    %c64_227 = arith.constant 64 : index
    %c1792_228 = arith.constant 1792 : index
    %227 = vector.load %arg18[%c64_227, %c1792_228] : memref<96x2048xbf16, #tpu.memory_space<vmem>>, vector<32x256xbf16>
    tpu.vector_store %arg18[%c64_227, %c1792_228], %222 {strides = array<i32>} : memref<96x2048xbf16, #tpu.memory_space<vmem>>, vector<32x256xbf16>,
    %c0_229 = arith.constant 0 : index
    %c0_230 = arith.constant 0 : index
    %228 = vector.load %arg4[%c0_229, %c0_230] : memref<32x96xbf16, #tpu.memory_space<vmem>>, vector<32x96xbf16>
    %c0_231 = arith.constant 0 : index
    %c0_232 = arith.constant 0 : index
    %229 = vector.load %arg18[%c0_231, %c0_232] : memref<96x2048xbf16, #tpu.memory_space<vmem>>, vector<96x2048xbf16>
    %cst_233 = arith.constant dense<0.000000e+00> : vector<32x2048xf32>
    %230 = tpu.matmul %228, %229, %cst_233 {dimension_numbers = #tpu.dot_dimension_numbers<[1], [0], [0], [1], [0, 0, 1, 1], [], []>} : vector<32x96xbf16>, vector<96x2048xbf16>, vector<32x2048xf32> -> vector<32x2048xf32>
    %c0_234 = arith.constant 0 : index
    %c0_235 = arith.constant 0 : index
    %231 = vector.load %arg5[%c0_234, %c0_235] : memref<32x1xf32, #tpu.memory_space<vmem>>, vector<32x1xf32>
    %232 = vector.shape_cast %231 : vector<32x1xf32> to vector<32x1xf32>
    %233 = vector.broadcast %232 : vector<32x1xf32> to vector<32x256xf32>
    %234 = vector.extract_strided_slice %230 {offsets = [0, 0], sizes = [32, 256], strides = [1, 1]} : vector<32x2048xf32> to vector<32x256xf32>
    %235 = arith.addf %234, %233 : vector<32x256xf32>
    %cst_236 = arith.constant 0.000000e+00 : f32
    %236 = vector.broadcast %cst_236 : f32 to vector<32x256xf32>
    %237 = arith.maximumf %235, %236 : vector<32x256xf32>
    %238 = arith.truncf %237 : vector<32x256xf32> to vector<32x256xbf16>
    %c32_237 = arith.constant 32 : index
    %c0_238 = arith.constant 0 : index
    %239 = vector.load %arg19[%c32_237, %c0_238] : memref<96x2048xbf16, #tpu.memory_space<vmem>>, vector<32x256xbf16>
    tpu.vector_store %arg19[%c32_237, %c0_238], %238 {strides = array<i32>} : memref<96x2048xbf16, #tpu.memory_space<vmem>>, vector<32x256xbf16>,
    %c0_239 = arith.constant 0 : index
    %c256_240 = arith.constant 256 : index
    %240 = vector.load %arg19[%c0_239, %c256_240] : memref<96x2048xbf16, #tpu.memory_space<vmem>>, vector<32x256xbf16>
    tpu.vector_store %arg19[%c0_239, %c256_240], %238 {strides = array<i32>} : memref<96x2048xbf16, #tpu.memory_space<vmem>>, vector<32x256xbf16>,
    %cst_241 = arith.constant 0.000000e+00 : bf16
    %241 = vector.broadcast %cst_241 : bf16 to vector<32x1xbf16>
    %242 = vector.extract_strided_slice %238 {offsets = [0, 1], sizes = [32, 255], strides = [1, 1]} : vector<32x256xbf16> to vector<32x255xbf16>
    %243 = tpu.concatenate %242, %241 in 1 : vector<32x255xbf16>, vector<32x1xbf16> -> vector<32x256xbf16>
    %c64_242 = arith.constant 64 : index
    %c1792_243 = arith.constant 1792 : index
    %244 = vector.load %arg19[%c64_242, %c1792_243] : memref<96x2048xbf16, #tpu.memory_space<vmem>>, vector<32x256xbf16>
    tpu.vector_store %arg19[%c64_242, %c1792_243], %243 {strides = array<i32>} : memref<96x2048xbf16, #tpu.memory_space<vmem>>, vector<32x256xbf16>,
    %245 = vector.extract_strided_slice %230 {offsets = [0, 256], sizes = [32, 256], strides = [1, 1]} : vector<32x2048xf32> to vector<32x256xf32>
    %246 = arith.addf %245, %233 : vector<32x256xf32>
    %cst_244 = arith.constant 0.000000e+00 : f32
    %247 = vector.broadcast %cst_244 : f32 to vector<32x256xf32>
    %248 = arith.maximumf %246, %247 : vector<32x256xf32>
    %249 = arith.truncf %248 : vector<32x256xf32> to vector<32x256xbf16>
    %c64_245 = arith.constant 64 : index
    %c0_246 = arith.constant 0 : index
    %250 = vector.load %arg19[%c64_245, %c0_246] : memref<96x2048xbf16, #tpu.memory_space<vmem>>, vector<32x256xbf16>
    tpu.vector_store %arg19[%c64_245, %c0_246], %249 {strides = array<i32>} : memref<96x2048xbf16, #tpu.memory_space<vmem>>, vector<32x256xbf16>,
    %c32_247 = arith.constant 32 : index
    %c256_248 = arith.constant 256 : index
    %251 = vector.load %arg19[%c32_247, %c256_248] : memref<96x2048xbf16, #tpu.memory_space<vmem>>, vector<32x256xbf16>
    tpu.vector_store %arg19[%c32_247, %c256_248], %249 {strides = array<i32>} : memref<96x2048xbf16, #tpu.memory_space<vmem>>, vector<32x256xbf16>,
    %c0_249 = arith.constant 0 : index
    %c512_250 = arith.constant 512 : index
    %252 = vector.load %arg19[%c0_249, %c512_250] : memref<96x2048xbf16, #tpu.memory_space<vmem>>, vector<32x256xbf16>
    tpu.vector_store %arg19[%c0_249, %c512_250], %249 {strides = array<i32>} : memref<96x2048xbf16, #tpu.memory_space<vmem>>, vector<32x256xbf16>,
    %253 = vector.extract_strided_slice %230 {offsets = [0, 512], sizes = [32, 256], strides = [1, 1]} : vector<32x2048xf32> to vector<32x256xf32>
    %254 = arith.addf %253, %233 : vector<32x256xf32>
    %cst_251 = arith.constant 0.000000e+00 : f32
    %255 = vector.broadcast %cst_251 : f32 to vector<32x256xf32>
    %256 = arith.maximumf %254, %255 : vector<32x256xf32>
    %257 = arith.truncf %256 : vector<32x256xf32> to vector<32x256xbf16>
    %c64_252 = arith.constant 64 : index
    %c256_253 = arith.constant 256 : index
    %258 = vector.load %arg19[%c64_252, %c256_253] : memref<96x2048xbf16, #tpu.memory_space<vmem>>, vector<32x256xbf16>
    tpu.vector_store %arg19[%c64_252, %c256_253], %257 {strides = array<i32>} : memref<96x2048xbf16, #tpu.memory_space<vmem>>, vector<32x256xbf16>,
    %c32_254 = arith.constant 32 : index
    %c512_255 = arith.constant 512 : index
    %259 = vector.load %arg19[%c32_254, %c512_255] : memref<96x2048xbf16, #tpu.memory_space<vmem>>, vector<32x256xbf16>
    tpu.vector_store %arg19[%c32_254, %c512_255], %257 {strides = array<i32>} : memref<96x2048xbf16, #tpu.memory_space<vmem>>, vector<32x256xbf16>,
    %c0_256 = arith.constant 0 : index
    %c768_257 = arith.constant 768 : index
    %260 = vector.load %arg19[%c0_256, %c768_257] : memref<96x2048xbf16, #tpu.memory_space<vmem>>, vector<32x256xbf16>
    tpu.vector_store %arg19[%c0_256, %c768_257], %257 {strides = array<i32>} : memref<96x2048xbf16, #tpu.memory_space<vmem>>, vector<32x256xbf16>,
    %261 = vector.extract_strided_slice %230 {offsets = [0, 768], sizes = [32, 256], strides = [1, 1]} : vector<32x2048xf32> to vector<32x256xf32>
    %262 = arith.addf %261, %233 : vector<32x256xf32>
    %cst_258 = arith.constant 0.000000e+00 : f32
    %263 = vector.broadcast %cst_258 : f32 to vector<32x256xf32>
    %264 = arith.maximumf %262, %263 : vector<32x256xf32>
    %265 = arith.truncf %264 : vector<32x256xf32> to vector<32x256xbf16>
    %c64_259 = arith.constant 64 : index
    %c512_260 = arith.constant 512 : index
    %266 = vector.load %arg19[%c64_259, %c512_260] : memref<96x2048xbf16, #tpu.memory_space<vmem>>, vector<32x256xbf16>
    tpu.vector_store %arg19[%c64_259, %c512_260], %265 {strides = array<i32>} : memref<96x2048xbf16, #tpu.memory_space<vmem>>, vector<32x256xbf16>,
    %c32_261 = arith.constant 32 : index
    %c768_262 = arith.constant 768 : index
    %267 = vector.load %arg19[%c32_261, %c768_262] : memref<96x2048xbf16, #tpu.memory_space<vmem>>, vector<32x256xbf16>
    tpu.vector_store %arg19[%c32_261, %c768_262], %265 {strides = array<i32>} : memref<96x2048xbf16, #tpu.memory_space<vmem>>, vector<32x256xbf16>,
    %c0_263 = arith.constant 0 : index
    %c1024_264 = arith.constant 1024 : index
    %268 = vector.load %arg19[%c0_263, %c1024_264] : memref<96x2048xbf16, #tpu.memory_space<vmem>>, vector<32x256xbf16>
    tpu.vector_store %arg19[%c0_263, %c1024_264], %265 {strides = array<i32>} : memref<96x2048xbf16, #tpu.memory_space<vmem>>, vector<32x256xbf16>,
    %269 = vector.extract_strided_slice %230 {offsets = [0, 1024], sizes = [32, 256], strides = [1, 1]} : vector<32x2048xf32> to vector<32x256xf32>
    %270 = arith.addf %269, %233 : vector<32x256xf32>
    %cst_265 = arith.constant 0.000000e+00 : f32
    %271 = vector.broadcast %cst_265 : f32 to vector<32x256xf32>
    %272 = arith.maximumf %270, %271 : vector<32x256xf32>
    %273 = arith.truncf %272 : vector<32x256xf32> to vector<32x256xbf16>
    %c64_266 = arith.constant 64 : index
    %c768_267 = arith.constant 768 : index
    %274 = vector.load %arg19[%c64_266, %c768_267] : memref<96x2048xbf16, #tpu.memory_space<vmem>>, vector<32x256xbf16>
    tpu.vector_store %arg19[%c64_266, %c768_267], %273 {strides = array<i32>} : memref<96x2048xbf16, #tpu.memory_space<vmem>>, vector<32x256xbf16>,
    %c32_268 = arith.constant 32 : index
    %c1024_269 = arith.constant 1024 : index
    %275 = vector.load %arg19[%c32_268, %c1024_269] : memref<96x2048xbf16, #tpu.memory_space<vmem>>, vector<32x256xbf16>
    tpu.vector_store %arg19[%c32_268, %c1024_269], %273 {strides = array<i32>} : memref<96x2048xbf16, #tpu.memory_space<vmem>>, vector<32x256xbf16>,
    %c0_270 = arith.constant 0 : index
    %c1280_271 = arith.constant 1280 : index
    %276 = vector.load %arg19[%c0_270, %c1280_271] : memref<96x2048xbf16, #tpu.memory_space<vmem>>, vector<32x256xbf16>
    tpu.vector_store %arg19[%c0_270, %c1280_271], %273 {strides = array<i32>} : memref<96x2048xbf16, #tpu.memory_space<vmem>>, vector<32x256xbf16>,
    %277 = vector.extract_strided_slice %230 {offsets = [0, 1280], sizes = [32, 256], strides = [1, 1]} : vector<32x2048xf32> to vector<32x256xf32>
    %278 = arith.addf %277, %233 : vector<32x256xf32>
    %cst_272 = arith.constant 0.000000e+00 : f32
    %279 = vector.broadcast %cst_272 : f32 to vector<32x256xf32>
    %280 = arith.maximumf %278, %279 : vector<32x256xf32>
    %281 = arith.truncf %280 : vector<32x256xf32> to vector<32x256xbf16>
    %c64_273 = arith.constant 64 : index
    %c1024_274 = arith.constant 1024 : index
    %282 = vector.load %arg19[%c64_273, %c1024_274] : memref<96x2048xbf16, #tpu.memory_space<vmem>>, vector<32x256xbf16>
    tpu.vector_store %arg19[%c64_273, %c1024_274], %281 {strides = array<i32>} : memref<96x2048xbf16, #tpu.memory_space<vmem>>, vector<32x256xbf16>,
    %c32_275 = arith.constant 32 : index
    %c1280_276 = arith.constant 1280 : index
    %283 = vector.load %arg19[%c32_275, %c1280_276] : memref<96x2048xbf16, #tpu.memory_space<vmem>>, vector<32x256xbf16>
    tpu.vector_store %arg19[%c32_275, %c1280_276], %281 {strides = array<i32>} : memref<96x2048xbf16, #tpu.memory_space<vmem>>, vector<32x256xbf16>,
    %c0_277 = arith.constant 0 : index
    %c1536_278 = arith.constant 1536 : index
    %284 = vector.load %arg19[%c0_277, %c1536_278] : memref<96x2048xbf16, #tpu.memory_space<vmem>>, vector<32x256xbf16>
    tpu.vector_store %arg19[%c0_277, %c1536_278], %281 {strides = array<i32>} : memref<96x2048xbf16, #tpu.memory_space<vmem>>, vector<32x256xbf16>,
    %285 = vector.extract_strided_slice %230 {offsets = [0, 1536], sizes = [32, 256], strides = [1, 1]} : vector<32x2048xf32> to vector<32x256xf32>
    %286 = arith.addf %285, %233 : vector<32x256xf32>
    %cst_279 = arith.constant 0.000000e+00 : f32
    %287 = vector.broadcast %cst_279 : f32 to vector<32x256xf32>
    %288 = arith.maximumf %286, %287 : vector<32x256xf32>
    %289 = arith.truncf %288 : vector<32x256xf32> to vector<32x256xbf16>
    %c64_280 = arith.constant 64 : index
    %c1280_281 = arith.constant 1280 : index
    %290 = vector.load %arg19[%c64_280, %c1280_281] : memref<96x2048xbf16, #tpu.memory_space<vmem>>, vector<32x256xbf16>
    tpu.vector_store %arg19[%c64_280, %c1280_281], %289 {strides = array<i32>} : memref<96x2048xbf16, #tpu.memory_space<vmem>>, vector<32x256xbf16>,
    %c32_282 = arith.constant 32 : index
    %c1536_283 = arith.constant 1536 : index
    %291 = vector.load %arg19[%c32_282, %c1536_283] : memref<96x2048xbf16, #tpu.memory_space<vmem>>, vector<32x256xbf16>
    tpu.vector_store %arg19[%c32_282, %c1536_283], %289 {strides = array<i32>} : memref<96x2048xbf16, #tpu.memory_space<vmem>>, vector<32x256xbf16>,
    %c0_284 = arith.constant 0 : index
    %c1792_285 = arith.constant 1792 : index
    %292 = vector.load %arg19[%c0_284, %c1792_285] : memref<96x2048xbf16, #tpu.memory_space<vmem>>, vector<32x256xbf16>
    tpu.vector_store %arg19[%c0_284, %c1792_285], %289 {strides = array<i32>} : memref<96x2048xbf16, #tpu.memory_space<vmem>>, vector<32x256xbf16>,
    %293 = vector.extract_strided_slice %230 {offsets = [0, 1792], sizes = [32, 256], strides = [1, 1]} : vector<32x2048xf32> to vector<32x256xf32>
    %294 = arith.addf %293, %233 : vector<32x256xf32>
    %cst_286 = arith.constant 0.000000e+00 : f32
    %295 = vector.broadcast %cst_286 : f32 to vector<32x256xf32>
    %296 = arith.maximumf %294, %295 : vector<32x256xf32>
    %297 = arith.truncf %296 : vector<32x256xf32> to vector<32x256xbf16>
    %cst_287 = arith.constant 0.000000e+00 : bf16
    %298 = vector.broadcast %cst_287 : bf16 to vector<32x1xbf16>
    %299 = vector.extract_strided_slice %297 {offsets = [0, 0], sizes = [32, 255], strides = [1, 1]} : vector<32x256xbf16> to vector<32x255xbf16>
    %300 = tpu.concatenate %298, %299 in 1 : vector<32x1xbf16>, vector<32x255xbf16> -> vector<32x256xbf16>
    %c0_288 = arith.constant 0 : index
    %c0_289 = arith.constant 0 : index
    %301 = vector.load %arg19[%c0_288, %c0_289] : memref<96x2048xbf16, #tpu.memory_space<vmem>>, vector<32x256xbf16>
    tpu.vector_store %arg19[%c0_288, %c0_289], %300 {strides = array<i32>} : memref<96x2048xbf16, #tpu.memory_space<vmem>>, vector<32x256xbf16>,
    %c64_290 = arith.constant 64 : index
    %c1536_291 = arith.constant 1536 : index
    %302 = vector.load %arg19[%c64_290, %c1536_291] : memref<96x2048xbf16, #tpu.memory_space<vmem>>, vector<32x256xbf16>
    tpu.vector_store %arg19[%c64_290, %c1536_291], %297 {strides = array<i32>} : memref<96x2048xbf16, #tpu.memory_space<vmem>>, vector<32x256xbf16>,
    %c32_292 = arith.constant 32 : index
    %c1792_293 = arith.constant 1792 : index
    %303 = vector.load %arg19[%c32_292, %c1792_293] : memref<96x2048xbf16, #tpu.memory_space<vmem>>, vector<32x256xbf16>
    tpu.vector_store %arg19[%c32_292, %c1792_293], %297 {strides = array<i32>} : memref<96x2048xbf16, #tpu.memory_space<vmem>>, vector<32x256xbf16>,
    %c0_294 = arith.constant 0 : index
    %c0_295 = arith.constant 0 : index
    %304 = vector.load %arg6[%c0_294, %c0_295] : memref<48x96xbf16, #tpu.memory_space<vmem>>, vector<48x96xbf16>
    %c0_296 = arith.constant 0 : index
    %c0_297 = arith.constant 0 : index
    %305 = vector.load %arg19[%c0_296, %c0_297] : memref<96x2048xbf16, #tpu.memory_space<vmem>>, vector<96x2048xbf16>
    %cst_298 = arith.constant dense<0.000000e+00> : vector<48x2048xf32>
    %306 = tpu.matmul %304, %305, %cst_298 {dimension_numbers = #tpu.dot_dimension_numbers<[1], [0], [0], [1], [0, 0, 1, 1], [], []>} : vector<48x96xbf16>, vector<96x2048xbf16>, vector<48x2048xf32> -> vector<48x2048xf32>
    %c0_299 = arith.constant 0 : index
    %c0_300 = arith.constant 0 : index
    %307 = vector.load %arg7[%c0_299, %c0_300] : memref<48x1xf32, #tpu.memory_space<vmem>>, vector<48x1xf32>
    %308 = vector.shape_cast %307 : vector<48x1xf32> to vector<48x1xf32>
    %309 = vector.broadcast %308 : vector<48x1xf32> to vector<48x256xf32>
    %310 = vector.extract_strided_slice %306 {offsets = [0, 0], sizes = [48, 256], strides = [1, 1]} : vector<48x2048xf32> to vector<48x256xf32>
    %311 = arith.addf %310, %309 : vector<48x256xf32>
    %cst_301 = arith.constant 0.000000e+00 : f32
    %312 = vector.broadcast %cst_301 : f32 to vector<48x256xf32>
    %313 = arith.maximumf %311, %312 : vector<48x256xf32>
    %314 = arith.truncf %313 : vector<48x256xf32> to vector<48x256xbf16>
    %c48 = arith.constant 48 : index
    %c0_302 = arith.constant 0 : index
    %315 = vector.load %arg20[%c48, %c0_302] : memref<144x1024xbf16, #tpu.memory_space<vmem>>, vector<48x256xbf16>
    tpu.vector_store %arg20[%c48, %c0_302], %314 {strides = array<i32>} : memref<144x1024xbf16, #tpu.memory_space<vmem>>, vector<48x256xbf16>,
    %316 = vector.extract_strided_slice %306 {offsets = [0, 256], sizes = [48, 256], strides = [1, 1]} : vector<48x2048xf32> to vector<48x256xf32>
    %317 = arith.addf %316, %309 : vector<48x256xf32>
    %cst_303 = arith.constant 0.000000e+00 : f32
    %318 = vector.broadcast %cst_303 : f32 to vector<48x256xf32>
    %319 = arith.maximumf %317, %318 : vector<48x256xf32>
    %320 = arith.truncf %319 : vector<48x256xf32> to vector<48x256xbf16>
    %c96 = arith.constant 96 : index
    %c0_304 = arith.constant 0 : index
    %321 = vector.load %arg20[%c96, %c0_304] : memref<144x1024xbf16, #tpu.memory_space<vmem>>, vector<48x256xbf16>
    tpu.vector_store %arg20[%c96, %c0_304], %320 {strides = array<i32>} : memref<144x1024xbf16, #tpu.memory_space<vmem>>, vector<48x256xbf16>,
    %c0_305 = arith.constant 0 : index
    %c256_306 = arith.constant 256 : index
    %322 = vector.load %arg20[%c0_305, %c256_306] : memref<144x1024xbf16, #tpu.memory_space<vmem>>, vector<48x256xbf16>
    tpu.vector_store %arg20[%c0_305, %c256_306], %320 {strides = array<i32>} : memref<144x1024xbf16, #tpu.memory_space<vmem>>, vector<48x256xbf16>,
    %323 = vector.extract_strided_slice %306 {offsets = [0, 512], sizes = [48, 256], strides = [1, 1]} : vector<48x2048xf32> to vector<48x256xf32>
    %324 = arith.addf %323, %309 : vector<48x256xf32>
    %cst_307 = arith.constant 0.000000e+00 : f32
    %325 = vector.broadcast %cst_307 : f32 to vector<48x256xf32>
    %326 = arith.maximumf %324, %325 : vector<48x256xf32>
    %327 = arith.truncf %326 : vector<48x256xf32> to vector<48x256xbf16>
    %c48_308 = arith.constant 48 : index
    %c256_309 = arith.constant 256 : index
    %328 = vector.load %arg20[%c48_308, %c256_309] : memref<144x1024xbf16, #tpu.memory_space<vmem>>, vector<48x256xbf16>
    tpu.vector_store %arg20[%c48_308, %c256_309], %327 {strides = array<i32>} : memref<144x1024xbf16, #tpu.memory_space<vmem>>, vector<48x256xbf16>,
    %329 = vector.extract_strided_slice %306 {offsets = [0, 768], sizes = [48, 256], strides = [1, 1]} : vector<48x2048xf32> to vector<48x256xf32>
    %330 = arith.addf %329, %309 : vector<48x256xf32>
    %cst_310 = arith.constant 0.000000e+00 : f32
    %331 = vector.broadcast %cst_310 : f32 to vector<48x256xf32>
    %332 = arith.maximumf %330, %331 : vector<48x256xf32>
    %333 = arith.truncf %332 : vector<48x256xf32> to vector<48x256xbf16>
    %c96_311 = arith.constant 96 : index
    %c256_312 = arith.constant 256 : index
    %334 = vector.load %arg20[%c96_311, %c256_312] : memref<144x1024xbf16, #tpu.memory_space<vmem>>, vector<48x256xbf16>
    tpu.vector_store %arg20[%c96_311, %c256_312], %333 {strides = array<i32>} : memref<144x1024xbf16, #tpu.memory_space<vmem>>, vector<48x256xbf16>,
    %c0_313 = arith.constant 0 : index
    %c512_314 = arith.constant 512 : index
    %335 = vector.load %arg20[%c0_313, %c512_314] : memref<144x1024xbf16, #tpu.memory_space<vmem>>, vector<48x256xbf16>
    tpu.vector_store %arg20[%c0_313, %c512_314], %333 {strides = array<i32>} : memref<144x1024xbf16, #tpu.memory_space<vmem>>, vector<48x256xbf16>,
    %336 = vector.extract_strided_slice %306 {offsets = [0, 1024], sizes = [48, 256], strides = [1, 1]} : vector<48x2048xf32> to vector<48x256xf32>
    %337 = arith.addf %336, %309 : vector<48x256xf32>
    %cst_315 = arith.constant 0.000000e+00 : f32
    %338 = vector.broadcast %cst_315 : f32 to vector<48x256xf32>
    %339 = arith.maximumf %337, %338 : vector<48x256xf32>
    %340 = arith.truncf %339 : vector<48x256xf32> to vector<48x256xbf16>
    %c48_316 = arith.constant 48 : index
    %c512_317 = arith.constant 512 : index
    %341 = vector.load %arg20[%c48_316, %c512_317] : memref<144x1024xbf16, #tpu.memory_space<vmem>>, vector<48x256xbf16>
    tpu.vector_store %arg20[%c48_316, %c512_317], %340 {strides = array<i32>} : memref<144x1024xbf16, #tpu.memory_space<vmem>>, vector<48x256xbf16>,
    %342 = vector.extract_strided_slice %306 {offsets = [0, 1280], sizes = [48, 256], strides = [1, 1]} : vector<48x2048xf32> to vector<48x256xf32>
    %343 = arith.addf %342, %309 : vector<48x256xf32>
    %cst_318 = arith.constant 0.000000e+00 : f32
    %344 = vector.broadcast %cst_318 : f32 to vector<48x256xf32>
    %345 = arith.maximumf %343, %344 : vector<48x256xf32>
    %346 = arith.truncf %345 : vector<48x256xf32> to vector<48x256xbf16>
    %c96_319 = arith.constant 96 : index
    %c512_320 = arith.constant 512 : index
    %347 = vector.load %arg20[%c96_319, %c512_320] : memref<144x1024xbf16, #tpu.memory_space<vmem>>, vector<48x256xbf16>
    tpu.vector_store %arg20[%c96_319, %c512_320], %346 {strides = array<i32>} : memref<144x1024xbf16, #tpu.memory_space<vmem>>, vector<48x256xbf16>,
    %c0_321 = arith.constant 0 : index
    %c768_322 = arith.constant 768 : index
    %348 = vector.load %arg20[%c0_321, %c768_322] : memref<144x1024xbf16, #tpu.memory_space<vmem>>, vector<48x256xbf16>
    tpu.vector_store %arg20[%c0_321, %c768_322], %346 {strides = array<i32>} : memref<144x1024xbf16, #tpu.memory_space<vmem>>, vector<48x256xbf16>,
    %349 = vector.extract_strided_slice %306 {offsets = [0, 1536], sizes = [48, 256], strides = [1, 1]} : vector<48x2048xf32> to vector<48x256xf32>
    %350 = arith.addf %349, %309 : vector<48x256xf32>
    %cst_323 = arith.constant 0.000000e+00 : f32
    %351 = vector.broadcast %cst_323 : f32 to vector<48x256xf32>
    %352 = arith.maximumf %350, %351 : vector<48x256xf32>
    %353 = arith.truncf %352 : vector<48x256xf32> to vector<48x256xbf16>
    %c48_324 = arith.constant 48 : index
    %c768_325 = arith.constant 768 : index
    %354 = vector.load %arg20[%c48_324, %c768_325] : memref<144x1024xbf16, #tpu.memory_space<vmem>>, vector<48x256xbf16>
    tpu.vector_store %arg20[%c48_324, %c768_325], %353 {strides = array<i32>} : memref<144x1024xbf16, #tpu.memory_space<vmem>>, vector<48x256xbf16>,
    %355 = vector.extract_strided_slice %306 {offsets = [0, 1792], sizes = [48, 256], strides = [1, 1]} : vector<48x2048xf32> to vector<48x256xf32>
    %356 = arith.addf %355, %309 : vector<48x256xf32>
    %cst_326 = arith.constant 0.000000e+00 : f32
    %357 = vector.broadcast %cst_326 : f32 to vector<48x256xf32>
    %358 = arith.maximumf %356, %357 : vector<48x256xf32>
    %359 = arith.truncf %358 : vector<48x256xf32> to vector<48x256xbf16>
    %cst_327 = arith.constant 0.000000e+00 : bf16
    %360 = vector.broadcast %cst_327 : bf16 to vector<48x1xbf16>
    %361 = vector.extract_strided_slice %359 {offsets = [0, 0], sizes = [48, 255], strides = [1, 1]} : vector<48x256xbf16> to vector<48x255xbf16>
    %362 = tpu.concatenate %360, %361 in 1 : vector<48x1xbf16>, vector<48x255xbf16> -> vector<48x256xbf16>
    %c0_328 = arith.constant 0 : index
    %c0_329 = arith.constant 0 : index
    %363 = vector.load %arg20[%c0_328, %c0_329] : memref<144x1024xbf16, #tpu.memory_space<vmem>>, vector<48x256xbf16>
    tpu.vector_store %arg20[%c0_328, %c0_329], %362 {strides = array<i32>} : memref<144x1024xbf16, #tpu.memory_space<vmem>>, vector<48x256xbf16>,
    %c96_330 = arith.constant 96 : index
    %c768_331 = arith.constant 768 : index
    %364 = vector.load %arg20[%c96_330, %c768_331] : memref<144x1024xbf16, #tpu.memory_space<vmem>>, vector<48x256xbf16>
    tpu.vector_store %arg20[%c96_330, %c768_331], %359 {strides = array<i32>} : memref<144x1024xbf16, #tpu.memory_space<vmem>>, vector<48x256xbf16>,
    %c0_332 = arith.constant 0 : index
    %c0_333 = arith.constant 0 : index
    %365 = vector.load %arg8[%c0_332, %c0_333] : memref<64x144xbf16, #tpu.memory_space<vmem>>, vector<64x144xbf16>
    %c0_334 = arith.constant 0 : index
    %c0_335 = arith.constant 0 : index
    %366 = vector.load %arg20[%c0_334, %c0_335] : memref<144x1024xbf16, #tpu.memory_space<vmem>>, vector<144x1024xbf16>
    %cst_336 = arith.constant dense<0.000000e+00> : vector<64x1024xf32>
    %367 = tpu.matmul %365, %366, %cst_336 {dimension_numbers = #tpu.dot_dimension_numbers<[1], [0], [0], [1], [0, 0, 1, 1], [], []>} : vector<64x144xbf16>, vector<144x1024xbf16>, vector<64x1024xf32> -> vector<64x1024xf32>
    %c0_337 = arith.constant 0 : index
    %c0_338 = arith.constant 0 : index
    %368 = vector.load %arg9[%c0_337, %c0_338] : memref<64x1xf32, #tpu.memory_space<vmem>>, vector<64x1xf32>
    %369 = vector.shape_cast %368 : vector<64x1xf32> to vector<64x1xf32>
    %370 = vector.broadcast %369 : vector<64x1xf32> to vector<64x256xf32>
    %371 = vector.extract_strided_slice %367 {offsets = [0, 0], sizes = [64, 256], strides = [1, 1]} : vector<64x1024xf32> to vector<64x256xf32>
    %372 = arith.addf %371, %370 : vector<64x256xf32>
    %cst_339 = arith.constant 0.000000e+00 : f32
    %373 = vector.broadcast %cst_339 : f32 to vector<64x256xf32>
    %374 = arith.maximumf %372, %373 : vector<64x256xf32>
    %375 = arith.truncf %374 : vector<64x256xf32> to vector<64x256xbf16>
    %c64_340 = arith.constant 64 : index
    %c0_341 = arith.constant 0 : index
    %376 = vector.load %arg21[%c64_340, %c0_341] : memref<192x512xbf16, #tpu.memory_space<vmem>>, vector<64x256xbf16>
    tpu.vector_store %arg21[%c64_340, %c0_341], %375 {strides = array<i32>} : memref<192x512xbf16, #tpu.memory_space<vmem>>, vector<64x256xbf16>,
    %377 = vector.extract_strided_slice %367 {offsets = [0, 256], sizes = [64, 256], strides = [1, 1]} : vector<64x1024xf32> to vector<64x256xf32>
    %378 = arith.addf %377, %370 : vector<64x256xf32>
    %cst_342 = arith.constant 0.000000e+00 : f32
    %379 = vector.broadcast %cst_342 : f32 to vector<64x256xf32>
    %380 = arith.maximumf %378, %379 : vector<64x256xf32>
    %381 = arith.truncf %380 : vector<64x256xf32> to vector<64x256xbf16>
    %c128 = arith.constant 128 : index
    %c0_343 = arith.constant 0 : index
    %382 = vector.load %arg21[%c128, %c0_343] : memref<192x512xbf16, #tpu.memory_space<vmem>>, vector<64x256xbf16>
    tpu.vector_store %arg21[%c128, %c0_343], %381 {strides = array<i32>} : memref<192x512xbf16, #tpu.memory_space<vmem>>, vector<64x256xbf16>,
    %c0_344 = arith.constant 0 : index
    %c256_345 = arith.constant 256 : index
    %383 = vector.load %arg21[%c0_344, %c256_345] : memref<192x512xbf16, #tpu.memory_space<vmem>>, vector<64x256xbf16>
    tpu.vector_store %arg21[%c0_344, %c256_345], %381 {strides = array<i32>} : memref<192x512xbf16, #tpu.memory_space<vmem>>, vector<64x256xbf16>,
    %384 = vector.extract_strided_slice %367 {offsets = [0, 512], sizes = [64, 256], strides = [1, 1]} : vector<64x1024xf32> to vector<64x256xf32>
    %385 = arith.addf %384, %370 : vector<64x256xf32>
    %cst_346 = arith.constant 0.000000e+00 : f32
    %386 = vector.broadcast %cst_346 : f32 to vector<64x256xf32>
    %387 = arith.maximumf %385, %386 : vector<64x256xf32>
    %388 = arith.truncf %387 : vector<64x256xf32> to vector<64x256xbf16>
    %c64_347 = arith.constant 64 : index
    %c256_348 = arith.constant 256 : index
    %389 = vector.load %arg21[%c64_347, %c256_348] : memref<192x512xbf16, #tpu.memory_space<vmem>>, vector<64x256xbf16>
    tpu.vector_store %arg21[%c64_347, %c256_348], %388 {strides = array<i32>} : memref<192x512xbf16, #tpu.memory_space<vmem>>, vector<64x256xbf16>,
    %390 = vector.extract_strided_slice %367 {offsets = [0, 768], sizes = [64, 256], strides = [1, 1]} : vector<64x1024xf32> to vector<64x256xf32>
    %391 = arith.addf %390, %370 : vector<64x256xf32>
    %cst_349 = arith.constant 0.000000e+00 : f32
    %392 = vector.broadcast %cst_349 : f32 to vector<64x256xf32>
    %393 = arith.maximumf %391, %392 : vector<64x256xf32>
    %394 = arith.truncf %393 : vector<64x256xf32> to vector<64x256xbf16>
    %cst_350 = arith.constant 0.000000e+00 : bf16
    %395 = vector.broadcast %cst_350 : bf16 to vector<64x1xbf16>
    %396 = vector.extract_strided_slice %394 {offsets = [0, 0], sizes = [64, 255], strides = [1, 1]} : vector<64x256xbf16> to vector<64x255xbf16>
    %397 = tpu.concatenate %395, %396 in 1 : vector<64x1xbf16>, vector<64x255xbf16> -> vector<64x256xbf16>
    %c0_351 = arith.constant 0 : index
    %c0_352 = arith.constant 0 : index
    %398 = vector.load %arg21[%c0_351, %c0_352] : memref<192x512xbf16, #tpu.memory_space<vmem>>, vector<64x256xbf16>
    tpu.vector_store %arg21[%c0_351, %c0_352], %397 {strides = array<i32>} : memref<192x512xbf16, #tpu.memory_space<vmem>>, vector<64x256xbf16>,
    %c128_353 = arith.constant 128 : index
    %c256_354 = arith.constant 256 : index
    %399 = vector.load %arg21[%c128_353, %c256_354] : memref<192x512xbf16, #tpu.memory_space<vmem>>, vector<64x256xbf16>
    tpu.vector_store %arg21[%c128_353, %c256_354], %394 {strides = array<i32>} : memref<192x512xbf16, #tpu.memory_space<vmem>>, vector<64x256xbf16>,
    %c0_355 = arith.constant 0 : index
    %c0_356 = arith.constant 0 : index
    %400 = vector.load %arg10[%c0_355, %c0_356] : memref<96x192xbf16, #tpu.memory_space<vmem>>, vector<96x192xbf16>
    %c0_357 = arith.constant 0 : index
    %c0_358 = arith.constant 0 : index
    %401 = vector.load %arg21[%c0_357, %c0_358] : memref<192x512xbf16, #tpu.memory_space<vmem>>, vector<192x512xbf16>
    %cst_359 = arith.constant dense<0.000000e+00> : vector<96x512xf32>
    %402 = tpu.matmul %400, %401, %cst_359 {dimension_numbers = #tpu.dot_dimension_numbers<[1], [0], [0], [1], [0, 0, 1, 1], [], []>} : vector<96x192xbf16>, vector<192x512xbf16>, vector<96x512xf32> -> vector<96x512xf32>
    %c0_360 = arith.constant 0 : index
    %c0_361 = arith.constant 0 : index
    %403 = vector.load %arg11[%c0_360, %c0_361] : memref<96x1xf32, #tpu.memory_space<vmem>>, vector<96x1xf32>
    %404 = vector.shape_cast %403 : vector<96x1xf32> to vector<96x1xf32>
    %405 = vector.broadcast %404 : vector<96x1xf32> to vector<96x256xf32>
    %406 = vector.extract_strided_slice %402 {offsets = [0, 0], sizes = [96, 256], strides = [1, 1]} : vector<96x512xf32> to vector<96x256xf32>
    %407 = arith.addf %406, %405 : vector<96x256xf32>
    %cst_362 = arith.constant 0.000000e+00 : f32
    %408 = vector.broadcast %cst_362 : f32 to vector<96x256xf32>
    %409 = arith.maximumf %407, %408 : vector<96x256xf32>
    %410 = arith.truncf %409 : vector<96x256xf32> to vector<96x256xbf16>
    %c96_363 = arith.constant 96 : index
    %c0_364 = arith.constant 0 : index
    %411 = vector.load %arg22[%c96_363, %c0_364] : memref<288x256xbf16, #tpu.memory_space<vmem>>, vector<96x256xbf16>
    tpu.vector_store %arg22[%c96_363, %c0_364], %410 {strides = array<i32>} : memref<288x256xbf16, #tpu.memory_space<vmem>>, vector<96x256xbf16>,
    %412 = vector.extract_strided_slice %402 {offsets = [0, 256], sizes = [96, 256], strides = [1, 1]} : vector<96x512xf32> to vector<96x256xf32>
    %413 = arith.addf %412, %405 : vector<96x256xf32>
    %cst_365 = arith.constant 0.000000e+00 : f32
    %414 = vector.broadcast %cst_365 : f32 to vector<96x256xf32>
    %415 = arith.maximumf %413, %414 : vector<96x256xf32>
    %416 = arith.truncf %415 : vector<96x256xf32> to vector<96x256xbf16>
    %cst_366 = arith.constant 0.000000e+00 : bf16
    %417 = vector.broadcast %cst_366 : bf16 to vector<96x1xbf16>
    %418 = vector.extract_strided_slice %416 {offsets = [0, 0], sizes = [96, 255], strides = [1, 1]} : vector<96x256xbf16> to vector<96x255xbf16>
    %419 = tpu.concatenate %417, %418 in 1 : vector<96x1xbf16>, vector<96x255xbf16> -> vector<96x256xbf16>
    %c0_367 = arith.constant 0 : index
    %c0_368 = arith.constant 0 : index
    %420 = vector.load %arg22[%c0_367, %c0_368] : memref<288x256xbf16, #tpu.memory_space<vmem>>, vector<96x256xbf16>
    tpu.vector_store %arg22[%c0_367, %c0_368], %419 {strides = array<i32>} : memref<288x256xbf16, #tpu.memory_space<vmem>>, vector<96x256xbf16>,
    %c192 = arith.constant 192 : index
    %c0_369 = arith.constant 0 : index
    %421 = vector.load %arg22[%c192, %c0_369] : memref<288x256xbf16, #tpu.memory_space<vmem>>, vector<96x256xbf16>
    tpu.vector_store %arg22[%c192, %c0_369], %416 {strides = array<i32>} : memref<288x256xbf16, #tpu.memory_space<vmem>>, vector<96x256xbf16>,
    %c0_370 = arith.constant 0 : index
    %c0_371 = arith.constant 0 : index
    %422 = vector.load %arg12[%c0_370, %c0_371] : memref<128x288xbf16, #tpu.memory_space<vmem>>, vector<128x288xbf16>
    %c0_372 = arith.constant 0 : index
    %c0_373 = arith.constant 0 : index
    %423 = vector.load %arg22[%c0_372, %c0_373] : memref<288x256xbf16, #tpu.memory_space<vmem>>, vector<288x256xbf16>
    %cst_374 = arith.constant dense<0.000000e+00> : vector<128x256xf32>
    %424 = tpu.matmul %422, %423, %cst_374 {dimension_numbers = #tpu.dot_dimension_numbers<[1], [0], [0], [1], [0, 0, 1, 1], [], []>} : vector<128x288xbf16>, vector<288x256xbf16>, vector<128x256xf32> -> vector<128x256xf32>
    %c0_375 = arith.constant 0 : index
    %c0_376 = arith.constant 0 : index
    %425 = vector.load %arg13[%c0_375, %c0_376] : memref<128x1xf32, #tpu.memory_space<vmem>>, vector<128x1xf32>
    %426 = vector.broadcast %425 : vector<128x1xf32> to vector<128x256xf32>
    %427 = arith.addf %424, %426 : vector<128x256xf32>
    %cst_377 = arith.constant 0.000000e+00 : f32
    %428 = vector.broadcast %cst_377 : f32 to vector<128x256xf32>
    %429 = arith.maximumf %427, %428 : vector<128x256xf32>
    %c0_378 = arith.constant 0 : index
    %c0_379 = arith.constant 0 : index
    %c0_380 = arith.constant 0 : index
    %430 = vector.load %arg14[%c0_378, %c0_379, %c0_380] : memref<2x128x256xf32, #tpu.memory_space<vmem>>, vector<1x128x256xf32>
    %431 = vector.shape_cast %430 : vector<1x128x256xf32> to vector<128x256xf32>
    %432 = arith.mulf %429, %431 : vector<128x256xf32>
    %cst_381 = arith.constant dense<0.000000e+00> : vector<128xf32>
    %433 = vector.multi_reduction <add>, %432, %cst_381 [1] : vector<128x256xf32> to vector<128xf32>
    %434 = vector.shape_cast %433 : vector<128xf32> to vector<128x1xf32>
    %c1 = arith.constant 1 : index
    %c0_382 = arith.constant 0 : index
    %c0_383 = arith.constant 0 : index
    %435 = vector.load %arg14[%c1, %c0_382, %c0_383] : memref<2x128x256xf32, #tpu.memory_space<vmem>>, vector<1x128x256xf32>
    %436 = vector.shape_cast %435 : vector<1x128x256xf32> to vector<128x256xf32>
    %437 = arith.mulf %429, %436 : vector<128x256xf32>
    %cst_384 = arith.constant dense<0.000000e+00> : vector<128xf32>
    %438 = vector.multi_reduction <add>, %437, %cst_384 [1] : vector<128x256xf32> to vector<128xf32>
    %439 = vector.shape_cast %438 : vector<128xf32> to vector<128x1xf32>
    %440 = tpu.concatenate %434, %439 in 1 : vector<128x1xf32>, vector<128x1xf32> -> vector<128x2xf32>
    %cst_385 = arith.constant dense<0.000000e+00> : vector<2xf32>
    %441 = vector.multi_reduction <add>, %440, %cst_385 [0] : vector<128x2xf32> to vector<2xf32>
    %442 = vector.shape_cast %441 : vector<2xf32> to vector<1x2xf32>
    %c0_386 = arith.constant 0 : index
    %c0_387 = arith.constant 0 : index
    %443 = vector.load %arg15[%c0_386, %c0_387] : memref<1x2xf32, #tpu.memory_space<vmem>>, vector<1x2xf32>
    %444 = arith.addf %442, %443 : vector<1x2xf32>
    %c0_388 = arith.constant 0 : index
    %c0_389 = arith.constant 0 : index
    %c0_390 = arith.constant 0 : index
    %445 = vector.load %arg16[%c0_388, %c0_389, %c0_390] : memref<1x1x2xf32, #tpu.memory_space<vmem>>, vector<1x1x2xf32>
    %446 = vector.shape_cast %445 : vector<1x1x2xf32> to vector<1x2xf32>
    %447 = vector.shape_cast %444 : vector<1x2xf32> to vector<1x1x2xf32>
    tpu.vector_store %arg16[%c0_388, %c0_389, %c0_390], %447 {strides = array<i32>} : memref<1x1x2xf32, #tpu.memory_space<vmem>>, vector<1x1x2xf32>,
    return
  }
  func.func @transform_0(%arg0: i32) -> (i32, i32, i32) {
    %c0_i32 = arith.constant 0 : i32
    %c0_i32_0 = arith.constant 0 : i32
    %c0_i32_1 = arith.constant 0 : i32
    return %arg0, %c0_i32, %c0_i32_0 : i32, i32, i32
  }
  func.func @transform_1(%arg0: i32) -> (i32, i32) {
    %c0_i32 = arith.constant 0 : i32
    %c0_i32_0 = arith.constant 0 : i32
    %c0_i32_1 = arith.constant 0 : i32
    return %c0_i32, %c0_i32_0 : i32, i32
  }
  func.func @transform_2(%arg0: i32) -> (i32, i32) {
    %c0_i32 = arith.constant 0 : i32
    %c0_i32_0 = arith.constant 0 : i32
    %c0_i32_1 = arith.constant 0 : i32
    return %c0_i32, %c0_i32_0 : i32, i32
  }
  func.func @transform_3(%arg0: i32) -> (i32, i32) {
    %c0_i32 = arith.constant 0 : i32
    %c0_i32_0 = arith.constant 0 : i32
    %c0_i32_1 = arith.constant 0 : i32
    return %c0_i32, %c0_i32_0 : i32, i32
  }
  func.func @transform_4(%arg0: i32) -> (i32, i32) {
    %c0_i32 = arith.constant 0 : i32
    %c0_i32_0 = arith.constant 0 : i32
    %c0_i32_1 = arith.constant 0 : i32
    return %c0_i32, %c0_i32_0 : i32, i32
  }
  func.func @transform_5(%arg0: i32) -> (i32, i32) {
    %c0_i32 = arith.constant 0 : i32
    %c0_i32_0 = arith.constant 0 : i32
    %c0_i32_1 = arith.constant 0 : i32
    return %c0_i32, %c0_i32_0 : i32, i32
  }
  func.func @transform_6(%arg0: i32) -> (i32, i32) {
    %c0_i32 = arith.constant 0 : i32
    %c0_i32_0 = arith.constant 0 : i32
    %c0_i32_1 = arith.constant 0 : i32
    return %c0_i32, %c0_i32_0 : i32, i32
  }
  func.func @transform_7(%arg0: i32) -> (i32, i32) {
    %c0_i32 = arith.constant 0 : i32
    %c0_i32_0 = arith.constant 0 : i32
    %c0_i32_1 = arith.constant 0 : i32
    return %c0_i32, %c0_i32_0 : i32, i32
  }
  func.func @transform_8(%arg0: i32) -> (i32, i32) {
    %c0_i32 = arith.constant 0 : i32
    %c0_i32_0 = arith.constant 0 : i32
    %c0_i32_1 = arith.constant 0 : i32
    return %c0_i32, %c0_i32_0 : i32, i32
  }
  func.func @transform_9(%arg0: i32) -> (i32, i32) {
    %c0_i32 = arith.constant 0 : i32
    %c0_i32_0 = arith.constant 0 : i32
    %c0_i32_1 = arith.constant 0 : i32
    return %c0_i32, %c0_i32_0 : i32, i32
  }
  func.func @transform_10(%arg0: i32) -> (i32, i32) {
    %c0_i32 = arith.constant 0 : i32
    %c0_i32_0 = arith.constant 0 : i32
    %c0_i32_1 = arith.constant 0 : i32
    return %c0_i32, %c0_i32_0 : i32, i32
  }
  func.func @transform_11(%arg0: i32) -> (i32, i32) {
    %c0_i32 = arith.constant 0 : i32
    %c0_i32_0 = arith.constant 0 : i32
    %c0_i32_1 = arith.constant 0 : i32
    return %c0_i32, %c0_i32_0 : i32, i32
  }
  func.func @transform_12(%arg0: i32) -> (i32, i32) {
    %c0_i32 = arith.constant 0 : i32
    %c0_i32_0 = arith.constant 0 : i32
    %c0_i32_1 = arith.constant 0 : i32
    return %c0_i32, %c0_i32_0 : i32, i32
  }
  func.func @transform_13(%arg0: i32) -> (i32, i32, i32) {
    %c0_i32 = arith.constant 0 : i32
    %c0_i32_0 = arith.constant 0 : i32
    %c0_i32_1 = arith.constant 0 : i32
    %c0_i32_2 = arith.constant 0 : i32
    return %c0_i32, %c0_i32_0, %c0_i32_1 : i32, i32, i32
  }
  func.func @transform_14(%arg0: i32) -> (i32, i32) {
    %c0_i32 = arith.constant 0 : i32
    %c0_i32_0 = arith.constant 0 : i32
    %c0_i32_1 = arith.constant 0 : i32
    return %c0_i32, %c0_i32_0 : i32, i32
  }
  func.func @transform_15(%arg0: i32) -> (i32, i32, i32) {
    %c0_i32 = arith.constant 0 : i32
    %c0_i32_0 = arith.constant 0 : i32
    %c0_i32_1 = arith.constant 0 : i32
    return %arg0, %c0_i32, %c0_i32_0 : i32, i32, i32
  }
}

</mosaic_0001>

<bundles_post_ra>
// kernel: wide6l1d_forward.1
= control target key start
LH: loop header
LB: loop body
LE: loop exit
PB: predicated region body
PF: predicated region fallthrough
CT: control target
= control target key end

     0   :  { %s9583_s0 = inlined_call_operand.vmem [shape: bf16[2,16,8192], index: 0, kind: input, shape index: {}]   ;;  %s9584_s1 = inlined_call_operand.vmem [shape: bf16[32,48], index: 1, kind: input, shape index: {}]   ;;  %s9585_s2 = inlined_call_operand.vmem [shape: f32[32,1], index: 2, kind: input, shape index: {}]   ;;  %s9586_s3 = inlined_call_operand.vmem [shape: bf16[32,96], index: 3, kind: input, shape index: {}]   ;;  %s9587_s4 = inlined_call_operand.vmem [shape: f32[32,1], index: 4, kind: input, shape index: {}]   ;;  %s9588_s5 = inlined_call_operand.vmem [shape: bf16[48,96], index: 5, kind: input, shape index: {}]   ;;  %s9589_s6 = inlined_call_operand.vmem [shape: f32[48,1], index: 6, kind: input, shape index: {}]   ;;  %s9590_s7 = inlined_call_operand.vmem [shape: bf16[64,144], index: 7, kind: input, shape index: {}]   ;;  %s9591_s8 = inlined_call_operand.vmem [shape: f32[64,1], index: 8, kind: input, shape index: {}]   ;;  %s9592_s9 = inlined_call_operand.vmem [shape: bf16[96,192], index: 9, kind: input, shape index: {}]   ;;  %s9593_s10 = inlined_call_operand.vmem [shape: f32[96,1], index: 10, kind: input, shape index: {}]   ;;  %s9594_s11 = inlined_call_operand.vmem [shape: bf16[128,288], index: 11, kind: input, shape index: {}]   ;;  %s9595_s12 = inlined_call_operand.vmem [shape: f32[128,1], index: 12, kind: input, shape index: {}]   ;;  %s9596_s13 = inlined_call_operand.vmem [shape: f32[2,128,256], index: 13, kind: input, shape index: {}]   ;;  %s9597_s14 = inlined_call_operand.vmem [shape: f32[1,2], index: 14, kind: input, shape index: {}]   ;;  %s9598_s15 = inlined_call_operand.hbm [shape: f32[2,1,2], index: 15, kind: output, shape index: {}]  }
   0x1   :  { %9612 = sst [smem:[#allocation22_spill]] %s9583_s0 }
   0x2   :  { %9613 = sst [smem:[#allocation23_spill]] %s9584_s1 }
   0x3   :  { %20 = vsyncpa [#allocation9], 0 }
   0x4   :  { %22 = vsyncpa [#allocation9 + $0x1], 0  ;;  %s7170_s18 = smov 0   ;;  %s7172_s19 = smov 0  }
   0x5   :  { %s7174_s20 = smov 0   ;;  %s7176_s21 = smov 0  }
   0x6 LB: > { %9614 = sst [smem:[#allocation11_spill]] %s7080_s20  ;;  %s7191_s22 = sadd.s32 4294967295, %s7084_s21   ;;  %s7084_s21 = sphi %s7176_s21, %s9641_s21   ;;  %s7080_s20 = sphi %s7174_s20, %s9646_s20   ;;  %s7076_s19 = sphi %s7172_s19, %s9645_s19   ;;  %s7072_s18 = sphi %s7170_s18, %s9644_s18  }
   0x7   : > { %s6542_s23 = sadd.s32 4294967294, %s7084_s21   ;;  %s7195_s24 = sadd.s32 1, %s7084_s21  }
   0x8   : > { %9615 = sst [smem:[#allocation12_spill]] %s7195_s24  ;;  %s355_s25 = sadd.s32 1, %s7080_s20 }
   0x9   : > { %s352_s26 = ssub.s32 %s7084_s21, %s7195_s24  ;;  %p365_p0 = scmp.ne.s32.totalorder %s7080_s20, %s7076_s19 }
   0xa   : > { %p353_p1 = scmp.eq.s32.totalorder %s352_s26, 0  ;;  %p366_p2 = scmp.eq.s32.totalorder %s7191_s22, 1 }
   0xb   : > { %p371_p3 = scmp.ne.s32.totalorder %s7076_s19, %s7072_s18  ;;  %p372_p4 = scmp.eq.s32.totalorder %s6542_s23, 1 }
   0xc   : > { %s7206_s27 = scalar_select %p353_p1, %s7080_s20, %s355_s25  }
   0xd   : > { %p7208_p5 = por %p366_p2, %p365_p0  ;;  %p7212_p6 = por %p372_p4, %p371_p3 }
   0xe   : > { %9616 = sst [smem:[#allocation13_spill]] %s7206_s27  ;;  %p6545_p7 = scmp.ge.s32.totalorder %s7084_s21, 1 }
   0xf   : > { %p440_p8 = scmp.lt.s32.totalorder %s7084_s21, 3 }
  0x11   : > { %p441_p9 = pnand %p6545_p7, %p440_p8 }
  0x13   : > { %444 = sbr.rel (%p441_p9) target bundleno = 2435 (0x983), region = 80 }
  0x1a   : > { %p487_p10 = scmp.lt.s32.totalorder %s7191_s22, 1  ;;  %v9602_v0 = vmov 0   ;;  %v1950_v1 = vld [vmem:[%s9585_s2] sm:$0xff]  ;;  %v1951_v2 = vld [vmem:[%s9585_s2 + $0x8] sm:$0xff]  ;;  %s9619_s0 = sld [smem:[#allocation22_spill]]  ;;  %v1953_v13 = vld [vmem:[%s9585_s2 + $0x18] sm:$0xff] }
  0x1b   : > { %1187 = vmatprep.mubr.bf16.mxu1 %v9602_v0  ;;  %6951 = vset.pattern.permute.xlu1 %v9602_v0  ;;  %v1952_v21 = vld [vmem:[%s9585_s2 + $0x10] sm:$0xff]  ;;  %s9620_s1 = sld [smem:[#allocation23_spill]]  ;;  %vm1095_vm0 = vcmask 392192   ;;  %vm971_vm1 = vcmask 7168   ;;  %vm2522_vm3 = vcmask 785408   ;;  %s7088_s23 = smov 127  }
  0x1c   : > { %s488_s30 = scalar_select %p487_p10, %s7191_s22, 1  ;;  %6952 = vset.pattern.permute.xlu0 %v9602_v0  ;;  %1134 = vmatprep.mubr.bf16.mxu0 %v9602_v0  ;;  %vm7443_vm2 = vmneg %vm971_vm1  ;;  %vm3017_vm4 = vcmask 1039360   ;;  %vm4406_vm5 = vcmask 130048   ;;  %vm5125_vm6 = vcmask 523264   ;;  %vm5908_vm7 = vcmask 261120  }
  0x1d   : > { %1956 = vperm.xlu1 %6951, %v1950_v1   ;;  %vm6432_vm8 = vcmask 15360   ;;  %vm6472_vm9 = vcmask 8192  }
  0x1e   : > { %s6806_s26 = sshll.u32 %s488_s30, 9  ;;  %s7087_s30 = smov 1  }
  0x20   : > { %s7233_s24 = scalar_lea.vmem %s9619_s0, %s6806_s26  ;;  %s485_s0 = sand.u32 1, %s7076_s19  }
  0x21   : > { %v957_v3 = vld [vmem:[%s7233_s24 + $0xf8] sm:$0xff]  ;;  %v507_v5 = vld [vmem:[%s7233_s24 + $0x8] sm:$0xff]  ;;  %v523_v8 = vld [vmem:[%s7233_s24 + $0x10] sm:$0xff]  ;;  %1961 = vperm.xlu1 %6951, %v1951_v2   ;;  %s486_s27 = scalar_lea.vmem [#allocation8], %s485_s0  ;;  %s6475_s26 = scalar_lea.sflag [#allocation9], %s485_s0 }
  0x22   : > { %v958_v4 = vld [vmem:[%s7233_s24 + $0x1f8] sm:$0xff]  ;;  %v508_v7 = vld [vmem:[%s7233_s24 + $0x108] sm:$0xff]  ;;  %v524_v9 = vld [vmem:[%s7233_s24 + $0x110] sm:$0xff]  ;;  %s6487_s16 = sshll.u32 %s486_s27, 4  ;;  %s9543_s16 = int_to_ptr.vmem [resolvable:$true] %s6487_s16 }
  0x23   : > { %v7238_v6 = vcombine.low %v957_v3, %v958_v4  ;;  %v7243_v10 = vcombine.high %v507_v5, %v508_v7  ;;  %v7245_v11 = vcombine.low %v507_v5, %v508_v7  ;;  %v6553_v12 = vcombine.high %v523_v8, %v524_v9  ;;  %v537_v15 = vld [vmem:[%s7233_s24 + $0x18] sm:$0xff]  ;;  %v567_v19 = vld [vmem:[%s7233_s24 + $0x28] sm:$0xff]  ;;  %v583_v24 = vld [vmem:[%s7233_s24 + $0x30] sm:$0xff] }
  0x24   : > { %v7250_v14 = vcombine.high %v957_v3, %v958_v4  ;;  %v538_v16 = vld [vmem:[%s7233_s24 + $0x118] sm:$0xff]  ;;  %v6552_v17 = vcombine.low %v523_v8, %v524_v9  ;;  %v568_v20 = vld [vmem:[%s7233_s24 + $0x128] sm:$0xff]  ;;  %v584_v25 = vld [vmem:[%s7233_s24 + $0x130] sm:$0xff] }
  0x25   : > { %967 = vrot.lane.b32.xlu0 %v7238_v6, %s7087_s30  ;;  %1155 = vmatprep.subr.bf16.mxu1 %v7243_v10  ;;  %v7258_v18 = vcombine.high %v537_v15, %v538_v16  ;;  %v7267_v22 = vcombine.low %v537_v15, %v538_v16  ;;  %v7270_v23 = vcombine.high %v567_v19, %v568_v20  ;;  %v7277_v26 = vld [vmem:[%s9620_s1] sm:$0xff]   ;;  %v597_v29 = vld [vmem:[%s7233_s24 + $0x38] sm:$0xff]  ;;  %v627_v32 = vld [vmem:[%s7233_s24 + $0x48] sm:$0xff] }
  0x26   : > { %1156 = vmatpush1.bf16.msra.mxu1 %v7245_v11  ;;  %1971 = vperm.xlu1 %6951, %v1953_v13   ;;  %v7280_v27 = vcombine.low %v567_v19, %v568_v20  ;;  %v6561_v28 = vcombine.high %v583_v24, %v584_v25  ;;  %v598_v30 = vld [vmem:[%s7233_s24 + $0x138] sm:$0xff]  ;;  %v6560_v31 = vcombine.low %v583_v24, %v584_v25  ;;  %v628_v33 = vld [vmem:[%s7233_s24 + $0x148] sm:$0xff]  ;;  %v643_v38 = vld [vmem:[%s7233_s24 + $0x50] sm:$0xff] }
  0x27   : > { %1157 = vmatprep.subr.bf16.mxu1 %v6553_v12  ;;  %v7294_v34 = vld [vmem:[%s9620_s1 + $0x8] sm:$0xff]   ;;  %v7296_v35 = vcombine.high %v597_v29, %v598_v30  ;;  %v7298_v36 = vcombine.low %v597_v29, %v598_v30  ;;  %v7301_v37 = vcombine.high %v627_v32, %v628_v33  ;;  %v644_v39 = vld [vmem:[%s7233_s24 + $0x150] sm:$0xff]  ;;  %v7310_v40 = vcombine.low %v627_v32, %v628_v33  ;;  %v657_v41 = vld [vmem:[%s7233_s24 + $0x58] sm:$0xff] }
  0x28   : > { %v658_v42 = vld [vmem:[%s7233_s24 + $0x158] sm:$0xff]  ;;  %v6569_v43 = vcombine.high %v643_v38, %v644_v39  ;;  %v6568_v44 = vcombine.low %v643_v38, %v644_v39  ;;  %v687_v45 = vld [vmem:[%s7233_s24 + $0x68] sm:$0xff]  ;;  %v703_v50 = vld [vmem:[%s7233_s24 + $0x70] sm:$0xff] }
  0x29   : > { %969 = vrot.lane.b32.xlu0 %v7250_v14, %s7087_s30  ;;  %v688_v46 = vld [vmem:[%s7233_s24 + $0x168] sm:$0xff]  ;;  %v7320_v47 = vcombine.high %v657_v41, %v658_v42  ;;  %v7322_v48 = vcombine.low %v657_v41, %v658_v42  ;;  %v704_v51 = vld [vmem:[%s7233_s24 + $0x170] sm:$0xff]  ;;  %v717_v54 = vld [vmem:[%s7233_s24 + $0x78] sm:$0xff] }
  0x2a   : > { %1158 = vmatpush1.bf16.msra.mxu1 %v6552_v17  ;;  %v7325_v49 = vcombine.high %v687_v45, %v688_v46  ;;  %v7334_v52 = vcombine.low %v687_v45, %v688_v46  ;;  %v6577_v53 = vcombine.high %v703_v50, %v704_v51  ;;  %v718_v55 = vld [vmem:[%s7233_s24 + $0x178] sm:$0xff]  ;;  %v6576_v56 = vcombine.low %v703_v50, %v704_v51  ;;  %v747_v58 = vld [vmem:[%s7233_s24 + $0x88] sm:$0xff]  ;;  %v763_v62 = vld [vmem:[%s7233_s24 + $0x90] sm:$0xff] }
  0x2b   : > { %1159 = vmatprep.subr.bf16.mxu1 %v7258_v18  ;;  %v7342_v57 = vcombine.high %v717_v54, %v718_v55  ;;  %v748_v59 = vld [vmem:[%s7233_s24 + $0x188] sm:$0xff]  ;;  %v7346_v60 = vcombine.low %v717_v54, %v718_v55  ;;  %v764_v63 = vld [vmem:[%s7233_s24 + $0x190] sm:$0xff]  ;;  %v777_v3 = vld [vmem:[%s7233_s24 + $0x98] sm:$0xff] }
  0x2c   : > { %v7349_v61 = vcombine.high %v747_v58, %v748_v59  ;;  %v7358_v1 = vcombine.low %v747_v58, %v748_v59  ;;  %v6585_v2 = vcombine.high %v763_v62, %v764_v63  ;;  %v778_v4 = vld [vmem:[%s7233_s24 + $0x198] sm:$0xff]  ;;  %v6584_v5 = vcombine.low %v763_v62, %v764_v63  ;;  %v807_v8 = vld [vmem:[%s7233_s24 + $0xa8] sm:$0xff]  ;;  %v823_v15 = vld [vmem:[%s7233_s24 + $0xb0] sm:$0xff] }
  0x2d   : > { %1966 = vperm.xlu0 %6952, %v1952_v21   ;;  %v7366_v7 = vcombine.high %v777_v3, %v778_v4  ;;  %v808_v9 = vld [vmem:[%s7233_s24 + $0x1a8] sm:$0xff]  ;;  %v7370_v12 = vcombine.low %v777_v3, %v778_v4  ;;  %v824_v16 = vld [vmem:[%s7233_s24 + $0x1b0] sm:$0xff]  ;;  %v837_v20 = vld [vmem:[%s7233_s24 + $0xb8] sm:$0xff] }
  0x2e   : > { %1160 = vmatpush1.bf16.msra.mxu1 %v7267_v22  ;;  %v7373_v13 = vcombine.high %v807_v8, %v808_v9  ;;  %v7382_v17 = vcombine.low %v807_v8, %v808_v9  ;;  %v6593_v19 = vcombine.high %v823_v15, %v824_v16  ;;  %v838_v21 = vld [vmem:[%s7233_s24 + $0x1b8] sm:$0xff]  ;;  %v6592_v24 = vcombine.low %v823_v15, %v824_v16  ;;  %v868_v29 = vld [vmem:[%s7233_s24 + $0x1c8] sm:$0xff]  ;;  %v883_v32 = vld [vmem:[%s7233_s24 + $0xd0] sm:$0xff] }
  0x2f   : > { %1261 = vmatprep.subr.bf16.mxu1 %v7270_v23  ;;  %v7390_v25 = vcombine.high %v837_v20, %v838_v21  ;;  %v7394_v30 = vcombine.low %v837_v20, %v838_v21  ;;  %v884_v33 = vld [vmem:[%s7233_s24 + $0x1d0] sm:$0xff]  ;;  %v897_v41 = vld [vmem:[%s7233_s24 + $0xd8] sm:$0xff]  ;;  %v927_v45 = vld [vmem:[%s7233_s24 + $0xe8] sm:$0xff] }
  0x30   : > { %v6601_v39 = vcombine.high %v883_v32, %v884_v33  ;;  %v898_v42 = vld [vmem:[%s7233_s24 + $0x1d8] sm:$0xff]  ;;  %v928_v46 = vld [vmem:[%s7233_s24 + $0x1e8] sm:$0xff]  ;;  %v944_v54 = vld [vmem:[%s7233_s24 + $0x1f0] sm:$0xff] }
  0x31   : > { %6616 = vmatmul.mubr.msk.bf16.vlgmr.msra.gmra.mrb[0].mxu1 %vm1095_vm0, %v7277_v26  ;;  %v7418_v50 = vcombine.low %v897_v41, %v898_v42  ;;  %v7421_v51 = vcombine.high %v927_v45, %v928_v46  ;;  %v7430_v55 = vcombine.low %v927_v45, %v928_v46  ;;  %v493_v62 = vld [vmem:[%s7233_s24] sm:$0xff] }
  0x32   : > { %1262 = vmatpush1.bf16.msra.mxu1 %v7280_v27  ;;  %1197 = vmatprep.mubr.bf16.mxu1 %v9602_v0  ;;  %v494_v63 = vld [vmem:[%s7233_s24 + $0x100] sm:$0xff] }
  0x33   : > { %1263 = vmatprep.subr.bf16.mxu1 %v6561_v28  ;;  %v867_v28 = vld [vmem:[%s7233_s24 + $0xc8] sm:$0xff]  ;;  %v6549_v4 = vcombine.high %v493_v62, %v494_v63  ;;  %v554_v8 = vld [vmem:[%s7233_s24 + $0x120] sm:$0xff] }
  0x34   : > { %v7406_v38 = vcombine.low %v867_v28, %v868_v29  ;;  %v913_v16 = vld [vmem:[%s7233_s24 + $0xe0] sm:$0xff] }
  0x35   : > { %v6990_v3 = vld [vmem:[%s9594_s11] ss:$12 sps:$4 sm:$0xff]  }
  0x36   : > { %1264 = vmatpush1.bf16.msra.mxu1 %v6560_v31  ;;  %v7397_v31 = vcombine.high %v867_v28, %v868_v29 }
  0x37   : > { %1265 = vmatprep.subr.bf16.mxu1 %v7296_v35 }
  0x39   : > { %6617 = vmatmul.mubr.msk.bf16.gmra.mrb[4].mxu1 %vm1095_vm0, %v7294_v34 }
  0x3a   : > { %1266 = vmatpush1.bf16.msra.mxu1 %v7298_v36  ;;  %1293 = vmatprep.mubr.bf16.mxu1 %v9602_v0 }
  0x3b   : > { %1367 = vmatprep.subr.bf16.mxu1 %v7301_v37 }
  0x41   : > { %6620 = vmatmul.mubr.msk.bf16.vlgmr.msra.gmra.mrb[8].mxu1 %vm1095_vm0, %v7277_v26 }
  0x42   : > { %1368 = vmatpush1.bf16.msra.mxu1 %v7310_v40  ;;  %1303 = vmatprep.mubr.bf16.mxu1 %v9602_v0 }
  0x43   : > { %1369 = vmatprep.subr.bf16.mxu1 %v6569_v43  ;;  %v6600_v43 = vcombine.low %v883_v32, %v884_v33 }
  0x46   : > { %1370 = vmatpush1.bf16.msra.mxu1 %v6568_v44  ;;  %v7414_v44 = vcombine.high %v897_v41, %v898_v42 }
  0x47   : > { %1371 = vmatprep.subr.bf16.mxu1 %v7320_v47 }
  0x49   : > { %6621 = vmatmul.mubr.msk.bf16.gmra.mrb[12].mxu1 %vm1095_vm0, %v7294_v34 }
  0x4a   : > { %1372 = vmatpush1.bf16.msra.mxu1 %v7322_v48  ;;  %1399 = vmatprep.mubr.bf16.mxu1 %v9602_v0 }
  0x4b   : > { %1473 = vmatprep.subr.bf16.mxu1 %v7325_v49 }
  0x51   : > { %6624 = vmatmul.mubr.msk.bf16.vlgmr.msra.gmra.mrb[16].mxu1 %vm1095_vm0, %v7277_v26 }
  0x52   : > { %1474 = vmatpush1.bf16.msra.mxu1 %v7334_v52  ;;  %1409 = vmatprep.mubr.bf16.mxu1 %v9602_v0 }
  0x53   : > { %1475 = vmatprep.subr.bf16.mxu1 %v6577_v53  ;;  %v943_v53 = vld [vmem:[%s7233_s24 + $0xf0] sm:$0xff] }
  0x54   : > { %v6608_v58 = vcombine.low %v943_v53, %v944_v54 }
  0x56   : > { %1476 = vmatpush1.bf16.msra.mxu1 %v6576_v56  ;;  %v6609_v56 = vcombine.high %v943_v53, %v944_v54 }
  0x57   : > { %1477 = vmatprep.subr.bf16.mxu1 %v7342_v57 }
  0x59   : > { %6625 = vmatmul.mubr.msk.bf16.gmra.mrb[20].mxu1 %vm1095_vm0, %v7294_v34 }
  0x5a   : > { %1478 = vmatpush1.bf16.msra.mxu1 %v7346_v60  ;;  %1505 = vmatprep.mubr.bf16.mxu1 %v9602_v0 }
  0x5b   : > { %1579 = vmatprep.subr.bf16.mxu1 %v7349_v61 }
  0x61   : > { %6628 = vmatmul.mubr.msk.bf16.vlgmr.msra.gmra.mrb[24].mxu1 %vm1095_vm0, %v7277_v26 }
  0x62   : > { %1580 = vmatpush1.bf16.msra.mxu1 %v7358_v1  ;;  %1515 = vmatprep.mubr.bf16.mxu1 %v9602_v0 }
  0x63   : > { %1581 = vmatprep.subr.bf16.mxu1 %v6585_v2 }
  0x66   : > { %1582 = vmatpush1.bf16.msra.mxu1 %v6584_v5  ;;  %v6548_v5 = vcombine.low %v493_v62, %v494_v63 }
  0x67   : > { %1583 = vmatprep.subr.bf16.mxu1 %v7366_v7 }
  0x69   : > { %6629 = vmatmul.mubr.msk.bf16.gmra.mrb[28].mxu1 %vm1095_vm0, %v7294_v34 }
  0x6a   : > { %1584 = vmatpush1.bf16.msra.mxu1 %v7370_v12  ;;  %1611 = vmatprep.mubr.bf16.mxu1 %v9602_v0 }
  0x6b   : > { %1685 = vmatprep.subr.bf16.mxu1 %v7373_v13 }
  0x71   : > { %6632 = vmatmul.mubr.msk.bf16.vlgmr.msra.gmra.mrb[32].mxu1 %vm1095_vm0, %v7277_v26 }
  0x72   : > { %1686 = vmatpush1.bf16.msra.mxu1 %v7382_v17  ;;  %1621 = vmatprep.mubr.bf16.mxu1 %v9602_v0 }
  0x73   : > { %1687 = vmatprep.subr.bf16.mxu1 %v6593_v19 }
  0x76   : > { %1688 = vmatpush1.bf16.msra.mxu1 %v6592_v24 }
  0x77   : > { %1689 = vmatprep.subr.bf16.mxu1 %v7390_v25 }
  0x79   : > { %6633 = vmatmul.mubr.msk.bf16.gmra.mrb[36].mxu1 %vm1095_vm0, %v7294_v34 }
  0x7a   : > { %1690 = vmatpush1.bf16.msra.mxu1 %v7394_v30  ;;  %1717 = vmatprep.mubr.bf16.mxu1 %v9602_v0 }
  0x7b   : > { %1791 = vmatprep.subr.bf16.mxu1 %v7397_v31 }
  0x81   : > { %6636 = vmatmul.mubr.msk.bf16.vlgmr.msra.gmra.mrb[40].mxu1 %vm1095_vm0, %v7277_v26 }
  0x82   : > { %1792 = vmatpush1.bf16.msra.mxu1 %v7406_v38  ;;  %1727 = vmatprep.mubr.bf16.mxu1 %v9602_v0 }
  0x83   : > { %1793 = vmatprep.subr.bf16.mxu1 %v6601_v39 }
  0x86   : > { %1794 = vmatpush1.bf16.msra.mxu1 %v6600_v43 }
  0x87   : > { %1795 = vmatprep.subr.bf16.mxu1 %v7414_v44 }
  0x89   : > { %6637 = vmatmul.mubr.msk.bf16.gmra.mrb[44].mxu1 %vm1095_vm0, %v7294_v34 }
  0x8a   : > { %1796 = vmatpush1.bf16.msra.mxu1 %v7418_v50  ;;  %1823 = vmatprep.mubr.bf16.mxu1 %v9602_v0 }
  0x8b   : > { %1897 = vmatprep.subr.bf16.mxu1 %v7421_v51 }
  0x91   : > { %6640 = vmatmul.mubr.msk.bf16.vlgmr.msra.gmra.mrb[48].mxu1 %vm1095_vm0, %v7277_v26 }
  0x92   : > { %1898 = vmatpush1.bf16.msra.mxu1 %v7430_v55  ;;  %1833 = vmatprep.mubr.bf16.mxu1 %v9602_v0 }
  0x93   : > { %1899 = vmatprep.subr.bf16.mxu1 %v6609_v56 }
  0x96   : > { %1900 = vmatpush1.bf16.msra.mxu1 %v6608_v58 }
  0x97   : > { %v968_v59 = vpop.permute.xlu0 %967  ;;  %1901 = vmatprep.subr.bf16.mxu1 %v7250_v14 }
  0x99   : > { %6641 = vmatmul.mubr.msk.bf16.gmra.mrb[52].mxu1 %vm1095_vm0, %v7294_v34 }
  0x9a   : > { %1902 = vmatpush1.bf16.msra.mxu1 %v7238_v6  ;;  %1929 = vmatprep.mubr.bf16.mxu1 %v9602_v0  ;;  %v553_v6 = vld [vmem:[%s7233_s24 + $0x20] sm:$0xff] }
  0x9b   : > { %v970_v2 = vpop.permute.xlu0 %969  ;;  %v6557_v9 = vcombine.high %v553_v6, %v554_v8 }
  0x9c   : > { %v972_v14 = vsel %vm971_vm1, %v968_v59, %v970_v2  ;;  %v7526_v15 = vpop.permute.xlu1 %1956 }
  0x9d   : > { %1102 = vmatprep.subr.bf16.mxu0 %v972_v14 }
  0x9e   : > { %6808 = vmatpush1.bf16.msk.msra.mxu0 %vm7443_vm2, %v968_v59 }
  0x9f   : > { %1104 = vmatprep.subr.bf16.mxu0 %v6549_v4 }
  0xa0   : > { %v7536_v20 = vpop.permute.xlu1 %1961 }
  0xa1   : > { %6644 = vmatmul.mubr.msk.bf16.vlgmr.msra.gmra.mrb[56].mxu1 %vm1095_vm0, %v7277_v26 }
  0xa2   : > { %1105 = vmatpush1.bf16.msra.mxu0 %v6548_v5  ;;  %1939 = vmatprep.mubr.bf16.mxu1 %v9602_v0 }
  0xa3   : > { %1106 = vmatprep.subr.bf16.mxu0 %v7243_v10  ;;  %v6556_v10 = vcombine.low %v553_v6, %v554_v8 }
  0xa5   : > { %v7552_v53 = vpop.permute.xlu1 %1971 }
  0xa6   : > { %1107 = vmatpush1.bf16.msra.mxu0 %v7245_v11  ;;  %v613_v11 = vld [vmem:[%s7233_s24 + $0x40] sm:$0xff] }
  0xa7   : > { %1208 = vmatprep.subr.bf16.mxu0 %v7258_v18  ;;  %v614_v18 = vld [vmem:[%s7233_s24 + $0x140] sm:$0xff] }
  0xa9   : > { %6614 = vmatmul.mubr.msk.bf16.vlgmr.msra.gmra.mrb[0].mxu0 %vm1095_vm0, %v7277_v26  ;;  %6645 = vmatmul.mubr.msk.bf16.gmra.mrb[60].mxu1 %vm1095_vm0, %v7294_v34 }
  0xaa   : > { %1209 = vmatpush1.bf16.msra.mxu0 %v7267_v22  ;;  %1144 = vmatprep.mubr.bf16.mxu0 %v9602_v0  ;;  %v6565_v22 = vcombine.high %v613_v11, %v614_v18 }
  0xab   : > { %1210 = vmatprep.subr.bf16.mxu0 %v6557_v9  ;;  %2614 = vmatprep.mubr.bf16.mxu1 %v9602_v0 }
  0xac   : > { %v7546_v43 = vpop.permute.xlu0 %1966 }
  0xae   : > { %1211 = vmatpush1.bf16.msra.mxu0 %v6556_v10 }
  0xaf   : > { %1212 = vmatprep.subr.bf16.mxu0 %v7270_v23  ;;  %v6564_v23 = vcombine.low %v613_v11, %v614_v18 }
  0xb1   : > { %6615 = vmatmul.mubr.msk.bf16.gmra.mrb[4].mxu0 %vm1095_vm0, %v7294_v34 }
  0xb2   : > { %1213 = vmatpush1.bf16.msra.mxu0 %v7280_v27  ;;  %1240 = vmatprep.mubr.bf16.mxu0 %v9602_v0  ;;  %v673_v27 = vld [vmem:[%s7233_s24 + $0x60] sm:$0xff] }
  0xb3   : > { %1314 = vmatprep.subr.bf16.mxu0 %v7296_v35  ;;  %v674_v35 = vld [vmem:[%s7233_s24 + $0x160] sm:$0xff] }
  0xb9   : > { %6618 = vmatmul.mubr.msk.bf16.vlgmr.msra.gmra.mrb[8].mxu0 %vm1095_vm0, %v7277_v26 }
  0xba   : > { %1315 = vmatpush1.bf16.msra.mxu0 %v7298_v36  ;;  %1250 = vmatprep.mubr.bf16.mxu0 %v9602_v0  ;;  %v6573_v36 = vcombine.high %v673_v27, %v674_v35 }
  0xbb   : > { %1316 = vmatprep.subr.bf16.mxu0 %v6565_v22 }
  0xbe   : > { %1317 = vmatpush1.bf16.msra.mxu0 %v6564_v23 }
  0xbf   : > { %1318 = vmatprep.subr.bf16.mxu0 %v7301_v37  ;;  %v6572_v37 = vcombine.low %v673_v27, %v674_v35 }
  0xc1   : > { %6619 = vmatmul.mubr.msk.bf16.gmra.mrb[12].mxu0 %vm1095_vm0, %v7294_v34 }
  0xc2   : > { %1319 = vmatpush1.bf16.msra.mxu0 %v7310_v40  ;;  %1346 = vmatprep.mubr.bf16.mxu0 %v9602_v0  ;;  %v733_v40 = vld [vmem:[%s7233_s24 + $0x80] sm:$0xff] }
  0xc3   : > { %1420 = vmatprep.subr.bf16.mxu0 %v7320_v47  ;;  %v734_v47 = vld [vmem:[%s7233_s24 + $0x180] sm:$0xff] }
  0xc9   : > { %6622 = vmatmul.mubr.msk.bf16.vlgmr.msra.gmra.mrb[16].mxu0 %vm1095_vm0, %v7277_v26 }
  0xca   : > { %1421 = vmatpush1.bf16.msra.mxu0 %v7322_v48  ;;  %1356 = vmatprep.mubr.bf16.mxu0 %v9602_v0  ;;  %v6581_v48 = vcombine.high %v733_v40, %v734_v47 }
  0xcb   : > { %1422 = vmatprep.subr.bf16.mxu0 %v6573_v36 }
  0xce   : > { %1423 = vmatpush1.bf16.msra.mxu0 %v6572_v37 }
  0xcf   : > { %1424 = vmatprep.subr.bf16.mxu0 %v7325_v49  ;;  %v6580_v49 = vcombine.low %v733_v40, %v734_v47 }
  0xd1   : > { %6623 = vmatmul.mubr.msk.bf16.gmra.mrb[20].mxu0 %vm1095_vm0, %v7294_v34 }
  0xd2   : > { %1425 = vmatpush1.bf16.msra.mxu0 %v7334_v52  ;;  %1452 = vmatprep.mubr.bf16.mxu0 %v9602_v0  ;;  %v793_v52 = vld [vmem:[%s7233_s24 + $0xa0] sm:$0xff] }
  0xd3   : > { %1526 = vmatprep.subr.bf16.mxu0 %v7342_v57  ;;  %v794_v57 = vld [vmem:[%s7233_s24 + $0x1a0] sm:$0xff] }
  0xd9   : > { %6626 = vmatmul.mubr.msk.bf16.vlgmr.msra.gmra.mrb[24].mxu0 %vm1095_vm0, %v7277_v26 }
  0xda   : > { %1527 = vmatpush1.bf16.msra.mxu0 %v7346_v60  ;;  %1462 = vmatprep.mubr.bf16.mxu0 %v9602_v0  ;;  %v6589_v60 = vcombine.high %v793_v52, %v794_v57 }
  0xdb   : > { %1528 = vmatprep.subr.bf16.mxu0 %v6581_v48 }
  0xde   : > { %1529 = vmatpush1.bf16.msra.mxu0 %v6580_v49 }
  0xdf   : > { %1530 = vmatprep.subr.bf16.mxu0 %v7349_v61  ;;  %v6588_v61 = vcombine.low %v793_v52, %v794_v57 }
  0xe1   : > { %6627 = vmatmul.mubr.msk.bf16.gmra.mrb[28].mxu0 %vm1095_vm0, %v7294_v34 }
  0xe2   : > { %1531 = vmatpush1.bf16.msra.mxu0 %v7358_v1  ;;  %1558 = vmatprep.mubr.bf16.mxu0 %v9602_v0  ;;  %v853_v1 = vld [vmem:[%s7233_s24 + $0xc0] sm:$0xff] }
  0xe3   : > { %1632 = vmatprep.subr.bf16.mxu0 %v7366_v7  ;;  %v854_v7 = vld [vmem:[%s7233_s24 + $0x1c0] sm:$0xff] }
  0xe9   : > { %6630 = vmatmul.mubr.msk.bf16.vlgmr.msra.gmra.mrb[32].mxu0 %vm1095_vm0, %v7277_v26 }
  0xea   : > { %1633 = vmatpush1.bf16.msra.mxu0 %v7370_v12  ;;  %1568 = vmatprep.mubr.bf16.mxu0 %v9602_v0  ;;  %v6597_v12 = vcombine.high %v853_v1, %v854_v7 }
  0xeb   : > { %1634 = vmatprep.subr.bf16.mxu0 %v6589_v60 }
  0xee   : > { %1635 = vmatpush1.bf16.msra.mxu0 %v6588_v61 }
  0xef   : > { %1636 = vmatprep.subr.bf16.mxu0 %v7373_v13  ;;  %v6596_v13 = vcombine.low %v853_v1, %v854_v7 }
  0xf1   : > { %6631 = vmatmul.mubr.msk.bf16.gmra.mrb[36].mxu0 %vm1095_vm0, %v7294_v34 }
  0xf2   : > { %1637 = vmatpush1.bf16.msra.mxu0 %v7382_v17  ;;  %1664 = vmatprep.mubr.bf16.mxu0 %v9602_v0  ;;  %v914_v17 = vld [vmem:[%s7233_s24 + $0x1e0] sm:$0xff]  ;;  %s6803_s24 = sshll.u32 %s7191_s22, 4  ;;  %s7089_s22 = smov [#allocation8]  }
  0xf3   : > { %1738 = vmatprep.subr.bf16.mxu0 %v7390_v25  ;;  %v6605_v29 = vcombine.high %v913_v16, %v914_v17  ;;  %v6604_v39 = vcombine.low %v913_v16, %v914_v17  ;;  %s9541_s25 = scalar_lea.hbm %s9598_s15, %s6803_s24  ;;  %s7026_s20 = sshll.u32 %s7089_s22, 4  ;;  %s7027_s20 = int_to_ptr.vmem [resolvable:$false] %s7026_s20 }
  0xf4   : > { %s7028_s1 = scalar_lea.vmem %s7027_s20, 32  ;;  %p7029_p0 = scmp.lt.s32.totalorder %s9543_s16, %s7027_s20 }
  0xf9   : > { %6634 = vmatmul.mubr.msk.bf16.vlgmr.msra.gmra.mrb[40].mxu0 %vm1095_vm0, %v7277_v26 }
  0xfa   : > { %1739 = vmatpush1.bf16.msra.mxu0 %v7394_v30  ;;  %1674 = vmatprep.mubr.bf16.mxu0 %v9602_v0 }
  0xfb   : > { %1740 = vmatprep.subr.bf16.mxu0 %v6597_v12 }
  0xfe   : > { %1741 = vmatpush1.bf16.msra.mxu0 %v6596_v13 }
  0xff   : > { %1742 = vmatprep.subr.bf16.mxu0 %v7397_v31 }
 0x101   : > { %6635 = vmatmul.mubr.msk.bf16.gmra.mrb[44].mxu0 %vm1095_vm0, %v7294_v34 }
 0x102   : > { %1743 = vmatpush1.bf16.msra.mxu0 %v7406_v38  ;;  %1770 = vmatprep.mubr.bf16.mxu0 %v9602_v0 }
 0x103   : > { %1844 = vmatprep.subr.bf16.mxu0 %v7414_v44 }
 0x104   : > { %v1189_v19 = vpop.f32.mrb[0].mxu1 }
 0x105   : > { %v1998_v21 = vadd.f32 %v7526_v15, %v1189_v19  ;;  %v1191_v24 = vpop.f32.mrb[1].mxu1 }
 0x106   : > { %v1999_v25 = vadd.f32 %v7526_v15, %v1191_v24  ;;  %v1193_v28 = vpop.f32.mrb[2].mxu1 }
 0x107   : > { %v2000_v30 = vadd.f32 %v7536_v20, %v1193_v28  ;;  %v1195_v31 = vpop.f32.mrb[3].mxu1  ;;  %v2006_v33 = vmax.f32 %v1998_v21, 0.0 }
 0x108   : > { %v2001_v32 = vadd.f32 %v7536_v20, %v1195_v31  ;;  %v2007_v41 = vmax.f32 %v1999_v25, 0.0 }
 0x109   : > { %6638 = vmatmul.mubr.msk.bf16.vlgmr.msra.gmra.mrb[48].mxu0 %vm1095_vm0, %v7277_v26  ;;  %v2008_v38 = vmax.f32 %v2000_v30, 0.0 }
 0x10a   : > { %1845 = vmatpush1.bf16.msra.mxu0 %v7418_v50  ;;  %1780 = vmatprep.mubr.bf16.mxu0 %v9602_v0  ;;  %v2009_v42 = vmax.f32 %v2001_v32, 0.0 }
 0x10b   : > { %1846 = vmatprep.subr.bf16.mxu0 %v6605_v29  ;;  %v7548_v44 = vpack.c.bf16 %v2008_v38, %v2006_v33 }
 0x10c   : > { %v7550_v45 = vpack.c.bf16 %v2009_v42, %v2007_v41  ;;  %v1199_v46 = vpop.f32.mrb[4].mxu1 }
 0x10d   : > { %v2002_v54 = vadd.f32 %v7546_v43, %v1199_v46  ;;  %v1201_v56 = vpop.f32.mrb[5].mxu1 }
 0x10e   : > { %1847 = vmatpush1.bf16.msra.mxu0 %v6604_v39  ;;  %v2003_v50 = vadd.f32 %v7546_v43, %v1201_v56  ;;  %v1203_v58 = vpop.f32.mrb[6].mxu1  ;;  %2582 = vmatprep.subr.bf16.mxu1 %v7550_v45 }
 0x10f   : > { %1848 = vmatprep.subr.bf16.mxu0 %v7421_v51  ;;  %v2004_v59 = vadd.f32 %v7552_v53, %v1203_v58  ;;  %v1205_v62 = vpop.f32.mrb[7].mxu1  ;;  %2583 = vmatpush1.bf16.msra.mxu1 %v7548_v44  ;;  %v2010_v2 = vmax.f32 %v2002_v54, 0.0 }
 0x110   : > { %v2005_v63 = vadd.f32 %v7552_v53, %v1205_v62  ;;  %v2011_v14 = vmax.f32 %v2003_v50, 0.0 }
 0x111   : > { %6639 = vmatmul.mubr.msk.bf16.gmra.mrb[52].mxu0 %vm1095_vm0, %v7294_v34  ;;  %v2012_v4 = vmax.f32 %v2004_v59, 0.0 }
 0x112   : > { %1849 = vmatpush1.bf16.msra.mxu0 %v7430_v55  ;;  %1876 = vmatprep.mubr.bf16.mxu0 %v9602_v0  ;;  %v2013_v5 = vmax.f32 %v2005_v63, 0.0 }
 0x113   : > { %v7565_v6 = vpack.c.bf16 %v2012_v4, %v2010_v2 }
 0x114   : > { %v7567_v51 = vpack.c.bf16 %v2013_v5, %v2011_v14  ;;  %v1295_v8 = vpop.f32.mrb[8].mxu1 }
 0x115   : > { %v2050_v9 = vadd.f32 %v7526_v15, %v1295_v8  ;;  %v1297_v10 = vpop.f32.mrb[9].mxu1 }
 0x116   : > { %v2051_v11 = vadd.f32 %v7526_v15, %v1297_v10  ;;  %v1299_v18 = vpop.f32.mrb[10].mxu1  ;;  %2584 = vmatprep.subr.bf16.mxu1 %v7567_v51 }
 0x117   : > { %v2052_v22 = vadd.f32 %v7536_v20, %v1299_v18  ;;  %v1301_v55 = vpop.f32.mrb[11].mxu1  ;;  %2585 = vmatpush1.bf16.msra.mxu1 %v7565_v6  ;;  %v2058_v27 = vmax.f32 %v2050_v9, 0.0 }
 0x118   : > { %v2053_v23 = vadd.f32 %v7536_v20, %v1301_v55  ;;  %v2059_v36 = vmax.f32 %v2051_v11, 0.0 }
 0x119   : > { %6642 = vmatmul.mubr.msk.bf16.vlgmr.msra.gmra.mrb[56].mxu0 %vm1095_vm0, %v7277_v26  ;;  %v2060_v35 = vmax.f32 %v2052_v22, 0.0 }
 0x11a   : > { %1886 = vmatprep.mubr.bf16.mxu0 %v9602_v0  ;;  %v2061_v37 = vmax.f32 %v2053_v23, 0.0 }
 0x11b   : > { %v7578_v40 = vpack.c.bf16 %v2060_v35, %v2058_v27 }
 0x11c   : > { %v7580_v47 = vpack.c.bf16 %v2061_v37, %v2059_v36  ;;  %v1305_v48 = vpop.f32.mrb[12].mxu1 }
 0x11d   : > { %v2054_v49 = vadd.f32 %v7546_v43, %v1305_v48  ;;  %v1307_v52 = vpop.f32.mrb[13].mxu1 }
 0x11e   : > { %v2055_v57 = vadd.f32 %v7546_v43, %v1307_v52  ;;  %v1309_v60 = vpop.f32.mrb[14].mxu1 }
 0x11f   : > { %v2056_v61 = vadd.f32 %v7552_v53, %v1309_v60  ;;  %v1311_v26 = vpop.f32.mrb[15].mxu1  ;;  %v2062_v7 = vmax.f32 %v2054_v49, 0.0 }
 0x120   : > { %v2057_v1 = vadd.f32 %v7552_v53, %v1311_v26  ;;  %v2063_v13 = vmax.f32 %v2055_v57, 0.0 }
 0x121   : > { %6643 = vmatmul.mubr.msk.bf16.gmra.mrb[60].mxu0 %vm1095_vm0, %v7294_v34  ;;  %v2064_v12 = vmax.f32 %v2056_v61, 0.0 }
 0x122   : > { %2561 = vmatprep.mubr.bf16.mxu0 %v9602_v0  ;;  %v2065_v16 = vmax.f32 %v2057_v1, 0.0 }
 0x123   : > { %v7589_v17 = vpack.c.bf16 %v2064_v12, %v2062_v7 }
 0x124   : > { %v7591_v19 = vpack.c.bf16 %v2065_v16, %v2063_v13  ;;  %v1401_v21 = vpop.f32.mrb[16].mxu1 }
 0x125   : > { %v2102_v24 = vadd.f32 %v7526_v15, %v1401_v21  ;;  %v1403_v25 = vpop.f32.mrb[17].mxu1 }
 0x126   : > { %v2103_v28 = vadd.f32 %v7526_v15, %v1403_v25  ;;  %v1405_v29 = vpop.f32.mrb[18].mxu1 }
 0x127   : > { %v2104_v30 = vadd.f32 %v7536_v20, %v1405_v29  ;;  %v1407_v34 = vpop.f32.mrb[19].mxu1  ;;  %v2110_v32 = vmax.f32 %v2102_v24, 0.0 }
 0x128   : > { %v2105_v31 = vadd.f32 %v7536_v20, %v1407_v34  ;;  %v2111_v38 = vmax.f32 %v2103_v28, 0.0 }
 0x129   : > { %v2112_v33 = vmax.f32 %v2104_v30, 0.0 }
 0x12a   : > { %v2113_v39 = vmax.f32 %v2105_v31, 0.0 }
 0x12b   : > { %v7597_v41 = vpack.c.bf16 %v2112_v33, %v2110_v32 }
 0x12c   : > { %v7599_v42 = vpack.c.bf16 %v2113_v39, %v2111_v38  ;;  %v1411_v46 = vpop.f32.mrb[20].mxu1 }
 0x12d   : > { %v2106_v54 = vadd.f32 %v7546_v43, %v1411_v46  ;;  %v1413_v56 = vpop.f32.mrb[21].mxu1 }
 0x12e   : > { %v2107_v50 = vadd.f32 %v7546_v43, %v1413_v56  ;;  %v1415_v58 = vpop.f32.mrb[22].mxu1 }
 0x12f   : > { %v2108_v59 = vadd.f32 %v7552_v53, %v1415_v58  ;;  %v1417_v62 = vpop.f32.mrb[23].mxu1  ;;  %v2114_v2 = vmax.f32 %v2106_v54, 0.0 }
 0x130   : > { %v2109_v63 = vadd.f32 %v7552_v53, %v1417_v62  ;;  %v2115_v14 = vmax.f32 %v2107_v50, 0.0 }
 0x131   : > { %v2116_v4 = vmax.f32 %v2108_v59, 0.0 }
 0x132   : > { %v2117_v5 = vmax.f32 %v2109_v63, 0.0 }
 0x133   : > { %v7605_v8 = vpack.c.bf16 %v2116_v4, %v2114_v2 }
 0x134   : > { %v7607_v9 = vpack.c.bf16 %v2117_v5, %v2115_v14  ;;  %v1507_v10 = vpop.f32.mrb[24].mxu1 }
 0x135   : > { %9623 = vst [vmem:[#allocation14_spill] sm:$0xff] %v7605_v8  ;;  %v2154_v11 = vadd.f32 %v7526_v15, %v1507_v10  ;;  %v1509_v18 = vpop.f32.mrb[25].mxu1 }
 0x136   : > { %9624 = vst [vmem:[#allocation15_spill] sm:$0xff] %v7607_v9  ;;  %v2155_v22 = vadd.f32 %v7526_v15, %v1509_v18  ;;  %v1511_v55 = vpop.f32.mrb[26].mxu1 }
 0x137   : > { %v2156_v23 = vadd.f32 %v7536_v20, %v1511_v55  ;;  %v1513_v27 = vpop.f32.mrb[27].mxu1  ;;  %v2162_v36 = vmax.f32 %v2154_v11, 0.0 }
 0x138   : > { %v2157_v35 = vadd.f32 %v7536_v20, %v1513_v27  ;;  %v2163_v48 = vmax.f32 %v2155_v22, 0.0 }
 0x139   : > { %v2164_v37 = vmax.f32 %v2156_v23, 0.0 }
 0x13a   : > { %v2165_v49 = vmax.f32 %v2157_v35, 0.0 }
 0x13b   : > { %v7613_v52 = vpack.c.bf16 %v2164_v37, %v2162_v36 }
 0x13c   : > { %v7615_v57 = vpack.c.bf16 %v2165_v49, %v2163_v48  ;;  %v1517_v60 = vpop.f32.mrb[28].mxu1 }
 0x13d   : > { %v2158_v61 = vadd.f32 %v7546_v43, %v1517_v60  ;;  %v1519_v26 = vpop.f32.mrb[29].mxu1 }
 0x13e   : > { %v2159_v1 = vadd.f32 %v7546_v43, %v1519_v26  ;;  %v1521_v7 = vpop.f32.mrb[30].mxu1 }
 0x13f   : > { %v2160_v12 = vadd.f32 %v7552_v53, %v1521_v7  ;;  %v1523_v13 = vpop.f32.mrb[31].mxu1  ;;  %v2166_v21 = vmax.f32 %v2158_v61, 0.0 }
 0x140   : > { %v2161_v16 = vadd.f32 %v7552_v53, %v1523_v13  ;;  %v2167_v25 = vmax.f32 %v2159_v1, 0.0 }
 0x141   : > { %v2168_v24 = vmax.f32 %v2160_v12, 0.0 }
 0x142   : > { %v2169_v28 = vmax.f32 %v2161_v16, 0.0 }
 0x143   : > { %v7621_v29 = vpack.c.bf16 %v2168_v24, %v2166_v21 }
 0x144   : > { %v7623_v30 = vpack.c.bf16 %v2169_v28, %v2167_v25  ;;  %v1613_v34 = vpop.f32.mrb[32].mxu1 }
 0x145   : > { %v2206_v31 = vadd.f32 %v7526_v15, %v1613_v34  ;;  %v1615_v32 = vpop.f32.mrb[33].mxu1 }
 0x146   : > { %v2207_v33 = vadd.f32 %v7526_v15, %v1615_v32  ;;  %v1617_v38 = vpop.f32.mrb[34].mxu1 }
 0x147   : > { %v2208_v39 = vadd.f32 %v7536_v20, %v1617_v38  ;;  %v1619_v46 = vpop.f32.mrb[35].mxu1  ;;  %v2214_v56 = vmax.f32 %v2206_v31, 0.0 }
 0x148   : > { %v2209_v54 = vadd.f32 %v7536_v20, %v1619_v46  ;;  %v2215_v58 = vmax.f32 %v2207_v33, 0.0 }
 0x149   : > { %v2216_v50 = vmax.f32 %v2208_v39, 0.0 }
 0x14a   : > { %v2217_v59 = vmax.f32 %v2209_v54, 0.0 }
 0x14b   : > { %v7629_v62 = vpack.c.bf16 %v2216_v50, %v2214_v56 }
 0x14c   : > { %v7631_v63 = vpack.c.bf16 %v2217_v59, %v2215_v58  ;;  %v1623_v2 = vpop.f32.mrb[36].mxu1 }
 0x14d   : > { %9625 = vst [vmem:[#allocation16_spill] sm:$0xff] %v7629_v62  ;;  %v2210_v4 = vadd.f32 %v7546_v43, %v1623_v2  ;;  %v1625_v14 = vpop.f32.mrb[37].mxu1 }
 0x14e   : > { %9626 = vst [vmem:[#allocation17_spill] sm:$0xff] %v7631_v63  ;;  %v2211_v5 = vadd.f32 %v7546_v43, %v1625_v14  ;;  %v1627_v10 = vpop.f32.mrb[38].mxu1 }
 0x14f   : > { %v2212_v11 = vadd.f32 %v7552_v53, %v1627_v10  ;;  %v1629_v18 = vpop.f32.mrb[39].mxu1  ;;  %v2218_v55 = vmax.f32 %v2210_v4, 0.0 }
 0x150   : > { %v2213_v22 = vadd.f32 %v7552_v53, %v1629_v18  ;;  %v2219_v27 = vmax.f32 %v2211_v5, 0.0 }
 0x151   : > { %v2220_v23 = vmax.f32 %v2212_v11, 0.0 }
 0x152   : > { %v2221_v35 = vmax.f32 %v2213_v22, 0.0 }
 0x153   : > { %v7637_v36 = vpack.c.bf16 %v2220_v23, %v2218_v55 }
 0x154   : > { %v7639_v37 = vpack.c.bf16 %v2221_v35, %v2219_v27  ;;  %v1719_v48 = vpop.f32.mrb[40].mxu1 }
 0x155   : > { %9627 = vst [vmem:[#allocation18_spill] sm:$0xff] %v7637_v36  ;;  %v2258_v49 = vadd.f32 %v7526_v15, %v1719_v48  ;;  %v1721_v60 = vpop.f32.mrb[41].mxu1 }
 0x156   : > { %9628 = vst [vmem:[#allocation19_spill] sm:$0xff] %v7639_v37  ;;  %v2259_v61 = vadd.f32 %v7526_v15, %v1721_v60  ;;  %v1723_v26 = vpop.f32.mrb[42].mxu1 }
 0x157   : > { %v2260_v1 = vadd.f32 %v7536_v20, %v1723_v26  ;;  %v1725_v7 = vpop.f32.mrb[43].mxu1  ;;  %v2266_v13 = vmax.f32 %v2258_v49, 0.0 }
 0x158   : > { %v2261_v12 = vadd.f32 %v7536_v20, %v1725_v7  ;;  %v2267_v21 = vmax.f32 %v2259_v61, 0.0 }
 0x159   : > { %v2268_v16 = vmax.f32 %v2260_v1, 0.0 }
 0x15a   : > { %v2269_v24 = vmax.f32 %v2261_v12, 0.0 }
 0x15b   : > { %v7645_v25 = vpack.c.bf16 %v2268_v16, %v2266_v13 }
 0x15c   : > { %v7647_v28 = vpack.c.bf16 %v2269_v24, %v2267_v21  ;;  %v1729_v34 = vpop.f32.mrb[44].mxu1 }
 0x15d   : > { %v2262_v31 = vadd.f32 %v7546_v43, %v1729_v34  ;;  %v1731_v32 = vpop.f32.mrb[45].mxu1 }
 0x15e   : > { %v2263_v33 = vadd.f32 %v7546_v43, %v1731_v32  ;;  %v1733_v38 = vpop.f32.mrb[46].mxu1 }
 0x15f   : > { %v2264_v39 = vadd.f32 %v7552_v53, %v1733_v38  ;;  %v1735_v46 = vpop.f32.mrb[47].mxu1  ;;  %v2270_v56 = vmax.f32 %v2262_v31, 0.0 }
 0x160   : > { %v2265_v54 = vadd.f32 %v7552_v53, %v1735_v46  ;;  %v2271_v58 = vmax.f32 %v2263_v33, 0.0 }
 0x161   : > { %v2272_v50 = vmax.f32 %v2264_v39, 0.0 }
 0x162   : > { %v2273_v59 = vmax.f32 %v2265_v54, 0.0 }
 0x163   : > { %v7653_v2 = vpack.c.bf16 %v2272_v50, %v2270_v56 }
 0x164   : > { %v7655_v4 = vpack.c.bf16 %v2273_v59, %v2271_v58  ;;  %v1825_v14 = vpop.f32.mrb[48].mxu1 }
 0x165   : > { %v2310_v5 = vadd.f32 %v7526_v15, %v1825_v14  ;;  %v1827_v10 = vpop.f32.mrb[49].mxu1 }
 0x166   : > { %v2311_v11 = vadd.f32 %v7526_v15, %v1827_v10  ;;  %v1829_v18 = vpop.f32.mrb[50].mxu1 }
 0x167   : > { %v2312_v22 = vadd.f32 %v7536_v20, %v1829_v18  ;;  %v1831_v55 = vpop.f32.mrb[51].mxu1  ;;  %v2318_v27 = vmax.f32 %v2310_v5, 0.0 }
 0x168   : > { %v2313_v23 = vadd.f32 %v7536_v20, %v1831_v55  ;;  %v2319_v48 = vmax.f32 %v2311_v11, 0.0 }
 0x169   : > { %v2320_v35 = vmax.f32 %v2312_v22, 0.0 }
 0x16a   : > { %v2321_v49 = vmax.f32 %v2313_v23, 0.0 }
 0x16b   : > { %v7661_v60 = vpack.c.bf16 %v2320_v35, %v2318_v27 }
 0x16c   : > { %v7663_v61 = vpack.c.bf16 %v2321_v49, %v2319_v48  ;;  %v1835_v26 = vpop.f32.mrb[52].mxu1 }
 0x16d   : > { %v2314_v1 = vadd.f32 %v7546_v43, %v1835_v26  ;;  %v1837_v7 = vpop.f32.mrb[53].mxu1 }
 0x16e   : > { %v2315_v12 = vadd.f32 %v7546_v43, %v1837_v7  ;;  %v1839_v13 = vpop.f32.mrb[54].mxu1 }
 0x16f   : > { %v2316_v16 = vadd.f32 %v7552_v53, %v1839_v13  ;;  %v1841_v21 = vpop.f32.mrb[55].mxu1  ;;  %v2322_v34 = vmax.f32 %v2314_v1, 0.0 }
 0x170   : > { %v2317_v24 = vadd.f32 %v7552_v53, %v1841_v21  ;;  %v2323_v32 = vmax.f32 %v2315_v12, 0.0 }
 0x171   : > { %v2324_v31 = vmax.f32 %v2316_v16, 0.0 }
 0x172   : > { %v2325_v33 = vmax.f32 %v2317_v24, 0.0 }
 0x173   : > { %v7669_v38 = vpack.c.bf16 %v2324_v31, %v2322_v34 }
 0x174   : > { %v7671_v39 = vpack.c.bf16 %v2325_v33, %v2323_v32  ;;  %v1931_v46 = vpop.f32.mrb[56].mxu1 }
 0x175   : > { %9629 = vst [vmem:[#allocation20_spill] sm:$0xff] %v7669_v38  ;;  %v2362_v54 = vadd.f32 %v7526_v15, %v1931_v46  ;;  %v1933_v56 = vpop.f32.mrb[57].mxu1 }
 0x176   : > { %v2363_v50 = vadd.f32 %v7526_v15, %v1933_v56  ;;  %v1935_v58 = vpop.f32.mrb[58].mxu1 }
 0x177   : > { %v2364_v59 = vadd.f32 %v7536_v20, %v1935_v58  ;;  %v1937_v14 = vpop.f32.mrb[59].mxu1  ;;  %v2370_v10 = vmax.f32 %v2362_v54, 0.0 }
 0x178   : > { %v2365_v5 = vadd.f32 %v7536_v20, %v1937_v14  ;;  %v2371_v18 = vmax.f32 %v2363_v50, 0.0 }
 0x179   : > { %v2372_v11 = vmax.f32 %v2364_v59, 0.0 }
 0x17a   : > { %v2373_v22 = vmax.f32 %v2365_v5, 0.0 }
 0x17b   : > { %v7677_v55 = vpack.c.bf16 %v2372_v11, %v2370_v10 }
 0x17c   : > { %v1136_v23 = vpop.f32.mrb[0].mxu0  ;;  %v7679_v27 = vpack.c.bf16 %v2373_v22, %v2371_v18  ;;  %v1941_v48 = vpop.f32.mrb[60].mxu1 }
 0x17d   : > { %v1974_v35 = vadd.f32 %v7526_v15, %v1136_v23  ;;  %v1138_v49 = vpop.f32.mrb[1].mxu0  ;;  %v2366_v26 = vadd.f32 %v7546_v43, %v1941_v48  ;;  %2386 = vrot.lane.b32.xlu1 %v7677_v55, %s7087_s30  ;;  %v1943_v7 = vpop.f32.mrb[61].mxu1 }
 0x17e   : > { %v1975_v1 = vadd.f32 %v7526_v15, %v1138_v49  ;;  %v1140_v12 = vpop.f32.mrb[2].mxu0  ;;  %v2367_v13 = vadd.f32 %v7546_v43, %v1943_v7  ;;  %2388 = vrot.lane.b32.xlu0 %v7679_v27, %s7087_s30  ;;  %v1945_v21 = vpop.f32.mrb[62].mxu1 }
 0x17f   : > { %v1976_v16 = vadd.f32 %v7536_v20, %v1140_v12  ;;  %v1142_v24 = vpop.f32.mrb[3].mxu0  ;;  %v2368_v34 = vadd.f32 %v7552_v53, %v1945_v21  ;;  %v1947_v32 = vpop.f32.mrb[63].mxu1  ;;  %v1982_v33 = vmax.f32 %v1974_v35, 0.0  ;;  %v2374_v56 = vmax.f32 %v2366_v26, 0.0  ;;  %v2953_v12 = vld [vmem:[%s9587_s4] sm:$0xff] }
 0x180   : > { %v1977_v31 = vadd.f32 %v7536_v20, %v1142_v24  ;;  %v2369_v54 = vadd.f32 %v7552_v53, %v1947_v32  ;;  %v1983_v50 = vmax.f32 %v1975_v1, 0.0  ;;  %v2375_v14 = vmax.f32 %v2367_v13, 0.0 }
 0x181   : > { %v1984_v46 = vmax.f32 %v1976_v16, 0.0  ;;  %v2376_v58 = vmax.f32 %v2368_v34, 0.0  ;;  %v2954_v16 = vld [vmem:[%s9587_s4 + $0x8] sm:$0xff] }
 0x182   : > { %v1985_v59 = vmax.f32 %v1977_v31, 0.0  ;;  %v2377_v10 = vmax.f32 %v2369_v54, 0.0 }
 0x183   : > { %v7693_v5 = vpack.c.bf16 %v1984_v46, %v1982_v33  ;;  %v7695_v11 = vpack.c.bf16 %v2376_v58, %v2374_v56  ;;  %v2955_v33 = vld [vmem:[%s9587_s4 + $0x10] sm:$0xff]  ;;  %v2956_v56 = vld [vmem:[%s9587_s4 + $0x18] sm:$0xff] }
 0x184   : > { %v7697_v18 = vpack.c.bf16 %v1985_v59, %v1983_v50  ;;  %v1146_v22 = vpop.f32.mrb[4].mxu0  ;;  %v7699_v23 = vpack.c.bf16 %v2377_v10, %v2375_v14 }
 0x185   : > { %v1978_v35 = vadd.f32 %v7546_v43, %v1146_v22  ;;  %v1148_v48 = vpop.f32.mrb[5].mxu0  ;;  %2390 = vrot.lane.b32.xlu1 %v7695_v11, %s7087_s30 }
 0x186   : > { %v1979_v49 = vadd.f32 %v7546_v43, %v1148_v48  ;;  %v1150_v26 = vpop.f32.mrb[6].mxu0  ;;  %2392 = vrot.lane.b32.xlu0 %v7699_v23, %s7087_s30 }
 0x187   : > { %v1980_v1 = vadd.f32 %v7552_v53, %v1150_v26  ;;  %v1152_v7 = vpop.f32.mrb[7].mxu0  ;;  %v1986_v21 = vmax.f32 %v1978_v35, 0.0 }
 0x188   : > { %v1981_v13 = vadd.f32 %v7552_v53, %v1152_v7  ;;  %v1987_v34 = vmax.f32 %v1979_v49, 0.0 }
 0x189   : > { %v1988_v24 = vmax.f32 %v1980_v1, 0.0  ;;  %2959 = vperm.xlu1 %6951, %v2953_v12  }
 0x18a   : > { %v1989_v31 = vmax.f32 %v1981_v13, 0.0  ;;  %2964 = vperm.xlu0 %6952, %v2954_v16  }
 0x18b   : > { %v7715_v32 = vpack.c.bf16 %v1988_v24, %v1986_v21 }
 0x18c   : > { %v7720_v46 = vpack.c.bf16 %v1989_v31, %v1987_v34  ;;  %v1242_v54 = vpop.f32.mrb[8].mxu0 }
 0x18d   : > { %v2026_v50 = vadd.f32 %v7526_v15, %v1242_v54  ;;  %v1244_v58 = vpop.f32.mrb[9].mxu0  ;;  %2969 = vperm.xlu1 %6951, %v2955_v33  }
 0x18e   : > { %v2027_v59 = vadd.f32 %v7526_v15, %v1244_v58  ;;  %v1246_v14 = vpop.f32.mrb[10].mxu0  ;;  %2974 = vperm.xlu0 %6952, %v2956_v56  }
 0x18f   : > { %v2028_v10 = vadd.f32 %v7536_v20, %v1246_v14  ;;  %v1248_v22 = vpop.f32.mrb[11].mxu0  ;;  %v2034_v48 = vmax.f32 %v2026_v50, 0.0 }
 0x190   : > { %v2029_v35 = vadd.f32 %v7536_v20, %v1248_v22  ;;  %v2035_v26 = vmax.f32 %v2027_v59, 0.0 }
 0x191   : > { %v2036_v49 = vmax.f32 %v2028_v10, 0.0 }
 0x192   : > { %v2037_v1 = vmax.f32 %v2029_v35, 0.0 }
 0x193   : > { %v2042_v7 = vpack.c.bf16 %v2036_v49, %v2034_v48 }
 0x194   : > { %v2043_v12 = vpack.c.bf16 %v2037_v1, %v2035_v26  ;;  %v1252_v13 = vpop.f32.mrb[12].mxu0 }
 0x195   : > { %v2030_v16 = vadd.f32 %v7546_v43, %v1252_v13  ;;  %v1254_v21 = vpop.f32.mrb[13].mxu0 }
 0x196   : > { %v2031_v24 = vadd.f32 %v7546_v43, %v1254_v21  ;;  %v1256_v34 = vpop.f32.mrb[14].mxu0  ;;  %2586 = vmatprep.subr.bf16.mxu1 %v2043_v12 }
 0x197   : > { %v2032_v31 = vadd.f32 %v7552_v53, %v1256_v34  ;;  %v1258_v33 = vpop.f32.mrb[15].mxu0  ;;  %2587 = vmatpush1.bf16.msra.mxu1 %v2042_v7  ;;  %v2038_v56 = vmax.f32 %v2030_v16, 0.0 }
 0x198   : > { %v2033_v54 = vadd.f32 %v7552_v53, %v1258_v33  ;;  %v2039_v58 = vmax.f32 %v2031_v24, 0.0 }
 0x199   : > { %v2040_v50 = vmax.f32 %v2032_v31, 0.0 }
 0x19a   : > { %v2041_v59 = vmax.f32 %v2033_v54, 0.0 }
 0x19b   : > { %v2044_v14 = vpack.c.bf16 %v2040_v50, %v2038_v56 }
 0x19c   : > { %v2045_v10 = vpack.c.bf16 %v2041_v59, %v2039_v58  ;;  %v1348_v22 = vpop.f32.mrb[16].mxu0  ;;  %v7749_v59 = vld [vmem:[%s9586_s3] sm:$0xff]  }
 0x19d   : > { %v2078_v35 = vadd.f32 %v7526_v15, %v1348_v22  ;;  %v1350_v48 = vpop.f32.mrb[17].mxu0 }
 0x19e   : > { %v2079_v49 = vadd.f32 %v7526_v15, %v1350_v48  ;;  %v1352_v26 = vpop.f32.mrb[18].mxu0  ;;  %2588 = vmatprep.subr.bf16.mxu1 %v2045_v10 }
 0x19f   : > { %v2080_v1 = vadd.f32 %v7536_v20, %v1352_v26  ;;  %v1354_v12 = vpop.f32.mrb[19].mxu0  ;;  %2589 = vmatpush1.bf16.msra.mxu1 %v2044_v14  ;;  %v2086_v13 = vmax.f32 %v2078_v35, 0.0 }
 0x1a0   : > { %v2081_v7 = vadd.f32 %v7536_v20, %v1354_v12  ;;  %2590 = vmatprep.subr.bf16.mxu1 %v7580_v47  ;;  %v2087_v21 = vmax.f32 %v2079_v49, 0.0 }
 0x1a1   : > { %v2088_v16 = vmax.f32 %v2080_v1, 0.0 }
 0x1a2   : > { %v2089_v24 = vmax.f32 %v2081_v7, 0.0 }
 0x1a3   : > { %v7738_v34 = vpack.c.bf16 %v2088_v16, %v2086_v13  ;;  %2591 = vmatpush1.bf16.msra.mxu1 %v7578_v40 }
 0x1a4   : > { %v7741_v31 = vpack.c.bf16 %v2089_v24, %v2087_v21  ;;  %v1358_v33 = vpop.f32.mrb[20].mxu0  ;;  %2592 = vmatprep.subr.bf16.mxu1 %v7591_v19 }
 0x1a5   : > { %v2082_v54 = vadd.f32 %v7546_v43, %v1358_v33  ;;  %v1360_v56 = vpop.f32.mrb[21].mxu0  ;;  %v7769_v33 = vld [vmem:[%s9586_s3 + $0x8] sm:$0xff]  }
 0x1a6   : > { %v2083_v50 = vadd.f32 %v7546_v43, %v1360_v56  ;;  %v1362_v58 = vpop.f32.mrb[22].mxu0 }
 0x1a7   : > { %v2084_v14 = vadd.f32 %v7552_v53, %v1362_v58  ;;  %v1364_v10 = vpop.f32.mrb[23].mxu0  ;;  %2593 = vmatpush1.bf16.msra.mxu1 %v7589_v17  ;;  %v2090_v35 = vmax.f32 %v2082_v54, 0.0 }
 0x1a8   : > { %v2085_v22 = vadd.f32 %v7552_v53, %v1364_v10  ;;  %2688 = vmatprep.subr.bf16.mxu1 %v7599_v42  ;;  %v2091_v49 = vmax.f32 %v2083_v50, 0.0 }
 0x1a9   : > { %v2092_v48 = vmax.f32 %v2084_v14, 0.0 }
 0x1aa   : > { %v2093_v26 = vmax.f32 %v2085_v22, 0.0  ;;  %6650 = vmatmul.mubr.msk.bf16.vlgmr.msra.gmra.mrb[64].mxu1 %vm2522_vm3, %v7749_v59 }
 0x1ab   : > { %v7757_v1 = vpack.c.bf16 %v2092_v48, %v2090_v35  ;;  %2689 = vmatpush1.bf16.msra.mxu1 %v7597_v41  ;;  %2624 = vmatprep.mubr.bf16.mxu1 %v9602_v0 }
 0x1ac   : > { %v7761_v12 = vpack.c.bf16 %v2093_v26, %v2091_v49  ;;  %v1454_v7 = vpop.f32.mrb[24].mxu0  ;;  %2690 = vmatprep.subr.bf16.mxu1 %v7607_v9 }
 0x1ad   : > { %v2130_v13 = vadd.f32 %v7526_v15, %v1454_v7  ;;  %v1456_v16 = vpop.f32.mrb[25].mxu0 }
 0x1ae   : > { %v2131_v21 = vadd.f32 %v7526_v15, %v1456_v16  ;;  %v1458_v24 = vpop.f32.mrb[26].mxu0 }
 0x1af   : > { %v2132_v54 = vadd.f32 %v7536_v20, %v1458_v24  ;;  %v1460_v56 = vpop.f32.mrb[27].mxu0  ;;  %2691 = vmatpush1.bf16.msra.mxu1 %v7605_v8  ;;  %v2138_v58 = vmax.f32 %v2130_v13, 0.0 }
 0x1b0   : > { %v2133_v50 = vadd.f32 %v7536_v20, %v1460_v56  ;;  %v2139_v10 = vmax.f32 %v2131_v21, 0.0 }
 0x1b1   : > { %v2140_v14 = vmax.f32 %v2132_v54, 0.0 }
 0x1b2   : > { %v2141_v22 = vmax.f32 %v2133_v50, 0.0  ;;  %6651 = vmatmul.mubr.msk.bf16.gmra.mrb[68].mxu1 %vm2522_vm3, %v7769_v33 }
 0x1b3   : > { %v2146_v35 = vpack.c.bf16 %v2140_v14, %v2138_v58  ;;  %2720 = vmatprep.mubr.bf16.mxu1 %v9602_v0 }
 0x1b4   : > { %v2147_v48 = vpack.c.bf16 %v2141_v22, %v2139_v10  ;;  %v1464_v49 = vpop.f32.mrb[28].mxu0 }
 0x1b5   : > { %v2134_v26 = vadd.f32 %v7546_v43, %v1464_v49  ;;  %v1466_v7 = vpop.f32.mrb[29].mxu0 }
 0x1b6   : > { %v2135_v16 = vadd.f32 %v7546_v43, %v1466_v7  ;;  %v1468_v24 = vpop.f32.mrb[30].mxu0  ;;  %2692 = vmatprep.subr.bf16.mxu1 %v2147_v48 }
 0x1b7   : > { %v2136_v13 = vadd.f32 %v7552_v53, %v1468_v24  ;;  %v1470_v54 = vpop.f32.mrb[31].mxu0  ;;  %2693 = vmatpush1.bf16.msra.mxu1 %v2146_v35  ;;  %v2142_v56 = vmax.f32 %v2134_v26, 0.0 }
 0x1b8   : > { %v2137_v21 = vadd.f32 %v7552_v53, %v1470_v54  ;;  %v2143_v58 = vmax.f32 %v2135_v16, 0.0 }
 0x1b9   : > { %v2144_v50 = vmax.f32 %v2136_v13, 0.0 }
 0x1ba   : > { %v2145_v14 = vmax.f32 %v2137_v21, 0.0 }
 0x1bb   : > { %v2148_v0 = vpack.c.bf16 %v2144_v50, %v2142_v56 }
 0x1bc   : > { %v2149_v10 = vpack.c.bf16 %v2145_v14, %v2143_v58  ;;  %v1560_v22 = vpop.f32.mrb[32].mxu0 }
 0x1bd   : > { %v2182_v49 = vadd.f32 %v7526_v15, %v1560_v22  ;;  %v1562_v8 = vpop.f32.mrb[33].mxu0 }
 0x1be   : > { %v2183_v7 = vadd.f32 %v7526_v15, %v1562_v8  ;;  %v1564_v9 = vpop.f32.mrb[34].mxu0  ;;  %2694 = vmatprep.subr.bf16.mxu1 %v2149_v10 }
 0x1bf   : > { %v2184_v48 = vadd.f32 %v7536_v20, %v1564_v9  ;;  %v1566_v24 = vpop.f32.mrb[35].mxu0  ;;  %2695 = vmatpush1.bf16.msra.mxu1 %v2148_v0  ;;  %v2190_v26 = vmax.f32 %v2182_v49, 0.0 }
 0x1c0   : > { %v2185_v35 = vadd.f32 %v7536_v20, %v1566_v24  ;;  %2696 = vmatprep.subr.bf16.mxu1 %v7615_v57  ;;  %v2191_v13 = vmax.f32 %v2183_v7, 0.0 }
 0x1c1   : > { %v2192_v16 = vmax.f32 %v2184_v48, 0.0 }
 0x1c2   : > { %v2193_v54 = vmax.f32 %v2185_v35, 0.0 }
 0x1c3   : > { %v7786_v21 = vpack.c.bf16 %v2192_v16, %v2190_v26  ;;  %2697 = vmatpush1.bf16.msra.mxu1 %v7613_v52  ;;  %v9631_v26 = vmov 0  }
 0x1c4   : > { %v7789_v56 = vpack.c.bf16 %v2193_v54, %v2191_v13  ;;  %v1570_v8 = vpop.f32.mrb[36].mxu0  ;;  %2698 = vmatprep.subr.bf16.mxu1 %v7623_v30 }
 0x1c5   : > { %v2186_v9 = vadd.f32 %v7546_v43, %v1570_v8  ;;  %v1572_v0 = vpop.f32.mrb[37].mxu0 }
 0x1c6   : > { %v2187_v50 = vadd.f32 %v7546_v43, %v1572_v0  ;;  %v1574_v58 = vpop.f32.mrb[38].mxu0 }
 0x1c7   : > { %v2188_v14 = vadd.f32 %v7552_v53, %v1574_v58  ;;  %v1576_v10 = vpop.f32.mrb[39].mxu0  ;;  %2699 = vmatpush1.bf16.msra.mxu1 %v7621_v29  ;;  %v2194_v49 = vmax.f32 %v2186_v9, 0.0 }
 0x1c8   : > { %v2189_v22 = vadd.f32 %v7552_v53, %v1576_v10  ;;  %2794 = vmatprep.subr.bf16.mxu1 %v7631_v63  ;;  %v2195_v48 = vmax.f32 %v2187_v50, 0.0 }
 0x1c9   : > { %v2196_v7 = vmax.f32 %v2188_v14, 0.0 }
 0x1ca   : > { %v2197_v24 = vmax.f32 %v2189_v22, 0.0  ;;  %6654 = vmatmul.mubr.msk.bf16.vlgmr.msra.gmra.mrb[72].mxu1 %vm2522_vm3, %v7749_v59 }
 0x1cb   : > { %v7800_v35 = vpack.c.bf16 %v2196_v7, %v2194_v49  ;;  %2795 = vmatpush1.bf16.msra.mxu1 %v7629_v62  ;;  %2730 = vmatprep.mubr.bf16.mxu1 %v9631_v26 }
 0x1cc   : > { %v7804_v16 = vpack.c.bf16 %v2197_v24, %v2195_v48  ;;  %v1666_v13 = vpop.f32.mrb[40].mxu0  ;;  %2796 = vmatprep.subr.bf16.mxu1 %v7639_v37 }
 0x1cd   : > { %9630 = vst [vmem:[#allocation21_spill] sm:$0xff] %v7800_v35  ;;  %v2234_v54 = vadd.f32 %v7526_v15, %v1666_v13  ;;  %v1668_v8 = vpop.f32.mrb[41].mxu0 }
 0x1ce   : > { %v2235_v9 = vadd.f32 %v7526_v15, %v1668_v8  ;;  %v1670_v0 = vpop.f32.mrb[42].mxu0 }
 0x1cf   : > { %v2236_v50 = vadd.f32 %v7536_v20, %v1670_v0  ;;  %v1672_v58 = vpop.f32.mrb[43].mxu0  ;;  %2797 = vmatpush1.bf16.msra.mxu1 %v7637_v36  ;;  %v2242_v10 = vmax.f32 %v2234_v54, 0.0 }
 0x1d0   : > { %v2237_v14 = vadd.f32 %v7536_v20, %v1672_v58  ;;  %v2243_v49 = vmax.f32 %v2235_v9, 0.0 }
 0x1d1   : > { %v2244_v22 = vmax.f32 %v2236_v50, 0.0 }
 0x1d2   : > { %v2245_v7 = vmax.f32 %v2237_v14, 0.0  ;;  %6655 = vmatmul.mubr.msk.bf16.gmra.mrb[76].mxu1 %vm2522_vm3, %v7769_v33 }
 0x1d3   : > { %v2250_v48 = vpack.c.bf16 %v2244_v22, %v2242_v10  ;;  %2826 = vmatprep.mubr.bf16.mxu1 %v9631_v26 }
 0x1d4   : > { %v2251_v24 = vpack.c.bf16 %v2245_v7, %v2243_v49  ;;  %v1676_v13 = vpop.f32.mrb[44].mxu0 }
 0x1d5   : > { %v2238_v8 = vadd.f32 %v7546_v43, %v1676_v13  ;;  %v1678_v0 = vpop.f32.mrb[45].mxu0 }
 0x1d6   : > { %v2239_v37 = vadd.f32 %v7546_v43, %v1678_v0  ;;  %v1680_v36 = vpop.f32.mrb[46].mxu0  ;;  %2798 = vmatprep.subr.bf16.mxu1 %v2251_v24 }
 0x1d7   : > { %v2240_v54 = vadd.f32 %v7552_v53, %v1680_v36  ;;  %v1682_v50 = vpop.f32.mrb[47].mxu0  ;;  %2799 = vmatpush1.bf16.msra.mxu1 %v2250_v48  ;;  %v2246_v58 = vmax.f32 %v2238_v8, 0.0 }
 0x1d8   : > { %v2241_v9 = vadd.f32 %v7552_v53, %v1682_v50  ;;  %v2247_v10 = vmax.f32 %v2239_v37, 0.0 }
 0x1d9   : > { %v2248_v14 = vmax.f32 %v2240_v54, 0.0 }
 0x1da   : > { %v2249_v22 = vmax.f32 %v2241_v9, 0.0 }
 0x1db   : > { %v2252_v62 = vpack.c.bf16 %v2248_v14, %v2246_v58 }
 0x1dc   : > { %v2253_v49 = vpack.c.bf16 %v2249_v22, %v2247_v10  ;;  %v1772_v7 = vpop.f32.mrb[48].mxu0 }
 0x1dd   : > { %v2286_v13 = vadd.f32 %v7526_v15, %v1772_v7  ;;  %v1774_v63 = vpop.f32.mrb[49].mxu0 }
 0x1de   : > { %v2287_v0 = vadd.f32 %v7526_v15, %v1774_v63  ;;  %v1776_v35 = vpop.f32.mrb[50].mxu0  ;;  %2800 = vmatprep.subr.bf16.mxu1 %v2253_v49 }
 0x1df   : > { %v2288_v36 = vadd.f32 %v7536_v20, %v1776_v35  ;;  %v1778_v24 = vpop.f32.mrb[51].mxu0  ;;  %2801 = vmatpush1.bf16.msra.mxu1 %v2252_v62  ;;  %v2294_v37 = vmax.f32 %v2286_v13, 0.0 }
 0x1e0   : > { %v2289_v48 = vadd.f32 %v7536_v20, %v1778_v24  ;;  %2802 = vmatprep.subr.bf16.mxu1 %v7647_v28  ;;  %v2295_v54 = vmax.f32 %v2287_v0, 0.0 }
 0x1e1   : > { %v2296_v8 = vmax.f32 %v2288_v36, 0.0 }
 0x1e2   : > { %v2297_v50 = vmax.f32 %v2289_v48, 0.0 }
 0x1e3   : > { %v7824_v9 = vpack.c.bf16 %v2296_v8, %v2294_v37  ;;  %2803 = vmatpush1.bf16.msra.mxu1 %v7645_v25 }
 0x1e4   : > { %v7827_v58 = vpack.c.bf16 %v2297_v50, %v2295_v54  ;;  %v1782_v63 = vpop.f32.mrb[52].mxu0  ;;  %2804 = vmatprep.subr.bf16.mxu1 %v7655_v4 }
 0x1e5   : > { %v2290_v35 = vadd.f32 %v7546_v43, %v1782_v63  ;;  %v1784_v62 = vpop.f32.mrb[53].mxu0 }
 0x1e6   : > { %v2291_v14 = vadd.f32 %v7546_v43, %v1784_v62  ;;  %v1786_v10 = vpop.f32.mrb[54].mxu0 }
 0x1e7   : > { %v2292_v22 = vadd.f32 %v7552_v53, %v1786_v10  ;;  %v1788_v49 = vpop.f32.mrb[55].mxu0  ;;  %2805 = vmatpush1.bf16.msra.mxu1 %v7653_v2  ;;  %v2298_v13 = vmax.f32 %v2290_v35, 0.0 }
 0x1e8   : > { %v2293_v7 = vadd.f32 %v7552_v53, %v1788_v49  ;;  %2900 = vmatprep.subr.bf16.mxu1 %v7663_v61  ;;  %v2299_v36 = vmax.f32 %v2291_v14, 0.0 }
 0x1e9   : > { %v2300_v0 = vmax.f32 %v2292_v22, 0.0 }
 0x1ea   : > { %v2301_v24 = vmax.f32 %v2293_v7, 0.0  ;;  %6658 = vmatmul.mubr.msk.bf16.vlgmr.msra.gmra.mrb[80].mxu1 %vm2522_vm3, %v7749_v59 }
 0x1eb   : > { %v7838_v48 = vpack.c.bf16 %v2300_v0, %v2298_v13  ;;  %2901 = vmatpush1.bf16.msra.mxu1 %v7661_v60  ;;  %2836 = vmatprep.mubr.bf16.mxu1 %v9631_v26 }
 0x1ec   : > { %v7842_v37 = vpack.c.bf16 %v2301_v24, %v2299_v36  ;;  %v1878_v8 = vpop.f32.mrb[56].mxu0  ;;  %2902 = vmatprep.subr.bf16.mxu1 %v7671_v39 }
 0x1ed   : > { %v2338_v54 = vadd.f32 %v7526_v15, %v1878_v8  ;;  %v1880_v50 = vpop.f32.mrb[57].mxu0 }
 0x1ee   : > { %v2339_v63 = vadd.f32 %v7526_v15, %v1880_v50  ;;  %v1882_v35 = vpop.f32.mrb[58].mxu0 }
 0x1ef   : > { %v2340_v62 = vadd.f32 %v7536_v20, %v1882_v35  ;;  %v1884_v14 = vpop.f32.mrb[59].mxu0  ;;  %2903 = vmatpush1.bf16.msra.mxu1 %v7669_v38  ;;  %v2387_v10 = vpop.permute.xlu1 %2386  ;;  %v2346_v49 = vmax.f32 %v2338_v54, 0.0 }
 0x1f0   : > { %v2341_v22 = vadd.f32 %v7536_v20, %v1884_v14  ;;  %v2389_v13 = vpop.permute.xlu0 %2388  ;;  %v2347_v0 = vmax.f32 %v2339_v63, 0.0 }
 0x1f1   : > { %v2348_v7 = vmax.f32 %v2340_v62, 0.0  ;;  %v2394_v24 = vsel %vm971_vm1, %v2387_v10, %v2389_v13 }
 0x1f2   : > { %v2349_v36 = vmax.f32 %v2341_v22, 0.0  ;;  %6659 = vmatmul.mubr.msk.bf16.gmra.mrb[84].mxu1 %vm2522_vm3, %v7769_v33  ;;  %2529 = vmatprep.subr.bf16.mxu0 %v2394_v24 }
 0x1f3   : > { %v2354_v15 = vpack.c.bf16 %v2348_v7, %v2346_v49  ;;  %2932 = vmatprep.mubr.bf16.mxu1 %v9631_v26  ;;  %6810 = vmatpush1.bf16.msk.msra.mxu0 %vm7443_vm2, %v2387_v10 }
 0x1f4   : > { %v2355_v8 = vpack.c.bf16 %v2349_v36, %v2347_v0  ;;  %v1888_v50 = vpop.f32.mrb[60].mxu0 }
 0x1f5   : > { %v2342_v20 = vadd.f32 %v7546_v43, %v1888_v50  ;;  %v1890_v54 = vpop.f32.mrb[61].mxu0 }
 0x1f6   : > { %v2343_v63 = vadd.f32 %v7546_v43, %v1890_v54  ;;  %v1892_v35 = vpop.f32.mrb[62].mxu0  ;;  %2904 = vmatprep.subr.bf16.mxu1 %v2355_v8  ;;  %v9632_v43 = vld [vmem:[#allocation15_spill] sm:$0xff] }
 0x1f7   : > { %v2344_v62 = vadd.f32 %v7552_v53, %v1892_v35  ;;  %v1894_v14 = vpop.f32.mrb[63].mxu0  ;;  %2905 = vmatpush1.bf16.msra.mxu1 %v2354_v15  ;;  %v2391_v22 = vpop.permute.xlu1 %2390  ;;  %v2350_v7 = vmax.f32 %v2342_v20, 0.0 }
 0x1f8   : > { %v2345_v49 = vadd.f32 %v7552_v53, %v1894_v14  ;;  %v2393_v0 = vpop.permute.xlu0 %2392  ;;  %v2351_v36 = vmax.f32 %v2343_v63, 0.0  ;;  %v9635_v53 = vld [vmem:[#allocation17_spill] sm:$0xff] }
 0x1f9   : > { %v2352_v13 = vmax.f32 %v2344_v62, 0.0  ;;  %v2395_v24 = vsel %vm971_vm1, %v2391_v22, %v2393_v0 }
 0x1fa   : > { %v2353_v10 = vmax.f32 %v2345_v49, 0.0  ;;  %2531 = vmatprep.subr.bf16.mxu0 %v2395_v24 }
 0x1fb   : > { %v2356_v50 = vpack.c.bf16 %v2352_v13, %v2350_v7  ;;  %6812 = vmatpush1.bf16.msk.msra.mxu0 %vm7443_vm2, %v2391_v22 }
 0x1fc   : > { %v2357_v38 = vpack.c.bf16 %v2353_v10, %v2351_v36  ;;  %2533 = vmatprep.subr.bf16.mxu0 %v7697_v18 }
 0x1fe   : > { %2906 = vmatprep.subr.bf16.mxu1 %v2357_v38 }
 0x1ff   : > { %2907 = vmatpush1.bf16.msra.mxu1 %v2356_v50  ;;  %2534 = vmatpush1.bf16.msra.mxu0 %v7693_v5 }
 0x200   : > { %2908 = vmatprep.subr.bf16.mxu1 %v7679_v27  ;;  %2535 = vmatprep.subr.bf16.mxu0 %v7720_v46 }
 0x203   : > { %2909 = vmatpush1.bf16.msra.mxu1 %v7677_v55  ;;  %2536 = vmatpush1.bf16.msra.mxu0 %v7715_v32 }
 0x204   : > { %2910 = vmatprep.subr.bf16.mxu1 %v7699_v23  ;;  %2537 = vmatprep.subr.bf16.mxu0 %v7550_v45  ;;  %v9634_v45 = vld [vmem:[#allocation21_spill] sm:$0xff] }
 0x207   : > { %2911 = vmatpush1.bf16.msra.mxu1 %v7695_v11  ;;  %2538 = vmatpush1.bf16.msra.mxu0 %v7548_v44  ;;  %v9633_v44 = vld [vmem:[#allocation14_spill] sm:$0xff] }
 0x208   : > { %2539 = vmatprep.subr.bf16.mxu0 %v7567_v51  ;;  %v9637_v51 = vld [vmem:[#allocation19_spill] sm:$0xff] }
 0x20a   : > { %6662 = vmatmul.mubr.msk.bf16.vlgmr.msra.gmra.mrb[88].mxu1 %vm2522_vm3, %v7749_v59 }
 0x20b   : > { %2942 = vmatprep.mubr.bf16.mxu1 %v9631_v26  ;;  %2540 = vmatpush1.bf16.msra.mxu0 %v7565_v6  ;;  %v9636_v6 = vld [vmem:[#allocation16_spill] sm:$0xff] }
 0x20c   : > { %2635 = vmatprep.subr.bf16.mxu0 %v7580_v47  ;;  %v9639_v47 = vld [vmem:[#allocation20_spill] sm:$0xff] }
 0x20e   : > { %6648 = vmatmul.mubr.msk.bf16.vlgmr.msra.gmra.mrb[64].mxu0 %vm2522_vm3, %v7749_v59 }
 0x20f   : > { %2636 = vmatpush1.bf16.msra.mxu0 %v7578_v40  ;;  %2571 = vmatprep.mubr.bf16.mxu0 %v9631_v26  ;;  %v9638_v40 = vld [vmem:[#allocation18_spill] sm:$0xff] }
 0x210   : > { %2637 = vmatprep.subr.bf16.mxu0 %v7591_v19 }
 0x212   : > { %6663 = vmatmul.mubr.msk.bf16.gmra.mrb[92].mxu1 %vm2522_vm3, %v7769_v33 }
 0x213   : > { %3500 = vmatprep.mubr.bf16.mxu1 %v9631_v26  ;;  %2638 = vmatpush1.bf16.msra.mxu0 %v7589_v17  ;;  %v7941_v17 = vpop.permute.xlu1 %2959 }
 0x214   : > { %2639 = vmatprep.subr.bf16.mxu0 %v7741_v31 }
 0x216   : > { %6649 = vmatmul.mubr.msk.bf16.gmra.mrb[68].mxu0 %vm2522_vm3, %v7769_v33 }
 0x217   : > { %2640 = vmatpush1.bf16.msra.mxu0 %v7738_v34  ;;  %2667 = vmatprep.mubr.bf16.mxu0 %v9631_v26 }
 0x218   : > { %2641 = vmatprep.subr.bf16.mxu0 %v7761_v12 }
 0x21b   : > { %2642 = vmatpush1.bf16.msra.mxu0 %v7757_v1 }
 0x21c   : > { %2643 = vmatprep.subr.bf16.mxu0 %v7599_v42 }
 0x21f   : > { %2644 = vmatpush1.bf16.msra.mxu0 %v7597_v41 }
 0x220   : > { %2645 = vmatprep.subr.bf16.mxu0 %v9632_v43 }
 0x223   : > { %2646 = vmatpush1.bf16.msra.mxu0 %v9633_v44 }
 0x224   : > { %2741 = vmatprep.subr.bf16.mxu0 %v7615_v57 }
 0x226   : > { %6652 = vmatmul.mubr.msk.bf16.vlgmr.msra.gmra.mrb[72].mxu0 %vm2522_vm3, %v7749_v59 }
 0x227   : > { %2742 = vmatpush1.bf16.msra.mxu0 %v7613_v52  ;;  %2677 = vmatprep.mubr.bf16.mxu0 %v9631_v26  ;;  %v7944_v52 = vpop.permute.xlu0 %2964 }
 0x228   : > { %2743 = vmatprep.subr.bf16.mxu0 %v7623_v30 }
 0x22b   : > { %2744 = vmatpush1.bf16.msra.mxu0 %v7621_v29  ;;  %v7956_v18 = vpop.permute.xlu0 %2974 }
 0x22c   : > { %2745 = vmatprep.subr.bf16.mxu0 %v7789_v56 }
 0x22e   : > { %6653 = vmatmul.mubr.msk.bf16.gmra.mrb[76].mxu0 %vm2522_vm3, %v7769_v33 }
 0x22f   : > { %2746 = vmatpush1.bf16.msra.mxu0 %v7786_v21  ;;  %2773 = vmatprep.mubr.bf16.mxu0 %v9631_v26 }
 0x230   : > { %2747 = vmatprep.subr.bf16.mxu0 %v7804_v16 }
 0x233   : > { %2748 = vmatpush1.bf16.msra.mxu0 %v9634_v45 }
 0x234   : > { %2749 = vmatprep.subr.bf16.mxu0 %v9635_v53 }
 0x237   : > { %2750 = vmatpush1.bf16.msra.mxu0 %v9636_v6 }
 0x238   : > { %2751 = vmatprep.subr.bf16.mxu0 %v9637_v51 }
 0x23b   : > { %2752 = vmatpush1.bf16.msra.mxu0 %v9638_v40 }
 0x23c   : > { %2847 = vmatprep.subr.bf16.mxu0 %v7647_v28 }
 0x23e   : > { %6656 = vmatmul.mubr.msk.bf16.vlgmr.msra.gmra.mrb[80].mxu0 %vm2522_vm3, %v7749_v59 }
 0x23f   : > { %2848 = vmatpush1.bf16.msra.mxu0 %v7645_v25  ;;  %2783 = vmatprep.mubr.bf16.mxu0 %v9631_v26 }
 0x240   : > { %2849 = vmatprep.subr.bf16.mxu0 %v7655_v4 }
 0x243   : > { %2850 = vmatpush1.bf16.msra.mxu0 %v7653_v2 }
 0x244   : > { %2851 = vmatprep.subr.bf16.mxu0 %v7827_v58 }
 0x246   : > { %6657 = vmatmul.mubr.msk.bf16.gmra.mrb[84].mxu0 %vm2522_vm3, %v7769_v33 }
 0x247   : > { %2852 = vmatpush1.bf16.msra.mxu0 %v7824_v9  ;;  %2879 = vmatprep.mubr.bf16.mxu0 %v9631_v26 }
 0x248   : > { %2853 = vmatprep.subr.bf16.mxu0 %v7842_v37 }
 0x24b   : > { %2854 = vmatpush1.bf16.msra.mxu0 %v7838_v48 }
 0x24c   : > { %2855 = vmatprep.subr.bf16.mxu0 %v7663_v61 }
 0x24f   : > { %2856 = vmatpush1.bf16.msra.mxu0 %v7661_v60 }
 0x250   : > { %2857 = vmatprep.subr.bf16.mxu0 %v7671_v39  ;;  %v7951_v39 = vpop.permute.xlu1 %2969 }
 0x253   : > { %2858 = vmatpush1.bf16.msra.mxu0 %v9639_v47 }
 0x256   : > { %6660 = vmatmul.mubr.msk.bf16.vlgmr.msra.gmra.mrb[88].mxu0 %vm2522_vm3, %v7749_v59 }
 0x257   : > { %2889 = vmatprep.mubr.bf16.mxu0 %v9631_v26 }
 0x25e   : > { %6661 = vmatmul.mubr.msk.bf16.gmra.mrb[92].mxu0 %vm2522_vm3, %v7769_v33 }
 0x25f   : > { %3437 = vmatprep.mubr.bf16.mxu0 %v9631_v26 }
 0x27d   : > { %v2616_v19 = vpop.f32.mrb[64].mxu1 }
 0x27e   : > { %v3033_v41 = vadd.f32 %v7941_v17, %v2616_v19  ;;  %v2618_v42 = vpop.f32.mrb[65].mxu1 }
 0x27f   : > { %v3034_v57 = vadd.f32 %v7941_v17, %v2618_v42  ;;  %v2620_v29 = vpop.f32.mrb[66].mxu1 }
 0x280   : > { %v3035_v30 = vadd.f32 %v7944_v52, %v2620_v29  ;;  %v2622_v25 = vpop.f32.mrb[67].mxu1  ;;  %v3041_v2 = vmax.f32 %v3033_v41, 0.0 }
 0x281   : > { %v3036_v28 = vadd.f32 %v7944_v52, %v2622_v25  ;;  %v3042_v60 = vmax.f32 %v3034_v57, 0.0 }
 0x282   : > { %v3043_v4 = vmax.f32 %v3035_v30, 0.0 }
 0x283   : > { %v3044_v61 = vmax.f32 %v3036_v28, 0.0 }
 0x284   : > { %v7949_v38 = vpack.c.bf16 %v3043_v4, %v3041_v2 }
 0x285   : > { %v7953_v55 = vpack.c.bf16 %v3044_v61, %v3042_v60  ;;  %v2626_v27 = vpop.f32.mrb[68].mxu1 }
 0x286   : > { %v3037_v5 = vadd.f32 %v7951_v39, %v2626_v27  ;;  %v2628_v11 = vpop.f32.mrb[69].mxu1 }
 0x287   : > { %v3038_v23 = vadd.f32 %v7951_v39, %v2628_v11  ;;  %v2630_v32 = vpop.f32.mrb[70].mxu1 }
 0x288   : > { %v3039_v46 = vadd.f32 %v7956_v18, %v2630_v32  ;;  %v2632_v34 = vpop.f32.mrb[71].mxu1  ;;  %v3045_v59 = vmax.f32 %v3037_v5, 0.0 }
 0x289   : > { %v3040_v31 = vadd.f32 %v7956_v18, %v2632_v34  ;;  %v3046_v12 = vmax.f32 %v3038_v23, 0.0 }
 0x28a   : > { %v3047_v1 = vmax.f32 %v3039_v46, 0.0 }
 0x28b   : > { %v3048_v33 = vmax.f32 %v3040_v31, 0.0 }
 0x28c   : > { %v7961_v21 = vpack.c.bf16 %v3047_v1, %v3045_v59 }
 0x28d   : > { %v7963_v56 = vpack.c.bf16 %v3048_v33, %v3046_v12 }
 0x29d   : > { %v2722_v16 = vpop.f32.mrb[72].mxu1 }
 0x29e   : > { %v3097_v9 = vadd.f32 %v7941_v17, %v2722_v16  ;;  %v2724_v58 = vpop.f32.mrb[73].mxu1 }
 0x29f   : > { %v3098_v48 = vadd.f32 %v7941_v17, %v2724_v58  ;;  %v2726_v37 = vpop.f32.mrb[74].mxu1 }
 0x2a0   : > { %v3099_v15 = vadd.f32 %v7944_v52, %v2726_v37  ;;  %v2728_v8 = vpop.f32.mrb[75].mxu1  ;;  %v3105_v54 = vmax.f32 %v3097_v9, 0.0 }
 0x2a1   : > { %v3100_v20 = vadd.f32 %v7944_v52, %v2728_v8  ;;  %v3106_v35 = vmax.f32 %v3098_v48, 0.0 }
 0x2a2   : > { %v3107_v63 = vmax.f32 %v3099_v15, 0.0 }
 0x2a3   : > { %v3108_v62 = vmax.f32 %v3100_v20, 0.0 }
 0x2a4   : > { %v7969_v14 = vpack.c.bf16 %v3107_v63, %v3105_v54 }
 0x2a5   : > { %v7971_v22 = vpack.c.bf16 %v3108_v62, %v3106_v35  ;;  %v2732_v49 = vpop.f32.mrb[76].mxu1 }
 0x2a6   : > { %v3101_v7 = vadd.f32 %v7951_v39, %v2732_v49  ;;  %v2734_v13 = vpop.f32.mrb[77].mxu1 }
 0x2a7   : > { %v3102_v0 = vadd.f32 %v7951_v39, %v2734_v13  ;;  %v2736_v36 = vpop.f32.mrb[78].mxu1 }
 0x2a8   : > { %v3103_v10 = vadd.f32 %v7956_v18, %v2736_v36  ;;  %v2738_v24 = vpop.f32.mrb[79].mxu1  ;;  %v3109_v43 = vmax.f32 %v3101_v7, 0.0 }
 0x2a9   : > { %v3104_v50 = vadd.f32 %v7956_v18, %v2738_v24  ;;  %v3110_v45 = vmax.f32 %v3102_v0, 0.0 }
 0x2aa   : > { %v3111_v44 = vmax.f32 %v3103_v10, 0.0 }
 0x2ab   : > { %v3112_v53 = vmax.f32 %v3104_v50, 0.0 }
 0x2ac   : > { %v7977_v6 = vpack.c.bf16 %v3111_v44, %v3109_v43 }
 0x2ad   : > { %v7979_v51 = vpack.c.bf16 %v3112_v53, %v3110_v45 }
 0x2bd   : > { %v2828_v40 = vpop.f32.mrb[80].mxu1 }
 0x2be   : > { %v3161_v47 = vadd.f32 %v7941_v17, %v2828_v40  ;;  %v2830_v19 = vpop.f32.mrb[81].mxu1 }
 0x2bf   : > { %v3162_v41 = vadd.f32 %v7941_v17, %v2830_v19  ;;  %v2832_v42 = vpop.f32.mrb[82].mxu1 }
 0x2c0   : > { %v3163_v57 = vadd.f32 %v7944_v52, %v2832_v42  ;;  %v2834_v29 = vpop.f32.mrb[83].mxu1  ;;  %v3169_v25 = vmax.f32 %v3161_v47, 0.0 }
 0x2c1   : > { %v3164_v30 = vadd.f32 %v7944_v52, %v2834_v29  ;;  %v3170_v2 = vmax.f32 %v3162_v41, 0.0 }
 0x2c2   : > { %v3171_v28 = vmax.f32 %v3163_v57, 0.0 }
 0x2c3   : > { %v3172_v4 = vmax.f32 %v3164_v30, 0.0 }
 0x2c4   : > { %v7985_v60 = vpack.c.bf16 %v3171_v28, %v3169_v25 }
 0x2c5   : > { %v7987_v61 = vpack.c.bf16 %v3172_v4, %v3170_v2  ;;  %v2838_v27 = vpop.f32.mrb[84].mxu1 }
 0x2c6   : > { %v3165_v5 = vadd.f32 %v7951_v39, %v2838_v27  ;;  %v2840_v11 = vpop.f32.mrb[85].mxu1 }
 0x2c7   : > { %v3166_v23 = vadd.f32 %v7951_v39, %v2840_v11  ;;  %v2842_v32 = vpop.f32.mrb[86].mxu1 }
 0x2c8   : > { %v3167_v46 = vadd.f32 %v7956_v18, %v2842_v32  ;;  %v2844_v34 = vpop.f32.mrb[87].mxu1  ;;  %v3173_v59 = vmax.f32 %v3165_v5, 0.0 }
 0x2c9   : > { %v3168_v31 = vadd.f32 %v7956_v18, %v2844_v34  ;;  %v3174_v12 = vmax.f32 %v3166_v23, 0.0 }
 0x2ca   : > { %v3175_v1 = vmax.f32 %v3167_v46, 0.0 }
 0x2cb   : > { %v3176_v33 = vmax.f32 %v3168_v31, 0.0 }
 0x2cc   : > { %v7993_v16 = vpack.c.bf16 %v3175_v1, %v3173_v59 }
 0x2cd   : > { %v7995_v9 = vpack.c.bf16 %v3176_v33, %v3174_v12 }
 0x2dd   : > { %v2934_v58 = vpop.f32.mrb[88].mxu1 }
 0x2de   : > { %v3225_v48 = vadd.f32 %v7941_v17, %v2934_v58  ;;  %v2936_v37 = vpop.f32.mrb[89].mxu1 }
 0x2df   : > { %v3226_v15 = vadd.f32 %v7941_v17, %v2936_v37  ;;  %v2938_v8 = vpop.f32.mrb[90].mxu1 }
 0x2e0   : > { %v3227_v20 = vadd.f32 %v7944_v52, %v2938_v8  ;;  %v2940_v54 = vpop.f32.mrb[91].mxu1  ;;  %v3233_v35 = vmax.f32 %v3225_v48, 0.0 }
 0x2e1   : > { %v3228_v63 = vadd.f32 %v7944_v52, %v2940_v54  ;;  %v2563_v49 = vpop.f32.mrb[64].mxu0  ;;  %v3234_v7 = vmax.f32 %v3226_v15, 0.0 }
 0x2e2   : > { %v3235_v62 = vmax.f32 %v3227_v20, 0.0  ;;  %v2977_v0 = vadd.f32 %v7941_v17, %v2563_v49  ;;  %v2565_v36 = vpop.f32.mrb[65].mxu0 }
 0x2e3   : > { %v3236_v13 = vmax.f32 %v3228_v63, 0.0  ;;  %v2978_v24 = vadd.f32 %v7941_v17, %v2565_v36  ;;  %v2567_v50 = vpop.f32.mrb[66].mxu0 }
 0x2e4   : > { %v8002_v10 = vpack.c.bf16 %v3235_v62, %v3233_v35  ;;  %v2979_v44 = vadd.f32 %v7944_v52, %v2567_v50  ;;  %v2569_v45 = vpop.f32.mrb[67].mxu0  ;;  %v2985_v41 = vmax.f32 %v2977_v0, 0.0 }
 0x2e5   : > { %v8005_v43 = vpack.c.bf16 %v3236_v13, %v3234_v7  ;;  %v2944_v53 = vpop.f32.mrb[92].mxu1  ;;  %v2980_v40 = vadd.f32 %v7944_v52, %v2569_v45  ;;  %v2986_v30 = vmax.f32 %v2978_v24, 0.0  ;;  %v3909_v24 = vld [vmem:[%s9589_s6] sm:$0xff]  ;;  %v3910_v45 = vld [vmem:[%s9589_s6 + $0x8] sm:$0xff] }
 0x2e6   : > { %v3229_v47 = vadd.f32 %v7951_v39, %v2944_v53  ;;  %v2946_v19 = vpop.f32.mrb[93].mxu1  ;;  %v2987_v42 = vmax.f32 %v2979_v44, 0.0 }
 0x2e7   : > { %v3230_v57 = vadd.f32 %v7951_v39, %v2946_v19  ;;  %v2948_v29 = vpop.f32.mrb[94].mxu1  ;;  %v2988_v25 = vmax.f32 %v2980_v40, 0.0 }
 0x2e8   : > { %v3231_v28 = vadd.f32 %v7956_v18, %v2948_v29  ;;  %v2950_v2 = vpop.f32.mrb[95].mxu1  ;;  %v8012_v4 = vpack.c.bf16 %v2987_v42, %v2985_v41  ;;  %v3237_v11 = vmax.f32 %v3229_v47, 0.0  ;;  %v3911_v42 = vld [vmem:[%s9589_s6 + $0x10] sm:$0xff]  ;;  %v3912_v29 = vld [vmem:[%s9589_s6 + $0x18] sm:$0xff] }
 0x2e9   : > { %v3232_v27 = vadd.f32 %v7956_v18, %v2950_v2  ;;  %v8015_v5 = vpack.c.bf16 %v2988_v25, %v2986_v30  ;;  %v2573_v32 = vpop.f32.mrb[68].mxu0  ;;  %v3238_v46 = vmax.f32 %v3230_v57, 0.0 }
 0x2ea   : > { %v3239_v23 = vmax.f32 %v3231_v28, 0.0  ;;  %v2981_v31 = vadd.f32 %v7951_v39, %v2573_v32  ;;  %3009 = vrot.lane.b32.xlu1 %v8012_v4, %s7088_s23  ;;  %v2575_v59 = vpop.f32.mrb[69].mxu0 }
 0x2eb   : > { %v3240_v34 = vmax.f32 %v3232_v27, 0.0  ;;  %v2982_v12 = vadd.f32 %v7951_v39, %v2575_v59  ;;  %3011 = vrot.lane.b32.xlu0 %v8015_v5, %s7088_s23  ;;  %v2577_v33 = vpop.f32.mrb[70].mxu0  ;;  %3468 = vmatprep.subr.bf16.mxu1 %v8015_v5 }
 0x2ec   : > { %v8019_v1 = vpack.c.bf16 %v3239_v23, %v3237_v11  ;;  %v2983_v48 = vadd.f32 %v7956_v18, %v2577_v33  ;;  %v2579_v37 = vpop.f32.mrb[71].mxu0  ;;  %3469 = vmatpush1.bf16.msra.mxu1 %v8012_v4  ;;  %v2989_v8 = vmax.f32 %v2981_v31, 0.0  ;;  %v3913_v23 = vld [vmem:[%s9589_s6 + $0x20] sm:$0xff] }
 0x2ed   : > { %v8024_v58 = vpack.c.bf16 %v3240_v34, %v3238_v46  ;;  %v2984_v15 = vadd.f32 %v7956_v18, %v2579_v37  ;;  %v2990_v54 = vmax.f32 %v2982_v12, 0.0  ;;  %v3914_v34 = vld [vmem:[%s9589_s6 + $0x28] sm:$0xff] }
 0x2ee   : > { %v2991_v20 = vmax.f32 %v2983_v48, 0.0 }
 0x2ef   : > { %v2992_v63 = vmax.f32 %v2984_v15, 0.0 }
 0x2f0   : > { %v8029_v35 = vpack.c.bf16 %v2991_v20, %v2989_v8  ;;  %v8089_v8 = vld [vmem:[%s9588_s5] sm:$0xff]  }
 0x2f1   : > { %v8031_v62 = vpack.c.bf16 %v2992_v63, %v2990_v54 }
 0x2f2   : > { %3013 = vrot.lane.b32.xlu1 %v8029_v35, %s7088_s23 }
 0x2f3   : > { %3015 = vrot.lane.b32.xlu0 %v8031_v62, %s7088_s23  ;;  %3470 = vmatprep.subr.bf16.mxu1 %v8031_v62 }
 0x2f4   : > { %3471 = vmatpush1.bf16.msra.mxu1 %v8029_v35 }
 0x2f5   : > { %3472 = vmatprep.subr.bf16.mxu1 %v7953_v55 }
 0x2f6   : > { %3249 = vrot.lane.b32.xlu1 %v8002_v10, %s7087_s30 }
 0x2f7   : > { %3251 = vrot.lane.b32.xlu0 %v8005_v43, %s7087_s30 }
 0x2f8   : > { %3473 = vmatpush1.bf16.msra.mxu1 %v7949_v38 }
 0x2f9   : > { %v2669_v49 = vpop.f32.mrb[72].mxu0  ;;  %3474 = vmatprep.subr.bf16.mxu1 %v7963_v56 }
 0x2fa   : > { %v3065_v7 = vadd.f32 %v7941_v17, %v2669_v49  ;;  %v2671_v13 = vpop.f32.mrb[73].mxu0  ;;  %3253 = vrot.lane.b32.xlu1 %v8019_v1, %s7087_s30 }
 0x2fb   : > { %v3066_v0 = vadd.f32 %v7941_v17, %v2671_v13  ;;  %v2673_v36 = vpop.f32.mrb[74].mxu0  ;;  %3255 = vrot.lane.b32.xlu0 %v8024_v58, %s7087_s30  ;;  %v8103_v13 = vld [vmem:[%s9588_s5 + $0x8] sm:$0xff]  }
 0x2fc   : > { %v3067_v50 = vadd.f32 %v7944_v52, %v2673_v36  ;;  %v2675_v44 = vpop.f32.mrb[75].mxu0  ;;  %3475 = vmatpush1.bf16.msra.mxu1 %v7961_v21  ;;  %v3073_v40 = vmax.f32 %v3065_v7, 0.0 }
 0x2fd   : > { %v3068_v53 = vadd.f32 %v7944_v52, %v2675_v44  ;;  %v3074_v19 = vmax.f32 %v3066_v0, 0.0 }
 0x2fe   : > { %v3075_v47 = vmax.f32 %v3067_v50, 0.0  ;;  %3917 = vperm.xlu1 %6951, %v3909_v24  }
 0x2ff   : > { %v3076_v41 = vmax.f32 %v3068_v53, 0.0  ;;  %3922 = vperm.xlu0 %6952, %v3910_v45  }
 0x300   : > { %v8062_v57 = vpack.c.bf16 %v3075_v47, %v3073_v40 }
 0x301   : > { %v8067_v30 = vpack.c.bf16 %v3076_v41, %v3074_v19  ;;  %v2679_v25 = vpop.f32.mrb[76].mxu0 }
 0x302   : > { %v3069_v28 = vadd.f32 %v7951_v39, %v2679_v25  ;;  %v2681_v2 = vpop.f32.mrb[77].mxu0  ;;  %3927 = vperm.xlu1 %6951, %v3911_v42  }
 0x303   : > { %v3070_v27 = vadd.f32 %v7951_v39, %v2681_v2  ;;  %v2683_v11 = vpop.f32.mrb[78].mxu0  ;;  %3476 = vmatprep.subr.bf16.mxu1 %v8067_v30  ;;  %3932 = vperm.xlu0 %6952, %v3912_v29  }
 0x304   : > { %v3071_v32 = vadd.f32 %v7956_v18, %v2683_v11  ;;  %v2685_v46 = vpop.f32.mrb[79].mxu0  ;;  %3477 = vmatpush1.bf16.msra.mxu1 %v8062_v57  ;;  %v3077_v59 = vmax.f32 %v3069_v28, 0.0  ;;  %v8123_v28 = vld [vmem:[%s9588_s5 + $0x10] sm:$0xff]  }
 0x305   : > { %v3072_v31 = vadd.f32 %v7956_v18, %v2685_v46  ;;  %v3078_v33 = vmax.f32 %v3070_v27, 0.0 }
 0x306   : > { %v3079_v12 = vmax.f32 %v3071_v32, 0.0  ;;  %3937 = vperm.xlu1 %6951, %v3913_v23  }
 0x307   : > { %v3080_v48 = vmax.f32 %v3072_v31, 0.0  ;;  %3942 = vperm.xlu0 %6952, %v3914_v34  }
 0x308   : > { %v8081_v37 = vpack.c.bf16 %v3079_v12, %v3077_v59 }
 0x309   : > { %v8083_v15 = vpack.c.bf16 %v3080_v48, %v3078_v33 }
 0x30b   : > { %3478 = vmatprep.subr.bf16.mxu1 %v8083_v15 }
 0x30c   : > { %3479 = vmatpush1.bf16.msra.mxu1 %v8081_v37 }
 0x30d   : > { %3594 = vmatprep.subr.bf16.mxu1 %v8067_v30 }
 0x30f   : > { %6670 = vmatmul.mubr.msk.bf16.vlgmr.msra.gmra.mrb[96].mxu1 %vm2522_vm3, %v8089_v8 }
 0x310   : > { %3595 = vmatpush1.bf16.msra.mxu1 %v8062_v57  ;;  %3510 = vmatprep.mubr.bf16.mxu1 %v9631_v26 }
 0x311   : > { %v2775_v20 = vpop.f32.mrb[80].mxu0  ;;  %3596 = vmatprep.subr.bf16.mxu1 %v8083_v15 }
 0x312   : > { %v3129_v54 = vadd.f32 %v7941_v17, %v2775_v20  ;;  %v2777_v63 = vpop.f32.mrb[81].mxu0 }
 0x313   : > { %v3130_v49 = vadd.f32 %v7941_v17, %v2777_v63  ;;  %v2779_v7 = vpop.f32.mrb[82].mxu0 }
 0x314   : > { %v3131_v0 = vadd.f32 %v7944_v52, %v2779_v7  ;;  %v2781_v36 = vpop.f32.mrb[83].mxu0  ;;  %3597 = vmatpush1.bf16.msra.mxu1 %v8081_v37  ;;  %v3137_v50 = vmax.f32 %v3129_v54, 0.0 }
 0x315   : > { %v3132_v24 = vadd.f32 %v7944_v52, %v2781_v36  ;;  %3598 = vmatprep.subr.bf16.mxu1 %v7971_v22  ;;  %v3138_v45 = vmax.f32 %v3130_v49, 0.0 }
 0x316   : > { %v3139_v44 = vmax.f32 %v3131_v0, 0.0 }
 0x317   : > { %v3140_v53 = vmax.f32 %v3132_v24, 0.0  ;;  %6671 = vmatmul.mubr.msk.bf16.gmra.mrb[100].mxu1 %vm2522_vm3, %v8103_v13 }
 0x318   : > { %v8111_v40 = vpack.c.bf16 %v3139_v44, %v3137_v50  ;;  %3599 = vmatpush1.bf16.msra.mxu1 %v7969_v14  ;;  %3520 = vmatprep.mubr.bf16.mxu1 %v9631_v26 }
 0x319   : > { %v8115_v47 = vpack.c.bf16 %v3140_v53, %v3138_v45  ;;  %v2785_v19 = vpop.f32.mrb[84].mxu0  ;;  %3600 = vmatprep.subr.bf16.mxu1 %v7979_v51 }
 0x31a   : > { %v3133_v41 = vadd.f32 %v7951_v39, %v2785_v19  ;;  %v2787_v42 = vpop.f32.mrb[85].mxu0 }
 0x31b   : > { %v3134_v29 = vadd.f32 %v7951_v39, %v2787_v42  ;;  %v2789_v25 = vpop.f32.mrb[86].mxu0 }
 0x31c   : > { %v3135_v2 = vadd.f32 %v7956_v18, %v2789_v25  ;;  %v2791_v27 = vpop.f32.mrb[87].mxu0  ;;  %3601 = vmatpush1.bf16.msra.mxu1 %v7977_v6  ;;  %v3141_v23 = vmax.f32 %v3133_v41, 0.0 }
 0x31d   : > { %v3136_v11 = vadd.f32 %v7956_v18, %v2791_v27  ;;  %3602 = vmatprep.subr.bf16.mxu1 %v8115_v47  ;;  %v3142_v46 = vmax.f32 %v3134_v29, 0.0 }
 0x31e   : > { %v3143_v32 = vmax.f32 %v3135_v2, 0.0 }
 0x31f   : > { %v3144_v34 = vmax.f32 %v3136_v11, 0.0  ;;  %6672 = vmatmul.mubr.msk.bf16.gmra.mrb[104].mxu1 %vm2522_vm3, %v8123_v28 }
 0x320   : > { %v8131_v31 = vpack.c.bf16 %v3143_v32, %v3141_v23  ;;  %3603 = vmatpush1.bf16.msra.mxu1 %v8111_v40  ;;  %3626 = vmatprep.mubr.bf16.mxu1 %v9631_v26 }
 0x321   : > { %v8135_v59 = vpack.c.bf16 %v3144_v34, %v3142_v46 }
 0x323   : > { %3604 = vmatprep.subr.bf16.mxu1 %v8135_v59 }
 0x324   : > { %3605 = vmatpush1.bf16.msra.mxu1 %v8131_v31 }
 0x325   : > { %3720 = vmatprep.subr.bf16.mxu1 %v8115_v47 }
 0x327   : > { %6676 = vmatmul.mubr.msk.bf16.vlgmr.msra.gmra.mrb[108].mxu1 %vm2522_vm3, %v8089_v8 }
 0x328   : > { %3721 = vmatpush1.bf16.msra.mxu1 %v8111_v40  ;;  %3636 = vmatprep.mubr.bf16.mxu1 %v9631_v26 }
 0x329   : > { %v2881_v12 = vpop.f32.mrb[88].mxu0  ;;  %3722 = vmatprep.subr.bf16.mxu1 %v8135_v59 }
 0x32a   : > { %v3193_v33 = vadd.f32 %v7941_v17, %v2881_v12  ;;  %v2883_v48 = vpop.f32.mrb[89].mxu0 }
 0x32b   : > { %v3194_v20 = vadd.f32 %v7941_v17, %v2883_v48  ;;  %v2885_v54 = vpop.f32.mrb[90].mxu0 }
 0x32c   : > { %v3195_v63 = vadd.f32 %v7944_v52, %v2885_v54  ;;  %v2887_v49 = vpop.f32.mrb[91].mxu0  ;;  %3723 = vmatpush1.bf16.msra.mxu1 %v8131_v31  ;;  %v3201_v0 = vmax.f32 %v3193_v33, 0.0 }
 0x32d   : > { %v3196_v7 = vadd.f32 %v7944_v52, %v2887_v49  ;;  %3724 = vmatprep.subr.bf16.mxu1 %v7987_v61  ;;  %v3202_v24 = vmax.f32 %v3194_v20, 0.0 }
 0x32e   : > { %v3203_v36 = vmax.f32 %v3195_v63, 0.0 }
 0x32f   : > { %v3204_v50 = vmax.f32 %v3196_v7, 0.0  ;;  %6677 = vmatmul.mubr.msk.bf16.gmra.mrb[112].mxu1 %vm2522_vm3, %v8103_v13 }
 0x330   : > { %v8153_v44 = vpack.c.bf16 %v3203_v36, %v3201_v0  ;;  %3725 = vmatpush1.bf16.msra.mxu1 %v7985_v60  ;;  %3646 = vmatprep.mubr.bf16.mxu1 %v9631_v26 }
 0x331   : > { %v8157_v17 = vpack.c.bf16 %v3204_v50, %v3202_v24  ;;  %v2891_v45 = vpop.f32.mrb[92].mxu0  ;;  %3726 = vmatprep.subr.bf16.mxu1 %v7995_v9 }
 0x332   : > { %v3197_v52 = vadd.f32 %v7951_v39, %v2891_v45  ;;  %v2893_v53 = vpop.f32.mrb[93].mxu0 }
 0x333   : > { %v3198_v19 = vadd.f32 %v7951_v39, %v2893_v53  ;;  %v2895_v41 = vpop.f32.mrb[94].mxu0 }
 0x334   : > { %v3199_v42 = vadd.f32 %v7956_v18, %v2895_v41  ;;  %v2897_v29 = vpop.f32.mrb[95].mxu0  ;;  %3727 = vmatpush1.bf16.msra.mxu1 %v7993_v16  ;;  %v3205_v2 = vmax.f32 %v3197_v52, 0.0 }
 0x335   : > { %v3200_v25 = vadd.f32 %v7956_v18, %v2897_v29  ;;  %3728 = vmatprep.subr.bf16.mxu1 %v8157_v17  ;;  %v3206_v11 = vmax.f32 %v3198_v19, 0.0 }
 0x336   : > { %v3207_v27 = vmax.f32 %v3199_v42, 0.0 }
 0x337   : > { %v3208_v23 = vmax.f32 %v3200_v25, 0.0  ;;  %6678 = vmatmul.mubr.msk.bf16.gmra.mrb[116].mxu1 %vm2522_vm3, %v8123_v28 }
 0x338   : > { %v8168_v32 = vpack.c.bf16 %v3207_v27, %v3205_v2  ;;  %3729 = vmatpush1.bf16.msra.mxu1 %v8153_v44  ;;  %3752 = vmatprep.mubr.bf16.mxu1 %v9631_v26 }
 0x339   : > { %v8172_v39 = vpack.c.bf16 %v3208_v23, %v3206_v11 }
 0x33b   : > { %3730 = vmatprep.subr.bf16.mxu1 %v8172_v39 }
 0x33c   : > { %3731 = vmatpush1.bf16.msra.mxu1 %v8168_v32 }
 0x33d   : > { %3846 = vmatprep.subr.bf16.mxu1 %v8157_v17 }
 0x33f   : > { %6682 = vmatmul.mubr.msk.bf16.vlgmr.msra.gmra.mrb[120].mxu1 %vm2522_vm3, %v8089_v8 }
 0x340   : > { %3847 = vmatpush1.bf16.msra.mxu1 %v8153_v44  ;;  %3762 = vmatprep.mubr.bf16.mxu1 %v9631_v26 }
 0x341   : > { %3848 = vmatprep.subr.bf16.mxu1 %v8172_v39 }
 0x344   : > { %3849 = vmatpush1.bf16.msra.mxu1 %v8168_v32 }
 0x345   : > { %3850 = vmatprep.subr.bf16.mxu1 %v8005_v43 }
 0x347   : > { %6683 = vmatmul.mubr.msk.bf16.gmra.mrb[124].mxu1 %vm2522_vm3, %v8103_v13 }
 0x348   : > { %3851 = vmatpush1.bf16.msra.mxu1 %v8002_v10  ;;  %3772 = vmatprep.mubr.bf16.mxu1 %v9631_v26 }
 0x349   : > { %3852 = vmatprep.subr.bf16.mxu1 %v8024_v58 }
 0x34c   : > { %3853 = vmatpush1.bf16.msra.mxu1 %v8019_v1 }
 0x34f   : > { %6684 = vmatmul.mubr.msk.bf16.gmra.mrb[128].mxu1 %vm2522_vm3, %v8123_v28 }
 0x350   : > { %3878 = vmatprep.mubr.bf16.mxu1 %v9631_v26 }
 0x35c   : > { %v3010_v18 = vpop.permute.xlu1 %3009 }
 0x35d   : > { %v3012_v46 = vpop.permute.xlu0 %3011 }
 0x35e   : > { %6817 = vmatprep.subr.msk.bf16.mxu1 %vm3017_vm4, %v3012_v46  ;;  %v3018_v34 = vsel %vm3017_vm4, %v3010_v18, %v3012_v46 }
 0x35f   : > { %3855 = vmatpush1.bf16.msra.mxu1 %v3018_v34 }
 0x364   : > { %v3014_v12 = vpop.permute.xlu1 %3013 }
 0x365   : > { %v3016_v33 = vpop.permute.xlu0 %3015 }
 0x366   : > { %6818 = vmatprep.subr.msk.bf16.mxu1 %vm3017_vm4, %v3016_v33  ;;  %v3019_v48 = vsel %vm3017_vm4, %v3014_v12, %v3016_v33 }
 0x367   : > { %3857 = vmatpush1.bf16.msra.mxu1 %v3019_v48 }
 0x368   : > { %v3250_v20 = vpop.permute.xlu1 %3249 }
 0x369   : > { %v3252_v54 = vpop.permute.xlu0 %3251 }
 0x36a   : > { %6688 = vmatmul.mubr.msk.bf16.vlgmr.msra.gmra.mrb[132].mxu1 %vm2522_vm3, %v8089_v8  ;;  %v3257_v63 = vsel %vm971_vm1, %v3250_v20, %v3252_v54 }
 0x36b   : > { %3405 = vmatprep.subr.bf16.mxu0 %v3257_v63  ;;  %3888 = vmatprep.mubr.bf16.mxu1 %v9631_v26 }
 0x36c   : > { %6814 = vmatpush1.bf16.msk.msra.mxu0 %vm7443_vm2, %v3250_v20  ;;  %v3254_v49 = vpop.permute.xlu1 %3253 }
 0x36d   : > { %v3256_v7 = vpop.permute.xlu0 %3255 }
 0x36e   : > { %v3258_v0 = vsel %vm971_vm1, %v3254_v49, %v3256_v7 }
 0x36f   : > { %3407 = vmatprep.subr.bf16.mxu0 %v3258_v0 }
 0x370   : > { %6816 = vmatpush1.bf16.msk.msra.mxu0 %vm7443_vm2, %v3254_v49 }
 0x371   : > { %3409 = vmatprep.subr.bf16.mxu0 %v8015_v5 }
 0x372   : > { %6689 = vmatmul.mubr.msk.bf16.gmra.mrb[136].mxu1 %vm2522_vm3, %v8103_v13 }
 0x373   : > { %3898 = vmatprep.mubr.bf16.mxu1 %v9631_v26 }
 0x374   : > { %3410 = vmatpush1.bf16.msra.mxu0 %v8012_v4 }
 0x375   : > { %3411 = vmatprep.subr.bf16.mxu0 %v8031_v62 }
 0x378   : > { %3412 = vmatpush1.bf16.msra.mxu0 %v8029_v35 }
 0x379   : > { %3413 = vmatprep.subr.bf16.mxu0 %v7953_v55 }
 0x37a   : > { %6690 = vmatmul.mubr.msk.bf16.gmra.mrb[140].mxu1 %vm2522_vm3, %v8123_v28 }
 0x37c   : > { %3414 = vmatpush1.bf16.msra.mxu0 %v7949_v38 }
 0x37d   : > { %3415 = vmatprep.subr.bf16.mxu0 %v7963_v56 }
 0x380   : > { %3416 = vmatpush1.bf16.msra.mxu0 %v7961_v21 }
 0x381   : > { %3531 = vmatprep.subr.bf16.mxu0 %v7953_v55 }
 0x383   : > { %6667 = vmatmul.mubr.msk.bf16.vlgmr.msra.gmra.mrb[96].mxu0 %vm2522_vm3, %v8089_v8 }
 0x384   : > { %3532 = vmatpush1.bf16.msra.mxu0 %v7949_v38  ;;  %3447 = vmatprep.mubr.bf16.mxu0 %v9631_v26  ;;  %v8286_v38 = vpop.permute.xlu1 %3917 }
 0x385   : > { %3533 = vmatprep.subr.bf16.mxu0 %v7963_v56 }
 0x388   : > { %3534 = vmatpush1.bf16.msra.mxu0 %v7961_v21  ;;  %v8296_v5 = vpop.permute.xlu1 %3927 }
 0x389   : > { %3535 = vmatprep.subr.bf16.mxu0 %v8067_v30 }
 0x38b   : > { %6668 = vmatmul.mubr.msk.bf16.gmra.mrb[100].mxu0 %vm2522_vm3, %v8103_v13 }
 0x38c   : > { %3536 = vmatpush1.bf16.msra.mxu0 %v8062_v57  ;;  %3457 = vmatprep.mubr.bf16.mxu0 %v9631_v26  ;;  %v8310_v36 = vpop.permute.xlu1 %3937 }
 0x38d   : > { %3537 = vmatprep.subr.bf16.mxu0 %v8083_v15 }
 0x390   : > { %3538 = vmatpush1.bf16.msra.mxu0 %v8081_v37 }
 0x391   : > { %3539 = vmatprep.subr.bf16.mxu0 %v7971_v22 }
 0x393   : > { %6669 = vmatmul.mubr.msk.bf16.gmra.mrb[104].mxu0 %vm2522_vm3, %v8123_v28 }
 0x394   : > { %3540 = vmatpush1.bf16.msra.mxu0 %v7969_v14  ;;  %3563 = vmatprep.mubr.bf16.mxu0 %v9631_v26 }
 0x395   : > { %3541 = vmatprep.subr.bf16.mxu0 %v7979_v51 }
 0x398   : > { %3542 = vmatpush1.bf16.msra.mxu0 %v7977_v6 }
 0x399   : > { %3657 = vmatprep.subr.bf16.mxu0 %v7971_v22 }
 0x39b   : > { %6673 = vmatmul.mubr.msk.bf16.vlgmr.msra.gmra.mrb[108].mxu0 %vm2522_vm3, %v8089_v8 }
 0x39c   : > { %3658 = vmatpush1.bf16.msra.mxu0 %v7969_v14  ;;  %3573 = vmatprep.mubr.bf16.mxu0 %v9631_v26  ;;  %v8289_v14 = vpop.permute.xlu0 %3922 }
 0x39d   : > { %3659 = vmatprep.subr.bf16.mxu0 %v7979_v51 }
 0x3a0   : > { %3660 = vmatpush1.bf16.msra.mxu0 %v7977_v6  ;;  %v8301_v57 = vpop.permute.xlu0 %3932 }
 0x3a1   : > { %3661 = vmatprep.subr.bf16.mxu0 %v8115_v47 }
 0x3a3   : > { %6674 = vmatmul.mubr.msk.bf16.gmra.mrb[112].mxu0 %vm2522_vm3, %v8103_v13 }
 0x3a4   : > { %3662 = vmatpush1.bf16.msra.mxu0 %v8111_v40  ;;  %3583 = vmatprep.mubr.bf16.mxu0 %v9631_v26  ;;  %v8315_v45 = vpop.permute.xlu0 %3942 }
 0x3a5   : > { %3663 = vmatprep.subr.bf16.mxu0 %v8135_v59 }
 0x3a8   : > { %3664 = vmatpush1.bf16.msra.mxu0 %v8131_v31 }
 0x3a9   : > { %3665 = vmatprep.subr.bf16.mxu0 %v7987_v61 }
 0x3ab   : > { %6675 = vmatmul.mubr.msk.bf16.gmra.mrb[116].mxu0 %vm2522_vm3, %v8123_v28 }
 0x3ac   : > { %3666 = vmatpush1.bf16.msra.mxu0 %v7985_v60  ;;  %3689 = vmatprep.mubr.bf16.mxu0 %v9631_v26 }
 0x3ad   : > { %3667 = vmatprep.subr.bf16.mxu0 %v7995_v9 }
 0x3b0   : > { %3668 = vmatpush1.bf16.msra.mxu0 %v7993_v16 }
 0x3b1   : > { %3783 = vmatprep.subr.bf16.mxu0 %v7987_v61 }
 0x3b3   : > { %6679 = vmatmul.mubr.msk.bf16.vlgmr.msra.gmra.mrb[120].mxu0 %vm2522_vm3, %v8089_v8 }
 0x3b4   : > { %3784 = vmatpush1.bf16.msra.mxu0 %v7985_v60  ;;  %3699 = vmatprep.mubr.bf16.mxu0 %v9631_v26 }
 0x3b5   : > { %3785 = vmatprep.subr.bf16.mxu0 %v7995_v9 }
 0x3b8   : > { %3786 = vmatpush1.bf16.msra.mxu0 %v7993_v16 }
 0x3b9   : > { %3787 = vmatprep.subr.bf16.mxu0 %v8157_v17 }
 0x3bb   : > { %6680 = vmatmul.mubr.msk.bf16.gmra.mrb[124].mxu0 %vm2522_vm3, %v8103_v13 }
 0x3bc   : > { %3788 = vmatpush1.bf16.msra.mxu0 %v8153_v44  ;;  %3709 = vmatprep.mubr.bf16.mxu0 %v9631_v26 }
 0x3bd   : > { %3789 = vmatprep.subr.bf16.mxu0 %v8172_v39 }
 0x3c0   : > { %3790 = vmatpush1.bf16.msra.mxu0 %v8168_v32 }
 0x3c1   : > { %3791 = vmatprep.subr.bf16.mxu0 %v8005_v43 }
 0x3c3   : > { %6681 = vmatmul.mubr.msk.bf16.gmra.mrb[128].mxu0 %vm2522_vm3, %v8123_v28 }
 0x3c4   : > { %3792 = vmatpush1.bf16.msra.mxu0 %v8002_v10  ;;  %3815 = vmatprep.mubr.bf16.mxu0 %v9631_v26 }
 0x3c5   : > { %3793 = vmatprep.subr.bf16.mxu0 %v8024_v58 }
 0x3c8   : > { %3794 = vmatpush1.bf16.msra.mxu0 %v8019_v1 }
 0x3cb   : > { %6685 = vmatmul.mubr.msk.bf16.vlgmr.msra.gmra.mrb[132].mxu0 %vm2522_vm3, %v8089_v8 }
 0x3cc   : > { %3825 = vmatprep.mubr.bf16.mxu0 %v9631_v26 }
 0x3d3   : > { %6686 = vmatmul.mubr.msk.bf16.gmra.mrb[136].mxu0 %vm2522_vm3, %v8103_v13 }
 0x3d4   : > { %3835 = vmatprep.mubr.bf16.mxu0 %v9631_v26 }
 0x3db   : > { %6687 = vmatmul.mubr.msk.bf16.gmra.mrb[140].mxu0 %vm2522_vm3, %v8123_v28 }
 0x3e2   : > { %v3502_v55 = vpop.f32.mrb[96].mxu1 }
 0x3e3   : > { %v3981_v21 = vadd.f32 %v8286_v38, %v3502_v55  ;;  %v3504_v56 = vpop.f32.mrb[97].mxu1 }
 0x3e4   : > { %v3982_v22 = vadd.f32 %v8286_v38, %v3504_v56  ;;  %v3506_v6 = vpop.f32.mrb[98].mxu1 }
 0x3e5   : > { %v3983_v51 = vadd.f32 %v8289_v14, %v3506_v6  ;;  %v3508_v60 = vpop.f32.mrb[99].mxu1  ;;  %v3993_v16 = vmax.f32 %v3981_v21, 0.0 }
 0x3e6   : > { %v3984_v61 = vadd.f32 %v8289_v14, %v3508_v60  ;;  %v3994_v10 = vmax.f32 %v3982_v22, 0.0 }
 0x3e7   : > { %v3995_v9 = vmax.f32 %v3983_v51, 0.0 }
 0x3e8   : > { %v3996_v43 = vmax.f32 %v3984_v61, 0.0 }
 0x3e9   : > { %v8294_v4 = vpack.c.bf16 %v3995_v9, %v3993_v16 }
 0x3ea   : > { %v8298_v1 = vpack.c.bf16 %v3996_v43, %v3994_v10  ;;  %v3512_v58 = vpop.f32.mrb[100].mxu1 }
 0x3eb   : > { %v3985_v35 = vadd.f32 %v8296_v5, %v3512_v58  ;;  %v3514_v62 = vpop.f32.mrb[101].mxu1 }
 0x3ec   : > { %v3986_v30 = vadd.f32 %v8296_v5, %v3514_v62  ;;  %v3516_v37 = vpop.f32.mrb[102].mxu1  ;;  %4492 = vmatprep.subr.bf16.mxu1 %v8298_v1 }
 0x3ed   : > { %v3987_v15 = vadd.f32 %v8301_v57, %v3516_v37  ;;  %v3518_v8 = vpop.f32.mrb[103].mxu1  ;;  %4493 = vmatpush1.bf16.msra.mxu1 %v8294_v4  ;;  %v3997_v40 = vmax.f32 %v3985_v35, 0.0 }
 0x3ee   : > { %v3988_v13 = vadd.f32 %v8301_v57, %v3518_v8  ;;  %v3998_v28 = vmax.f32 %v3986_v30, 0.0 }
 0x3ef   : > { %v3999_v47 = vmax.f32 %v3987_v15, 0.0 }
 0x3f0   : > { %v4000_v31 = vmax.f32 %v3988_v13, 0.0 }
 0x3f1   : > { %v8308_v59 = vpack.c.bf16 %v3999_v47, %v3997_v40 }
 0x3f2   : > { %v8312_v24 = vpack.c.bf16 %v4000_v31, %v3998_v28  ;;  %v3522_v50 = vpop.f32.mrb[104].mxu1 }
 0x3f3   : > { %v3989_v44 = vadd.f32 %v8310_v36, %v3522_v50  ;;  %v3524_v17 = vpop.f32.mrb[105].mxu1 }
 0x3f4   : > { %v3990_v52 = vadd.f32 %v8310_v36, %v3524_v17  ;;  %v3526_v53 = vpop.f32.mrb[106].mxu1  ;;  %4494 = vmatprep.subr.bf16.mxu1 %v8312_v24 }
 0x3f5   : > { %v3991_v19 = vadd.f32 %v8315_v45, %v3526_v53  ;;  %v3528_v41 = vpop.f32.mrb[107].mxu1  ;;  %4495 = vmatpush1.bf16.msra.mxu1 %v8308_v59  ;;  %v4001_v29 = vmax.f32 %v3989_v44, 0.0 }
 0x3f6   : > { %v3992_v42 = vadd.f32 %v8315_v45, %v3528_v41  ;;  %v4002_v2 = vmax.f32 %v3990_v52, 0.0 }
 0x3f7   : > { %v4003_v25 = vmax.f32 %v3991_v19, 0.0 }
 0x3f8   : > { %v4004_v27 = vmax.f32 %v3992_v42, 0.0 }
 0x3f9   : > { %v8322_v11 = vpack.c.bf16 %v4003_v25, %v4001_v29 }
 0x3fa   : > { %v8324_v23 = vpack.c.bf16 %v4004_v27, %v4002_v2  ;;  %v3628_v32 = vpop.f32.mrb[108].mxu1  ;;  %v8358_v27 = vld [vmem:[%s9590_s7 + $0x4] ss:$8 sps:$4 sm:$0xff]  }
 0x3fb   : > { %v4059_v39 = vadd.f32 %v8286_v38, %v3628_v32  ;;  %v3630_v18 = vpop.f32.mrb[109].mxu1  ;;  %6703 = vmatprep.mubr.msk.bf16.mxu1 %vm4406_vm5, %v8358_v27  ;;  %6699 = vmatprep.mubr.msk.bf16.mxu0 %vm4406_vm5, %v8358_v27 }
 0x3fc   : > { %v4060_v46 = vadd.f32 %v8286_v38, %v3630_v18  ;;  %v3632_v34 = vpop.f32.mrb[110].mxu1  ;;  %4496 = vmatprep.subr.bf16.mxu1 %v8324_v23 }
 0x3fd   : > { %v4061_v12 = vadd.f32 %v8289_v14, %v3632_v34  ;;  %v3634_v33 = vpop.f32.mrb[111].mxu1  ;;  %4497 = vmatpush1.bf16.msra.mxu1 %v8322_v11  ;;  %v4071_v20 = vmax.f32 %v4059_v39, 0.0 }
 0x3fe   : > { %v4062_v48 = vadd.f32 %v8289_v14, %v3634_v33  ;;  %v4072_v63 = vmax.f32 %v4060_v46, 0.0 }
 0x3ff   : > { %v4073_v54 = vmax.f32 %v4061_v12, 0.0 }
 0x400   : > { %v4074_v49 = vmax.f32 %v4062_v48, 0.0 }
 0x401   : > { %v8332_v7 = vpack.c.bf16 %v4073_v54, %v4071_v20 }
 0x402   : > { %v8334_v0 = vpack.c.bf16 %v4074_v49, %v4072_v63  ;;  %v3638_v55 = vpop.f32.mrb[112].mxu1 }
 0x403   : > { %v4063_v21 = vadd.f32 %v8296_v5, %v3638_v55  ;;  %v3640_v56 = vpop.f32.mrb[113].mxu1 }
 0x404   : > { %v4064_v22 = vadd.f32 %v8296_v5, %v3640_v56  ;;  %v3642_v6 = vpop.f32.mrb[114].mxu1 }
 0x405   : > { %v4065_v51 = vadd.f32 %v8301_v57, %v3642_v6  ;;  %v3644_v60 = vpop.f32.mrb[115].mxu1  ;;  %v4075_v16 = vmax.f32 %v4063_v21, 0.0 }
 0x406   : > { %v4066_v61 = vadd.f32 %v8301_v57, %v3644_v60  ;;  %v4076_v10 = vmax.f32 %v4064_v22, 0.0 }
 0x407   : > { %v4077_v9 = vmax.f32 %v4065_v51, 0.0 }
 0x408   : > { %v4078_v43 = vmax.f32 %v4066_v61, 0.0 }
 0x409   : > { %v8340_v58 = vpack.c.bf16 %v4077_v9, %v4075_v16 }
 0x40a   : > { %v8342_v35 = vpack.c.bf16 %v4078_v43, %v4076_v10  ;;  %v3648_v62 = vpop.f32.mrb[116].mxu1 }
 0x40b   : > { %v4067_v30 = vadd.f32 %v8310_v36, %v3648_v62  ;;  %v3650_v37 = vpop.f32.mrb[117].mxu1 }
 0x40c   : > { %v4068_v15 = vadd.f32 %v8310_v36, %v3650_v37  ;;  %v3652_v8 = vpop.f32.mrb[118].mxu1 }
 0x40d   : > { %v4069_v13 = vadd.f32 %v8315_v45, %v3652_v8  ;;  %v3654_v40 = vpop.f32.mrb[119].mxu1  ;;  %v4079_v28 = vmax.f32 %v4067_v30, 0.0 }
 0x40e   : > { %v4070_v47 = vadd.f32 %v8315_v45, %v3654_v40  ;;  %v4080_v50 = vmax.f32 %v4068_v15, 0.0 }
 0x40f   : > { %v4081_v31 = vmax.f32 %v4069_v13, 0.0 }
 0x410   : > { %v4082_v44 = vmax.f32 %v4070_v47, 0.0 }
 0x411   : > { %v8348_v17 = vpack.c.bf16 %v4081_v31, %v4079_v28 }
 0x412   : > { %v8350_v52 = vpack.c.bf16 %v4082_v44, %v4080_v50  ;;  %v3754_v53 = vpop.f32.mrb[120].mxu1 }
 0x413   : > { %v4137_v19 = vadd.f32 %v8286_v38, %v3754_v53  ;;  %v3756_v41 = vpop.f32.mrb[121].mxu1 }
 0x414   : > { %v4138_v42 = vadd.f32 %v8286_v38, %v3756_v41  ;;  %v3758_v29 = vpop.f32.mrb[122].mxu1 }
 0x415   : > { %v4139_v25 = vadd.f32 %v8289_v14, %v3758_v29  ;;  %v3760_v2 = vpop.f32.mrb[123].mxu1  ;;  %v4149_v39 = vmax.f32 %v4137_v19, 0.0 }
 0x416   : > { %v4140_v32 = vadd.f32 %v8289_v14, %v3760_v2  ;;  %v4150_v46 = vmax.f32 %v4138_v42, 0.0 }
 0x417   : > { %v4151_v18 = vmax.f32 %v4139_v25, 0.0 }
 0x418   : > { %v4152_v34 = vmax.f32 %v4140_v32, 0.0 }
 0x419   : > { %v8365_v12 = vpack.c.bf16 %v4151_v18, %v4149_v39 }
 0x41a   : > { %v8367_v33 = vpack.c.bf16 %v4152_v34, %v4150_v46  ;;  %v3764_v48 = vpop.f32.mrb[124].mxu1 }
 0x41b   : > { %v4141_v20 = vadd.f32 %v8296_v5, %v3764_v48  ;;  %v3766_v54 = vpop.f32.mrb[125].mxu1 }
 0x41c   : > { %v4142_v63 = vadd.f32 %v8296_v5, %v3766_v54  ;;  %v3768_v49 = vpop.f32.mrb[126].mxu1 }
 0x41d   : > { %v4143_v55 = vadd.f32 %v8301_v57, %v3768_v49  ;;  %v3770_v21 = vpop.f32.mrb[127].mxu1  ;;  %v4153_v22 = vmax.f32 %v4141_v20, 0.0 }
 0x41e   : > { %v4144_v56 = vadd.f32 %v8301_v57, %v3770_v21  ;;  %v4154_v51 = vmax.f32 %v4142_v63, 0.0 }
 0x41f   : > { %v4155_v6 = vmax.f32 %v4143_v55, 0.0 }
 0x420   : > { %v4156_v60 = vmax.f32 %v4144_v56, 0.0 }
 0x421   : > { %v8373_v61 = vpack.c.bf16 %v4155_v6, %v4153_v22 }
 0x422   : > { %v8375_v16 = vpack.c.bf16 %v4156_v60, %v4154_v51  ;;  %v3774_v9 = vpop.f32.mrb[128].mxu1 }
 0x423   : > { %v4145_v10 = vadd.f32 %v8310_v36, %v3774_v9  ;;  %v3776_v43 = vpop.f32.mrb[129].mxu1 }
 0x424   : > { %v4146_v62 = vadd.f32 %v8310_v36, %v3776_v43  ;;  %v3778_v30 = vpop.f32.mrb[130].mxu1 }
 0x425   : > { %v4147_v37 = vadd.f32 %v8315_v45, %v3778_v30  ;;  %v3780_v15 = vpop.f32.mrb[131].mxu1  ;;  %v4157_v13 = vmax.f32 %v4145_v10, 0.0 }
 0x426   : > { %v4148_v8 = vadd.f32 %v8315_v45, %v3780_v15  ;;  %v4158_v47 = vmax.f32 %v4146_v62, 0.0 }
 0x427   : > { %v4159_v40 = vmax.f32 %v4147_v37, 0.0 }
 0x428   : > { %v4160_v28 = vmax.f32 %v4148_v8, 0.0 }
 0x429   : > { %v8381_v31 = vpack.c.bf16 %v4159_v40, %v4157_v13 }
 0x42a   : > { %v8383_v50 = vpack.c.bf16 %v4160_v28, %v4158_v47 }
 0x43d   : > { %v3880_v44 = vpop.f32.mrb[132].mxu1 }
 0x43e   : > { %v4215_v53 = vadd.f32 %v8286_v38, %v3880_v44  ;;  %v3882_v19 = vpop.f32.mrb[133].mxu1 }
 0x43f   : > { %v4216_v41 = vadd.f32 %v8286_v38, %v3882_v19  ;;  %v3884_v42 = vpop.f32.mrb[134].mxu1 }
 0x440   : > { %v4217_v29 = vadd.f32 %v8289_v14, %v3884_v42  ;;  %v3886_v25 = vpop.f32.mrb[135].mxu1  ;;  %v4227_v32 = vmax.f32 %v4215_v53, 0.0 }
 0x441   : > { %v4218_v2 = vadd.f32 %v8289_v14, %v3886_v25  ;;  %v4228_v18 = vmax.f32 %v4216_v41, 0.0 }
 0x442   : > { %v4229_v39 = vmax.f32 %v4217_v29, 0.0 }
 0x443   : > { %v4230_v46 = vmax.f32 %v4218_v2, 0.0 }
 0x444   : > { %v8389_v34 = vpack.c.bf16 %v4229_v39, %v4227_v32  ;;  %v4711_v32 = vld [vmem:[%s9591_s8] sm:$0xff] }
 0x445   : > { %v8391_v48 = vpack.c.bf16 %v4230_v46, %v4228_v18  ;;  %v3890_v20 = vpop.f32.mrb[136].mxu1  ;;  %v4712_v46 = vld [vmem:[%s9591_s8 + $0x8] sm:$0xff] }
 0x446   : > { %v4219_v54 = vadd.f32 %v8296_v5, %v3890_v20  ;;  %4251 = vrot.lane.b32.xlu1 %v8389_v34, %s7087_s30  ;;  %v3892_v63 = vpop.f32.mrb[137].mxu1 }
 0x447   : > { %v4220_v49 = vadd.f32 %v8296_v5, %v3892_v63  ;;  %4253 = vrot.lane.b32.xlu0 %v8391_v48, %s7087_s30  ;;  %v3894_v55 = vpop.f32.mrb[138].mxu1 }
 0x448   : > { %v4221_v21 = vadd.f32 %v8301_v57, %v3894_v55  ;;  %v3896_v56 = vpop.f32.mrb[139].mxu1  ;;  %v4231_v6 = vmax.f32 %v4219_v54, 0.0 }
 0x449   : > { %v4222_v22 = vadd.f32 %v8301_v57, %v3896_v56  ;;  %v4232_v60 = vmax.f32 %v4220_v49, 0.0 }
 0x44a   : > { %v4233_v51 = vmax.f32 %v4221_v21, 0.0  ;;  %v4713_v21 = vld [vmem:[%s9591_s8 + $0x10] sm:$0xff] }
 0x44b   : > { %v4234_v9 = vmax.f32 %v4222_v22, 0.0 }
 0x44c   : > { %v8401_v10 = vpack.c.bf16 %v4233_v51, %v4231_v6  ;;  %v4714_v6 = vld [vmem:[%s9591_s8 + $0x18] sm:$0xff] }
 0x44d   : > { %v8403_v43 = vpack.c.bf16 %v4234_v9, %v4232_v60  ;;  %v3900_v62 = vpop.f32.mrb[140].mxu1 }
 0x44e   : > { %v4223_v30 = vadd.f32 %v8310_v36, %v3900_v62  ;;  %4255 = vrot.lane.b32.xlu1 %v8401_v10, %s7087_s30  ;;  %v3902_v37 = vpop.f32.mrb[141].mxu1 }
 0x44f   : > { %v4224_v15 = vadd.f32 %v8310_v36, %v3902_v37  ;;  %4257 = vrot.lane.b32.xlu0 %v8403_v43, %s7087_s30  ;;  %v3904_v8 = vpop.f32.mrb[142].mxu1  ;;  %v4715_v37 = vld [vmem:[%s9591_s8 + $0x20] sm:$0xff] }
 0x450   : > { %v4225_v13 = vadd.f32 %v8315_v45, %v3904_v8  ;;  %v3906_v40 = vpop.f32.mrb[143].mxu1  ;;  %v4235_v28 = vmax.f32 %v4223_v30, 0.0 }
 0x451   : > { %v4226_v47 = vadd.f32 %v8315_v45, %v3906_v40  ;;  %v4236_v53 = vmax.f32 %v4224_v15, 0.0 }
 0x452   : > { %v4237_v44 = vmax.f32 %v4225_v13, 0.0  ;;  %v4716_v13 = vld [vmem:[%s9591_s8 + $0x28] sm:$0xff] }
 0x453   : > { %v4238_v19 = vmax.f32 %v4226_v47, 0.0 }
 0x454   : > { %v8413_v41 = vpack.c.bf16 %v4237_v44, %v4235_v28 }
 0x455   : > { %v8415_v42 = vpack.c.bf16 %v4238_v19, %v4236_v53  ;;  %v4717_v19 = vld [vmem:[%s9591_s8 + $0x30] sm:$0xff] }
 0x456   : > { %v3439_v29 = vpop.f32.mrb[96].mxu0  ;;  %4259 = vrot.lane.b32.xlu1 %v8413_v41, %s7087_s30 }
 0x457   : > { %v3945_v25 = vadd.f32 %v8286_v38, %v3439_v29  ;;  %v3441_v2 = vpop.f32.mrb[97].mxu0  ;;  %4261 = vrot.lane.b32.xlu0 %v8415_v42, %s7087_s30 }
 0x458   : > { %v3946_v39 = vadd.f32 %v8286_v38, %v3441_v2  ;;  %v3443_v18 = vpop.f32.mrb[98].mxu0  ;;  %v4718_v2 = vld [vmem:[%s9591_s8 + $0x38] sm:$0xff] }
 0x459   : > { %v3947_v20 = vadd.f32 %v8289_v14, %v3443_v18  ;;  %v3445_v54 = vpop.f32.mrb[99].mxu0  ;;  %v3957_v49 = vmax.f32 %v3945_v25, 0.0 }
 0x45a   : > { %v3948_v63 = vadd.f32 %v8289_v14, %v3445_v54  ;;  %4721 = vperm.xlu1 %6951, %v4711_v32   ;;  %v3958_v56 = vmax.f32 %v3946_v39, 0.0 }
 0x45b   : > { %v3959_v55 = vmax.f32 %v3947_v20, 0.0  ;;  %4726 = vperm.xlu0 %6952, %v4712_v46  }
 0x45c   : > { %v3960_v22 = vmax.f32 %v3948_v63, 0.0 }
 0x45d   : > { %v8437_v51 = vpack.c.bf16 %v3959_v55, %v3957_v49 }
 0x45e   : > { %v8439_v60 = vpack.c.bf16 %v3960_v22, %v3958_v56  ;;  %v3449_v9 = vpop.f32.mrb[100].mxu0  ;;  %4731 = vperm.xlu1 %6951, %v4713_v21  }
 0x45f   : > { %v3949_v62 = vadd.f32 %v8296_v5, %v3449_v9  ;;  %v3451_v30 = vpop.f32.mrb[101].mxu0  ;;  %4736 = vperm.xlu0 %6952, %v4714_v6  }
 0x460   : > { %v3950_v15 = vadd.f32 %v8296_v5, %v3451_v30  ;;  %v3453_v8 = vpop.f32.mrb[102].mxu0 }
 0x461   : > { %v3951_v40 = vadd.f32 %v8301_v57, %v3453_v8  ;;  %v3455_v47 = vpop.f32.mrb[103].mxu0  ;;  %v3961_v44 = vmax.f32 %v3949_v62, 0.0 }
 0x462   : > { %v3952_v28 = vadd.f32 %v8301_v57, %v3455_v47  ;;  %4741 = vperm.xlu1 %6951, %v4715_v37   ;;  %v3962_v29 = vmax.f32 %v3950_v15, 0.0 }
 0x463   : > { %v3963_v53 = vmax.f32 %v3951_v40, 0.0  ;;  %4746 = vperm.xlu0 %6952, %v4716_v13  }
 0x464   : > { %v3964_v25 = vmax.f32 %v3952_v28, 0.0 }
 0x465   : > { %v8457_v32 = vpack.c.bf16 %v3963_v53, %v3961_v44 }
 0x466   : > { %v8459_v39 = vpack.c.bf16 %v3964_v25, %v3962_v29  ;;  %v3459_v18 = vpop.f32.mrb[104].mxu0  ;;  %4751 = vperm.xlu1 %6951, %v4717_v19  }
 0x467   : > { %v3953_v46 = vadd.f32 %v8310_v36, %v3459_v18  ;;  %v3461_v20 = vpop.f32.mrb[105].mxu0  ;;  %4756 = vperm.xlu0 %6952, %v4718_v2  }
 0x468   : > { %v3954_v54 = vadd.f32 %v8310_v36, %v3461_v20  ;;  %v3463_v63 = vpop.f32.mrb[106].mxu0 }
 0x469   : > { %v3955_v49 = vadd.f32 %v8315_v45, %v3463_v63  ;;  %v3465_v55 = vpop.f32.mrb[107].mxu0  ;;  %v3965_v56 = vmax.f32 %v3953_v46, 0.0 }
 0x46a   : > { %v3956_v21 = vadd.f32 %v8315_v45, %v3465_v55  ;;  %v3966_v6 = vmax.f32 %v3954_v54, 0.0 }
 0x46b   : > { %v3967_v22 = vmax.f32 %v3955_v49, 0.0 }
 0x46c   : > { %v3968_v9 = vmax.f32 %v3956_v21, 0.0 }
 0x46d   : > { %v8465_v62 = vpack.c.bf16 %v3967_v22, %v3965_v56 }
 0x46e   : > { %v8467_v30 = vpack.c.bf16 %v3968_v9, %v3966_v6  ;;  %v3565_v37 = vpop.f32.mrb[108].mxu0 }
 0x46f   : > { %v4023_v15 = vadd.f32 %v8286_v38, %v3565_v37  ;;  %v3567_v8 = vpop.f32.mrb[109].mxu0 }
 0x470   : > { %v4024_v13 = vadd.f32 %v8286_v38, %v3567_v8  ;;  %v3569_v40 = vpop.f32.mrb[110].mxu0 }
 0x471   : > { %v4025_v47 = vadd.f32 %v8289_v14, %v3569_v40  ;;  %v3571_v28 = vpop.f32.mrb[111].mxu0  ;;  %v4035_v53 = vmax.f32 %v4023_v15, 0.0 }
 0x472   : > { %v4026_v44 = vadd.f32 %v8289_v14, %v3571_v28  ;;  %v4036_v29 = vmax.f32 %v4024_v13, 0.0 }
 0x473   : > { %v4037_v19 = vmax.f32 %v4025_v47, 0.0 }
 0x474   : > { %v4038_v25 = vmax.f32 %v4026_v44, 0.0 }
 0x475   : > { %v4047_v2 = vpack.c.bf16 %v4037_v19, %v4035_v53 }
 0x476   : > { %v4048_v18 = vpack.c.bf16 %v4038_v25, %v4036_v29  ;;  %v3575_v46 = vpop.f32.mrb[112].mxu0 }
 0x477   : > { %v4027_v20 = vadd.f32 %v8296_v5, %v3575_v46  ;;  %v3577_v54 = vpop.f32.mrb[113].mxu0 }
 0x478   : > { %v4028_v63 = vadd.f32 %v8296_v5, %v3577_v54  ;;  %v3579_v49 = vpop.f32.mrb[114].mxu0  ;;  %4498 = vmatprep.subr.bf16.mxu1 %v4048_v18 }
 0x479   : > { %v4029_v55 = vadd.f32 %v8301_v57, %v3579_v49  ;;  %v3581_v21 = vpop.f32.mrb[115].mxu0  ;;  %4499 = vmatpush1.bf16.msra.mxu1 %v4047_v2  ;;  %v4039_v22 = vmax.f32 %v4027_v20, 0.0 }
 0x47a   : > { %v4030_v56 = vadd.f32 %v8301_v57, %v3581_v21  ;;  %v4040_v9 = vmax.f32 %v4028_v63, 0.0 }
 0x47b   : > { %v4041_v6 = vmax.f32 %v4029_v55, 0.0 }
 0x47c   : > { %v4042_v37 = vmax.f32 %v4030_v56, 0.0 }
 0x47d   : > { %v4049_v15 = vpack.c.bf16 %v4041_v6, %v4039_v22 }
 0x47e   : > { %v4050_v8 = vpack.c.bf16 %v4042_v37, %v4040_v9  ;;  %v3585_v13 = vpop.f32.mrb[116].mxu0 }
 0x47f   : > { %v4031_v40 = vadd.f32 %v8310_v36, %v3585_v13  ;;  %v3587_v47 = vpop.f32.mrb[117].mxu0 }
 0x480   : > { %v4032_v28 = vadd.f32 %v8310_v36, %v3587_v47  ;;  %v3589_v44 = vpop.f32.mrb[118].mxu0  ;;  %4500 = vmatprep.subr.bf16.mxu1 %v4050_v8 }
 0x481   : > { %v4033_v53 = vadd.f32 %v8315_v45, %v3589_v44  ;;  %v3591_v19 = vpop.f32.mrb[119].mxu0  ;;  %4501 = vmatpush1.bf16.msra.mxu1 %v4049_v15  ;;  %v4043_v25 = vmax.f32 %v4031_v40, 0.0 }
 0x482   : > { %v4034_v29 = vadd.f32 %v8315_v45, %v3591_v19  ;;  %v4044_v18 = vmax.f32 %v4032_v28, 0.0 }
 0x483   : > { %v4045_v2 = vmax.f32 %v4033_v53, 0.0 }
 0x484   : > { %v4046_v46 = vmax.f32 %v4034_v29, 0.0 }
 0x485   : > { %v4051_v20 = vpack.c.bf16 %v4045_v2, %v4043_v25 }
 0x486   : > { %v4052_v54 = vpack.c.bf16 %v4046_v46, %v4044_v18  ;;  %v3691_v63 = vpop.f32.mrb[120].mxu0 }
 0x487   : > { %v4101_v49 = vadd.f32 %v8286_v38, %v3691_v63  ;;  %v3693_v55 = vpop.f32.mrb[121].mxu0 }
 0x488   : > { %v4102_v21 = vadd.f32 %v8286_v38, %v3693_v55  ;;  %v3695_v56 = vpop.f32.mrb[122].mxu0  ;;  %4502 = vmatprep.subr.bf16.mxu1 %v4052_v54 }
 0x489   : > { %v4103_v22 = vadd.f32 %v8289_v14, %v3695_v56  ;;  %v3697_v6 = vpop.f32.mrb[123].mxu0  ;;  %4503 = vmatpush1.bf16.msra.mxu1 %v4051_v20  ;;  %v4113_v37 = vmax.f32 %v4101_v49, 0.0  ;;  %v8501_v49 = vld [vmem:[%s9590_s7] ss:$8 sps:$4 sm:$0xff]  }
 0x48a   : > { %v4104_v9 = vadd.f32 %v8289_v14, %v3697_v6  ;;  %4504 = vmatprep.subr.bf16.mxu1 %v8334_v0  ;;  %v4114_v8 = vmax.f32 %v4102_v21, 0.0  ;;  %v8509_v21 = vld [vmem:[%s9590_s7 + $0x14] ss:$8 sps:$4 sm:$0xff]  }
 0x48b   : > { %v4115_v15 = vmax.f32 %v4103_v22, 0.0 }
 0x48c   : > { %v4116_v13 = vmax.f32 %v4104_v9, 0.0 }
 0x48d   : > { %v8486_v40 = vpack.c.bf16 %v4115_v15, %v4113_v37  ;;  %4505 = vmatpush1.bf16.msra.mxu1 %v8332_v7 }
 0x48e   : > { %v8489_v47 = vpack.c.bf16 %v4116_v13, %v4114_v8  ;;  %v3701_v28 = vpop.f32.mrb[124].mxu0  ;;  %4506 = vmatprep.subr.bf16.mxu1 %v8342_v35 }
 0x48f   : > { %v4105_v44 = vadd.f32 %v8296_v5, %v3701_v28  ;;  %v3703_v53 = vpop.f32.mrb[125].mxu0 }
 0x490   : > { %v4106_v19 = vadd.f32 %v8296_v5, %v3703_v53  ;;  %v3705_v29 = vpop.f32.mrb[126].mxu0 }
 0x491   : > { %v4107_v25 = vadd.f32 %v8301_v57, %v3705_v29  ;;  %v3707_v2 = vpop.f32.mrb[127].mxu0  ;;  %4507 = vmatpush1.bf16.msra.mxu1 %v8340_v58  ;;  %v4117_v46 = vmax.f32 %v4105_v44, 0.0 }
 0x492   : > { %v4108_v18 = vadd.f32 %v8301_v57, %v3707_v2  ;;  %4508 = vmatprep.subr.bf16.mxu1 %v8350_v52  ;;  %v4118_v54 = vmax.f32 %v4106_v19, 0.0 }
 0x493   : > { %v4119_v20 = vmax.f32 %v4107_v25, 0.0  ;;  %v8526_v25 = vld [vmem:[%s9590_s7 + $0x10] ss:$8 sps:$4 sm:$0xff]  }
 0x494   : > { %v4120_v63 = vmax.f32 %v4108_v18, 0.0  ;;  %v8534_v18 = vld [vmem:[%s9590_s7 + $0x24] ss:$8 sps:$4 sm:$0xff]  }
 0x495   : > { %v8503_v55 = vpack.c.bf16 %v4119_v20, %v4117_v46  ;;  %4509 = vmatpush1.bf16.msra.mxu1 %v8348_v17 }
 0x496   : > { %v8511_v56 = vpack.c.bf16 %v4120_v63, %v4118_v54  ;;  %v3711_v22 = vpop.f32.mrb[128].mxu0  ;;  %4638 = vmatprep.subr.bf16.mxu1 %v8367_v33 }
 0x497   : > { %v4109_v6 = vadd.f32 %v8310_v36, %v3711_v22  ;;  %v3713_v9 = vpop.f32.mrb[129].mxu0 }
 0x498   : > { %v4110_v37 = vadd.f32 %v8310_v36, %v3713_v9  ;;  %v3715_v15 = vpop.f32.mrb[130].mxu0  ;;  %4525 = vmatmul.mubr.bf16.vlgmr.msra.gmra.mrb[144].mxu1 %v8501_v49 }
 0x499   : > { %v4111_v8 = vadd.f32 %v8315_v45, %v3715_v15  ;;  %v3717_v13 = vpop.f32.mrb[131].mxu0  ;;  %4639 = vmatpush1.bf16.msra.mxu1 %v8365_v12  ;;  %6704 = vmatprep.mubr.msk.bf16.mxu1 %vm4406_vm5, %v8509_v21  ;;  %v4121_v44 = vmax.f32 %v4109_v6, 0.0 }
 0x49a   : > { %v4112_v28 = vadd.f32 %v8315_v45, %v3717_v13  ;;  %4640 = vmatprep.subr.bf16.mxu1 %v8375_v16  ;;  %v4122_v19 = vmax.f32 %v4110_v37, 0.0 }
 0x49b   : > { %v4123_v53 = vmax.f32 %v4111_v8, 0.0 }
 0x49c   : > { %v4124_v29 = vmax.f32 %v4112_v28, 0.0 }
 0x49d   : > { %v8528_v2 = vpack.c.bf16 %v4123_v53, %v4121_v44  ;;  %4641 = vmatpush1.bf16.msra.mxu1 %v8373_v61 }
 0x49e   : > { %v8536_v46 = vpack.c.bf16 %v4124_v29, %v4122_v19  ;;  %v3817_v20 = vpop.f32.mrb[132].mxu0  ;;  %4642 = vmatprep.subr.bf16.mxu1 %v8383_v50  ;;  %v8555_v19 = vld [vmem:[%s9590_s7 + $0x34] ss:$8 sps:$4 sm:$0xff]  }
 0x49f   : > { %v4179_v54 = vadd.f32 %v8286_v38, %v3817_v20  ;;  %v3819_v63 = vpop.f32.mrb[133].mxu0 }
 0x4a0   : > { %v4180_v22 = vadd.f32 %v8286_v38, %v3819_v63  ;;  %v3821_v6 = vpop.f32.mrb[134].mxu0  ;;  %4535 = vmatmul.mubr.bf16.gmra.mrb[148].mxu1 %v8526_v25  ;;  %v8550_v38 = vld [vmem:[%s9590_s7 + $0x20] ss:$8 sps:$4 sm:$0xff]  }
 0x4a1   : > { %v4181_v9 = vadd.f32 %v8289_v14, %v3821_v6  ;;  %v3823_v37 = vpop.f32.mrb[135].mxu0  ;;  %4643 = vmatpush1.bf16.msra.mxu1 %v8381_v31  ;;  %6705 = vmatprep.mubr.msk.bf16.mxu1 %vm4406_vm5, %v8534_v18  ;;  %v4191_v8 = vmax.f32 %v4179_v54, 0.0 }
 0x4a2   : > { %v4182_v15 = vadd.f32 %v8289_v14, %v3823_v37  ;;  %v4192_v28 = vmax.f32 %v4180_v22, 0.0 }
 0x4a3   : > { %v4193_v13 = vmax.f32 %v4181_v9, 0.0 }
 0x4a4   : > { %v4194_v44 = vmax.f32 %v4182_v15, 0.0 }
 0x4a5   : > { %v4203_v53 = vpack.c.bf16 %v4193_v13, %v4191_v8 }
 0x4a6   : > { %v4204_v29 = vpack.c.bf16 %v4194_v44, %v4192_v28  ;;  %v3827_v20 = vpop.f32.mrb[136].mxu0 }
 0x4a7   : > { %v4183_v63 = vadd.f32 %v8296_v5, %v3827_v20  ;;  %v3829_v14 = vpop.f32.mrb[137].mxu0 }
 0x4a8   : > { %v4184_v54 = vadd.f32 %v8296_v5, %v3829_v14  ;;  %v3831_v22 = vpop.f32.mrb[138].mxu0  ;;  %4545 = vmatmul.mubr.bf16.gmra.mrb[152].mxu1 %v8550_v38  ;;  %4644 = vmatprep.subr.bf16.mxu1 %v4204_v29  ;;  %v8567_v5 = vld [vmem:[%s9590_s7 + $0x30] ss:$8 sps:$4 sm:$0xff]  }
 0x4a9   : > { %v4185_v6 = vadd.f32 %v8301_v57, %v3831_v22  ;;  %v3833_v9 = vpop.f32.mrb[139].mxu0  ;;  %4645 = vmatpush1.bf16.msra.mxu1 %v4203_v53  ;;  %6706 = vmatprep.mubr.msk.bf16.mxu1 %vm4406_vm5, %v8555_v19  ;;  %v4195_v15 = vmax.f32 %v4183_v63, 0.0 }
 0x4aa   : > { %v4186_v37 = vadd.f32 %v8301_v57, %v3833_v9  ;;  %v4196_v13 = vmax.f32 %v4184_v54, 0.0 }
 0x4ab   : > { %v4197_v8 = vmax.f32 %v4185_v6, 0.0 }
 0x4ac   : > { %v4198_v28 = vmax.f32 %v4186_v37, 0.0 }
 0x4ad   : > { %v4205_v44 = vpack.c.bf16 %v4197_v8, %v4195_v15 }
 0x4ae   : > { %v4206_v29 = vpack.c.bf16 %v4198_v28, %v4196_v13  ;;  %v3837_v20 = vpop.f32.mrb[140].mxu0 }
 0x4af   : > { %v4187_v14 = vadd.f32 %v8310_v36, %v3837_v20  ;;  %v3839_v53 = vpop.f32.mrb[141].mxu0 }
 0x4b0   : > { %v4188_v22 = vadd.f32 %v8310_v36, %v3839_v53  ;;  %v3841_v26 = vpop.f32.mrb[142].mxu0  ;;  %4555 = vmatmul.mubr.bf16.gmra.mrb[156].mxu1 %v8567_v5  ;;  %4646 = vmatprep.subr.bf16.mxu1 %v4206_v29 }
 0x4b1   : > { %v4189_v57 = vadd.f32 %v8315_v45, %v3841_v26  ;;  %v3843_v63 = vpop.f32.mrb[143].mxu0  ;;  %4647 = vmatpush1.bf16.msra.mxu1 %v4205_v44  ;;  %6711 = vmatprep.mubr.msk.bf16.mxu1 %vm4406_vm5, %v8358_v27  ;;  %v4199_v6 = vmax.f32 %v4187_v14, 0.0 }
 0x4b2   : > { %v4190_v54 = vadd.f32 %v8315_v45, %v3843_v63  ;;  %v4200_v37 = vmax.f32 %v4188_v22, 0.0 }
 0x4b3   : > { %v4201_v9 = vmax.f32 %v4189_v57, 0.0 }
 0x4b4   : > { %v4202_v15 = vmax.f32 %v4190_v54, 0.0 }
 0x4b5   : > { %v4207_v8 = vpack.c.bf16 %v4201_v9, %v4199_v6 }
 0x4b6   : > { %v4208_v13 = vpack.c.bf16 %v4202_v15, %v4200_v37 }
 0x4b8   : > { %4648 = vmatprep.subr.bf16.mxu1 %v4208_v13  ;;  %v4252_v36 = vpop.permute.xlu1 %4251 }
 0x4b9   : > { %4649 = vmatpush1.bf16.msra.mxu1 %v4207_v8  ;;  %v4254_v28 = vpop.permute.xlu0 %4253 }
 0x4ba   : > { %4650 = vmatprep.subr.bf16.mxu1 %v8391_v48  ;;  %v4263_v26 = vsel %vm971_vm1, %v4252_v36, %v4254_v28 }
 0x4bb   : > { %4419 = vmatprep.subr.bf16.mxu0 %v4263_v26 }
 0x4bc   : > { %6820 = vmatpush1.bf16.msk.msra.mxu0 %vm7443_vm2, %v4252_v36 }
 0x4bd   : > { %4651 = vmatpush1.bf16.msra.mxu1 %v8389_v34 }
 0x4be   : > { %4652 = vmatprep.subr.bf16.mxu1 %v8403_v43 }
 0x4c0   : > { %v4256_v45 = vpop.permute.xlu1 %4255 }
 0x4c1   : > { %v4258_v44 = vpop.permute.xlu0 %4257  ;;  %4653 = vmatpush1.bf16.msra.mxu1 %v8401_v10 }
 0x4c2   : > { %4654 = vmatprep.subr.bf16.mxu1 %v8415_v42  ;;  %v4264_v29 = vsel %vm971_vm1, %v4256_v45, %v4258_v44 }
 0x4c3   : > { %4421 = vmatprep.subr.bf16.mxu0 %v4264_v29 }
 0x4c4   : > { %6822 = vmatpush1.bf16.msk.msra.mxu0 %vm7443_vm2, %v4256_v45 }
 0x4c5   : > { %4655 = vmatpush1.bf16.msra.mxu1 %v8413_v41 }
 0x4c8   : > { %v4260_v48 = vpop.permute.xlu1 %4259  ;;  %4671 = vmatmul.mubr.bf16.vlgmr.msra.gmra.mrb[160].mxu1 %v8501_v49 }
 0x4c9   : > { %v4262_v34 = vpop.permute.xlu0 %4261  ;;  %6712 = vmatprep.mubr.msk.bf16.mxu1 %vm4406_vm5, %v8509_v21 }
 0x4ca   : > { %v4265_v43 = vsel %vm971_vm1, %v4260_v48, %v4262_v34 }
 0x4cb   : > { %4423 = vmatprep.subr.bf16.mxu0 %v4265_v43 }
 0x4cc   : > { %6824 = vmatpush1.bf16.msk.msra.mxu0 %vm7443_vm2, %v4260_v48 }
 0x4cd   : > { %4425 = vmatprep.subr.bf16.mxu0 %v8439_v60 }
 0x4d0   : > { %4426 = vmatpush1.bf16.msra.mxu0 %v8437_v51  ;;  %4681 = vmatmul.mubr.bf16.gmra.mrb[164].mxu1 %v8526_v25 }
 0x4d1   : > { %4427 = vmatprep.subr.bf16.mxu0 %v8459_v39  ;;  %6713 = vmatprep.mubr.msk.bf16.mxu1 %vm4406_vm5, %v8534_v18 }
 0x4d4   : > { %4428 = vmatpush1.bf16.msra.mxu0 %v8457_v32 }
 0x4d5   : > { %4429 = vmatprep.subr.bf16.mxu0 %v8467_v30 }
 0x4d8   : > { %4430 = vmatpush1.bf16.msra.mxu0 %v8465_v62  ;;  %4691 = vmatmul.mubr.bf16.gmra.mrb[168].mxu1 %v8550_v38 }
 0x4d9   : > { %4431 = vmatprep.subr.bf16.mxu0 %v8298_v1  ;;  %6714 = vmatprep.mubr.msk.bf16.mxu1 %vm4406_vm5, %v8555_v19 }
 0x4dc   : > { %4432 = vmatpush1.bf16.msra.mxu0 %v8294_v4  ;;  %v8653_v4 = vpop.permute.xlu1 %4721 }
 0x4dd   : > { %4433 = vmatprep.subr.bf16.mxu0 %v8312_v24 }
 0x4e0   : > { %4434 = vmatpush1.bf16.msra.mxu0 %v8308_v59  ;;  %4701 = vmatmul.mubr.bf16.gmra.mrb[172].mxu1 %v8567_v5 }
 0x4e1   : > { %4435 = vmatprep.subr.bf16.mxu0 %v8324_v23 }
 0x4e4   : > { %4436 = vmatpush1.bf16.msra.mxu0 %v8322_v11  ;;  %v8656_v11 = vpop.permute.xlu0 %4726 }
 0x4e5   : > { %4565 = vmatprep.subr.bf16.mxu0 %v8334_v0 }
 0x4e7   : > { %4452 = vmatmul.mubr.bf16.vlgmr.msra.gmra.mrb[144].mxu0 %v8501_v49 }
 0x4e8   : > { %4566 = vmatpush1.bf16.msra.mxu0 %v8332_v7  ;;  %6700 = vmatprep.mubr.msk.bf16.mxu0 %vm4406_vm5, %v8509_v21  ;;  %v8668_v41 = vpop.permute.xlu0 %4736 }
 0x4e9   : > { %4567 = vmatprep.subr.bf16.mxu0 %v8342_v35 }
 0x4ec   : > { %4568 = vmatpush1.bf16.msra.mxu0 %v8340_v58 }
 0x4ed   : > { %4569 = vmatprep.subr.bf16.mxu0 %v8350_v52 }
 0x4ef   : > { %4462 = vmatmul.mubr.bf16.gmra.mrb[148].mxu0 %v8526_v25 }
 0x4f0   : > { %4570 = vmatpush1.bf16.msra.mxu0 %v8348_v17  ;;  %6701 = vmatprep.mubr.msk.bf16.mxu0 %vm4406_vm5, %v8534_v18 }
 0x4f1   : > { %4571 = vmatprep.subr.bf16.mxu0 %v8489_v47 }
 0x4f4   : > { %4572 = vmatpush1.bf16.msra.mxu0 %v8486_v40 }
 0x4f5   : > { %4573 = vmatprep.subr.bf16.mxu0 %v8511_v56 }
 0x4f7   : > { %4472 = vmatmul.mubr.bf16.gmra.mrb[152].mxu0 %v8550_v38 }
 0x4f8   : > { %4574 = vmatpush1.bf16.msra.mxu0 %v8503_v55  ;;  %6702 = vmatprep.mubr.msk.bf16.mxu0 %vm4406_vm5, %v8555_v19 }
 0x4f9   : > { %4575 = vmatprep.subr.bf16.mxu0 %v8536_v46 }
 0x4fc   : > { %4576 = vmatpush1.bf16.msra.mxu0 %v8528_v2 }
 0x4fd   : > { %4577 = vmatprep.subr.bf16.mxu0 %v8367_v33 }
 0x4ff   : > { %4482 = vmatmul.mubr.bf16.gmra.mrb[156].mxu0 %v8567_v5 }
 0x500   : > { %4578 = vmatpush1.bf16.msra.mxu0 %v8365_v12  ;;  %6707 = vmatprep.mubr.msk.bf16.mxu0 %vm4406_vm5, %v8358_v27 }
 0x501   : > { %4579 = vmatprep.subr.bf16.mxu0 %v8375_v16 }
 0x504   : > { %4580 = vmatpush1.bf16.msra.mxu0 %v8373_v61  ;;  %v8663_v61 = vpop.permute.xlu1 %4731 }
 0x505   : > { %4581 = vmatprep.subr.bf16.mxu0 %v8383_v50 }
 0x508   : > { %4582 = vmatpush1.bf16.msra.mxu0 %v8381_v31  ;;  %v8677_v55 = vpop.permute.xlu1 %4741 }
 0x50b   : > { %4598 = vmatmul.mubr.bf16.vlgmr.msra.gmra.mrb[160].mxu0 %v8501_v49 }
 0x50c   : > { %6708 = vmatprep.mubr.msk.bf16.mxu0 %vm4406_vm5, %v8509_v21  ;;  %v8691_v54 = vpop.permute.xlu1 %4751 }
 0x513   : > { %4608 = vmatmul.mubr.bf16.gmra.mrb[164].mxu0 %v8526_v25 }
 0x514   : > { %6709 = vmatprep.mubr.msk.bf16.mxu0 %vm4406_vm5, %v8534_v18  ;;  %v8682_v18 = vpop.permute.xlu0 %4746 }
 0x518   : > { %v8696_v8 = vpop.permute.xlu0 %4756 }
 0x51b   : > { %4618 = vmatmul.mubr.bf16.gmra.mrb[168].mxu0 %v8550_v38 }
 0x51c   : > { %6710 = vmatprep.mubr.msk.bf16.mxu0 %vm4406_vm5, %v8555_v19 }
 0x523   : > { %4628 = vmatmul.mubr.bf16.gmra.mrb[172].mxu0 %v8567_v5 }
 0x56b   : > { %v4526_v1 = vpop.f32.mrb[144].mxu1 }
 0x56c   : > { %v4807_v59 = vadd.f32 %v8653_v4, %v4526_v1  ;;  %v4528_v24 = vpop.f32.mrb[145].mxu1 }
 0x56d   : > { %v4808_v23 = vadd.f32 %v8653_v4, %v4528_v24  ;;  %v4530_v7 = vpop.f32.mrb[146].mxu1 }
 0x56e   : > { %v4809_v0 = vadd.f32 %v8656_v11, %v4530_v7  ;;  %v4532_v58 = vpop.f32.mrb[147].mxu1  ;;  %v4823_v17 = vmax.f32 %v4807_v59, 0.0  ;;  %v6974_v59 = vld [vmem:[%s9592_s9 + $0x4] ss:$8 sps:$4 sm:$0xff]  }
 0x56f   : > { %v4810_v35 = vadd.f32 %v8656_v11, %v4532_v58  ;;  %v4824_v27 = vmax.f32 %v4808_v23, 0.0  ;;  %6733 = vmatprep.mubr.msk.bf16.mxu1 %vm5125_vm6, %v6974_v59  ;;  %6727 = vmatprep.mubr.msk.bf16.mxu0 %vm5125_vm6, %v6974_v59 }
 0x570   : > { %v4825_v52 = vmax.f32 %v4809_v0, 0.0 }
 0x571   : > { %v4826_v12 = vmax.f32 %v4810_v35, 0.0 }
 0x572   : > { %v8661_v33 = vpack.c.bf16 %v4825_v52, %v4823_v17 }
 0x573   : > { %v8665_v16 = vpack.c.bf16 %v4826_v12, %v4824_v27  ;;  %v4536_v31 = vpop.f32.mrb[148].mxu1 }
 0x574   : > { %v4811_v50 = vadd.f32 %v8663_v61, %v4536_v31  ;;  %v4538_v10 = vpop.f32.mrb[149].mxu1 }
 0x575   : > { %v4812_v42 = vadd.f32 %v8663_v61, %v4538_v10  ;;  %v4540_v51 = vpop.f32.mrb[150].mxu1  ;;  %5237 = vmatprep.subr.bf16.mxu1 %v8665_v16 }
 0x576   : > { %v4813_v60 = vadd.f32 %v8668_v41, %v4540_v51  ;;  %v4542_v32 = vpop.f32.mrb[151].mxu1  ;;  %5238 = vmatpush1.bf16.msra.mxu1 %v8661_v33  ;;  %v4827_v62 = vmax.f32 %v4811_v50, 0.0 }
 0x577   : > { %v4814_v39 = vadd.f32 %v8668_v41, %v4542_v32  ;;  %v4828_v40 = vmax.f32 %v4812_v42, 0.0 }
 0x578   : > { %v4829_v30 = vmax.f32 %v4813_v60, 0.0 }
 0x579   : > { %v4830_v47 = vmax.f32 %v4814_v39, 0.0 }
 0x57a   : > { %v8675_v49 = vpack.c.bf16 %v4829_v30, %v4827_v62 }
 0x57b   : > { %v8679_v21 = vpack.c.bf16 %v4830_v47, %v4828_v40  ;;  %v4546_v56 = vpop.f32.mrb[152].mxu1 }
 0x57c   : > { %v4815_v25 = vadd.f32 %v8677_v55, %v4546_v56  ;;  %v4548_v2 = vpop.f32.mrb[153].mxu1 }
 0x57d   : > { %v4816_v46 = vadd.f32 %v8677_v55, %v4548_v2  ;;  %v4550_v38 = vpop.f32.mrb[154].mxu1  ;;  %5239 = vmatprep.subr.bf16.mxu1 %v8679_v21 }
 0x57e   : > { %v4817_v19 = vadd.f32 %v8682_v18, %v4550_v38  ;;  %v4552_v5 = vpop.f32.mrb[155].mxu1  ;;  %5240 = vmatpush1.bf16.msra.mxu1 %v8675_v49  ;;  %v4831_v14 = vmax.f32 %v4815_v25, 0.0 }
 0x57f   : > { %v4818_v20 = vadd.f32 %v8682_v18, %v4552_v5  ;;  %v4832_v22 = vmax.f32 %v4816_v46, 0.0 }
 0x580   : > { %v4833_v53 = vmax.f32 %v4817_v19, 0.0 }
 0x581   : > { %v4834_v57 = vmax.f32 %v4818_v20, 0.0 }
 0x582   : > { %v8689_v63 = vpack.c.bf16 %v4833_v53, %v4831_v14 }
 0x583   : > { %v8693_v6 = vpack.c.bf16 %v4834_v57, %v4832_v22  ;;  %v4556_v9 = vpop.f32.mrb[156].mxu1 }
 0x584   : > { %v4819_v37 = vadd.f32 %v8691_v54, %v4556_v9  ;;  %v4558_v15 = vpop.f32.mrb[157].mxu1 }
 0x585   : > { %v4820_v13 = vadd.f32 %v8691_v54, %v4558_v15  ;;  %v4560_v36 = vpop.f32.mrb[158].mxu1  ;;  %5241 = vmatprep.subr.bf16.mxu1 %v8693_v6 }
 0x586   : > { %v4821_v28 = vadd.f32 %v8696_v8, %v4560_v36  ;;  %v4562_v26 = vpop.f32.mrb[159].mxu1  ;;  %5242 = vmatpush1.bf16.msra.mxu1 %v8689_v63  ;;  %v4835_v44 = vmax.f32 %v4819_v37, 0.0 }
 0x587   : > { %v4822_v45 = vadd.f32 %v8696_v8, %v4562_v26  ;;  %v4836_v48 = vmax.f32 %v4820_v13, 0.0 }
 0x588   : > { %v4837_v29 = vmax.f32 %v4821_v28, 0.0 }
 0x589   : > { %v4838_v34 = vmax.f32 %v4822_v45, 0.0 }
 0x58a   : > { %v8703_v43 = vpack.c.bf16 %v4837_v29, %v4835_v44 }
 0x58b   : > { %v8705_v1 = vpack.c.bf16 %v4838_v34, %v4836_v48 }
 0x58d   : > { %5243 = vmatprep.subr.bf16.mxu1 %v8705_v1 }
 0x58e   : > { %5244 = vmatpush1.bf16.msra.mxu1 %v8703_v43 }
 0x59b   : > { %v4672_v24 = vpop.f32.mrb[160].mxu1 }
 0x59c   : > { %v4911_v23 = vadd.f32 %v8653_v4, %v4672_v24  ;;  %v4674_v7 = vpop.f32.mrb[161].mxu1 }
 0x59d   : > { %v4912_v0 = vadd.f32 %v8653_v4, %v4674_v7  ;;  %v4676_v58 = vpop.f32.mrb[162].mxu1 }
 0x59e   : > { %v4913_v35 = vadd.f32 %v8656_v11, %v4676_v58  ;;  %v4678_v17 = vpop.f32.mrb[163].mxu1  ;;  %v4927_v27 = vmax.f32 %v4911_v23, 0.0 }
 0x59f   : > { %v4914_v52 = vadd.f32 %v8656_v11, %v4678_v17  ;;  %v4928_v31 = vmax.f32 %v4912_v0, 0.0 }
 0x5a0   : > { %v4929_v12 = vmax.f32 %v4913_v35, 0.0 }
 0x5a1   : > { %v4930_v50 = vmax.f32 %v4914_v52, 0.0 }
 0x5a2   : > { %v8718_v10 = vpack.c.bf16 %v4929_v12, %v4927_v27 }
 0x5a3   : > { %v8720_v42 = vpack.c.bf16 %v4930_v50, %v4928_v31  ;;  %v4682_v51 = vpop.f32.mrb[164].mxu1 }
 0x5a4   : > { %v4915_v60 = vadd.f32 %v8663_v61, %v4682_v51  ;;  %4959 = vrot.lane.b32.xlu1 %v8718_v10, %s7087_s30  ;;  %v4684_v32 = vpop.f32.mrb[165].mxu1 }
 0x5a5   : > { %v4916_v39 = vadd.f32 %v8663_v61, %v4684_v32  ;;  %4961 = vrot.lane.b32.xlu0 %v8720_v42, %s7087_s30  ;;  %v4686_v62 = vpop.f32.mrb[166].mxu1 }
 0x5a6   : > { %v4917_v30 = vadd.f32 %v8668_v41, %v4686_v62  ;;  %v4688_v40 = vpop.f32.mrb[167].mxu1  ;;  %v4931_v56 = vmax.f32 %v4915_v60, 0.0  ;;  %v5330_v62 = vld [vmem:[%s9593_s10] sm:$0xff] }
 0x5a7   : > { %v4918_v47 = vadd.f32 %v8668_v41, %v4688_v40  ;;  %v4932_v2 = vmax.f32 %v4916_v39, 0.0  ;;  %v5331_v40 = vld [vmem:[%s9593_s10 + $0x8] sm:$0xff] }
 0x5a8   : > { %v4933_v25 = vmax.f32 %v4917_v30, 0.0 }
 0x5a9   : > { %v4934_v46 = vmax.f32 %v4918_v47, 0.0 }
 0x5aa   : > { %v8730_v38 = vpack.c.bf16 %v4933_v25, %v4931_v56 }
 0x5ab   : > { %v8732_v19 = vpack.c.bf16 %v4934_v46, %v4932_v2  ;;  %v4692_v5 = vpop.f32.mrb[168].mxu1 }
 0x5ac   : > { %v4919_v20 = vadd.f32 %v8677_v55, %v4692_v5  ;;  %4963 = vrot.lane.b32.xlu1 %v8730_v38, %s7087_s30  ;;  %v4694_v14 = vpop.f32.mrb[169].mxu1  ;;  %v5332_v5 = vld [vmem:[%s9593_s10 + $0x10] sm:$0xff] }
 0x5ad   : > { %v4920_v53 = vadd.f32 %v8677_v55, %v4694_v14  ;;  %4965 = vrot.lane.b32.xlu0 %v8732_v19, %s7087_s30  ;;  %v4696_v22 = vpop.f32.mrb[170].mxu1 }
 0x5ae   : > { %v4921_v57 = vadd.f32 %v8682_v18, %v4696_v22  ;;  %v4698_v9 = vpop.f32.mrb[171].mxu1  ;;  %v4935_v15 = vmax.f32 %v4919_v20, 0.0 }
 0x5af   : > { %v4922_v37 = vadd.f32 %v8682_v18, %v4698_v9  ;;  %v4936_v36 = vmax.f32 %v4920_v53, 0.0  ;;  %v5333_v53 = vld [vmem:[%s9593_s10 + $0x18] sm:$0xff] }
 0x5b0   : > { %v4937_v13 = vmax.f32 %v4921_v57, 0.0 }
 0x5b1   : > { %v4938_v28 = vmax.f32 %v4922_v37, 0.0 }
 0x5b2   : > { %v8742_v26 = vpack.c.bf16 %v4937_v13, %v4935_v15 }
 0x5b3   : > { %v8744_v45 = vpack.c.bf16 %v4938_v28, %v4936_v36  ;;  %v4702_v44 = vpop.f32.mrb[172].mxu1  ;;  %v5334_v36 = vld [vmem:[%s9593_s10 + $0x20] sm:$0xff] }
 0x5b4   : > { %v4923_v29 = vadd.f32 %v8691_v54, %v4702_v44  ;;  %4967 = vrot.lane.b32.xlu1 %v8742_v26, %s7087_s30  ;;  %v4704_v48 = vpop.f32.mrb[173].mxu1  ;;  %v5335_v44 = vld [vmem:[%s9593_s10 + $0x28] sm:$0xff] }
 0x5b5   : > { %v4924_v34 = vadd.f32 %v8691_v54, %v4704_v48  ;;  %4969 = vrot.lane.b32.xlu0 %v8744_v45, %s7087_s30  ;;  %v4706_v59 = vpop.f32.mrb[174].mxu1 }
 0x5b6   : > { %v4925_v24 = vadd.f32 %v8696_v8, %v4706_v59  ;;  %v4708_v23 = vpop.f32.mrb[175].mxu1  ;;  %v4939_v0 = vmax.f32 %v4923_v29, 0.0 }
 0x5b7   : > { %v4926_v7 = vadd.f32 %v8696_v8, %v4708_v23  ;;  %v4940_v35 = vmax.f32 %v4924_v34, 0.0  ;;  %v5336_v23 = vld [vmem:[%s9593_s10 + $0x30] sm:$0xff] }
 0x5b8   : > { %v4941_v58 = vmax.f32 %v4925_v24, 0.0 }
 0x5b9   : > { %v4942_v17 = vmax.f32 %v4926_v7, 0.0 }
 0x5ba   : > { %v8754_v52 = vpack.c.bf16 %v4941_v58, %v4939_v0  ;;  %v4453_v27 = vpop.f32.mrb[144].mxu0  ;;  %v5337_v58 = vld [vmem:[%s9593_s10 + $0x38] sm:$0xff] }
 0x5bb   : > { %v8756_v12 = vpack.c.bf16 %v4942_v17, %v4940_v35  ;;  %v4759_v31 = vadd.f32 %v8653_v4, %v4453_v27  ;;  %v4455_v50 = vpop.f32.mrb[145].mxu0 }
 0x5bc   : > { %v4760_v51 = vadd.f32 %v8653_v4, %v4455_v50  ;;  %v4457_v60 = vpop.f32.mrb[146].mxu0  ;;  %4971 = vrot.lane.b32.xlu1 %v8754_v52, %s7087_s30 }
 0x5bd   : > { %v4761_v32 = vadd.f32 %v8656_v11, %v4457_v60  ;;  %v4459_v39 = vpop.f32.mrb[147].mxu0  ;;  %4973 = vrot.lane.b32.xlu0 %v8756_v12, %s7087_s30  ;;  %v4775_v47 = vmax.f32 %v4759_v31, 0.0  ;;  %v5338_v60 = vld [vmem:[%s9593_s10 + $0x40] sm:$0xff] }
 0x5be   : > { %v4762_v30 = vadd.f32 %v8656_v11, %v4459_v39  ;;  %v4776_v25 = vmax.f32 %v4760_v51, 0.0  ;;  %v5339_v39 = vld [vmem:[%s9593_s10 + $0x48] sm:$0xff] }
 0x5bf   : > { %v4777_v56 = vmax.f32 %v4761_v32, 0.0 }
 0x5c0   : > { %v4778_v2 = vmax.f32 %v4762_v30, 0.0  ;;  %5344 = vperm.xlu1 %6951, %v5330_v62  }
 0x5c1   : > { %v8772_v46 = vpack.c.bf16 %v4777_v56, %v4775_v47  ;;  %5349 = vperm.xlu0 %6952, %v5331_v40  }
 0x5c2   : > { %v8777_v20 = vpack.c.bf16 %v4778_v2, %v4776_v25  ;;  %v4463_v14 = vpop.f32.mrb[148].mxu0  ;;  %v5340_v25 = vld [vmem:[%s9593_s10 + $0x50] sm:$0xff] }
 0x5c3   : > { %v4763_v22 = vadd.f32 %v8663_v61, %v4463_v14  ;;  %v4465_v57 = vpop.f32.mrb[149].mxu0  ;;  %v5341_v14 = vld [vmem:[%s9593_s10 + $0x58] sm:$0xff] }
 0x5c4   : > { %v4764_v9 = vadd.f32 %v8663_v61, %v4465_v57  ;;  %v4467_v37 = vpop.f32.mrb[150].mxu0  ;;  %5354 = vperm.xlu1 %6951, %v5332_v5  }
 0x5c5   : > { %v4765_v15 = vadd.f32 %v8668_v41, %v4467_v37  ;;  %v4469_v13 = vpop.f32.mrb[151].mxu0  ;;  %5359 = vperm.xlu0 %6952, %v5333_v53   ;;  %v4779_v29 = vmax.f32 %v4763_v22, 0.0 }
 0x5c6   : > { %v4766_v28 = vadd.f32 %v8668_v41, %v4469_v13  ;;  %v4780_v34 = vmax.f32 %v4764_v9, 0.0 }
 0x5c7   : > { %v4781_v48 = vmax.f32 %v4765_v15, 0.0 }
 0x5c8   : > { %v4782_v59 = vmax.f32 %v4766_v28, 0.0  ;;  %5364 = vperm.xlu1 %6951, %v5334_v36  }
 0x5c9   : > { %v8792_v24 = vpack.c.bf16 %v4781_v48, %v4779_v29  ;;  %5369 = vperm.xlu0 %6952, %v5335_v44  }
 0x5ca   : > { %v8797_v7 = vpack.c.bf16 %v4782_v59, %v4780_v34  ;;  %v4473_v0 = vpop.f32.mrb[152].mxu0 }
 0x5cb   : > { %v4767_v35 = vadd.f32 %v8677_v55, %v4473_v0  ;;  %v4475_v17 = vpop.f32.mrb[153].mxu0 }
 0x5cc   : > { %v4768_v27 = vadd.f32 %v8677_v55, %v4475_v17  ;;  %v4477_v31 = vpop.f32.mrb[154].mxu0  ;;  %5374 = vperm.xlu1 %6951, %v5336_v23  }
 0x5cd   : > { %v4769_v50 = vadd.f32 %v8682_v18, %v4477_v31  ;;  %v4479_v51 = vpop.f32.mrb[155].mxu0  ;;  %5379 = vperm.xlu0 %6952, %v5337_v58   ;;  %v4783_v62 = vmax.f32 %v4767_v35, 0.0 }
 0x5ce   : > { %v4770_v32 = vadd.f32 %v8682_v18, %v4479_v51  ;;  %v4784_v40 = vmax.f32 %v4768_v27, 0.0 }
 0x5cf   : > { %v4785_v30 = vmax.f32 %v4769_v50, 0.0 }
 0x5d0   : > { %v4786_v47 = vmax.f32 %v4770_v32, 0.0  ;;  %5384 = vperm.xlu1 %6951, %v5338_v60  }
 0x5d1   : > { %v8812_v56 = vpack.c.bf16 %v4785_v30, %v4783_v62  ;;  %5389 = vperm.xlu0 %6952, %v5339_v39  }
 0x5d2   : > { %v8817_v2 = vpack.c.bf16 %v4786_v47, %v4784_v40  ;;  %v4483_v5 = vpop.f32.mrb[156].mxu0 }
 0x5d3   : > { %v4771_v53 = vadd.f32 %v8691_v54, %v4483_v5  ;;  %v4485_v22 = vpop.f32.mrb[157].mxu0 }
 0x5d4   : > { %v4772_v57 = vadd.f32 %v8691_v54, %v4485_v22  ;;  %v4487_v9 = vpop.f32.mrb[158].mxu0  ;;  %5394 = vperm.xlu1 %6951, %v5340_v25  }
 0x5d5   : > { %v4773_v37 = vadd.f32 %v8696_v8, %v4487_v9  ;;  %v4489_v15 = vpop.f32.mrb[159].mxu0  ;;  %5399 = vperm.xlu0 %6952, %v5341_v14   ;;  %v4787_v36 = vmax.f32 %v4771_v53, 0.0 }
 0x5d6   : > { %v4774_v13 = vadd.f32 %v8696_v8, %v4489_v15  ;;  %v4788_v44 = vmax.f32 %v4772_v57, 0.0 }
 0x5d7   : > { %v4789_v28 = vmax.f32 %v4773_v37, 0.0 }
 0x5d8   : > { %v4790_v29 = vmax.f32 %v4774_v13, 0.0 }
 0x5d9   : > { %v8826_v48 = vpack.c.bf16 %v4789_v28, %v4787_v36 }
 0x5da   : > { %v8828_v34 = vpack.c.bf16 %v4790_v29, %v4788_v44 }
 0x5de   : > { %v4599_v59 = vpop.f32.mrb[160].mxu0 }
 0x5df   : > { %v4863_v23 = vadd.f32 %v8653_v4, %v4599_v59  ;;  %v4601_v0 = vpop.f32.mrb[161].mxu0 }
 0x5e0   : > { %v4864_v58 = vadd.f32 %v8653_v4, %v4601_v0  ;;  %v4603_v35 = vpop.f32.mrb[162].mxu0 }
 0x5e1   : > { %v4865_v17 = vadd.f32 %v8656_v11, %v4603_v35  ;;  %v4605_v27 = vpop.f32.mrb[163].mxu0  ;;  %v4879_v50 = vmax.f32 %v4863_v23, 0.0 }
 0x5e2   : > { %v4866_v31 = vadd.f32 %v8656_v11, %v4605_v27  ;;  %v4880_v60 = vmax.f32 %v4864_v58, 0.0 }
 0x5e3   : > { %v4881_v51 = vmax.f32 %v4865_v17, 0.0 }
 0x5e4   : > { %v4882_v32 = vmax.f32 %v4866_v31, 0.0 }
 0x5e5   : > { %v4895_v39 = vpack.c.bf16 %v4881_v51, %v4879_v50 }
 0x5e6   : > { %v4896_v62 = vpack.c.bf16 %v4882_v32, %v4880_v60  ;;  %v4609_v30 = vpop.f32.mrb[164].mxu0 }
 0x5e7   : > { %v4867_v40 = vadd.f32 %v8663_v61, %v4609_v30  ;;  %v4611_v47 = vpop.f32.mrb[165].mxu0 }
 0x5e8   : > { %v4868_v25 = vadd.f32 %v8663_v61, %v4611_v47  ;;  %v4613_v5 = vpop.f32.mrb[166].mxu0  ;;  %5245 = vmatprep.subr.bf16.mxu1 %v4896_v62 }
 0x5e9   : > { %v4869_v4 = vadd.f32 %v8668_v41, %v4613_v5  ;;  %v4615_v14 = vpop.f32.mrb[167].mxu0  ;;  %5246 = vmatpush1.bf16.msra.mxu1 %v4895_v39  ;;  %v4883_v53 = vmax.f32 %v4867_v40, 0.0 }
 0x5ea   : > { %v4870_v11 = vadd.f32 %v8668_v41, %v4615_v14  ;;  %v4884_v57 = vmax.f32 %v4868_v25, 0.0  ;;  %v6981_v14 = vld [vmem:[%s9592_s9 + $0x34] ss:$8 sps:$4 sm:$0xff]  }
 0x5eb   : > { %v4885_v22 = vmax.f32 %v4869_v4, 0.0  ;;  %v6980_v4 = vld [vmem:[%s9592_s9 + $0x20] ss:$8 sps:$4 sm:$0xff]  }
 0x5ec   : > { %v4886_v9 = vmax.f32 %v4870_v11, 0.0 }
 0x5ed   : > { %v4897_v37 = vpack.c.bf16 %v4885_v22, %v4883_v53 }
 0x5ee   : > { %v4898_v15 = vpack.c.bf16 %v4886_v9, %v4884_v57  ;;  %v4619_v13 = vpop.f32.mrb[168].mxu0  ;;  %v6983_v57 = vld [vmem:[%s9592_s9 + $0x30] ss:$8 sps:$4 sm:$0xff]   ;;  %v6984_v9 = vld [vmem:[%s9592_s9 + $0x44] ss:$8 sps:$4 sm:$0xff]  }
 0x5ef   : > { %v4871_v36 = vadd.f32 %v8677_v55, %v4619_v13  ;;  %v4621_v28 = vpop.f32.mrb[169].mxu0 }
 0x5f0   : > { %v4872_v61 = vadd.f32 %v8677_v55, %v4621_v28  ;;  %v4623_v44 = vpop.f32.mrb[170].mxu0  ;;  %5247 = vmatprep.subr.bf16.mxu1 %v4898_v15  ;;  %v6987_v28 = vld [vmem:[%s9592_s9 + $0x54] ss:$8 sps:$4 sm:$0xff]  }
 0x5f1   : > { %v4873_v29 = vadd.f32 %v8682_v18, %v4623_v44  ;;  %v4625_v59 = vpop.f32.mrb[171].mxu0  ;;  %5248 = vmatpush1.bf16.msra.mxu1 %v4897_v37  ;;  %v4887_v23 = vmax.f32 %v4871_v36, 0.0  ;;  %v6986_v36 = vld [vmem:[%s9592_s9 + $0x40] ss:$8 sps:$4 sm:$0xff]  }
 0x5f2   : > { %v4874_v41 = vadd.f32 %v8682_v18, %v4625_v59  ;;  %v4888_v58 = vmax.f32 %v4872_v61, 0.0  ;;  %v6989_v61 = vld [vmem:[%s9592_s9 + $0x50] ss:$8 sps:$4 sm:$0xff]  }
 0x5f3   : > { %v4889_v0 = vmax.f32 %v4873_v29, 0.0 }
 0x5f4   : > { %v4890_v35 = vmax.f32 %v4874_v41, 0.0 }
 0x5f5   : > { %v4899_v17 = vpack.c.bf16 %v4889_v0, %v4887_v23 }
 0x5f6   : > { %v4900_v27 = vpack.c.bf16 %v4890_v35, %v4888_v58  ;;  %v4629_v31 = vpop.f32.mrb[172].mxu0 }
 0x5f7   : > { %v4875_v50 = vadd.f32 %v8691_v54, %v4629_v31  ;;  %v4631_v51 = vpop.f32.mrb[173].mxu0 }
 0x5f8   : > { %v4876_v55 = vadd.f32 %v8691_v54, %v4631_v51  ;;  %v4633_v60 = vpop.f32.mrb[174].mxu0  ;;  %5249 = vmatprep.subr.bf16.mxu1 %v4900_v27  ;;  %v6972_v54 = vld [vmem:[%s9592_s9] ss:$8 sps:$4 sm:$0xff]  }
 0x5f9   : > { %v4877_v32 = vadd.f32 %v8696_v8, %v4633_v60  ;;  %v4635_v39 = vpop.f32.mrb[175].mxu0  ;;  %5250 = vmatpush1.bf16.msra.mxu1 %v4899_v17  ;;  %v4891_v62 = vmax.f32 %v4875_v50, 0.0 }
 0x5fa   : > { %v4878_v18 = vadd.f32 %v8696_v8, %v4635_v39  ;;  %v4892_v40 = vmax.f32 %v4876_v55, 0.0  ;;  %v6975_v8 = vld [vmem:[%s9592_s9 + $0x14] ss:$8 sps:$4 sm:$0xff]  }
 0x5fb   : > { %v4893_v30 = vmax.f32 %v4877_v32, 0.0 }
 0x5fc   : > { %v4894_v47 = vmax.f32 %v4878_v18, 0.0 }
 0x5fd   : > { %v4901_v25 = vpack.c.bf16 %v4893_v30, %v4891_v62 }
 0x5fe   : > { %v4902_v5 = vpack.c.bf16 %v4894_v47, %v4892_v40 }
 0x600   : > { %5251 = vmatprep.subr.bf16.mxu1 %v4902_v5 }
 0x601   : > { %5252 = vmatpush1.bf16.msra.mxu1 %v4901_v25 }
 0x602   : > { %5253 = vmatprep.subr.bf16.mxu1 %v8720_v42 }
 0x605   : > { %5254 = vmatpush1.bf16.msra.mxu1 %v8718_v10 }
 0x606   : > { %5255 = vmatprep.subr.bf16.mxu1 %v8732_v19  ;;  %v6977_v19 = vld [vmem:[%s9592_s9 + $0x10] ss:$8 sps:$4 sm:$0xff]  }
 0x609   : > { %5256 = vmatpush1.bf16.msra.mxu1 %v8730_v38 }
 0x60a   : > { %5257 = vmatprep.subr.bf16.mxu1 %v8744_v45 }
 0x60d   : > { %5258 = vmatpush1.bf16.msra.mxu1 %v8742_v26  ;;  %v6978_v26 = vld [vmem:[%s9592_s9 + $0x24] ss:$8 sps:$4 sm:$0xff]  }
 0x60e   : > { %5259 = vmatprep.subr.bf16.mxu1 %v8756_v12 }
 0x611   : > { %5260 = vmatpush1.bf16.msra.mxu1 %v8754_v52 }
 0x614   : > { %5270 = vmatmul.mubr.bf16.vlgmr.msra.gmra.mrb[176].mxu1 %v6972_v54 }
 0x615   : > { %6734 = vmatprep.mubr.msk.bf16.mxu1 %vm5125_vm6, %v6975_v8 }
 0x616   : > { %v4960_v10 = vpop.permute.xlu1 %4959 }
 0x617   : > { %v4962_v42 = vpop.permute.xlu0 %4961 }
 0x618   : > { %v4975_v38 = vsel %vm971_vm1, %v4960_v10, %v4962_v42 }
 0x619   : > { %5144 = vmatprep.subr.bf16.mxu0 %v4975_v38 }
 0x61a   : > { %6826 = vmatpush1.bf16.msk.msra.mxu0 %vm7443_vm2, %v4960_v10 }
 0x61c   : > { %5280 = vmatmul.mubr.bf16.gmra.mrb[180].mxu1 %v6977_v19 }
 0x61d   : > { %6735 = vmatprep.mubr.msk.bf16.mxu1 %vm5125_vm6, %v6978_v26 }
 0x61e   : > { %v4964_v45 = vpop.permute.xlu1 %4963 }
 0x61f   : > { %v4966_v52 = vpop.permute.xlu0 %4965 }
 0x620   : > { %v4976_v12 = vsel %vm971_vm1, %v4964_v45, %v4966_v52 }
 0x621   : > { %5146 = vmatprep.subr.bf16.mxu0 %v4976_v12 }
 0x622   : > { %6828 = vmatpush1.bf16.msk.msra.mxu0 %vm7443_vm2, %v4964_v45 }
 0x624   : > { %5290 = vmatmul.mubr.bf16.gmra.mrb[184].mxu1 %v6980_v4 }
 0x625   : > { %6736 = vmatprep.mubr.msk.bf16.mxu1 %vm5125_vm6, %v6981_v14 }
 0x626   : > { %v4968_v11 = vpop.permute.xlu1 %4967 }
 0x627   : > { %v4970_v53 = vpop.permute.xlu0 %4969 }
 0x628   : > { %v4977_v22 = vsel %vm971_vm1, %v4968_v11, %v4970_v53 }
 0x629   : > { %5148 = vmatprep.subr.bf16.mxu0 %v4977_v22 }
 0x62a   : > { %6830 = vmatpush1.bf16.msk.msra.mxu0 %vm7443_vm2, %v4968_v11 }
 0x62c   : > { %5300 = vmatmul.mubr.bf16.gmra.mrb[188].mxu1 %v6983_v57 }
 0x62d   : > { %6737 = vmatprep.mubr.msk.bf16.mxu1 %vm5125_vm6, %v6984_v9 }
 0x62e   : > { %v4972_v37 = vpop.permute.xlu1 %4971 }
 0x62f   : > { %v4974_v15 = vpop.permute.xlu0 %4973 }
 0x630   : > { %v4978_v13 = vsel %vm971_vm1, %v4972_v37, %v4974_v15 }
 0x631   : > { %5150 = vmatprep.subr.bf16.mxu0 %v4978_v13 }
 0x632   : > { %6832 = vmatpush1.bf16.msk.msra.mxu0 %vm7443_vm2, %v4972_v37 }
 0x633   : > { %5152 = vmatprep.subr.bf16.mxu0 %v8777_v20 }
 0x634   : > { %5310 = vmatmul.mubr.bf16.gmra.mrb[192].mxu1 %v6986_v36 }
 0x635   : > { %6738 = vmatprep.mubr.msk.bf16.mxu1 %vm5125_vm6, %v6987_v28 }
 0x636   : > { %5153 = vmatpush1.bf16.msra.mxu0 %v8772_v46 }
 0x637   : > { %5154 = vmatprep.subr.bf16.mxu0 %v8797_v7 }
 0x63a   : > { %5155 = vmatpush1.bf16.msra.mxu0 %v8792_v24 }
 0x63b   : > { %5156 = vmatprep.subr.bf16.mxu0 %v8817_v2 }
 0x63c   : > { %5320 = vmatmul.mubr.bf16.gmra.mrb[196].mxu1 %v6989_v61 }
 0x63e   : > { %5157 = vmatpush1.bf16.msra.mxu0 %v8812_v56 }
 0x63f   : > { %5158 = vmatprep.subr.bf16.mxu0 %v8828_v34 }
 0x642   : > { %5159 = vmatpush1.bf16.msra.mxu0 %v8826_v48 }
 0x643   : > { %5160 = vmatprep.subr.bf16.mxu0 %v8665_v16  ;;  %v8926_v16 = vpop.permute.xlu1 %5344 }
 0x646   : > { %5161 = vmatpush1.bf16.msra.mxu0 %v8661_v33  ;;  %v9640_v33 = vmov 0  }
 0x647   : > { %5162 = vmatprep.subr.bf16.mxu0 %v8679_v21  ;;  %v8936_v44 = vpop.permute.xlu1 %5354 }
 0x64a   : > { %5163 = vmatpush1.bf16.msra.mxu0 %v8675_v49 }
 0x64b   : > { %5164 = vmatprep.subr.bf16.mxu0 %v8693_v6  ;;  %v8929_v6 = vpop.permute.xlu0 %5349  ;;  %v8952_v39 = vpop.permute.xlu1 %5364 }
 0x64e   : > { %5165 = vmatpush1.bf16.msra.mxu0 %v8689_v63 }
 0x64f   : > { %5166 = vmatprep.subr.bf16.mxu0 %v8705_v1  ;;  %v8943_v0 = vpop.permute.xlu0 %5359  ;;  %v8968_v52 = vpop.permute.xlu1 %5374 }
 0x652   : > { %5167 = vmatpush1.bf16.msra.mxu0 %v8703_v43 }
 0x653   : > { %v8959_v47 = vpop.permute.xlu0 %5369 }
 0x655   : > { %5177 = vmatmul.mubr.bf16.vlgmr.msra.gmra.mrb[176].mxu0 %v6972_v54 }
 0x656   : > { %6728 = vmatprep.mubr.msk.bf16.mxu0 %vm5125_vm6, %v6975_v8 }
 0x657   : > { %v8975_v53 = vpop.permute.xlu0 %5379 }
 0x65d   : > { %5187 = vmatmul.mubr.bf16.gmra.mrb[180].mxu0 %v6977_v19 }
 0x65e   : > { %6729 = vmatprep.mubr.msk.bf16.mxu0 %vm5125_vm6, %v6978_v26 }
 0x665   : > { %5197 = vmatmul.mubr.bf16.gmra.mrb[184].mxu0 %v6980_v4 }
 0x666   : > { %6730 = vmatprep.mubr.msk.bf16.mxu0 %vm5125_vm6, %v6981_v14 }
 0x66d   : > { %5207 = vmatmul.mubr.bf16.gmra.mrb[188].mxu0 %v6983_v57 }
 0x66e   : > { %6731 = vmatprep.mubr.msk.bf16.mxu0 %vm5125_vm6, %v6984_v9 }
 0x675   : > { %5217 = vmatmul.mubr.bf16.gmra.mrb[192].mxu0 %v6986_v36 }
 0x676   : > { %6732 = vmatprep.mubr.msk.bf16.mxu0 %vm5125_vm6, %v6987_v28 }
 0x67d   : > { %5227 = vmatmul.mubr.bf16.gmra.mrb[196].mxu0 %v6989_v61 }
 0x67e   : > { %6078 = vmatprep.mubr.bf16.mxu0 %v9640_v33 }
 0x6e7   : > { %v5271_v49 = vpop.f32.mrb[176].mxu1 }
 0x6e8   : > { %v5474_v21 = vadd.f32 %v8926_v16, %v5271_v49  ;;  %v5273_v63 = vpop.f32.mrb[177].mxu1 }
 0x6e9   : > { %v5475_v43 = vadd.f32 %v8926_v16, %v5273_v63  ;;  %v5275_v1 = vpop.f32.mrb[178].mxu1 }
 0x6ea   : > { %v5476_v46 = vadd.f32 %v8929_v6, %v5275_v1  ;;  %v5277_v20 = vpop.f32.mrb[179].mxu1  ;;  %v5498_v7 = vmax.f32 %v5474_v21, 0.0  ;;  %v8984_v21 = vpop.permute.xlu1 %5384 }
 0x6eb   : > { %v5477_v24 = vadd.f32 %v8929_v6, %v5277_v20  ;;  %v5499_v2 = vmax.f32 %v5475_v43, 0.0  ;;  %v8991_v20 = vpop.permute.xlu0 %5389 }
 0x6ec   : > { %v5500_v56 = vmax.f32 %v5476_v46, 0.0 }
 0x6ed   : > { %v5501_v48 = vmax.f32 %v5477_v24, 0.0 }
 0x6ee   : > { %v8934_v34 = vpack.c.bf16 %v5500_v56, %v5498_v7 }
 0x6ef   : > { %v8938_v29 = vpack.c.bf16 %v5501_v48, %v5499_v2  ;;  %v5281_v59 = vpop.f32.mrb[180].mxu1 }
 0x6f0   : > { %v5478_v41 = vadd.f32 %v8936_v44, %v5281_v59  ;;  %5546 = vrot.lane.b32.xlu1 %v8934_v34, %s7087_s30  ;;  %v5283_v23 = vpop.f32.mrb[181].mxu1 }
 0x6f1   : > { %v5479_v58 = vadd.f32 %v8936_v44, %v5283_v23  ;;  %5548 = vrot.lane.b32.xlu0 %v8938_v29, %s7087_s30  ;;  %v5285_v35 = vpop.f32.mrb[182].mxu1 }
 0x6f2   : > { %v5480_v17 = vadd.f32 %v8943_v0, %v5285_v35  ;;  %v5287_v27 = vpop.f32.mrb[183].mxu1  ;;  %v5502_v50 = vmax.f32 %v5478_v41, 0.0 }
 0x6f3   : > { %v5481_v31 = vadd.f32 %v8943_v0, %v5287_v27  ;;  %v5503_v55 = vmax.f32 %v5479_v58, 0.0 }
 0x6f4   : > { %v5504_v51 = vmax.f32 %v5480_v17, 0.0  ;;  %v8998_v17 = vpop.permute.xlu1 %5394 }
 0x6f5   : > { %v5505_v60 = vmax.f32 %v5481_v31, 0.0 }
 0x6f6   : > { %v8950_v32 = vpack.c.bf16 %v5504_v51, %v5502_v50 }
 0x6f7   : > { %v8954_v18 = vpack.c.bf16 %v5505_v60, %v5503_v55  ;;  %v5291_v62 = vpop.f32.mrb[184].mxu1  ;;  %v9002_v55 = vpop.permute.xlu0 %5399 }
 0x6f8   : > { %v5482_v30 = vadd.f32 %v8952_v39, %v5291_v62  ;;  %5550 = vrot.lane.b32.xlu1 %v8950_v32, %s7087_s30  ;;  %v5293_v40 = vpop.f32.mrb[185].mxu1 }
 0x6f9   : > { %v5483_v25 = vadd.f32 %v8952_v39, %v5293_v40  ;;  %5552 = vrot.lane.b32.xlu0 %v8954_v18, %s7087_s30  ;;  %v5295_v5 = vpop.f32.mrb[186].mxu1 }
 0x6fa   : > { %v5484_v54 = vadd.f32 %v8959_v47, %v5295_v5  ;;  %v5297_v8 = vpop.f32.mrb[187].mxu1  ;;  %v5506_v42 = vmax.f32 %v5482_v30, 0.0 }
 0x6fb   : > { %v5485_v10 = vadd.f32 %v8959_v47, %v5297_v8  ;;  %v5507_v19 = vmax.f32 %v5483_v25, 0.0 }
 0x6fc   : > { %v5508_v38 = vmax.f32 %v5484_v54, 0.0 }
 0x6fd   : > { %v5509_v26 = vmax.f32 %v5485_v10, 0.0 }
 0x6fe   : > { %v8966_v45 = vpack.c.bf16 %v5508_v38, %v5506_v42 }
 0x6ff   : > { %v8970_v12 = vpack.c.bf16 %v5509_v26, %v5507_v19  ;;  %v5301_v4 = vpop.f32.mrb[188].mxu1  ;;  %v5692_v19 = vld [vmem:[%s9595_s12] sm:$0xff]  ;;  %v5693_v26 = vld [vmem:[%s9595_s12 + $0x8] sm:$0xff] }
 0x700   : > { %v5486_v14 = vadd.f32 %v8968_v52, %v5301_v4  ;;  %5554 = vrot.lane.b32.xlu1 %v8966_v45, %s7087_s30  ;;  %v5303_v11 = vpop.f32.mrb[189].mxu1  ;;  %v5694_v4 = vld [vmem:[%s9595_s12 + $0x10] sm:$0xff] }
 0x701   : > { %v5487_v22 = vadd.f32 %v8968_v52, %v5303_v11  ;;  %5556 = vrot.lane.b32.xlu0 %v8970_v12, %s7087_s30  ;;  %v5305_v57 = vpop.f32.mrb[190].mxu1  ;;  %v5696_v11 = vld [vmem:[%s9595_s12 + $0x20] sm:$0xff] }
 0x702   : > { %v5488_v9 = vadd.f32 %v8975_v53, %v5305_v57  ;;  %v5307_v37 = vpop.f32.mrb[191].mxu1  ;;  %v5510_v13 = vmax.f32 %v5486_v14, 0.0  ;;  %v5695_v14 = vld [vmem:[%s9595_s12 + $0x18] sm:$0xff]  ;;  %v5698_v57 = vld [vmem:[%s9595_s12 + $0x30] sm:$0xff] }
 0x703   : > { %v5489_v15 = vadd.f32 %v8975_v53, %v5307_v37  ;;  %v5511_v28 = vmax.f32 %v5487_v22, 0.0  ;;  %v5697_v22 = vld [vmem:[%s9595_s12 + $0x28] sm:$0xff] }
 0x704   : > { %v5512_v36 = vmax.f32 %v5488_v9, 0.0  ;;  %v5699_v9 = vld [vmem:[%s9595_s12 + $0x38] sm:$0xff] }
 0x705   : > { %v5513_v61 = vmax.f32 %v5489_v15, 0.0 }
 0x706   : > { %v8982_v49 = vpack.c.bf16 %v5512_v36, %v5510_v13  ;;  %v5700_v36 = vld [vmem:[%s9595_s12 + $0x40] sm:$0xff] }
 0x707   : > { %v8986_v63 = vpack.c.bf16 %v5513_v61, %v5511_v28  ;;  %v5311_v43 = vpop.f32.mrb[192].mxu1 }
 0x708   : > { %v5490_v1 = vadd.f32 %v8984_v21, %v5311_v43  ;;  %5558 = vrot.lane.b32.xlu1 %v8982_v49, %s7087_s30  ;;  %v5313_v46 = vpop.f32.mrb[193].mxu1  ;;  %v5701_v43 = vld [vmem:[%s9595_s12 + $0x48] sm:$0xff] }
 0x709   : > { %v5491_v24 = vadd.f32 %v8984_v21, %v5313_v46  ;;  %5560 = vrot.lane.b32.xlu0 %v8986_v63, %s7087_s30  ;;  %v5315_v7 = vpop.f32.mrb[194].mxu1 }
 0x70a   : > { %v5492_v56 = vadd.f32 %v8991_v20, %v5315_v7  ;;  %v5317_v2 = vpop.f32.mrb[195].mxu1  ;;  %v5514_v59 = vmax.f32 %v5490_v1, 0.0 }
 0x70b   : > { %v5493_v48 = vadd.f32 %v8991_v20, %v5317_v2  ;;  %v5515_v23 = vmax.f32 %v5491_v24, 0.0  ;;  %v5702_v2 = vld [vmem:[%s9595_s12 + $0x50] sm:$0xff] }
 0x70c   : > { %v5516_v41 = vmax.f32 %v5492_v56, 0.0 }
 0x70d   : > { %v5517_v58 = vmax.f32 %v5493_v48, 0.0 }
 0x70e   : > { %v5530_v35 = vpack.c.bf16 %v5516_v41, %v5514_v59  ;;  %v5703_v59 = vld [vmem:[%s9595_s12 + $0x58] sm:$0xff] }
 0x70f   : > { %v5531_v27 = vpack.c.bf16 %v5517_v58, %v5515_v23  ;;  %v5321_v31 = vpop.f32.mrb[196].mxu1 }
 0x710   : > { %v5494_v50 = vadd.f32 %v8998_v17, %v5321_v31  ;;  %5562 = vrot.lane.b32.xlu1 %v5530_v35, %s7087_s30  ;;  %v5323_v51 = vpop.f32.mrb[197].mxu1 }
 0x711   : > { %v5495_v60 = vadd.f32 %v8998_v17, %v5323_v51  ;;  %5564 = vrot.lane.b32.xlu0 %v5531_v27, %s7087_s30  ;;  %v5325_v62 = vpop.f32.mrb[198].mxu1  ;;  %6046 = vmatprep.subr.bf16.mxu0 %v5531_v27  ;;  %v5704_v27 = vld [vmem:[%s9595_s12 + $0x60] sm:$0xff]  ;;  %v5705_v51 = vld [vmem:[%s9595_s12 + $0x68] sm:$0xff] }
 0x712   : > { %v5496_v30 = vadd.f32 %v9002_v55, %v5325_v62  ;;  %v5327_v40 = vpop.f32.mrb[199].mxu1  ;;  %6047 = vmatpush1.bf16.msra.mxu0 %v5530_v35  ;;  %v5518_v5 = vmax.f32 %v5494_v50, 0.0 }
 0x713   : > { %v5497_v25 = vadd.f32 %v9002_v55, %v5327_v40  ;;  %v5519_v8 = vmax.f32 %v5495_v60, 0.0 }
 0x714   : > { %v5520_v54 = vmax.f32 %v5496_v30, 0.0 }
 0x715   : > { %v5521_v10 = vmax.f32 %v5497_v25, 0.0 }
 0x716   : > { %v5532_v42 = vpack.c.bf16 %v5520_v54, %v5518_v5  ;;  %v5706_v5 = vld [vmem:[%s9595_s12 + $0x70] sm:$0xff] }
 0x717   : > { %v5533_v38 = vpack.c.bf16 %v5521_v10, %v5519_v8  ;;  %v6992_v10 = vld [vmem:[%s9594_s11 + $0x4] ss:$12 sps:$4 sm:$0xff]  }
 0x718   : > { %5566 = vrot.lane.b32.xlu1 %v5532_v42, %s7087_s30  ;;  %5965 = vmatprep.mubr.bf16.mxu1 %v6992_v10 }
 0x719   : > { %5568 = vrot.lane.b32.xlu0 %v5533_v38, %s7087_s30  ;;  %6048 = vmatprep.subr.bf16.mxu0 %v5533_v38  ;;  %s7022_s30 = scalar_lea.vmem %s9543_s16, 16 }
 0x71a   : > { %6049 = vmatpush1.bf16.msra.mxu0 %v5532_v42  ;;  %p7023_p11 = scmp.ne.s32.totalorder %s9543_s16, %s7022_s30  ;;  %p7030_p1 = scmp.lt.s32.totalorder %s7028_s1, %s7022_s30 }
 0x71c   : > { %5710 = vperm.xlu1 %6951, %v5692_v19   ;;  %p7024_p12 = pnand %p7023_p11, %p7208_p5  ;;  %p7031_p2 = por %p7030_p1, %p7029_p0 }
 0x71d   : > { %5715 = vperm.xlu0 %6952, %v5693_v26  }
 0x71e   : > { %p7025_p13 = pneg %p7024_p12 }
 0x720   : > { %5720 = vperm.xlu1 %6951, %v5694_v4   ;;  %p7032_p3 = pnand %p7031_p2, %p7025_p13 }
 0x721   : > { %5725 = vperm.xlu0 %6952, %v5695_v14  }
 0x724   : > { %5730 = vperm.xlu1 %6951, %v5696_v11  }
 0x725   : > { %5735 = vperm.xlu0 %6952, %v5697_v22  }
 0x728   : > { %v5178_v37 = vpop.f32.mrb[176].mxu0  ;;  %5740 = vperm.xlu1 %6951, %v5698_v57  }
 0x729   : > { %v5402_v15 = vadd.f32 %v8926_v16, %v5178_v37  ;;  %v5180_v13 = vpop.f32.mrb[177].mxu0  ;;  %5745 = vperm.xlu0 %6952, %v5699_v9  }
 0x72a   : > { %v5403_v28 = vadd.f32 %v8926_v16, %v5180_v13  ;;  %v5182_v61 = vpop.f32.mrb[178].mxu0 }
 0x72b   : > { %v5404_v1 = vadd.f32 %v8929_v6, %v5182_v61  ;;  %v5184_v46 = vpop.f32.mrb[179].mxu0  ;;  %v5426_v7 = vmax.f32 %v5402_v15, 0.0 }
 0x72c   : > { %v5405_v24 = vadd.f32 %v8929_v6, %v5184_v46  ;;  %5750 = vperm.xlu1 %6951, %v5700_v36   ;;  %v5427_v48 = vmax.f32 %v5403_v28, 0.0  ;;  %v6997_v28 = vld [vmem:[%s9594_s11 + $0x20] ss:$12 sps:$4 sm:$0xff]  }
 0x72d   : > { %v5428_v56 = vmax.f32 %v5404_v1, 0.0  ;;  %5755 = vperm.xlu0 %6952, %v5701_v43  }
 0x72e   : > { %v5429_v16 = vmax.f32 %v5405_v24, 0.0 }
 0x72f   : > { %v9050_v41 = vpack.c.bf16 %v5428_v56, %v5426_v7 }
 0x730   : > { %v9052_v23 = vpack.c.bf16 %v5429_v16, %v5427_v48  ;;  %v5188_v58 = vpop.f32.mrb[180].mxu0  ;;  %5760 = vperm.xlu1 %6951, %v5702_v2  }
 0x731   : > { %v5406_v6 = vadd.f32 %v8936_v44, %v5188_v58  ;;  %v5190_v35 = vpop.f32.mrb[181].mxu0  ;;  %5765 = vperm.xlu0 %6952, %v5703_v59  }
 0x732   : > { %v5407_v31 = vadd.f32 %v8936_v44, %v5190_v35  ;;  %v5192_v50 = vpop.f32.mrb[182].mxu0  ;;  %v5707_v44 = vld [vmem:[%s9595_s12 + $0x78] sm:$0xff] }
 0x733   : > { %v5408_v60 = vadd.f32 %v8943_v0, %v5192_v50  ;;  %v5194_v62 = vpop.f32.mrb[183].mxu0  ;;  %v5430_v40 = vmax.f32 %v5406_v6, 0.0  ;;  %v7001_v6 = vld [vmem:[%s9594_s11 + $0x38] ss:$12 sps:$4 sm:$0xff]  }
 0x734   : > { %v5409_v30 = vadd.f32 %v8943_v0, %v5194_v62  ;;  %5770 = vperm.xlu1 %6951, %v5704_v27   ;;  %v5431_v54 = vmax.f32 %v5407_v31, 0.0  ;;  %v6993_v0 = vld [vmem:[%s9594_s11 + $0x8] ss:$12 sps:$4 sm:$0xff]  }
 0x735   : > { %v5432_v25 = vmax.f32 %v5408_v60, 0.0  ;;  %5775 = vperm.xlu0 %6952, %v5705_v51   ;;  %6763 = vmatmul.mubr.msk.bf16.vlgmr.msra.gmra.mrb[200].mxu0 %vm5908_vm7, %v6993_v0 }
 0x736   : > { %v5433_v8 = vmax.f32 %v5409_v30, 0.0  ;;  %6088 = vmatprep.mubr.bf16.mxu0 %v9640_v33 }
 0x737   : > { %v9076_v42 = vpack.c.bf16 %v5432_v25, %v5430_v40 }
 0x738   : > { %v9078_v38 = vpack.c.bf16 %v5433_v8, %v5431_v54  ;;  %v5198_v19 = vpop.f32.mrb[184].mxu0  ;;  %5780 = vperm.xlu1 %6951, %v5706_v5   ;;  %v7005_v54 = vld [vmem:[%s9594_s11 + $0x50] ss:$12 sps:$4 sm:$0xff]  }
 0x739   : > { %v5410_v26 = vadd.f32 %v8952_v39, %v5198_v19  ;;  %v5200_v4 = vpop.f32.mrb[185].mxu0  ;;  %5785 = vperm.xlu0 %6952, %v5707_v44  }
 0x73a   : > { %v5411_v14 = vadd.f32 %v8952_v39, %v5200_v4  ;;  %v5202_v11 = vpop.f32.mrb[186].mxu0 }
 0x73b   : > { %v5412_v22 = vadd.f32 %v8959_v47, %v5202_v11  ;;  %v5204_v57 = vpop.f32.mrb[187].mxu0  ;;  %v5434_v37 = vmax.f32 %v5410_v26, 0.0 }
 0x73c   : > { %v5413_v9 = vadd.f32 %v8959_v47, %v5204_v57  ;;  %v5435_v13 = vmax.f32 %v5411_v14, 0.0 }
 0x73d   : > { %v5436_v15 = vmax.f32 %v5412_v22, 0.0  ;;  %6764 = vmatmul.mubr.msk.bf16.gmra.mrb[204].mxu0 %vm5908_vm7, %v6997_v28 }
 0x73e   : > { %v5437_v36 = vmax.f32 %v5413_v9, 0.0  ;;  %6098 = vmatprep.mubr.bf16.mxu0 %v9640_v33 }
 0x73f   : > { %v9089_v61 = vpack.c.bf16 %v5436_v15, %v5434_v37  ;;  %v7009_v15 = vld [vmem:[%s9594_s11 + $0x68] ss:$12 sps:$4 sm:$0xff]  }
 0x740   : > { %v9091_v43 = vpack.c.bf16 %v5437_v36, %v5435_v13  ;;  %v5208_v39 = vpop.f32.mrb[188].mxu0 }
 0x741   : > { %v5414_v1 = vadd.f32 %v8968_v52, %v5208_v39  ;;  %v5210_v46 = vpop.f32.mrb[189].mxu0 }
 0x742   : > { %v5415_v47 = vadd.f32 %v8968_v52, %v5210_v46  ;;  %v5212_v24 = vpop.f32.mrb[190].mxu0 }
 0x743   : > { %v5416_v7 = vadd.f32 %v8975_v53, %v5212_v24  ;;  %v5214_v56 = vpop.f32.mrb[191].mxu0  ;;  %v5438_v48 = vmax.f32 %v5414_v1, 0.0  ;;  %v7017_v1 = vld [vmem:[%s9594_s11 + $0x98] ss:$12 sps:$4 sm:$0xff]  }
 0x744   : > { %v5417_v2 = vadd.f32 %v8975_v53, %v5214_v56  ;;  %v5439_v59 = vmax.f32 %v5415_v47, 0.0 }
 0x745   : > { %v5440_v16 = vmax.f32 %v5416_v7, 0.0  ;;  %6765 = vmatmul.mubr.msk.bf16.gmra.mrb[208].mxu0 %vm5908_vm7, %v7001_v6  ;;  %v7021_v7 = vld [vmem:[%s9594_s11 + $0xb0] ss:$12 sps:$4 sm:$0xff]  }
 0x746   : > { %v5441_v58 = vmax.f32 %v5417_v2, 0.0  ;;  %6108 = vmatprep.mubr.bf16.mxu0 %v9640_v33 }
 0x747   : > { %v9102_v35 = vpack.c.bf16 %v5440_v16, %v5438_v48 }
 0x748   : > { %v9104_v27 = vpack.c.bf16 %v5441_v58, %v5439_v59  ;;  %v5218_v52 = vpop.f32.mrb[192].mxu0 }
 0x749   : > { %v5418_v31 = vadd.f32 %v8984_v21, %v5218_v52  ;;  %v5220_v50 = vpop.f32.mrb[193].mxu0 }
 0x74a   : > { %v5419_v53 = vadd.f32 %v8984_v21, %v5220_v50  ;;  %v5222_v51 = vpop.f32.mrb[194].mxu0 }
 0x74b   : > { %v5420_v60 = vadd.f32 %v8991_v20, %v5222_v51  ;;  %v5224_v62 = vpop.f32.mrb[195].mxu0  ;;  %v5442_v40 = vmax.f32 %v5418_v31, 0.0 }
 0x74c   : > { %v5421_v30 = vadd.f32 %v8991_v20, %v5224_v62  ;;  %v5443_v5 = vmax.f32 %v5419_v53, 0.0 }
 0x74d   : > { %v5444_v25 = vmax.f32 %v5420_v60, 0.0  ;;  %6766 = vmatmul.mubr.msk.bf16.gmra.mrb[212].mxu0 %vm5908_vm7, %v7005_v54 }
 0x74e   : > { %v5445_v44 = vmax.f32 %v5421_v30, 0.0  ;;  %6118 = vmatprep.mubr.bf16.mxu0 %v9640_v33 }
 0x74f   : > { %v9115_v8 = vpack.c.bf16 %v5444_v25, %v5442_v40 }
 0x750   : > { %v9117_v10 = vpack.c.bf16 %v5445_v44, %v5443_v5  ;;  %v5228_v21 = vpop.f32.mrb[196].mxu0 }
 0x751   : > { %v5422_v0 = vadd.f32 %v8998_v17, %v5228_v21  ;;  %v5230_v19 = vpop.f32.mrb[197].mxu0 }
 0x752   : > { %v5423_v20 = vadd.f32 %v8998_v17, %v5230_v19  ;;  %v5232_v26 = vpop.f32.mrb[198].mxu0  ;;  %v7013_v17 = vld [vmem:[%s9594_s11 + $0x80] ss:$12 sps:$4 sm:$0xff]  }
 0x753   : > { %v5424_v4 = vadd.f32 %v9002_v55, %v5232_v26  ;;  %v5234_v14 = vpop.f32.mrb[199].mxu0  ;;  %v5446_v22 = vmax.f32 %v5422_v0, 0.0 }
 0x754   : > { %v5425_v11 = vadd.f32 %v9002_v55, %v5234_v14  ;;  %v5447_v9 = vmax.f32 %v5423_v20, 0.0 }
 0x755   : > { %v5448_v57 = vmax.f32 %v5424_v4, 0.0  ;;  %6767 = vmatmul.mubr.msk.bf16.gmra.mrb[216].mxu0 %vm5908_vm7, %v7009_v15 }
 0x756   : > { %v5449_v37 = vmax.f32 %v5425_v11, 0.0  ;;  %6128 = vmatprep.mubr.bf16.mxu0 %v9640_v33 }
 0x757   : > { %v5460_v13 = vpack.c.bf16 %v5448_v57, %v5446_v22 }
 0x758   : > { %v5461_v36 = vpack.c.bf16 %v5449_v37, %v5447_v9 }
 0x75d   : > { %6768 = vmatmul.mubr.msk.bf16.gmra.mrb[220].mxu0 %vm5908_vm7, %v7013_v17 }
 0x75e   : > { %6138 = vmatprep.mubr.bf16.mxu0 %v9640_v33 }
 0x762   : > { %v5547_v55 = vpop.permute.xlu1 %5546 }
 0x763   : > { %v5549_v28 = vpop.permute.xlu0 %5548 }
 0x764   : > { %v5570_v39 = vsel %vm971_vm1, %v5547_v55, %v5549_v28 }
 0x765   : > { %5933 = vmatprep.subr.bf16.mxu1 %v5570_v39  ;;  %6769 = vmatmul.mubr.msk.bf16.gmra.mrb[224].mxu0 %vm5908_vm7, %v7017_v1 }
 0x766   : > { %6834 = vmatpush1.bf16.msk.msra.mxu1 %vm7443_vm2, %v5547_v55  ;;  %6148 = vmatprep.mubr.bf16.mxu0 %v9640_v33 }
 0x76a   : > { %v5551_v46 = vpop.permute.xlu1 %5550 }
 0x76b   : > { %v5553_v47 = vpop.permute.xlu0 %5552 }
 0x76c   : > { %v5571_v24 = vsel %vm971_vm1, %v5551_v46, %v5553_v47 }
 0x76d   : > { %5935 = vmatprep.subr.bf16.mxu1 %v5571_v24  ;;  %6770 = vmatmul.mubr.msk.bf16.gmra.mrb[228].mxu0 %vm5908_vm7, %v7021_v7 }
 0x76e   : > { %6836 = vmatpush1.bf16.msk.msra.mxu1 %vm7443_vm2, %v5551_v46 }
 0x772   : > { %v5555_v56 = vpop.permute.xlu1 %5554 }
 0x773   : > { %v5557_v2 = vpop.permute.xlu0 %5556 }
 0x774   : > { %v5572_v48 = vsel %vm971_vm1, %v5555_v56, %v5557_v2 }
 0x775   : > { %5937 = vmatprep.subr.bf16.mxu1 %v5572_v48 }
 0x776   : > { %6838 = vmatpush1.bf16.msk.msra.mxu1 %vm7443_vm2, %v5555_v56 }
 0x77a   : > { %v5559_v33 = vpop.permute.xlu1 %5558 }
 0x77b   : > { %v5561_v16 = vpop.permute.xlu0 %5560 }
 0x77c   : > { %v5573_v59 = vsel %vm971_vm1, %v5559_v33, %v5561_v16 }
 0x77d   : > { %5939 = vmatprep.subr.bf16.mxu1 %v5573_v59  ;;  %v6191_v59 = vld [vmem:[%s9596_s13] sm:$0xff] }
 0x77e   : > { %6840 = vmatpush1.bf16.msk.msra.mxu1 %vm7443_vm2, %v5559_v33 }
 0x782   : > { %v5563_v58 = vpop.permute.xlu1 %5562 }
 0x783   : > { %v5565_v6 = vpop.permute.xlu0 %5564 }
 0x784   : > { %v5574_v52 = vsel %vm971_vm1, %v5563_v58, %v5565_v6 }
 0x785   : > { %5941 = vmatprep.subr.bf16.mxu1 %v5574_v52 }
 0x786   : > { %6842 = vmatpush1.bf16.msk.msra.mxu1 %vm7443_vm2, %v5563_v58  ;;  %v6771_v58 = vld [vmem:[%s9596_s13 + $0x100] sm:$0xff] }
 0x78a   : > { %v5567_v31 = vpop.permute.xlu1 %5566 }
 0x78b   : > { %v5569_v50 = vpop.permute.xlu0 %5568 }
 0x78c   : > { %v5575_v53 = vsel %vm971_vm1, %v5567_v31, %v5569_v50  ;;  %v6192_v50 = vld [vmem:[%s9596_s13 + $0x8] sm:$0xff] }
 0x78d   : > { %5943 = vmatprep.subr.bf16.mxu1 %v5575_v53  ;;  %v6772_v53 = vld [vmem:[%s9596_s13 + $0x108] sm:$0xff] }
 0x78e   : > { %6844 = vmatpush1.bf16.msk.msra.mxu1 %vm7443_vm2, %v5567_v31 }
 0x78f   : > { %5945 = vmatprep.subr.bf16.mxu1 %v9052_v23  ;;  %v7012_v23 = vld [vmem:[%s9594_s11 + $0x78] ss:$12 sps:$4 sm:$0xff]  }
 0x792   : > { %5946 = vmatpush1.bf16.msra.mxu1 %v9050_v41  ;;  %v7010_v41 = vld [vmem:[%s9594_s11 + $0x7c] ss:$12 sps:$4 sm:$0xff]  }
 0x793   : > { %5947 = vmatprep.subr.bf16.mxu1 %v9078_v38  ;;  %v7016_v38 = vld [vmem:[%s9594_s11 + $0x90] ss:$12 sps:$4 sm:$0xff]  }
 0x796   : > { %5948 = vmatpush1.bf16.msra.mxu1 %v9076_v42  ;;  %v7014_v42 = vld [vmem:[%s9594_s11 + $0x94] ss:$12 sps:$4 sm:$0xff]  }
 0x797   : > { %5949 = vmatprep.subr.bf16.mxu1 %v9091_v43  ;;  %v7020_v43 = vld [vmem:[%s9594_s11 + $0xa8] ss:$12 sps:$4 sm:$0xff]  }
 0x79a   : > { %5950 = vmatpush1.bf16.msra.mxu1 %v9089_v61  ;;  %v7018_v61 = vld [vmem:[%s9594_s11 + $0xac] ss:$12 sps:$4 sm:$0xff]  }
 0x79b   : > { %5951 = vmatprep.subr.bf16.mxu1 %v9104_v27  ;;  %v5711_v1 = vpop.permute.xlu1 %5710 }
 0x79c   : > { %v5716_v7 = vpop.permute.xlu0 %5715 }
 0x79e   : > { %5952 = vmatpush1.bf16.msra.mxu1 %v9102_v35 }
 0x79f   : > { %5953 = vmatprep.subr.bf16.mxu1 %v9117_v10 }
 0x7a2   : > { %5954 = vmatpush1.bf16.msra.mxu1 %v9115_v8 }
 0x7a3   : > { %5955 = vmatprep.subr.bf16.mxu1 %v5461_v36 }
 0x7a6   : > { %5956 = vmatpush1.bf16.msra.mxu1 %v5460_v13 }
 0x7a7   : > { %5957 = vmatprep.subr.bf16.mxu1 %v8938_v29  ;;  %v6996_v29 = vld [vmem:[%s9594_s11 + $0x18] ss:$12 sps:$4 sm:$0xff]  }
 0x7aa   : > { %5958 = vmatpush1.bf16.msra.mxu1 %v8934_v34  ;;  %v6994_v34 = vld [vmem:[%s9594_s11 + $0x1c] ss:$12 sps:$4 sm:$0xff]  }
 0x7ab   : > { %5959 = vmatprep.subr.bf16.mxu1 %v8954_v18  ;;  %v7000_v18 = vld [vmem:[%s9594_s11 + $0x30] ss:$12 sps:$4 sm:$0xff]  }
 0x7ae   : > { %5960 = vmatpush1.bf16.msra.mxu1 %v8950_v32  ;;  %v6998_v32 = vld [vmem:[%s9594_s11 + $0x34] ss:$12 sps:$4 sm:$0xff]  }
 0x7af   : > { %5961 = vmatprep.subr.bf16.mxu1 %v8970_v12  ;;  %v7004_v12 = vld [vmem:[%s9594_s11 + $0x48] ss:$12 sps:$4 sm:$0xff]  }
 0x7b2   : > { %5962 = vmatpush1.bf16.msra.mxu1 %v8966_v45  ;;  %v7002_v45 = vld [vmem:[%s9594_s11 + $0x4c] ss:$12 sps:$4 sm:$0xff]  }
 0x7b3   : > { %5963 = vmatprep.subr.bf16.mxu1 %v8986_v63  ;;  %v7008_v63 = vld [vmem:[%s9594_s11 + $0x60] ss:$12 sps:$4 sm:$0xff]  }
 0x7b6   : > { %5964 = vmatpush1.bf16.msra.mxu1 %v8982_v49  ;;  %v7006_v49 = vld [vmem:[%s9594_s11 + $0x64] ss:$12 sps:$4 sm:$0xff]  }
 0x7b9   : > { %5966 = vmatmul.mubr.bf16.vlgmr.msra.gmra.mrb[200].mxu1 %v6990_v3 }
 0x7ba   : > { %5975 = vmatprep.mubr.bf16.mxu1 %v6994_v34 }
 0x7c1   : > { %5976 = vmatmul.mubr.bf16.gmra.mrb[204].mxu1 %v6996_v29  ;;  %v6193_v29 = vld [vmem:[%s9596_s13 + $0x10] sm:$0xff] }
 0x7c2   : > { %5985 = vmatprep.mubr.bf16.mxu1 %v6998_v32  ;;  %v6773_v32 = vld [vmem:[%s9596_s13 + $0x110] sm:$0xff] }
 0x7c9   : > { %5986 = vmatmul.mubr.bf16.gmra.mrb[208].mxu1 %v7000_v18 }
 0x7ca   : > { %5995 = vmatprep.mubr.bf16.mxu1 %v7002_v45 }
 0x7d1   : > { %5996 = vmatmul.mubr.bf16.gmra.mrb[212].mxu1 %v7004_v12 }
 0x7d2   : > { %6005 = vmatprep.mubr.bf16.mxu1 %v7006_v49 }
 0x7d9   : > { %6006 = vmatmul.mubr.bf16.gmra.mrb[216].mxu1 %v7008_v63  ;;  %v6194_v63 = vld [vmem:[%s9596_s13 + $0x18] sm:$0xff] }
 0x7da   : > { %6015 = vmatprep.mubr.bf16.mxu1 %v7010_v41  ;;  %v6774_v41 = vld [vmem:[%s9596_s13 + $0x118] sm:$0xff] }
 0x7e1   : > { %6016 = vmatmul.mubr.bf16.gmra.mrb[220].mxu1 %v7012_v23  ;;  %v5721_v23 = vpop.permute.xlu1 %5720 }
 0x7e2   : > { %6025 = vmatprep.mubr.bf16.mxu1 %v7014_v42 }
 0x7e9   : > { %6026 = vmatmul.mubr.bf16.gmra.mrb[224].mxu1 %v7016_v38 }
 0x7ea   : > { %6035 = vmatprep.mubr.bf16.mxu1 %v7018_v61 }
 0x7f1   : > { %6036 = vmatmul.mubr.bf16.gmra.mrb[228].mxu1 %v7020_v43 }
 0x808   : > { %v6080_v35 = vpop.f32.mrb[200].mxu0 }
 0x809   : > { %v6082_v27 = vpop.f32.mrb[201].mxu0 }
 0x80a   : > { %v6084_v51 = vpop.f32.mrb[202].mxu0 }
 0x80b   : > { %v6086_v60 = vpop.f32.mrb[203].mxu0 }
 0x810   : > { %v9225_v62 = vpop.f32.mrb[204].mxu0 }
 0x811   : > { %v9227_v30 = vpop.f32.mrb[205].mxu0 }
 0x812   : > { %v9229_v40 = vpop.f32.mrb[206].mxu0 }
 0x813   : > { %v9231_v25 = vpop.f32.mrb[207].mxu0 }
 0x818   : > { %v9233_v5 = vpop.f32.mrb[208].mxu0 }
 0x819   : > { %v9235_v44 = vpop.f32.mrb[209].mxu0 }
 0x81a   : > { %v9237_v54 = vpop.f32.mrb[210].mxu0 }
 0x81b   : > { %v9239_v8 = vpop.f32.mrb[211].mxu0 }
 0x820   : > { %v9241_v10 = vpop.f32.mrb[212].mxu0 }
 0x821   : > { %v9243_v21 = vpop.f32.mrb[213].mxu0 }
 0x822   : > { %v9245_v0 = vpop.f32.mrb[214].mxu0 }
 0x823   : > { %v9247_v19 = vpop.f32.mrb[215].mxu0 }
 0x828   : > { %v9249_v20 = vpop.f32.mrb[216].mxu0 }
 0x829   : > { %v9251_v26 = vpop.f32.mrb[217].mxu0 }
 0x82a   : > { %v9253_v4 = vpop.f32.mrb[218].mxu0 }
 0x82b   : > { %v9255_v14 = vpop.f32.mrb[219].mxu0 }
 0x830   : > { %v9257_v11 = vpop.f32.mrb[220].mxu0 }
 0x831   : > { %v9259_v22 = vpop.f32.mrb[221].mxu0 }
 0x832   : > { %v9261_v57 = vpop.f32.mrb[222].mxu0 }
 0x833   : > { %v9263_v9 = vpop.f32.mrb[223].mxu0 }
 0x838   : > { %v9265_v37 = vpop.f32.mrb[224].mxu0 }
 0x839   : > { %v9267_v15 = vpop.f32.mrb[225].mxu0 }
 0x83a   : > { %v9269_v13 = vpop.f32.mrb[226].mxu0 }
 0x83b   : > { %v9271_v36 = vpop.f32.mrb[227].mxu0 }
 0x840   : > { %v9273_v17 = vpop.f32.mrb[228].mxu0 }
 0x841   : > { %v9275_v55 = vpop.f32.mrb[229].mxu0 }
 0x842   : > { %v9277_v28 = vpop.f32.mrb[230].mxu0 }
 0x843   : > { %v9279_v39 = vpop.f32.mrb[231].mxu0 }
 0x88c   : > { %v5967_v46 = vpop.f32.mrb[200].mxu1 }
 0x88d   : > { %v5968_v47 = vadd.f32 %v5967_v46, %v5711_v1  ;;  %v5969_v24 = vpop.f32.mrb[201].mxu1 }
 0x88e   : > { %v5970_v56 = vadd.f32 %v5969_v24, %v5711_v1  ;;  %v5971_v2 = vpop.f32.mrb[202].mxu1  ;;  %v5726_v1 = vpop.permute.xlu0 %5725 }
 0x88f   : > { %v6081_v48 = vadd.f32 %v6080_v35, %v5968_v47  ;;  %v5972_v33 = vadd.f32 %v5971_v2, %v5716_v7  ;;  %v5973_v16 = vpop.f32.mrb[203].mxu1 }
 0x890   : > { %v6083_v6 = vadd.f32 %v6082_v27, %v5970_v56  ;;  %v5974_v52 = vadd.f32 %v5973_v16, %v5716_v7 }
 0x891   : > { %v6159_v31 = vmax.f32 %v6081_v48, 0.0  ;;  %v6085_v3 = vadd.f32 %v6084_v51, %v5972_v33 }
 0x892   : > { %v6160_v34 = vmax.f32 %v6083_v6, 0.0  ;;  %v6087_v18 = vadd.f32 %v6086_v60, %v5974_v52 }
 0x893   : > { %v6223_v45 = vmul.f32 %v6191_v59, %v6159_v31  ;;  %v6336_v12 = vmul.f32 %v6771_v58, %v6159_v31  ;;  %v6161_v49 = vmax.f32 %v6085_v3, 0.0  ;;  %v6195_v59 = vld [vmem:[%s9596_s13 + $0x20] sm:$0xff]  ;;  %v6776_v3 = vld [vmem:[%s9596_s13 + $0x128] sm:$0xff] }
 0x894   : > { %v6224_v42 = vmul.f32 %v6192_v50, %v6160_v34  ;;  %v6337_v38 = vmul.f32 %v6772_v53, %v6160_v34  ;;  %v6162_v61 = vmax.f32 %v6087_v18, 0.0  ;;  %v5977_v43 = vpop.f32.mrb[204].mxu1  ;;  %v6775_v58 = vld [vmem:[%s9596_s13 + $0x120] sm:$0xff] }
 0x895   : > { %v6225_v35 = vmul.f32 %v6193_v29, %v6161_v49  ;;  %v6338_v27 = vmul.f32 %v6773_v32, %v6161_v49  ;;  %v5978_v51 = vadd.f32 %v5977_v43, %v5721_v23  ;;  %v5979_v60 = vpop.f32.mrb[205].mxu1  ;;  %v6777_v32 = vld [vmem:[%s9596_s13 + $0x130] sm:$0xff] }
 0x896   : > { %v6226_v46 = vmul.f32 %v6194_v63, %v6162_v61  ;;  %v6339_v47 = vmul.f32 %v6774_v41, %v6162_v61  ;;  %v5980_v24 = vadd.f32 %v5979_v60, %v5721_v23  ;;  %v5981_v7 = vpop.f32.mrb[206].mxu1  ;;  %v6368_v56 = vadd.f32 %v6337_v38, %v6336_v12  ;;  %v6198_v63 = vld [vmem:[%s9596_s13 + $0x38] sm:$0xff]  ;;  %v5731_v41 = vpop.permute.xlu1 %5730 }
 0x897   : > { %v6091_v2 = vadd.f32 %v9225_v62, %v5978_v51  ;;  %v5982_v48 = vadd.f32 %v5981_v7, %v5726_v1  ;;  %v5983_v33 = vpop.f32.mrb[207].mxu1  ;;  %v6255_v16 = vadd.f32 %v6224_v42, %v6223_v45  ;;  %v6196_v62 = vld [vmem:[%s9596_s13 + $0x28] sm:$0xff]  ;;  %v5736_v51 = vpop.permute.xlu0 %5735 }
 0x898   : > { %v6093_v6 = vadd.f32 %v9227_v30, %v5980_v24  ;;  %v5984_v52 = vadd.f32 %v5983_v33, %v5726_v1  ;;  %6369 = vadd.xlane.f32.xlu0 %v6368_v56  ;;  %v6258_v31 = vadd.f32 %v6226_v46, %v6225_v35  ;;  %v6371_v50 = vadd.f32 %v6339_v47, %v6338_v27  ;;  %v6197_v30 = vld [vmem:[%s9596_s13 + $0x30] sm:$0xff]  ;;  %v6199_v33 = vld [vmem:[%s9596_s13 + $0x40] sm:$0xff] }
 0x899   : > { %v6163_v53 = vmax.f32 %v6091_v2, 0.0  ;;  %v6095_v34 = vadd.f32 %v9229_v40, %v5982_v48  ;;  %6256 = vadd.xlane.f32.xlu1 %v6255_v16  ;;  %v6778_v40 = vld [vmem:[%s9596_s13 + $0x138] sm:$0xff]  ;;  %v6779_v16 = vld [vmem:[%s9596_s13 + $0x140] sm:$0xff] }
 0x89a   : > { %v6164_v29 = vmax.f32 %v6093_v6, 0.0  ;;  %v6097_v18 = vadd.f32 %v9231_v25, %v5984_v52 }
 0x89b   : > { %v6227_v45 = vmul.f32 %v6195_v59, %v6163_v53  ;;  %v6340_v12 = vmul.f32 %v6775_v58, %v6163_v53  ;;  %v6165_v49 = vmax.f32 %v6095_v34, 0.0 }
 0x89c   : > { %v6228_v23 = vmul.f32 %v6196_v62, %v6164_v29  ;;  %v6341_v42 = vmul.f32 %v6776_v3, %v6164_v29  ;;  %v6166_v38 = vmax.f32 %v6097_v18, 0.0  ;;  %v5987_v61 = vpop.f32.mrb[208].mxu1  ;;  %6259 = vadd.xlane.f32.xlu0 %v6258_v31  ;;  %v6781_v3 = vld [vmem:[%s9596_s13 + $0x150] sm:$0xff]  ;;  %v6202_v18 = vld [vmem:[%s9596_s13 + $0x58] sm:$0xff] }
 0x89d   : > { %v6229_v43 = vmul.f32 %v6197_v30, %v6165_v49  ;;  %v6342_v35 = vmul.f32 %v6777_v32, %v6165_v49  ;;  %v5988_v25 = vadd.f32 %v5987_v61, %v5731_v41  ;;  %6372 = vadd.xlane.f32.xlu1 %v6371_v50  ;;  %v5989_v27 = vpop.f32.mrb[209].mxu1  ;;  %v6780_v50 = vld [vmem:[%s9596_s13 + $0x148] sm:$0xff] }
 0x89e   : > { %v6230_v60 = vmul.f32 %v6198_v63, %v6166_v38  ;;  %v6343_v1 = vmul.f32 %v6778_v40, %v6166_v38  ;;  %v5990_v46 = vadd.f32 %v5989_v27, %v5731_v41  ;;  %v5991_v47 = vpop.f32.mrb[210].mxu1  ;;  %v6261_v24 = vadd.f32 %v6228_v23, %v6227_v45  ;;  %v5741_v45 = vpop.permute.xlu1 %5740 }
 0x89f   : > { %v6101_v7 = vadd.f32 %v9233_v5, %v5988_v25  ;;  %v5992_v56 = vadd.f32 %v5991_v47, %v5736_v51  ;;  %v5993_v2 = vpop.f32.mrb[211].mxu1  ;;  %v6374_v48 = vadd.f32 %v6341_v42, %v6340_v12  ;;  %v6200_v5 = vld [vmem:[%s9596_s13 + $0x48] sm:$0xff]  ;;  %v5746_v38 = vpop.permute.xlu0 %5745  ;;  %v6203_v47 = vld [vmem:[%s9596_s13 + $0x60] sm:$0xff] }
 0x8a0   : > { %v6103_v59 = vadd.f32 %v9235_v44, %v5990_v46  ;;  %v5994_v58 = vadd.f32 %v5993_v2, %v5736_v51  ;;  %6262 = vadd.xlane.f32.xlu0 %v6261_v24  ;;  %v6264_v6 = vadd.f32 %v6230_v60, %v6229_v43  ;;  %v6377_v52 = vadd.f32 %v6343_v1, %v6342_v35  ;;  %v6201_v44 = vld [vmem:[%s9596_s13 + $0x50] sm:$0xff]  ;;  %v6783_v24 = vld [vmem:[%s9596_s13 + $0x160] sm:$0xff] }
 0x8a1   : > { %v6167_v31 = vmax.f32 %v6101_v7, 0.0  ;;  %v6105_v53 = vadd.f32 %v9237_v54, %v5992_v56  ;;  %6375 = vadd.xlane.f32.xlu1 %v6374_v48  ;;  %v6782_v54 = vld [vmem:[%s9596_s13 + $0x158] sm:$0xff] }
 0x8a2   : > { %v6168_v62 = vmax.f32 %v6103_v59, 0.0  ;;  %v6107_v34 = vadd.f32 %v9239_v8, %v5994_v58 }
 0x8a3   : > { %v6231_v29 = vmul.f32 %v6199_v33, %v6167_v31  ;;  %v6344_v30 = vmul.f32 %v6779_v16, %v6167_v31  ;;  %v6169_v32 = vmax.f32 %v6105_v53, 0.0  ;;  %v6784_v16 = vld [vmem:[%s9596_s13 + $0x168] sm:$0xff]  ;;  %v6206_v53 = vld [vmem:[%s9596_s13 + $0x78] sm:$0xff] }
 0x8a4   : > { %v6232_v12 = vmul.f32 %v6200_v5, %v6168_v62  ;;  %v6345_v49 = vmul.f32 %v6780_v50, %v6168_v62  ;;  %v6170_v63 = vmax.f32 %v6107_v34, 0.0  ;;  %v5997_v40 = vpop.f32.mrb[212].mxu1  ;;  %6265 = vadd.xlane.f32.xlu0 %v6264_v6  ;;  %v6785_v6 = vld [vmem:[%s9596_s13 + $0x170] sm:$0xff]  ;;  %v5751_v62 = vpop.permute.xlu1 %5750 }
 0x8a5   : > { %v6233_v41 = vmul.f32 %v6201_v44, %v6169_v32  ;;  %v6346_v23 = vmul.f32 %v6781_v3, %v6169_v32  ;;  %v5998_v8 = vadd.f32 %v5997_v40, %v5741_v45  ;;  %6378 = vadd.xlane.f32.xlu1 %v6377_v52  ;;  %v5999_v42 = vpop.f32.mrb[213].mxu1 }
 0x8a6   : > { %v6234_v61 = vmul.f32 %v6202_v18, %v6170_v63  ;;  %v6347_v43 = vmul.f32 %v6782_v54, %v6170_v63  ;;  %v6000_v35 = vadd.f32 %v5999_v42, %v5741_v45  ;;  %v6001_v25 = vpop.f32.mrb[214].mxu1  ;;  %v6267_v27 = vadd.f32 %v6232_v12, %v6231_v29  ;;  %v5756_v54 = vpop.permute.xlu0 %5755 }
 0x8a7   : > { %v6111_v51 = vadd.f32 %v9241_v10, %v5998_v8  ;;  %v6002_v60 = vadd.f32 %v6001_v25, %v5746_v38  ;;  %v6003_v1 = vpop.f32.mrb[215].mxu1  ;;  %v6380_v46 = vadd.f32 %v6345_v49, %v6344_v30  ;;  %v6204_v10 = vld [vmem:[%s9596_s13 + $0x68] sm:$0xff] }
 0x8a8   : > { %v6113_v7 = vadd.f32 %v9243_v21, %v6000_v35  ;;  %v6004_v56 = vadd.f32 %v6003_v1, %v5746_v38  ;;  %6268 = vadd.xlane.f32.xlu0 %v6267_v27  ;;  %v6270_v2 = vadd.f32 %v6234_v61, %v6233_v41  ;;  %v6383_v48 = vadd.f32 %v6347_v43, %v6346_v23  ;;  %v6205_v21 = vld [vmem:[%s9596_s13 + $0x70] sm:$0xff]  ;;  %v6207_v38 = vld [vmem:[%s9596_s13 + $0x80] sm:$0xff] }
 0x8a9   : > { %v6171_v33 = vmax.f32 %v6111_v51, 0.0  ;;  %v6115_v59 = vadd.f32 %v9245_v0, %v6002_v60  ;;  %6381 = vadd.xlane.f32.xlu1 %v6380_v46  ;;  %v6786_v0 = vld [vmem:[%s9596_s13 + $0x178] sm:$0xff]  ;;  %v6787_v61 = vld [vmem:[%s9596_s13 + $0x180] sm:$0xff]  ;;  %v6788_v60 = vld [vmem:[%s9596_s13 + $0x188] sm:$0xff] }
 0x8aa   : > { %v6172_v58 = vmax.f32 %v6113_v7, 0.0  ;;  %v6117_v52 = vadd.f32 %v9247_v19, %v6004_v56 }
 0x8ab   : > { %v6235_v31 = vmul.f32 %v6203_v47, %v6171_v33  ;;  %v6348_v5 = vmul.f32 %v6783_v24, %v6171_v33  ;;  %v6173_v50 = vmax.f32 %v6115_v59, 0.0  ;;  %v6789_v47 = vld [vmem:[%s9596_s13 + $0x190] sm:$0xff]  ;;  %v5761_v33 = vpop.permute.xlu1 %5760 }
 0x8ac   : > { %v6236_v44 = vmul.f32 %v6204_v10, %v6172_v58  ;;  %v6349_v3 = vmul.f32 %v6784_v16, %v6172_v58  ;;  %v6174_v34 = vmax.f32 %v6117_v52, 0.0  ;;  %v6007_v29 = vpop.f32.mrb[216].mxu1  ;;  %6271 = vadd.xlane.f32.xlu0 %v6270_v2 }
 0x8ad   : > { %v6237_v30 = vmul.f32 %v6205_v21, %v6173_v50  ;;  %v6350_v32 = vmul.f32 %v6785_v6, %v6173_v50  ;;  %v6008_v19 = vadd.f32 %v6007_v29, %v5751_v62  ;;  %6384 = vadd.xlane.f32.xlu1 %v6383_v48  ;;  %v6009_v18 = vpop.f32.mrb[217].mxu1  ;;  %v6210_v48 = vld [vmem:[%s9596_s13 + $0x98] sm:$0xff] }
 0x8ae   : > { %v6238_v45 = vmul.f32 %v6206_v53, %v6174_v34  ;;  %v6351_v12 = vmul.f32 %v6786_v0, %v6174_v34  ;;  %v6010_v49 = vadd.f32 %v6009_v18, %v5751_v62  ;;  %v6011_v63 = vpop.f32.mrb[218].mxu1  ;;  %v6273_v40 = vadd.f32 %v6236_v44, %v6235_v31  ;;  %v5766_v31 = vpop.permute.xlu0 %5765 }
 0x8af   : > { %v6121_v41 = vadd.f32 %v9249_v20, %v6008_v19  ;;  %v6012_v23 = vadd.f32 %v6011_v63, %v5756_v54  ;;  %v6013_v8 = vpop.f32.mrb[219].mxu1  ;;  %v6386_v42 = vadd.f32 %v6349_v3, %v6348_v5  ;;  %v6208_v20 = vld [vmem:[%s9596_s13 + $0x88] sm:$0xff] }
 0x8b0   : > { %v6123_v43 = vadd.f32 %v9251_v26, %v6010_v49  ;;  %v6014_v35 = vadd.f32 %v6013_v8, %v5756_v54  ;;  %6274 = vadd.xlane.f32.xlu0 %v6273_v40  ;;  %v6276_v25 = vadd.f32 %v6238_v45, %v6237_v30  ;;  %v6389_v27 = vadd.f32 %v6351_v12, %v6350_v32  ;;  %v6209_v26 = vld [vmem:[%s9596_s13 + $0x90] sm:$0xff]  ;;  %v6211_v30 = vld [vmem:[%s9596_s13 + $0xa0] sm:$0xff]  ;;  %v6792_v49 = vld [vmem:[%s9596_s13 + $0x1a8] sm:$0xff] }
 0x8b1   : > { %v6175_v51 = vmax.f32 %v6121_v41, 0.0  ;;  %v6125_v1 = vadd.f32 %v9253_v4, %v6012_v23  ;;  %6387 = vadd.xlane.f32.xlu1 %v6386_v42  ;;  %v6790_v4 = vld [vmem:[%s9596_s13 + $0x198] sm:$0xff]  ;;  %v6791_v32 = vld [vmem:[%s9596_s13 + $0x1a0] sm:$0xff]  ;;  %v6793_v41 = vld [vmem:[%s9596_s13 + $0x1b0] sm:$0xff] }
 0x8b2   : > { %v6176_v46 = vmax.f32 %v6123_v43, 0.0  ;;  %v6127_v24 = vadd.f32 %v9255_v14, %v6014_v35  ;;  %v5771_v43 = vpop.permute.xlu1 %5770 }
 0x8b3   : > { %v6239_v7 = vmul.f32 %v6207_v38, %v6175_v51  ;;  %v6352_v56 = vmul.f32 %v6787_v61, %v6175_v51  ;;  %v6177_v2 = vmax.f32 %v6125_v1, 0.0  ;;  %v6214_v61 = vld [vmem:[%s9596_s13 + $0xb8] sm:$0xff] }
 0x8b4   : > { %v6240_v10 = vmul.f32 %v6208_v20, %v6176_v46  ;;  %v6353_v16 = vmul.f32 %v6788_v60, %v6176_v46  ;;  %v6178_v59 = vmax.f32 %v6127_v24, 0.0  ;;  %v6017_v58 = vpop.f32.mrb[220].mxu1  ;;  %6277 = vadd.xlane.f32.xlu0 %v6276_v25  ;;  %v5776_v46 = vpop.permute.xlu0 %5775 }
 0x8b5   : > { %v6241_v21 = vmul.f32 %v6209_v26, %v6177_v2  ;;  %v6354_v6 = vmul.f32 %v6789_v47, %v6177_v2  ;;  %v6018_v14 = vadd.f32 %v6017_v58, %v5761_v33  ;;  %6390 = vadd.xlane.f32.xlu1 %v6389_v27  ;;  %v6019_v52 = vpop.f32.mrb[221].mxu1 }
 0x8b6   : > { %v6242_v5 = vmul.f32 %v6210_v48, %v6178_v59  ;;  %v6355_v50 = vmul.f32 %v6790_v4, %v6178_v59  ;;  %v6020_v53 = vadd.f32 %v6019_v52, %v5761_v33  ;;  %v6021_v0 = vpop.f32.mrb[222].mxu1  ;;  %v6279_v62 = vadd.f32 %v6240_v10, %v6239_v7  ;;  %v6215_v10 = vld [vmem:[%s9596_s13 + $0xc0] sm:$0xff]  ;;  %v6796_v52 = vld [vmem:[%s9596_s13 + $0x1c8] sm:$0xff] }
 0x8b7   : > { %v6131_v44 = vadd.f32 %v9257_v11, %v6018_v14  ;;  %v6022_v3 = vadd.f32 %v6021_v0, %v5766_v31  ;;  %v6023_v34 = vpop.f32.mrb[223].mxu1  ;;  %v6392_v29 = vadd.f32 %v6353_v16, %v6352_v56  ;;  %v6212_v11 = vld [vmem:[%s9596_s13 + $0xa8] sm:$0xff]  ;;  %v6795_v16 = vld [vmem:[%s9596_s13 + $0x1c0] sm:$0xff] }
 0x8b8   : > { %v6133_v19 = vadd.f32 %v9259_v22, %v6020_v53  ;;  %v6024_v18 = vadd.f32 %v6023_v34, %v5766_v31  ;;  %6280 = vadd.xlane.f32.xlu0 %v6279_v62  ;;  %v6282_v54 = vadd.f32 %v6242_v5, %v6241_v21  ;;  %v6395_v45 = vadd.f32 %v6355_v50, %v6354_v6  ;;  %v6213_v22 = vld [vmem:[%s9596_s13 + $0xb0] sm:$0xff]  ;;  %v5781_v34 = vpop.permute.xlu1 %5780 }
 0x8b9   : > { %v6179_v12 = vmax.f32 %v6131_v44, 0.0  ;;  %v6135_v63 = vadd.f32 %v9261_v57, %v6022_v3  ;;  %6393 = vadd.xlane.f32.xlu1 %v6392_v29  ;;  %v6794_v57 = vld [vmem:[%s9596_s13 + $0x1b8] sm:$0xff]  ;;  %v6797_v50 = vld [vmem:[%s9596_s13 + $0x1d0] sm:$0xff] }
 0x8ba   : > { %v6180_v40 = vmax.f32 %v6133_v19, 0.0  ;;  %v6137_v23 = vadd.f32 %v9263_v9, %v6024_v18  ;;  %v6218_v3 = vld [vmem:[%s9596_s13 + $0xd8] sm:$0xff] }
 0x8bb   : > { %v6243_v8 = vmul.f32 %v6211_v30, %v6179_v12  ;;  %v6356_v42 = vmul.f32 %v6791_v32, %v6179_v12  ;;  %v6181_v38 = vmax.f32 %v6135_v63, 0.0  ;;  %v5786_v12 = vpop.permute.xlu0 %5785 }
 0x8bc   : > { %v6244_v35 = vmul.f32 %v6212_v11, %v6180_v40  ;;  %v6357_v25 = vmul.f32 %v6792_v49, %v6180_v40  ;;  %v6182_v27 = vmax.f32 %v6137_v23, 0.0  ;;  %v6027_v51 = vpop.f32.mrb[224].mxu1  ;;  %6283 = vadd.xlane.f32.xlu0 %v6282_v54 }
 0x8bd   : > { %v6245_v20 = vmul.f32 %v6213_v22, %v6181_v38  ;;  %v6358_v60 = vmul.f32 %v6793_v41, %v6181_v38  ;;  %v6028_v9 = vadd.f32 %v6027_v51, %v5771_v43  ;;  %6396 = vadd.xlane.f32.xlu1 %v6395_v45  ;;  %v6029_v1 = vpop.f32.mrb[225].mxu1  ;;  %v6219_v38 = vld [vmem:[%s9596_s13 + $0xe0] sm:$0xff]  ;;  %v6800_v51 = vld [vmem:[%s9596_s13 + $0x1e8] sm:$0xff] }
 0x8be   : > { %v6246_v26 = vmul.f32 %v6214_v61, %v6182_v27  ;;  %v6359_v47 = vmul.f32 %v6794_v57, %v6182_v27  ;;  %v6030_v24 = vadd.f32 %v6029_v1, %v5771_v43  ;;  %v6031_v7 = vpop.f32.mrb[226].mxu1  ;;  %v6285_v56 = vadd.f32 %v6244_v35, %v6243_v8  ;;  %v6799_v61 = vld [vmem:[%s9596_s13 + $0x1e0] sm:$0xff] }
 0x8bf   : > { %v6141_v2 = vadd.f32 %v9265_v37, %v6028_v9  ;;  %v6032_v48 = vadd.f32 %v6031_v7, %v5776_v46  ;;  %v6033_v4 = vpop.f32.mrb[227].mxu1  ;;  %v6398_v33 = vadd.f32 %v6357_v25, %v6356_v42  ;;  %v6216_v37 = vld [vmem:[%s9596_s13 + $0xc8] sm:$0xff]  ;;  %v6801_v9 = vld [vmem:[%s9596_s13 + $0x1f0] sm:$0xff] }
 0x8c0   : > { %v6143_v59 = vadd.f32 %v9267_v15, %v6030_v24  ;;  %v6034_v58 = vadd.f32 %v6033_v4, %v5776_v46  ;;  %6286 = vadd.xlane.f32.xlu0 %v6285_v56  ;;  %v6288_v21 = vadd.f32 %v6246_v26, %v6245_v20  ;;  %v6401_v6 = vadd.f32 %v6359_v47, %v6358_v60  ;;  %v6217_v15 = vld [vmem:[%s9596_s13 + $0xd0] sm:$0xff]  ;;  %v6222_v24 = vld [vmem:[%s9596_s13 + $0xf8] sm:$0xff] }
 0x8c1   : > { %v6183_v14 = vmax.f32 %v6141_v2, 0.0  ;;  %v6145_v31 = vadd.f32 %v9269_v13, %v6032_v48  ;;  %6399 = vadd.xlane.f32.xlu1 %v6398_v33  ;;  %v6798_v13 = vld [vmem:[%s9596_s13 + $0x1d8] sm:$0xff] }
 0x8c2   : > { %v6184_v5 = vmax.f32 %v6143_v59, 0.0  ;;  %v6147_v53 = vadd.f32 %v9271_v36, %v6034_v58 }
 0x8c3   : > { %v6247_v0 = vmul.f32 %v6215_v10, %v6183_v14  ;;  %v6360_v62 = vmul.f32 %v6795_v16, %v6183_v14  ;;  %v6185_v44 = vmax.f32 %v6145_v31, 0.0 }
 0x8c4   : > { %v6248_v29 = vmul.f32 %v6216_v37, %v6184_v5  ;;  %v6361_v30 = vmul.f32 %v6796_v52, %v6184_v5  ;;  %v6186_v32 = vmax.f32 %v6147_v53, 0.0  ;;  %v6037_v19 = vpop.f32.mrb[228].mxu1  ;;  %6289 = vadd.xlane.f32.xlu0 %v6288_v21 }
 0x8c5   : > { %v6249_v18 = vmul.f32 %v6217_v15, %v6185_v44  ;;  %v6362_v54 = vmul.f32 %v6797_v50, %v6185_v44  ;;  %v6038_v36 = vadd.f32 %v6037_v19, %v5781_v34  ;;  %6402 = vadd.xlane.f32.xlu1 %v6401_v6  ;;  %v6039_v45 = vpop.f32.mrb[229].mxu1 }
 0x8c6   : > { %v6250_v11 = vmul.f32 %v6218_v3, %v6186_v32  ;;  %v6363_v49 = vmul.f32 %v6798_v13, %v6186_v32  ;;  %v6040_v63 = vadd.f32 %v6039_v45, %v5781_v34  ;;  %v6041_v40 = vpop.f32.mrb[230].mxu1  ;;  %v6291_v22 = vadd.f32 %v6248_v29, %v6247_v0 }
 0x8c7   : > { %v6151_v41 = vadd.f32 %v9273_v17, %v6038_v36  ;;  %v6042_v23 = vadd.f32 %v6041_v40, %v5786_v12  ;;  %v6043_v8 = vpop.f32.mrb[231].mxu1  ;;  %v6404_v42 = vadd.f32 %v6361_v30, %v6360_v62  ;;  %v6220_v17 = vld [vmem:[%s9596_s13 + $0xe8] sm:$0xff] }
 0x8c8   : > { %v6153_v57 = vadd.f32 %v9275_v55, %v6040_v63  ;;  %v6044_v43 = vadd.f32 %v6043_v8, %v5786_v12  ;;  %6292 = vadd.xlane.f32.xlu0 %v6291_v22  ;;  %v6294_v35 = vadd.f32 %v6250_v11, %v6249_v18  ;;  %v6407_v25 = vadd.f32 %v6363_v49, %v6362_v54  ;;  %v6221_v55 = vld [vmem:[%s9596_s13 + $0xf0] sm:$0xff] }
 0x8c9   : > { %v6187_v27 = vmax.f32 %v6151_v41, 0.0  ;;  %v6155_v20 = vadd.f32 %v9277_v28, %v6042_v23  ;;  %6405 = vadd.xlane.f32.xlu1 %v6404_v42  ;;  %v6802_v28 = vld [vmem:[%s9596_s13 + $0x1f8] sm:$0xff] }
 0x8ca   : > { %v6188_v60 = vmax.f32 %v6153_v57, 0.0  ;;  %v6157_v1 = vadd.f32 %v9279_v39, %v6044_v43 }
 0x8cb   : > { %v6251_v46 = vmul.f32 %v6219_v38, %v6187_v27  ;;  %v6364_v26 = vmul.f32 %v6799_v61, %v6187_v27  ;;  %v6189_v47 = vmax.f32 %v6155_v20, 0.0 }
 0x8cc   : > { %v6252_v7 = vmul.f32 %v6220_v17, %v6188_v60  ;;  %v6365_v56 = vmul.f32 %v6800_v51, %v6188_v60  ;;  %v6190_v2 = vmax.f32 %v6157_v1, 0.0  ;;  %6295 = vadd.xlane.f32.xlu0 %v6294_v35 }
 0x8cd   : > { %v6253_v48 = vmul.f32 %v6221_v55, %v6189_v47  ;;  %v6366_v4 = vmul.f32 %v6801_v9, %v6189_v47  ;;  %6408 = vadd.xlane.f32.xlu1 %v6407_v25 }
 0x8ce   : > { %v6254_v33 = vmul.f32 %v6222_v24, %v6190_v2  ;;  %v6367_v39 = vmul.f32 %v6802_v28, %v6190_v2  ;;  %v6297_v10 = vadd.f32 %v6252_v7, %v6251_v46  ;;  %v6410_v16 = vadd.f32 %v6365_v56, %v6364_v26 }
 0x8d0   : > { %6298 = vadd.xlane.f32.xlu0 %v6297_v10  ;;  %v6300_v59 = vadd.f32 %v6254_v33, %v6253_v48  ;;  %v6413_v58 = vadd.f32 %v6367_v39, %v6366_v4 }
 0x8d1   : > { %6411 = vadd.xlane.f32.xlu1 %v6410_v16 }
 0x8d4   : > { %6301 = vadd.xlane.f32.xlu0 %v6300_v59 }
 0x8d5   : > { %6414 = vadd.xlane.f32.xlu1 %v6413_v58 }
 0x925   : > { %v6370_v21 = vpop.xlane.xlu0 %6369 }
 0x926   : > { %v6257_v6 = vpop.xlane.xlu1 %6256 }
 0x927   : > { %v6416_v30 = vsel %vm971_vm1, %v6257_v6, %v6370_v21 }
 0x928   : > { %v6433_v45 = vsel %vm6432_vm8, %v6416_v30, 0.0 }
 0x929   : > { %v6260_v14 = vpop.xlane.xlu0 %6259 }
 0x92a   : > { %v6373_v37 = vpop.xlane.xlu1 %6372 }
 0x92b   : > { %v6417_v29 = vsel %vm971_vm1, %v6260_v14, %v6373_v37 }
 0x92c   : > { %v6434_v18 = vsel %vm6432_vm8, %v6417_v29, 0.0 }
 0x92d   : > { %v6263_v52 = vpop.xlane.xlu0 %6262  ;;  %v6435_v11 = vadd.f32 %v6434_v18, %v6433_v45  ;;  %v6470_v18 = vld [vmem:[%s9597_s14] sm:$0x1] }
 0x92e   : > { %v6376_v31 = vpop.xlane.xlu1 %6375 }
 0x92f   : > { %v6418_v32 = vsel %vm971_vm1, %v6263_v52, %v6376_v31 }
 0x930   : > { %v6436_v12 = vsel %vm6432_vm8, %v6418_v32, 0.0 }
 0x931   : > { %v6266_v5 = vpop.xlane.xlu0 %6265  ;;  %v6437_v41 = vadd.f32 %v6436_v12, %v6435_v11 }
 0x932   : > { %v6379_v15 = vpop.xlane.xlu1 %6378 }
 0x933   : > { %v6419_v36 = vsel %vm971_vm1, %v6266_v5, %v6379_v15 }
 0x934   : > { %v6438_v40 = vsel %vm6432_vm8, %v6419_v36, 0.0 }
 0x935   : > { %v6269_v50 = vpop.xlane.xlu0 %6268  ;;  %v6439_v42 = vadd.f32 %v6438_v40, %v6437_v41 }
 0x936   : > { %v6382_v53 = vpop.xlane.xlu1 %6381 }
 0x937   : > { %v6420_v49 = vsel %vm971_vm1, %v6269_v50, %v6382_v53 }
 0x938   : > { %v6440_v8 = vsel %vm6432_vm8, %v6420_v49, 0.0 }
 0x939   : > { %v6272_v0 = vpop.xlane.xlu0 %6271  ;;  %v6441_v35 = vadd.f32 %v6440_v8, %v6439_v42 }
 0x93a   : > { %v6385_v62 = vpop.xlane.xlu1 %6384 }
 0x93b   : > { %v6421_v23 = vsel %vm971_vm1, %v6272_v0, %v6385_v62 }
 0x93c   : > { %v6442_v57 = vsel %vm6432_vm8, %v6421_v23, 0.0 }
 0x93d   : > { %v6275_v44 = vpop.xlane.xlu0 %6274  ;;  %v6443_v17 = vadd.f32 %v6442_v57, %v6441_v35 }
 0x93e   : > { %v6388_v3 = vpop.xlane.xlu1 %6387 }
 0x93f   : > { %v6422_v38 = vsel %vm971_vm1, %v6275_v44, %v6388_v3 }
 0x940   : > { %v6444_v27 = vsel %vm6432_vm8, %v6422_v38, 0.0 }
 0x941   : > { %v6278_v13 = vpop.xlane.xlu0 %6277  ;;  %v6445_v9 = vadd.f32 %v6444_v27, %v6443_v17 }
 0x942   : > { %v6391_v34 = vpop.xlane.xlu1 %6390 }
 0x943   : > { %v6423_v25 = vsel %vm971_vm1, %v6278_v13, %v6391_v34 }
 0x944   : > { %v6446_v60 = vsel %vm6432_vm8, %v6423_v25, 0.0 }
 0x945   : > { %v6281_v19 = vpop.xlane.xlu0 %6280  ;;  %v6447_v26 = vadd.f32 %v6446_v60, %v6445_v9 }
 0x946   : > { %v6394_v54 = vpop.xlane.xlu1 %6393 }
 0x947   : > { %v6424_v51 = vsel %vm971_vm1, %v6281_v19, %v6394_v54 }
 0x948   : > { %v6448_v46 = vsel %vm6432_vm8, %v6424_v51, 0.0 }
 0x949   : > { %v6284_v63 = vpop.xlane.xlu0 %6283  ;;  %v6449_v56 = vadd.f32 %v6448_v46, %v6447_v26 }
 0x94a   : > { %v6397_v22 = vpop.xlane.xlu1 %6396 }
 0x94b   : > { %v6425_v1 = vsel %vm971_vm1, %v6284_v63, %v6397_v22 }
 0x94c   : > { %v6450_v28 = vsel %vm6432_vm8, %v6425_v1, 0.0 }
 0x94d   : > { %v6287_v61 = vpop.xlane.xlu0 %6286  ;;  %v6451_v4 = vadd.f32 %v6450_v28, %v6449_v56 }
 0x94e   : > { %v6400_v43 = vpop.xlane.xlu1 %6399 }
 0x94f   : > { %v6426_v47 = vsel %vm971_vm1, %v6287_v61, %v6400_v43 }
 0x950   : > { %v6452_v48 = vsel %vm6432_vm8, %v6426_v47, 0.0 }
 0x951   : > { %v6290_v20 = vpop.xlane.xlu0 %6289  ;;  %v6453_v59 = vadd.f32 %v6452_v48, %v6451_v4 }
 0x952   : > { %v6403_v55 = vpop.xlane.xlu1 %6402 }
 0x953   : > { %v6427_v2 = vsel %vm971_vm1, %v6290_v20, %v6403_v55 }
 0x954   : > { %v6454_v10 = vsel %vm6432_vm8, %v6427_v2, 0.0 }
 0x955   : > { %v6293_v24 = vpop.xlane.xlu0 %6292  ;;  %v6455_v6 = vadd.f32 %v6454_v10, %v6453_v59 }
 0x956   : > { %v6406_v7 = vpop.xlane.xlu1 %6405 }
 0x957   : > { %v6428_v33 = vsel %vm971_vm1, %v6293_v24, %v6406_v7 }
 0x958   : > { %v6456_v21 = vsel %vm6432_vm8, %v6428_v33, 0.0 }
 0x959   : > { %v6296_v39 = vpop.xlane.xlu0 %6295  ;;  %v6457_v31 = vadd.f32 %v6456_v21, %v6455_v6 }
 0x95a   : > { %v6409_v16 = vpop.xlane.xlu1 %6408 }
 0x95b   : > { %v6429_v58 = vsel %vm971_vm1, %v6296_v39, %v6409_v16 }
 0x95c   : > { %v6458_v37 = vsel %vm6432_vm8, %v6429_v58, 0.0 }
 0x95d   : > { %v6299_v14 = vpop.xlane.xlu0 %6298  ;;  %v6459_v50 = vadd.f32 %v6458_v37, %v6457_v31 }
 0x95e   : > { %v6412_v52 = vpop.xlane.xlu1 %6411 }
 0x95f   : > { %v6430_v5 = vsel %vm971_vm1, %v6299_v14, %v6412_v52 }
 0x960   : > { %v6460_v15 = vsel %vm6432_vm8, %v6430_v5, 0.0 }
 0x961   : > { %v6302_v53 = vpop.xlane.xlu0 %6301  ;;  %v6461_v62 = vadd.f32 %v6460_v15, %v6459_v50 }
 0x962   : > { %v6415_v0 = vpop.xlane.xlu1 %6414 }
 0x963   : > { %v6431_v44 = vsel %vm971_vm1, %v6302_v53, %v6415_v0 }
 0x964   : > { %v6462_v3 = vsel %vm6432_vm8, %v6431_v44, 0.0 }
 0x965   : > { %v6463_v13 = vadd.f32 %v6462_v3, %v6461_v62 }
 0x967   : > { %v6464_v34 = vrot.slane %v6463_v13, 4 }
 0x969   : > { %v6465_v29 = vadd.f32 %v6464_v34, %v6463_v13 }
 0x96b   : > { %v6466_v30 = vrot.slane %v6465_v29, 2 }
 0x96d   : > { %v6467_v32 = vadd.f32 %v6466_v30, %v6465_v29 }
 0x96f   : > { %v6468_v19 = vrot.slane %v6467_v32, 1 }
 0x971   : > { %v6469_v54 = vadd.f32 %v6468_v19, %v6467_v32 }
 0x973   : > { %v6471_v36 = vadd.f32 %v6470_v18, %v6469_v54 }
 0x975   : > { %6473 = vst.msk [vmem:[%s486_s27] sm:$0x1] %vm6472_vm9, %v6471_v36 }
 0x976   : > { %7035 = shalt.err (!%p7032_p3)
}
 0x977   : > { %s7036_s0 = scalar_lea.hbm %s9541_s25, 16  ;;  %s7040_s17 = scalar_lea.hbm %s9598_s15, 32 }
 0x978   : > { %p7037_p4 = scmp.ne.s32.totalorder %s9541_s25, %s7036_s0  ;;  %p7041_p9 = scmp.lt.u32.totalorder %s9541_s25, %s9598_s15 }
 0x979   : > { %p7042_p10 = scmp.lt.u32.totalorder %s7040_s17, %s7036_s0  ;;  %p7044_p12 = scmp.lt.u32.totalorder %s7036_s0, %s9541_s25 }
 0x97a   : > { %p7038_p7 = pnand %p7037_p4, %p7208_p5 }
 0x97b   : > { %p7043_p11 = por %p7042_p10, %p7041_p9 }
 0x97c   : > { %p7039_p8 = pneg %p7038_p7 }
 0x97d   : > { %p7045_p13 = por %p7044_p12, %p7043_p11 }
 0x97f   : > { %p7046_p0 = pnand %p7045_p13, %p7039_p8 }
 0x981   : > { %7049 = shalt.err (!%p7046_p0)
}
 0x982   : > { %6909 = dma.vmem_to_hbm [thread:$0]  (%p7208_p5), %s9543_s16, 16, %s9541_s25, %s6475_s26  }
 0x983 PF: > { %p6915_p1 = scmp.ge.s32.totalorder %s7084_s21, 2  ;;  %s6499_s1 = sand.u32 1, %s7072_s18  }
 0x984   : > { %s6500_s30 = scalar_lea.sflag [#allocation9], %s6499_s1 }
 0x985   : > { %p6912_p2 = pnand %p6915_p1, %p7212_p6 }
 0x987   : > { %7067 = dma.done.wait (!%p6912_p2), %s6500_s30, 16  }
 0x988   : > { %7069 = vsyncadd (!%p6912_p2), %s6500_s30, 4294967280  ;;  %s9641_s21 = sld [smem:[#allocation12_spill]]  ;;  %s9642_s20 = sld [smem:[#allocation11_spill]] }
 0x989   : > { %s9643_s0 = sld [smem:[#allocation13_spill]]  ;;  %s9644_s18 = smov %s7076_s19 }
 0x98e   : > { %p25_p3 = scmp.ge.s32.totalorder %s9641_s21, 4   ;;  %s9645_s19 = smov %s9642_s20 }
 0x98f   : > { %s9646_s20 = smov %s9643_s0 }
 0x990   :  { %27 = sbr.rel (!%p25_p3) target bundleno = 6 (0x6), region = 116 }
 0x997   :  { %6504 = vsyncpa [#allocation9], 1 }
 0x998   :  { %6506 = vsyncpa [#allocation9 + $0x1], 1 }

</bundles_post_ra>
